<compile_context>
chip_gen: v7x
topology: tpu7x:2x2x1
jax: 0.10.0
libtpu: 0.0.40
codegen_flags: <defaults>
</compile_context>

<pallas_src>
import jax
import jax.numpy as jnp
from jax import lax
from jax.experimental import pallas as pl
from jax.experimental.pallas import tpu as pltpu

LP = 8  # left column padding inside padded scratches (interior col offset is 8-aligned)


# ----------------------------- fused forward kernel -----------------------------
def _fused_kernel(x_ref, w1_ref, b1_ref, w2_ref, b2_ref, w3_ref, b3_ref,
                  wf1_ref, bf1_ref, wf2_ref, bf2_ref, o_ref,
                  xp1, xp2, xp3, acc1, acc2, acc3):
    f32 = jnp.float32

    # Zero the padded-input scratches (their borders provide the conv SAME padding).
    xp1[...] = jnp.zeros_like(xp1)
    xp2[...] = jnp.zeros_like(xp2)
    xp3[...] = jnp.zeros_like(xp3)

    # Place the 32x32x3 image in xp1's interior: rows [2, 34), cols [LP, LP+32).
    xp1[pl.ds(2, 32), pl.ds(LP, 32), :] = x_ref[0].astype(f32)

    def conv_pool_band(xp_ref, w_ref, bias_ref, acc_ref, y0):
        """5x5 SAME conv + bias + 2x2 maxpool for RB output rows starting at y0.

        xp_ref : (Hp, Wp, Cin) zero-padded input (interior rows start at 2, cols at LP)
        w_ref  : (25, Cin, Cout) tap-major weights
        acc_ref: (RB, W, Cout) f32 accumulator scratch
        returns pooled (RB//2, W//2, Cout) f32 value (bias already added).
        """
        RB, W, Cout = acc_ref.shape
        Cin = xp_ref.shape[-1]
        # 25 per-tap whole-band matmuls; taps of one kernel row are summed in
        # registers, so the VMEM accumulator sees only 5 passes per band.
        for ky in range(5):
            g = None
            for kx in range(5):
                k = ky * 5 + kx
                patch = xp_ref[pl.ds(y0 + ky, RB), pl.ds(LP - 2 + kx, W), :]   # (RB, W, Cin)
                d = jnp.dot(patch.reshape(RB * W, Cin), w_ref[k],
                            preferred_element_type=f32)                        # (RB*W, Cout)
                g = d if g is None else g + d
            g = g.reshape(RB, W, Cout)
            if ky == 0:
                acc_ref[...] = g
            else:
                acc_ref[...] += g
        # Fused 2x2 max-pool: horizontal pairs via stride-2 VMEM reads,
        # vertical pairs via a leading-dim split; bias added on the pooled tile.
        RBo, Wo = RB // 2, W // 2
        hmax = jnp.maximum(acc_ref[:, pl.ds(0, Wo, 2), :],
                           acc_ref[:, pl.ds(1, Wo, 2), :]).reshape(RBo, 2, Wo, Cout)
        return jnp.maximum(hmax[:, 0], hmax[:, 1]) + bias_ref[...]

    # conv1 (3->32) + pool : 8 bands of 4 output rows -> xp2 interior (16x16x32)
    def band1(b, c):
        pooled = conv_pool_band(xp1, w1_ref, b1_ref, acc1, b * 4)    # (2, 16, 32)
        xp2[pl.ds(2 + b * 2, 2), pl.ds(LP, 16), :] = pooled
        return c
    lax.fori_loop(0, 8, band1, 0)

    # conv2 (32->32) + pool : 2 bands of 8 output rows -> xp3 interior (8x8x32)
    def band2(b, c):
        pooled = conv_pool_band(xp2, w2_ref, b2_ref, acc2, b * 8)    # (4, 8, 32)
        xp3[pl.ds(2 + b * 4, 4), pl.ds(LP, 8), :] = pooled
        return c
    lax.fori_loop(0, 2, band2, 0)

    # conv3 (32->64) + pool : a single 8-row band; pooled (4,4,64) stays in registers
    pooled3 = conv_pool_band(xp3, w3_ref, b3_ref, acc3, 0)           # (4, 4, 64)

    # Flatten (NCHW order folded into the repacked fc1 weight) + the two Linears.
    y = bf1_ref[...].astype(f32)                                      # (1, 64)
    for r in range(16):
        hh, ww = divmod(r, 4)
        y = y + jnp.dot(pooled3[hh, ww:ww + 1, :], wf1_ref[r],
                        preferred_element_type=f32)
    logits = jnp.dot(y, wf2_ref[...], preferred_element_type=f32) + bf2_ref[...]
    o_ref[0] = logits.astype(o_ref.dtype)


# ----------------------------- wrapper -----------------------------
@jax.jit
def my_layers_forward(x_nchw, q):
    """x_nchw: (N, 3, 32, 32) like PyTorch; q: packed params (see pack_params)."""
    N, C, H, W = x_nchw.shape
    assert (C, H, W) == (3, 32, 32)
    x = jnp.transpose(x_nchw, (0, 2, 3, 1))                 # NCHW -> NHWC (boundary glue)

    out = pl.pallas_call(
        _fused_kernel,
        out_shape=jax.ShapeDtypeStruct((N, 1, 10), jnp.float32),
        grid=(N,),
        in_specs=[
            pl.BlockSpec((1, 32, 32, 3), lambda n: (n, 0, 0, 0)),   # image
            pl.BlockSpec((25, 3, 32), lambda n: (0, 0, 0)),         # w1
            pl.BlockSpec((1, 32), lambda n: (0, 0)),                # b1
            pl.BlockSpec((25, 32, 32), lambda n: (0, 0, 0)),        # w2
            pl.BlockSpec((1, 32), lambda n: (0, 0)),                # b2
            pl.BlockSpec((25, 32, 64), lambda n: (0, 0, 0)),        # w3
            pl.BlockSpec((1, 64), lambda n: (0, 0)),                # b3
            pl.BlockSpec((16, 64, 64), lambda n: (0, 0, 0)),        # wf1 (r, c, o)
            pl.BlockSpec((1, 64), lambda n: (0, 0)),                # bf1
            pl.BlockSpec((64, 10), lambda n: (0, 0)),               # wf2
            pl.BlockSpec((1, 10), lambda n: (0, 0)),                # bf2
        ],
        out_specs=pl.BlockSpec((1, 1, 10), lambda n: (n, 0, 0)),
        scratch_shapes=[
            pltpu.VMEM((36, 42, 3), jnp.float32),    # padded conv1 input
            pltpu.VMEM((20, 26, 32), jnp.float32),   # padded conv2 input
            pltpu.VMEM((12, 18, 32), jnp.float32),   # padded conv3 input
            pltpu.VMEM((4, 32, 32), jnp.float32),    # conv1 band accumulator
            pltpu.VMEM((8, 16, 32), jnp.float32),    # conv2 band accumulator
            pltpu.VMEM((8, 8, 64), jnp.float32),     # conv3 accumulator
        ],
        compiler_params=pltpu.CompilerParams(
            dimension_semantics=("parallel",),
            vmem_limit_bytes=32 * 1024 * 1024),
    )(x, q["w1"], q["b1"], q["w2"], q["b2"], q["w3"], q["b3"],
      q["wf1"], q["bf1"], q["wf2"], q["bf2"])
    return out.reshape(N, 10)


def pack_params(p):
    """Repack torch-layout params once (outside the hot path)."""
    def conv_w(w):  # (Cout, Cin, 5, 5) -> (25, Cin, Cout), tap-major k = ky*5 + kx
        co, ci = w.shape[0], w.shape[1]
        return jnp.transpose(w, (2, 3, 1, 0)).reshape(25, ci, co)
    # fc1: torch (64, 1024) with input index c*16 + h*4 + w  ->  (16, 64, 64) = [r=h*4+w, c, o]
    wf1r = p["wf1"].reshape(64, 64, 4, 4).transpose(2, 3, 1, 0).reshape(16, 64, 64)
    return {
        "w1": conv_w(p["w1"]), "b1": p["b1"].reshape(1, -1),
        "w2": conv_w(p["w2"]), "b2": p["b2"].reshape(1, -1),
        "w3": conv_w(p["w3"]), "b3": p["b3"].reshape(1, -1),
        "wf1": wf1r, "bf1": p["bf1"].reshape(1, -1),
        "wf2": p["wf2"].T, "bf2": p["bf2"].reshape(1, -1),
    }


# ----------------------------- pure-JAX reference (torch layout) -----------------------------
def reference_forward(x, p):
    def conv(x, w, b):
        y = lax.conv_general_dilated(x, w, (1, 1), ((2, 2), (2, 2)),
                                     dimension_numbers=("NCHW", "OIHW", "NCHW"))
        return y + b[None, :, None, None]

    def pool(x):
        return jnp.maximum(jnp.maximum(x[:, :, 0::2, 0::2], x[:, :, 0::2, 1::2]),
                           jnp.maximum(x[:, :, 1::2, 0::2], x[:, :, 1::2, 1::2]))

    x = pool(conv(x, p["w1"], p["b1"]))
    x = pool(conv(x, p["w2"], p["b2"]))
    x = pool(conv(x, p["w3"], p["b3"]))
    x = x.reshape(x.shape[0], -1)
    x = x @ p["wf1"].T + p["bf1"]
    x = x @ p["wf2"].T + p["bf2"]
    return x


def init_params(key):
    ks = jax.random.split(key, 10)
    s = 0.05
    rnd = lambda k, shp: s * jax.random.normal(k, shp, jnp.float32)
    return {
        "w1": rnd(ks[0], (32, 3, 5, 5)),  "b1": rnd(ks[1], (32,)),
        "w2": rnd(ks[2], (32, 32, 5, 5)), "b2": rnd(ks[3], (32,)),
        "w3": rnd(ks[4], (64, 32, 5, 5)), "b3": rnd(ks[5], (64,)),
        "wf1": rnd(ks[6], (64, 1024)),    "bf1": rnd(ks[7], (64,)),
        "wf2": rnd(ks[8], (10, 64)),      "bf2": rnd(ks[9], (10,)),
    }


if __name__ == "__main__":
    key = jax.random.PRNGKey(0)
    kp, kx = jax.random.split(key)
    params = init_params(kp)
    packed = pack_params(params)
    x = jax.random.normal(kx, (2, 3, 32, 32), jnp.float32)   # NCHW like PyTorch

    out = my_layers_forward(x, packed)
    out = jax.block_until_ready(out)
    assert out.shape == (2, 10), out.shape

    ref = reference_forward(x, params)
    assert jnp.allclose(out, ref, atol=1e-4, rtol=1e-4), (
        float(jnp.max(jnp.abs(out - ref))))

    print("KERNEL_OK")
</pallas_src>

<mosaic_0001>
module attributes {stable_mosaic.version = 11 : i64} {
  func.func @_fused_kernel(%arg0: i32, %arg1: memref<1x32x32x3xf32, #tpu.memory_space<vmem>>, %arg2: memref<25x3x32xf32, #tpu.memory_space<vmem>>, %arg3: memref<1x32xf32, #tpu.memory_space<vmem>>, %arg4: memref<25x32x32xf32, #tpu.memory_space<vmem>>, %arg5: memref<1x32xf32, #tpu.memory_space<vmem>>, %arg6: memref<25x32x64xf32, #tpu.memory_space<vmem>>, %arg7: memref<1x64xf32, #tpu.memory_space<vmem>>, %arg8: memref<16x64x64xf32, #tpu.memory_space<vmem>>, %arg9: memref<1x64xf32, #tpu.memory_space<vmem>>, %arg10: memref<64x10xf32, #tpu.memory_space<vmem>>, %arg11: memref<1x10xf32, #tpu.memory_space<vmem>>, %arg12: memref<1x1x10xf32, #tpu.memory_space<vmem>>, %arg13: memref<36x42x3xf32, #tpu.memory_space<vmem>>, %arg14: memref<20x26x32xf32, #tpu.memory_space<vmem>>, %arg15: memref<12x18x32xf32, #tpu.memory_space<vmem>>, %arg16: memref<4x32x32xf32, #tpu.memory_space<vmem>>, %arg17: memref<8x16x32xf32, #tpu.memory_space<vmem>>, %arg18: memref<8x8x64xf32, #tpu.memory_space<vmem>>) attributes {dimension_semantics = [#tpu.dimension_semantics<parallel>], iteration_bounds = array<i64: 2>, scalar_prefetch = 0 : i64, scratch_operands = 6 : i64, tpu.core_type = #tpu.core_type<tc>, window_params = [{transform_indices = @transform_0, window_bounds = array<i64: 1, 32, 32, 3>}, {pipeline_mode = #tpu.pipeline_mode<synchronous>, transform_indices = @transform_1, window_bounds = array<i64: 25, 3, 32>}, {pipeline_mode = #tpu.pipeline_mode<synchronous>, transform_indices = @transform_2, window_bounds = array<i64: 1, 32>}, {pipeline_mode = #tpu.pipeline_mode<synchronous>, transform_indices = @transform_3, window_bounds = array<i64: 25, 32, 32>}, {pipeline_mode = #tpu.pipeline_mode<synchronous>, transform_indices = @transform_4, window_bounds = array<i64: 1, 32>}, {pipeline_mode = #tpu.pipeline_mode<synchronous>, transform_indices = @transform_5, window_bounds = array<i64: 25, 32, 64>}, {pipeline_mode = #tpu.pipeline_mode<synchronous>, transform_indices = @transform_6, window_bounds = array<i64: 1, 64>}, {pipeline_mode = #tpu.pipeline_mode<synchronous>, transform_indices = @transform_7, window_bounds = array<i64: 16, 64, 64>}, {pipeline_mode = #tpu.pipeline_mode<synchronous>, transform_indices = @transform_8, window_bounds = array<i64: 1, 64>}, {pipeline_mode = #tpu.pipeline_mode<synchronous>, transform_indices = @transform_9, window_bounds = array<i64: 64, 10>}, {pipeline_mode = #tpu.pipeline_mode<synchronous>, transform_indices = @transform_10, window_bounds = array<i64: 1, 10>}, {transform_indices = @transform_11, window_bounds = array<i64: 1, 1, 10>}]} {
    %cst = arith.constant 0.000000e+00 : f32
    %0 = vector.broadcast %cst : f32 to vector<36x42x3xf32>
    %c0 = arith.constant 0 : index
    %c0_0 = arith.constant 0 : index
    %c0_1 = arith.constant 0 : index
    %1 = vector.load %arg13[%c0, %c0_0, %c0_1] : memref<36x42x3xf32, #tpu.memory_space<vmem>>, vector<36x42x3xf32>
    tpu.vector_store %arg13[%c0, %c0_0, %c0_1], %0 {strides = array<i32>} : memref<36x42x3xf32, #tpu.memory_space<vmem>>, vector<36x42x3xf32>,
    %cst_2 = arith.constant 0.000000e+00 : f32
    %2 = vector.broadcast %cst_2 : f32 to vector<20x26x32xf32>
    %c0_3 = arith.constant 0 : index
    %c0_4 = arith.constant 0 : index
    %c0_5 = arith.constant 0 : index
    %3 = vector.load %arg14[%c0_3, %c0_4, %c0_5] : memref<20x26x32xf32, #tpu.memory_space<vmem>>, vector<20x26x32xf32>
    tpu.vector_store %arg14[%c0_3, %c0_4, %c0_5], %2 {strides = array<i32>} : memref<20x26x32xf32, #tpu.memory_space<vmem>>, vector<20x26x32xf32>,
    %cst_6 = arith.constant 0.000000e+00 : f32
    %4 = vector.broadcast %cst_6 : f32 to vector<12x18x32xf32>
    %c0_7 = arith.constant 0 : index
    %c0_8 = arith.constant 0 : index
    %c0_9 = arith.constant 0 : index
    %5 = vector.load %arg15[%c0_7, %c0_8, %c0_9] : memref<12x18x32xf32, #tpu.memory_space<vmem>>, vector<12x18x32xf32>
    tpu.vector_store %arg15[%c0_7, %c0_8, %c0_9], %4 {strides = array<i32>} : memref<12x18x32xf32, #tpu.memory_space<vmem>>, vector<12x18x32xf32>,
    %c0_10 = arith.constant 0 : index
    %c0_11 = arith.constant 0 : index
    %c0_12 = arith.constant 0 : index
    %c0_13 = arith.constant 0 : index
    %6 = vector.load %arg1[%c0_10, %c0_11, %c0_12, %c0_13] : memref<1x32x32x3xf32, #tpu.memory_space<vmem>>, vector<1x32x32x3xf32>
    %7 = vector.shape_cast %6 : vector<1x32x32x3xf32> to vector<32x32x3xf32>
    %c2 = arith.constant 2 : index
    %c8 = arith.constant 8 : index
    %c0_14 = arith.constant 0 : index
    %8 = vector.load %arg13[%c2, %c8, %c0_14] : memref<36x42x3xf32, #tpu.memory_space<vmem>>, vector<32x32x3xf32>
    tpu.vector_store %arg13[%c2, %c8, %c0_14], %7 {strides = array<i32>} : memref<36x42x3xf32, #tpu.memory_space<vmem>>, vector<32x32x3xf32>,
    %c0_i32 = arith.constant 0 : i32
    %c8_i32 = arith.constant 8 : i32
    %9 = arith.addi %c0_i32, %c8_i32 : i32
    %c1_i32 = arith.constant 1 : i32
    scf.for %arg19 = %c0_i32 to %9 step %c1_i32  : i32 {
      %c4_i32 = arith.constant 4 : i32
      %291 = arith.muli %arg19, %c4_i32 : i32
      %c0_i32_281 = arith.constant 0 : i32
      %292 = arith.addi %291, %c0_i32_281 : i32
      %293 = arith.index_cast %292 : i32 to index
      %c6_282 = arith.constant 6 : index
      %c0_283 = arith.constant 0 : index
      %294 = vector.load %arg13[%293, %c6_282, %c0_283] : memref<36x42x3xf32, #tpu.memory_space<vmem>>, vector<4x32x3xf32>
      %295 = vector.shape_cast %294 : vector<4x32x3xf32> to vector<128x3xf32>
      %c0_284 = arith.constant 0 : index
      %c0_285 = arith.constant 0 : index
      %c0_286 = arith.constant 0 : index
      %296 = vector.load %arg2[%c0_284, %c0_285, %c0_286] : memref<25x3x32xf32, #tpu.memory_space<vmem>>, vector<1x3x32xf32>
      %297 = vector.shape_cast %296 : vector<1x3x32xf32> to vector<3x32xf32>
      %cst_287 = arith.constant dense<0.000000e+00> : vector<128x32xf32>
      %298 = tpu.matmul %295, %297, %cst_287 {dimension_numbers = #tpu.dot_dimension_numbers<[1], [0], [0], [1], [0, 0, 1, 1], [], []>} : vector<128x3xf32>, vector<3x32xf32>, vector<128x32xf32> -> vector<128x32xf32>
      %c0_i32_288 = arith.constant 0 : i32
      %299 = arith.addi %291, %c0_i32_288 : i32
      %300 = arith.index_cast %299 : i32 to index
      %c7_289 = arith.constant 7 : index
      %c0_290 = arith.constant 0 : index
      %301 = vector.load %arg13[%300, %c7_289, %c0_290] : memref<36x42x3xf32, #tpu.memory_space<vmem>>, vector<4x32x3xf32>
      %302 = vector.shape_cast %301 : vector<4x32x3xf32> to vector<128x3xf32>
      %c1_291 = arith.constant 1 : index
      %c0_292 = arith.constant 0 : index
      %c0_293 = arith.constant 0 : index
      %303 = vector.load %arg2[%c1_291, %c0_292, %c0_293] : memref<25x3x32xf32, #tpu.memory_space<vmem>>, vector<1x3x32xf32>
      %304 = vector.shape_cast %303 : vector<1x3x32xf32> to vector<3x32xf32>
      %cst_294 = arith.constant dense<0.000000e+00> : vector<128x32xf32>
      %305 = tpu.matmul %302, %304, %cst_294 {dimension_numbers = #tpu.dot_dimension_numbers<[1], [0], [0], [1], [0, 0, 1, 1], [], []>} : vector<128x3xf32>, vector<3x32xf32>, vector<128x32xf32> -> vector<128x32xf32>
      %306 = arith.addf %298, %305 : vector<128x32xf32>
      %c0_i32_295 = arith.constant 0 : i32
      %307 = arith.addi %291, %c0_i32_295 : i32
      %308 = arith.index_cast %307 : i32 to index
      %c8_296 = arith.constant 8 : index
      %c0_297 = arith.constant 0 : index
      %309 = vector.load %arg13[%308, %c8_296, %c0_297] : memref<36x42x3xf32, #tpu.memory_space<vmem>>, vector<4x32x3xf32>
      %310 = vector.shape_cast %309 : vector<4x32x3xf32> to vector<128x3xf32>
      %c2_298 = arith.constant 2 : index
      %c0_299 = arith.constant 0 : index
      %c0_300 = arith.constant 0 : index
      %311 = vector.load %arg2[%c2_298, %c0_299, %c0_300] : memref<25x3x32xf32, #tpu.memory_space<vmem>>, vector<1x3x32xf32>
      %312 = vector.shape_cast %311 : vector<1x3x32xf32> to vector<3x32xf32>
      %cst_301 = arith.constant dense<0.000000e+00> : vector<128x32xf32>
      %313 = tpu.matmul %310, %312, %cst_301 {dimension_numbers = #tpu.dot_dimension_numbers<[1], [0], [0], [1], [0, 0, 1, 1], [], []>} : vector<128x3xf32>, vector<3x32xf32>, vector<128x32xf32> -> vector<128x32xf32>
      %314 = arith.addf %306, %313 : vector<128x32xf32>
      %c0_i32_302 = arith.constant 0 : i32
      %315 = arith.addi %291, %c0_i32_302 : i32
      %316 = arith.index_cast %315 : i32 to index
      %c9_303 = arith.constant 9 : index
      %c0_304 = arith.constant 0 : index
      %317 = vector.load %arg13[%316, %c9_303, %c0_304] : memref<36x42x3xf32, #tpu.memory_space<vmem>>, vector<4x32x3xf32>
      %318 = vector.shape_cast %317 : vector<4x32x3xf32> to vector<128x3xf32>
      %c3_305 = arith.constant 3 : index
      %c0_306 = arith.constant 0 : index
      %c0_307 = arith.constant 0 : index
      %319 = vector.load %arg2[%c3_305, %c0_306, %c0_307] : memref<25x3x32xf32, #tpu.memory_space<vmem>>, vector<1x3x32xf32>
      %320 = vector.shape_cast %319 : vector<1x3x32xf32> to vector<3x32xf32>
      %cst_308 = arith.constant dense<0.000000e+00> : vector<128x32xf32>
      %321 = tpu.matmul %318, %320, %cst_308 {dimension_numbers = #tpu.dot_dimension_numbers<[1], [0], [0], [1], [0, 0, 1, 1], [], []>} : vector<128x3xf32>, vector<3x32xf32>, vector<128x32xf32> -> vector<128x32xf32>
      %322 = arith.addf %314, %321 : vector<128x32xf32>
      %c0_i32_309 = arith.constant 0 : i32
      %323 = arith.addi %291, %c0_i32_309 : i32
      %324 = arith.index_cast %323 : i32 to index
      %c10_310 = arith.constant 10 : index
      %c0_311 = arith.constant 0 : index
      %325 = vector.load %arg13[%324, %c10_310, %c0_311] : memref<36x42x3xf32, #tpu.memory_space<vmem>>, vector<4x32x3xf32>
      %326 = vector.shape_cast %325 : vector<4x32x3xf32> to vector<128x3xf32>
      %c4_312 = arith.constant 4 : index
      %c0_313 = arith.constant 0 : index
      %c0_314 = arith.constant 0 : index
      %327 = vector.load %arg2[%c4_312, %c0_313, %c0_314] : memref<25x3x32xf32, #tpu.memory_space<vmem>>, vector<1x3x32xf32>
      %328 = vector.shape_cast %327 : vector<1x3x32xf32> to vector<3x32xf32>
      %cst_315 = arith.constant dense<0.000000e+00> : vector<128x32xf32>
      %329 = tpu.matmul %326, %328, %cst_315 {dimension_numbers = #tpu.dot_dimension_numbers<[1], [0], [0], [1], [0, 0, 1, 1], [], []>} : vector<128x3xf32>, vector<3x32xf32>, vector<128x32xf32> -> vector<128x32xf32>
      %330 = arith.addf %322, %329 : vector<128x32xf32>
      %331 = vector.shape_cast %330 : vector<128x32xf32> to vector<4x32x32xf32>
      %c0_316 = arith.constant 0 : index
      %c0_317 = arith.constant 0 : index
      %c0_318 = arith.constant 0 : index
      %332 = vector.load %arg16[%c0_316, %c0_317, %c0_318] : memref<4x32x32xf32, #tpu.memory_space<vmem>>, vector<4x32x32xf32>
      tpu.vector_store %arg16[%c0_316, %c0_317, %c0_318], %331 {strides = array<i32>} : memref<4x32x32xf32, #tpu.memory_space<vmem>>, vector<4x32x32xf32>,
      %c1_i32_319 = arith.constant 1 : i32
      %333 = arith.addi %291, %c1_i32_319 : i32
      %334 = arith.index_cast %333 : i32 to index
      %c6_320 = arith.constant 6 : index
      %c0_321 = arith.constant 0 : index
      %335 = vector.load %arg13[%334, %c6_320, %c0_321] : memref<36x42x3xf32, #tpu.memory_space<vmem>>, vector<4x32x3xf32>
      %336 = vector.shape_cast %335 : vector<4x32x3xf32> to vector<128x3xf32>
      %c5_322 = arith.constant 5 : index
      %c0_323 = arith.constant 0 : index
      %c0_324 = arith.constant 0 : index
      %337 = vector.load %arg2[%c5_322, %c0_323, %c0_324] : memref<25x3x32xf32, #tpu.memory_space<vmem>>, vector<1x3x32xf32>
      %338 = vector.shape_cast %337 : vector<1x3x32xf32> to vector<3x32xf32>
      %cst_325 = arith.constant dense<0.000000e+00> : vector<128x32xf32>
      %339 = tpu.matmul %336, %338, %cst_325 {dimension_numbers = #tpu.dot_dimension_numbers<[1], [0], [0], [1], [0, 0, 1, 1], [], []>} : vector<128x3xf32>, vector<3x32xf32>, vector<128x32xf32> -> vector<128x32xf32>
      %c1_i32_326 = arith.constant 1 : i32
      %340 = arith.addi %291, %c1_i32_326 : i32
      %341 = arith.index_cast %340 : i32 to index
      %c7_327 = arith.constant 7 : index
      %c0_328 = arith.constant 0 : index
      %342 = vector.load %arg13[%341, %c7_327, %c0_328] : memref<36x42x3xf32, #tpu.memory_space<vmem>>, vector<4x32x3xf32>
      %343 = vector.shape_cast %342 : vector<4x32x3xf32> to vector<128x3xf32>
      %c6_329 = arith.constant 6 : index
      %c0_330 = arith.constant 0 : index
      %c0_331 = arith.constant 0 : index
      %344 = vector.load %arg2[%c6_329, %c0_330, %c0_331] : memref<25x3x32xf32, #tpu.memory_space<vmem>>, vector<1x3x32xf32>
      %345 = vector.shape_cast %344 : vector<1x3x32xf32> to vector<3x32xf32>
      %cst_332 = arith.constant dense<0.000000e+00> : vector<128x32xf32>
      %346 = tpu.matmul %343, %345, %cst_332 {dimension_numbers = #tpu.dot_dimension_numbers<[1], [0], [0], [1], [0, 0, 1, 1], [], []>} : vector<128x3xf32>, vector<3x32xf32>, vector<128x32xf32> -> vector<128x32xf32>
      %347 = arith.addf %339, %346 : vector<128x32xf32>
      %c1_i32_333 = arith.constant 1 : i32
      %348 = arith.addi %291, %c1_i32_333 : i32
      %349 = arith.index_cast %348 : i32 to index
      %c8_334 = arith.constant 8 : index
      %c0_335 = arith.constant 0 : index
      %350 = vector.load %arg13[%349, %c8_334, %c0_335] : memref<36x42x3xf32, #tpu.memory_space<vmem>>, vector<4x32x3xf32>
      %351 = vector.shape_cast %350 : vector<4x32x3xf32> to vector<128x3xf32>
      %c7_336 = arith.constant 7 : index
      %c0_337 = arith.constant 0 : index
      %c0_338 = arith.constant 0 : index
      %352 = vector.load %arg2[%c7_336, %c0_337, %c0_338] : memref<25x3x32xf32, #tpu.memory_space<vmem>>, vector<1x3x32xf32>
      %353 = vector.shape_cast %352 : vector<1x3x32xf32> to vector<3x32xf32>
      %cst_339 = arith.constant dense<0.000000e+00> : vector<128x32xf32>
      %354 = tpu.matmul %351, %353, %cst_339 {dimension_numbers = #tpu.dot_dimension_numbers<[1], [0], [0], [1], [0, 0, 1, 1], [], []>} : vector<128x3xf32>, vector<3x32xf32>, vector<128x32xf32> -> vector<128x32xf32>
      %355 = arith.addf %347, %354 : vector<128x32xf32>
      %c1_i32_340 = arith.constant 1 : i32
      %356 = arith.addi %291, %c1_i32_340 : i32
      %357 = arith.index_cast %356 : i32 to index
      %c9_341 = arith.constant 9 : index
      %c0_342 = arith.constant 0 : index
      %358 = vector.load %arg13[%357, %c9_341, %c0_342] : memref<36x42x3xf32, #tpu.memory_space<vmem>>, vector<4x32x3xf32>
      %359 = vector.shape_cast %358 : vector<4x32x3xf32> to vector<128x3xf32>
      %c8_343 = arith.constant 8 : index
      %c0_344 = arith.constant 0 : index
      %c0_345 = arith.constant 0 : index
      %360 = vector.load %arg2[%c8_343, %c0_344, %c0_345] : memref<25x3x32xf32, #tpu.memory_space<vmem>>, vector<1x3x32xf32>
      %361 = vector.shape_cast %360 : vector<1x3x32xf32> to vector<3x32xf32>
      %cst_346 = arith.constant dense<0.000000e+00> : vector<128x32xf32>
      %362 = tpu.matmul %359, %361, %cst_346 {dimension_numbers = #tpu.dot_dimension_numbers<[1], [0], [0], [1], [0, 0, 1, 1], [], []>} : vector<128x3xf32>, vector<3x32xf32>, vector<128x32xf32> -> vector<128x32xf32>
      %363 = arith.addf %355, %362 : vector<128x32xf32>
      %c1_i32_347 = arith.constant 1 : i32
      %364 = arith.addi %291, %c1_i32_347 : i32
      %365 = arith.index_cast %364 : i32 to index
      %c10_348 = arith.constant 10 : index
      %c0_349 = arith.constant 0 : index
      %366 = vector.load %arg13[%365, %c10_348, %c0_349] : memref<36x42x3xf32, #tpu.memory_space<vmem>>, vector<4x32x3xf32>
      %367 = vector.shape_cast %366 : vector<4x32x3xf32> to vector<128x3xf32>
      %c9_350 = arith.constant 9 : index
      %c0_351 = arith.constant 0 : index
      %c0_352 = arith.constant 0 : index
      %368 = vector.load %arg2[%c9_350, %c0_351, %c0_352] : memref<25x3x32xf32, #tpu.memory_space<vmem>>, vector<1x3x32xf32>
      %369 = vector.shape_cast %368 : vector<1x3x32xf32> to vector<3x32xf32>
      %cst_353 = arith.constant dense<0.000000e+00> : vector<128x32xf32>
      %370 = tpu.matmul %367, %369, %cst_353 {dimension_numbers = #tpu.dot_dimension_numbers<[1], [0], [0], [1], [0, 0, 1, 1], [], []>} : vector<128x3xf32>, vector<3x32xf32>, vector<128x32xf32> -> vector<128x32xf32>
      %371 = arith.addf %363, %370 : vector<128x32xf32>
      %372 = vector.shape_cast %371 : vector<128x32xf32> to vector<4x32x32xf32>
      %c0_354 = arith.constant 0 : index
      %c0_355 = arith.constant 0 : index
      %c0_356 = arith.constant 0 : index
      %373 = vector.load %arg16[%c0_354, %c0_355, %c0_356] : memref<4x32x32xf32, #tpu.memory_space<vmem>>, vector<4x32x32xf32>
      %374 = arith.addf %373, %372 : vector<4x32x32xf32>
      %c0_357 = arith.constant 0 : index
      %c0_358 = arith.constant 0 : index
      %c0_359 = arith.constant 0 : index
      %375 = vector.load %arg16[%c0_357, %c0_358, %c0_359] : memref<4x32x32xf32, #tpu.memory_space<vmem>>, vector<4x32x32xf32>
      tpu.vector_store %arg16[%c0_357, %c0_358, %c0_359], %374 {strides = array<i32>} : memref<4x32x32xf32, #tpu.memory_space<vmem>>, vector<4x32x32xf32>,
      %c2_i32_360 = arith.constant 2 : i32
      %376 = arith.addi %291, %c2_i32_360 : i32
      %377 = arith.index_cast %376 : i32 to index
      %c6_361 = arith.constant 6 : index
      %c0_362 = arith.constant 0 : index
      %378 = vector.load %arg13[%377, %c6_361, %c0_362] : memref<36x42x3xf32, #tpu.memory_space<vmem>>, vector<4x32x3xf32>
      %379 = vector.shape_cast %378 : vector<4x32x3xf32> to vector<128x3xf32>
      %c10_363 = arith.constant 10 : index
      %c0_364 = arith.constant 0 : index
      %c0_365 = arith.constant 0 : index
      %380 = vector.load %arg2[%c10_363, %c0_364, %c0_365] : memref<25x3x32xf32, #tpu.memory_space<vmem>>, vector<1x3x32xf32>
      %381 = vector.shape_cast %380 : vector<1x3x32xf32> to vector<3x32xf32>
      %cst_366 = arith.constant dense<0.000000e+00> : vector<128x32xf32>
      %382 = tpu.matmul %379, %381, %cst_366 {dimension_numbers = #tpu.dot_dimension_numbers<[1], [0], [0], [1], [0, 0, 1, 1], [], []>} : vector<128x3xf32>, vector<3x32xf32>, vector<128x32xf32> -> vector<128x32xf32>
      %c2_i32_367 = arith.constant 2 : i32
      %383 = arith.addi %291, %c2_i32_367 : i32
      %384 = arith.index_cast %383 : i32 to index
      %c7_368 = arith.constant 7 : index
      %c0_369 = arith.constant 0 : index
      %385 = vector.load %arg13[%384, %c7_368, %c0_369] : memref<36x42x3xf32, #tpu.memory_space<vmem>>, vector<4x32x3xf32>
      %386 = vector.shape_cast %385 : vector<4x32x3xf32> to vector<128x3xf32>
      %c11_370 = arith.constant 11 : index
      %c0_371 = arith.constant 0 : index
      %c0_372 = arith.constant 0 : index
      %387 = vector.load %arg2[%c11_370, %c0_371, %c0_372] : memref<25x3x32xf32, #tpu.memory_space<vmem>>, vector<1x3x32xf32>
      %388 = vector.shape_cast %387 : vector<1x3x32xf32> to vector<3x32xf32>
      %cst_373 = arith.constant dense<0.000000e+00> : vector<128x32xf32>
      %389 = tpu.matmul %386, %388, %cst_373 {dimension_numbers = #tpu.dot_dimension_numbers<[1], [0], [0], [1], [0, 0, 1, 1], [], []>} : vector<128x3xf32>, vector<3x32xf32>, vector<128x32xf32> -> vector<128x32xf32>
      %390 = arith.addf %382, %389 : vector<128x32xf32>
      %c2_i32_374 = arith.constant 2 : i32
      %391 = arith.addi %291, %c2_i32_374 : i32
      %392 = arith.index_cast %391 : i32 to index
      %c8_375 = arith.constant 8 : index
      %c0_376 = arith.constant 0 : index
      %393 = vector.load %arg13[%392, %c8_375, %c0_376] : memref<36x42x3xf32, #tpu.memory_space<vmem>>, vector<4x32x3xf32>
      %394 = vector.shape_cast %393 : vector<4x32x3xf32> to vector<128x3xf32>
      %c12_377 = arith.constant 12 : index
      %c0_378 = arith.constant 0 : index
      %c0_379 = arith.constant 0 : index
      %395 = vector.load %arg2[%c12_377, %c0_378, %c0_379] : memref<25x3x32xf32, #tpu.memory_space<vmem>>, vector<1x3x32xf32>
      %396 = vector.shape_cast %395 : vector<1x3x32xf32> to vector<3x32xf32>
      %cst_380 = arith.constant dense<0.000000e+00> : vector<128x32xf32>
      %397 = tpu.matmul %394, %396, %cst_380 {dimension_numbers = #tpu.dot_dimension_numbers<[1], [0], [0], [1], [0, 0, 1, 1], [], []>} : vector<128x3xf32>, vector<3x32xf32>, vector<128x32xf32> -> vector<128x32xf32>
      %398 = arith.addf %390, %397 : vector<128x32xf32>
      %c2_i32_381 = arith.constant 2 : i32
      %399 = arith.addi %291, %c2_i32_381 : i32
      %400 = arith.index_cast %399 : i32 to index
      %c9_382 = arith.constant 9 : index
      %c0_383 = arith.constant 0 : index
      %401 = vector.load %arg13[%400, %c9_382, %c0_383] : memref<36x42x3xf32, #tpu.memory_space<vmem>>, vector<4x32x3xf32>
      %402 = vector.shape_cast %401 : vector<4x32x3xf32> to vector<128x3xf32>
      %c13_384 = arith.constant 13 : index
      %c0_385 = arith.constant 0 : index
      %c0_386 = arith.constant 0 : index
      %403 = vector.load %arg2[%c13_384, %c0_385, %c0_386] : memref<25x3x32xf32, #tpu.memory_space<vmem>>, vector<1x3x32xf32>
      %404 = vector.shape_cast %403 : vector<1x3x32xf32> to vector<3x32xf32>
      %cst_387 = arith.constant dense<0.000000e+00> : vector<128x32xf32>
      %405 = tpu.matmul %402, %404, %cst_387 {dimension_numbers = #tpu.dot_dimension_numbers<[1], [0], [0], [1], [0, 0, 1, 1], [], []>} : vector<128x3xf32>, vector<3x32xf32>, vector<128x32xf32> -> vector<128x32xf32>
      %406 = arith.addf %398, %405 : vector<128x32xf32>
      %c2_i32_388 = arith.constant 2 : i32
      %407 = arith.addi %291, %c2_i32_388 : i32
      %408 = arith.index_cast %407 : i32 to index
      %c10_389 = arith.constant 10 : index
      %c0_390 = arith.constant 0 : index
      %409 = vector.load %arg13[%408, %c10_389, %c0_390] : memref<36x42x3xf32, #tpu.memory_space<vmem>>, vector<4x32x3xf32>
      %410 = vector.shape_cast %409 : vector<4x32x3xf32> to vector<128x3xf32>
      %c14_391 = arith.constant 14 : index
      %c0_392 = arith.constant 0 : index
      %c0_393 = arith.constant 0 : index
      %411 = vector.load %arg2[%c14_391, %c0_392, %c0_393] : memref<25x3x32xf32, #tpu.memory_space<vmem>>, vector<1x3x32xf32>
      %412 = vector.shape_cast %411 : vector<1x3x32xf32> to vector<3x32xf32>
      %cst_394 = arith.constant dense<0.000000e+00> : vector<128x32xf32>
      %413 = tpu.matmul %410, %412, %cst_394 {dimension_numbers = #tpu.dot_dimension_numbers<[1], [0], [0], [1], [0, 0, 1, 1], [], []>} : vector<128x3xf32>, vector<3x32xf32>, vector<128x32xf32> -> vector<128x32xf32>
      %414 = arith.addf %406, %413 : vector<128x32xf32>
      %415 = vector.shape_cast %414 : vector<128x32xf32> to vector<4x32x32xf32>
      %c0_395 = arith.constant 0 : index
      %c0_396 = arith.constant 0 : index
      %c0_397 = arith.constant 0 : index
      %416 = vector.load %arg16[%c0_395, %c0_396, %c0_397] : memref<4x32x32xf32, #tpu.memory_space<vmem>>, vector<4x32x32xf32>
      %417 = arith.addf %416, %415 : vector<4x32x32xf32>
      %c0_398 = arith.constant 0 : index
      %c0_399 = arith.constant 0 : index
      %c0_400 = arith.constant 0 : index
      %418 = vector.load %arg16[%c0_398, %c0_399, %c0_400] : memref<4x32x32xf32, #tpu.memory_space<vmem>>, vector<4x32x32xf32>
      tpu.vector_store %arg16[%c0_398, %c0_399, %c0_400], %417 {strides = array<i32>} : memref<4x32x32xf32, #tpu.memory_space<vmem>>, vector<4x32x32xf32>,
      %c3_i32 = arith.constant 3 : i32
      %419 = arith.addi %291, %c3_i32 : i32
      %420 = arith.index_cast %419 : i32 to index
      %c6_401 = arith.constant 6 : index
      %c0_402 = arith.constant 0 : index
      %421 = vector.load %arg13[%420, %c6_401, %c0_402] : memref<36x42x3xf32, #tpu.memory_space<vmem>>, vector<4x32x3xf32>
      %422 = vector.shape_cast %421 : vector<4x32x3xf32> to vector<128x3xf32>
      %c15_403 = arith.constant 15 : index
      %c0_404 = arith.constant 0 : index
      %c0_405 = arith.constant 0 : index
      %423 = vector.load %arg2[%c15_403, %c0_404, %c0_405] : memref<25x3x32xf32, #tpu.memory_space<vmem>>, vector<1x3x32xf32>
      %424 = vector.shape_cast %423 : vector<1x3x32xf32> to vector<3x32xf32>
      %cst_406 = arith.constant dense<0.000000e+00> : vector<128x32xf32>
      %425 = tpu.matmul %422, %424, %cst_406 {dimension_numbers = #tpu.dot_dimension_numbers<[1], [0], [0], [1], [0, 0, 1, 1], [], []>} : vector<128x3xf32>, vector<3x32xf32>, vector<128x32xf32> -> vector<128x32xf32>
      %c3_i32_407 = arith.constant 3 : i32
      %426 = arith.addi %291, %c3_i32_407 : i32
      %427 = arith.index_cast %426 : i32 to index
      %c7_408 = arith.constant 7 : index
      %c0_409 = arith.constant 0 : index
      %428 = vector.load %arg13[%427, %c7_408, %c0_409] : memref<36x42x3xf32, #tpu.memory_space<vmem>>, vector<4x32x3xf32>
      %429 = vector.shape_cast %428 : vector<4x32x3xf32> to vector<128x3xf32>
      %c16_410 = arith.constant 16 : index
      %c0_411 = arith.constant 0 : index
      %c0_412 = arith.constant 0 : index
      %430 = vector.load %arg2[%c16_410, %c0_411, %c0_412] : memref<25x3x32xf32, #tpu.memory_space<vmem>>, vector<1x3x32xf32>
      %431 = vector.shape_cast %430 : vector<1x3x32xf32> to vector<3x32xf32>
      %cst_413 = arith.constant dense<0.000000e+00> : vector<128x32xf32>
      %432 = tpu.matmul %429, %431, %cst_413 {dimension_numbers = #tpu.dot_dimension_numbers<[1], [0], [0], [1], [0, 0, 1, 1], [], []>} : vector<128x3xf32>, vector<3x32xf32>, vector<128x32xf32> -> vector<128x32xf32>
      %433 = arith.addf %425, %432 : vector<128x32xf32>
      %c3_i32_414 = arith.constant 3 : i32
      %434 = arith.addi %291, %c3_i32_414 : i32
      %435 = arith.index_cast %434 : i32 to index
      %c8_415 = arith.constant 8 : index
      %c0_416 = arith.constant 0 : index
      %436 = vector.load %arg13[%435, %c8_415, %c0_416] : memref<36x42x3xf32, #tpu.memory_space<vmem>>, vector<4x32x3xf32>
      %437 = vector.shape_cast %436 : vector<4x32x3xf32> to vector<128x3xf32>
      %c17_417 = arith.constant 17 : index
      %c0_418 = arith.constant 0 : index
      %c0_419 = arith.constant 0 : index
      %438 = vector.load %arg2[%c17_417, %c0_418, %c0_419] : memref<25x3x32xf32, #tpu.memory_space<vmem>>, vector<1x3x32xf32>
      %439 = vector.shape_cast %438 : vector<1x3x32xf32> to vector<3x32xf32>
      %cst_420 = arith.constant dense<0.000000e+00> : vector<128x32xf32>
      %440 = tpu.matmul %437, %439, %cst_420 {dimension_numbers = #tpu.dot_dimension_numbers<[1], [0], [0], [1], [0, 0, 1, 1], [], []>} : vector<128x3xf32>, vector<3x32xf32>, vector<128x32xf32> -> vector<128x32xf32>
      %441 = arith.addf %433, %440 : vector<128x32xf32>
      %c3_i32_421 = arith.constant 3 : i32
      %442 = arith.addi %291, %c3_i32_421 : i32
      %443 = arith.index_cast %442 : i32 to index
      %c9_422 = arith.constant 9 : index
      %c0_423 = arith.constant 0 : index
      %444 = vector.load %arg13[%443, %c9_422, %c0_423] : memref<36x42x3xf32, #tpu.memory_space<vmem>>, vector<4x32x3xf32>
      %445 = vector.shape_cast %444 : vector<4x32x3xf32> to vector<128x3xf32>
      %c18_424 = arith.constant 18 : index
      %c0_425 = arith.constant 0 : index
      %c0_426 = arith.constant 0 : index
      %446 = vector.load %arg2[%c18_424, %c0_425, %c0_426] : memref<25x3x32xf32, #tpu.memory_space<vmem>>, vector<1x3x32xf32>
      %447 = vector.shape_cast %446 : vector<1x3x32xf32> to vector<3x32xf32>
      %cst_427 = arith.constant dense<0.000000e+00> : vector<128x32xf32>
      %448 = tpu.matmul %445, %447, %cst_427 {dimension_numbers = #tpu.dot_dimension_numbers<[1], [0], [0], [1], [0, 0, 1, 1], [], []>} : vector<128x3xf32>, vector<3x32xf32>, vector<128x32xf32> -> vector<128x32xf32>
      %449 = arith.addf %441, %448 : vector<128x32xf32>
      %c3_i32_428 = arith.constant 3 : i32
      %450 = arith.addi %291, %c3_i32_428 : i32
      %451 = arith.index_cast %450 : i32 to index
      %c10_429 = arith.constant 10 : index
      %c0_430 = arith.constant 0 : index
      %452 = vector.load %arg13[%451, %c10_429, %c0_430] : memref<36x42x3xf32, #tpu.memory_space<vmem>>, vector<4x32x3xf32>
      %453 = vector.shape_cast %452 : vector<4x32x3xf32> to vector<128x3xf32>
      %c19_431 = arith.constant 19 : index
      %c0_432 = arith.constant 0 : index
      %c0_433 = arith.constant 0 : index
      %454 = vector.load %arg2[%c19_431, %c0_432, %c0_433] : memref<25x3x32xf32, #tpu.memory_space<vmem>>, vector<1x3x32xf32>
      %455 = vector.shape_cast %454 : vector<1x3x32xf32> to vector<3x32xf32>
      %cst_434 = arith.constant dense<0.000000e+00> : vector<128x32xf32>
      %456 = tpu.matmul %453, %455, %cst_434 {dimension_numbers = #tpu.dot_dimension_numbers<[1], [0], [0], [1], [0, 0, 1, 1], [], []>} : vector<128x3xf32>, vector<3x32xf32>, vector<128x32xf32> -> vector<128x32xf32>
      %457 = arith.addf %449, %456 : vector<128x32xf32>
      %458 = vector.shape_cast %457 : vector<128x32xf32> to vector<4x32x32xf32>
      %c0_435 = arith.constant 0 : index
      %c0_436 = arith.constant 0 : index
      %c0_437 = arith.constant 0 : index
      %459 = vector.load %arg16[%c0_435, %c0_436, %c0_437] : memref<4x32x32xf32, #tpu.memory_space<vmem>>, vector<4x32x32xf32>
      %460 = arith.addf %459, %458 : vector<4x32x32xf32>
      %c0_438 = arith.constant 0 : index
      %c0_439 = arith.constant 0 : index
      %c0_440 = arith.constant 0 : index
      %461 = vector.load %arg16[%c0_438, %c0_439, %c0_440] : memref<4x32x32xf32, #tpu.memory_space<vmem>>, vector<4x32x32xf32>
      tpu.vector_store %arg16[%c0_438, %c0_439, %c0_440], %460 {strides = array<i32>} : memref<4x32x32xf32, #tpu.memory_space<vmem>>, vector<4x32x32xf32>,
      %c4_i32_441 = arith.constant 4 : i32
      %462 = arith.addi %291, %c4_i32_441 : i32
      %463 = arith.index_cast %462 : i32 to index
      %c6_442 = arith.constant 6 : index
      %c0_443 = arith.constant 0 : index
      %464 = vector.load %arg13[%463, %c6_442, %c0_443] : memref<36x42x3xf32, #tpu.memory_space<vmem>>, vector<4x32x3xf32>
      %465 = vector.shape_cast %464 : vector<4x32x3xf32> to vector<128x3xf32>
      %c20_444 = arith.constant 20 : index
      %c0_445 = arith.constant 0 : index
      %c0_446 = arith.constant 0 : index
      %466 = vector.load %arg2[%c20_444, %c0_445, %c0_446] : memref<25x3x32xf32, #tpu.memory_space<vmem>>, vector<1x3x32xf32>
      %467 = vector.shape_cast %466 : vector<1x3x32xf32> to vector<3x32xf32>
      %cst_447 = arith.constant dense<0.000000e+00> : vector<128x32xf32>
      %468 = tpu.matmul %465, %467, %cst_447 {dimension_numbers = #tpu.dot_dimension_numbers<[1], [0], [0], [1], [0, 0, 1, 1], [], []>} : vector<128x3xf32>, vector<3x32xf32>, vector<128x32xf32> -> vector<128x32xf32>
      %c4_i32_448 = arith.constant 4 : i32
      %469 = arith.addi %291, %c4_i32_448 : i32
      %470 = arith.index_cast %469 : i32 to index
      %c7_449 = arith.constant 7 : index
      %c0_450 = arith.constant 0 : index
      %471 = vector.load %arg13[%470, %c7_449, %c0_450] : memref<36x42x3xf32, #tpu.memory_space<vmem>>, vector<4x32x3xf32>
      %472 = vector.shape_cast %471 : vector<4x32x3xf32> to vector<128x3xf32>
      %c21_451 = arith.constant 21 : index
      %c0_452 = arith.constant 0 : index
      %c0_453 = arith.constant 0 : index
      %473 = vector.load %arg2[%c21_451, %c0_452, %c0_453] : memref<25x3x32xf32, #tpu.memory_space<vmem>>, vector<1x3x32xf32>
      %474 = vector.shape_cast %473 : vector<1x3x32xf32> to vector<3x32xf32>
      %cst_454 = arith.constant dense<0.000000e+00> : vector<128x32xf32>
      %475 = tpu.matmul %472, %474, %cst_454 {dimension_numbers = #tpu.dot_dimension_numbers<[1], [0], [0], [1], [0, 0, 1, 1], [], []>} : vector<128x3xf32>, vector<3x32xf32>, vector<128x32xf32> -> vector<128x32xf32>
      %476 = arith.addf %468, %475 : vector<128x32xf32>
      %c4_i32_455 = arith.constant 4 : i32
      %477 = arith.addi %291, %c4_i32_455 : i32
      %478 = arith.index_cast %477 : i32 to index
      %c8_456 = arith.constant 8 : index
      %c0_457 = arith.constant 0 : index
      %479 = vector.load %arg13[%478, %c8_456, %c0_457] : memref<36x42x3xf32, #tpu.memory_space<vmem>>, vector<4x32x3xf32>
      %480 = vector.shape_cast %479 : vector<4x32x3xf32> to vector<128x3xf32>
      %c22_458 = arith.constant 22 : index
      %c0_459 = arith.constant 0 : index
      %c0_460 = arith.constant 0 : index
      %481 = vector.load %arg2[%c22_458, %c0_459, %c0_460] : memref<25x3x32xf32, #tpu.memory_space<vmem>>, vector<1x3x32xf32>
      %482 = vector.shape_cast %481 : vector<1x3x32xf32> to vector<3x32xf32>
      %cst_461 = arith.constant dense<0.000000e+00> : vector<128x32xf32>
      %483 = tpu.matmul %480, %482, %cst_461 {dimension_numbers = #tpu.dot_dimension_numbers<[1], [0], [0], [1], [0, 0, 1, 1], [], []>} : vector<128x3xf32>, vector<3x32xf32>, vector<128x32xf32> -> vector<128x32xf32>
      %484 = arith.addf %476, %483 : vector<128x32xf32>
      %c4_i32_462 = arith.constant 4 : i32
      %485 = arith.addi %291, %c4_i32_462 : i32
      %486 = arith.index_cast %485 : i32 to index
      %c9_463 = arith.constant 9 : index
      %c0_464 = arith.constant 0 : index
      %487 = vector.load %arg13[%486, %c9_463, %c0_464] : memref<36x42x3xf32, #tpu.memory_space<vmem>>, vector<4x32x3xf32>
      %488 = vector.shape_cast %487 : vector<4x32x3xf32> to vector<128x3xf32>
      %c23_465 = arith.constant 23 : index
      %c0_466 = arith.constant 0 : index
      %c0_467 = arith.constant 0 : index
      %489 = vector.load %arg2[%c23_465, %c0_466, %c0_467] : memref<25x3x32xf32, #tpu.memory_space<vmem>>, vector<1x3x32xf32>
      %490 = vector.shape_cast %489 : vector<1x3x32xf32> to vector<3x32xf32>
      %cst_468 = arith.constant dense<0.000000e+00> : vector<128x32xf32>
      %491 = tpu.matmul %488, %490, %cst_468 {dimension_numbers = #tpu.dot_dimension_numbers<[1], [0], [0], [1], [0, 0, 1, 1], [], []>} : vector<128x3xf32>, vector<3x32xf32>, vector<128x32xf32> -> vector<128x32xf32>
      %492 = arith.addf %484, %491 : vector<128x32xf32>
      %c4_i32_469 = arith.constant 4 : i32
      %493 = arith.addi %291, %c4_i32_469 : i32
      %494 = arith.index_cast %493 : i32 to index
      %c10_470 = arith.constant 10 : index
      %c0_471 = arith.constant 0 : index
      %495 = vector.load %arg13[%494, %c10_470, %c0_471] : memref<36x42x3xf32, #tpu.memory_space<vmem>>, vector<4x32x3xf32>
      %496 = vector.shape_cast %495 : vector<4x32x3xf32> to vector<128x3xf32>
      %c24_472 = arith.constant 24 : index
      %c0_473 = arith.constant 0 : index
      %c0_474 = arith.constant 0 : index
      %497 = vector.load %arg2[%c24_472, %c0_473, %c0_474] : memref<25x3x32xf32, #tpu.memory_space<vmem>>, vector<1x3x32xf32>
      %498 = vector.shape_cast %497 : vector<1x3x32xf32> to vector<3x32xf32>
      %cst_475 = arith.constant dense<0.000000e+00> : vector<128x32xf32>
      %499 = tpu.matmul %496, %498, %cst_475 {dimension_numbers = #tpu.dot_dimension_numbers<[1], [0], [0], [1], [0, 0, 1, 1], [], []>} : vector<128x3xf32>, vector<3x32xf32>, vector<128x32xf32> -> vector<128x32xf32>
      %500 = arith.addf %492, %499 : vector<128x32xf32>
      %501 = vector.shape_cast %500 : vector<128x32xf32> to vector<4x32x32xf32>
      %c0_476 = arith.constant 0 : index
      %c0_477 = arith.constant 0 : index
      %c0_478 = arith.constant 0 : index
      %502 = vector.load %arg16[%c0_476, %c0_477, %c0_478] : memref<4x32x32xf32, #tpu.memory_space<vmem>>, vector<4x32x32xf32>
      %503 = arith.addf %502, %501 : vector<4x32x32xf32>
      %c0_479 = arith.constant 0 : index
      %c0_480 = arith.constant 0 : index
      %c0_481 = arith.constant 0 : index
      %504 = vector.load %arg16[%c0_479, %c0_480, %c0_481] : memref<4x32x32xf32, #tpu.memory_space<vmem>>, vector<4x32x32xf32>
      tpu.vector_store %arg16[%c0_479, %c0_480, %c0_481], %503 {strides = array<i32>} : memref<4x32x32xf32, #tpu.memory_space<vmem>>, vector<4x32x32xf32>,
      %c0_482 = arith.constant 0 : index
      %c0_483 = arith.constant 0 : index
      %c0_484 = arith.constant 0 : index
      %505 = tpu.strided_load %arg16[%c0_482, %c0_483, %c0_484] {strides = array<i32: 1, 2, 1>} : memref<4x32x32xf32, #tpu.memory_space<vmem>>, vector<4x16x32xf32>
      %c0_485 = arith.constant 0 : index
      %c1_486 = arith.constant 1 : index
      %c0_487 = arith.constant 0 : index
      %506 = tpu.strided_load %arg16[%c0_485, %c1_486, %c0_487] {strides = array<i32: 1, 2, 1>} : memref<4x32x32xf32, #tpu.memory_space<vmem>>, vector<4x16x32xf32>
      %507 = arith.maximumf %505, %506 : vector<4x16x32xf32>
      %508 = vector.shape_cast %507 : vector<4x16x32xf32> to vector<2x2x16x32xf32>
      %509 = vector.extract_strided_slice %508 {offsets = [0, 0, 0, 0], sizes = [2, 1, 16, 32], strides = [1, 1, 1, 1]} : vector<2x2x16x32xf32> to vector<2x1x16x32xf32>
      %510 = vector.shape_cast %509 : vector<2x1x16x32xf32> to vector<2x16x32xf32>
      %511 = vector.extract_strided_slice %508 {offsets = [0, 1, 0, 0], sizes = [2, 1, 16, 32], strides = [1, 1, 1, 1]} : vector<2x2x16x32xf32> to vector<2x1x16x32xf32>
      %512 = vector.shape_cast %511 : vector<2x1x16x32xf32> to vector<2x16x32xf32>
      %513 = arith.maximumf %510, %512 : vector<2x16x32xf32>
      %c0_488 = arith.constant 0 : index
      %c0_489 = arith.constant 0 : index
      %514 = vector.load %arg3[%c0_488, %c0_489] : memref<1x32xf32, #tpu.memory_space<vmem>>, vector<1x32xf32>
      %515 = vector.shape_cast %514 : vector<1x32xf32> to vector<1x1x32xf32>
      %516 = vector.broadcast %515 : vector<1x1x32xf32> to vector<2x16x32xf32>
      %517 = arith.addf %513, %516 : vector<2x16x32xf32>
      %c2_i32_490 = arith.constant 2 : i32
      %518 = arith.muli %arg19, %c2_i32_490 : i32
      %c2_i32_491 = arith.constant 2 : i32
      %519 = arith.addi %c2_i32_491, %518 : i32
      %520 = arith.index_cast %519 : i32 to index
      %c8_492 = arith.constant 8 : index
      %c0_493 = arith.constant 0 : index
      %521 = vector.load %arg14[%520, %c8_492, %c0_493] : memref<20x26x32xf32, #tpu.memory_space<vmem>>, vector<2x16x32xf32>
      tpu.vector_store %arg14[%520, %c8_492, %c0_493], %517 {strides = array<i32>} : memref<20x26x32xf32, #tpu.memory_space<vmem>>, vector<2x16x32xf32>,
    }
    %c8_i32_15 = arith.constant 8 : i32
    %c0_i32_16 = arith.constant 0 : i32
    %c2_i32 = arith.constant 2 : i32
    %10 = arith.addi %c0_i32_16, %c2_i32 : i32
    %c1_i32_17 = arith.constant 1 : i32
    scf.for %arg19 = %c0_i32_16 to %10 step %c1_i32_17  : i32 {
      %c8_i32_281 = arith.constant 8 : i32
      %291 = arith.muli %arg19, %c8_i32_281 : i32
      %c0_i32_282 = arith.constant 0 : i32
      %292 = arith.addi %291, %c0_i32_282 : i32
      %293 = arith.index_cast %292 : i32 to index
      %c6_283 = arith.constant 6 : index
      %c0_284 = arith.constant 0 : index
      %294 = vector.load %arg14[%293, %c6_283, %c0_284] : memref<20x26x32xf32, #tpu.memory_space<vmem>>, vector<8x16x32xf32>
      %295 = vector.shape_cast %294 : vector<8x16x32xf32> to vector<128x32xf32>
      %c0_285 = arith.constant 0 : index
      %c0_286 = arith.constant 0 : index
      %c0_287 = arith.constant 0 : index
      %296 = vector.load %arg4[%c0_285, %c0_286, %c0_287] : memref<25x32x32xf32, #tpu.memory_space<vmem>>, vector<1x32x32xf32>
      %297 = vector.shape_cast %296 : vector<1x32x32xf32> to vector<32x32xf32>
      %cst_288 = arith.constant dense<0.000000e+00> : vector<128x32xf32>
      %298 = tpu.matmul %295, %297, %cst_288 {dimension_numbers = #tpu.dot_dimension_numbers<[1], [0], [0], [1], [0, 0, 1, 1], [], []>} : vector<128x32xf32>, vector<32x32xf32>, vector<128x32xf32> -> vector<128x32xf32>
      %c0_i32_289 = arith.constant 0 : i32
      %299 = arith.addi %291, %c0_i32_289 : i32
      %300 = arith.index_cast %299 : i32 to index
      %c7_290 = arith.constant 7 : index
      %c0_291 = arith.constant 0 : index
      %301 = vector.load %arg14[%300, %c7_290, %c0_291] : memref<20x26x32xf32, #tpu.memory_space<vmem>>, vector<8x16x32xf32>
      %302 = vector.shape_cast %301 : vector<8x16x32xf32> to vector<128x32xf32>
      %c1_292 = arith.constant 1 : index
      %c0_293 = arith.constant 0 : index
      %c0_294 = arith.constant 0 : index
      %303 = vector.load %arg4[%c1_292, %c0_293, %c0_294] : memref<25x32x32xf32, #tpu.memory_space<vmem>>, vector<1x32x32xf32>
      %304 = vector.shape_cast %303 : vector<1x32x32xf32> to vector<32x32xf32>
      %cst_295 = arith.constant dense<0.000000e+00> : vector<128x32xf32>
      %305 = tpu.matmul %302, %304, %cst_295 {dimension_numbers = #tpu.dot_dimension_numbers<[1], [0], [0], [1], [0, 0, 1, 1], [], []>} : vector<128x32xf32>, vector<32x32xf32>, vector<128x32xf32> -> vector<128x32xf32>
      %306 = arith.addf %298, %305 : vector<128x32xf32>
      %c0_i32_296 = arith.constant 0 : i32
      %307 = arith.addi %291, %c0_i32_296 : i32
      %308 = arith.index_cast %307 : i32 to index
      %c8_297 = arith.constant 8 : index
      %c0_298 = arith.constant 0 : index
      %309 = vector.load %arg14[%308, %c8_297, %c0_298] : memref<20x26x32xf32, #tpu.memory_space<vmem>>, vector<8x16x32xf32>
      %310 = vector.shape_cast %309 : vector<8x16x32xf32> to vector<128x32xf32>
      %c2_299 = arith.constant 2 : index
      %c0_300 = arith.constant 0 : index
      %c0_301 = arith.constant 0 : index
      %311 = vector.load %arg4[%c2_299, %c0_300, %c0_301] : memref<25x32x32xf32, #tpu.memory_space<vmem>>, vector<1x32x32xf32>
      %312 = vector.shape_cast %311 : vector<1x32x32xf32> to vector<32x32xf32>
      %cst_302 = arith.constant dense<0.000000e+00> : vector<128x32xf32>
      %313 = tpu.matmul %310, %312, %cst_302 {dimension_numbers = #tpu.dot_dimension_numbers<[1], [0], [0], [1], [0, 0, 1, 1], [], []>} : vector<128x32xf32>, vector<32x32xf32>, vector<128x32xf32> -> vector<128x32xf32>
      %314 = arith.addf %306, %313 : vector<128x32xf32>
      %c0_i32_303 = arith.constant 0 : i32
      %315 = arith.addi %291, %c0_i32_303 : i32
      %316 = arith.index_cast %315 : i32 to index
      %c9_304 = arith.constant 9 : index
      %c0_305 = arith.constant 0 : index
      %317 = vector.load %arg14[%316, %c9_304, %c0_305] : memref<20x26x32xf32, #tpu.memory_space<vmem>>, vector<8x16x32xf32>
      %318 = vector.shape_cast %317 : vector<8x16x32xf32> to vector<128x32xf32>
      %c3_306 = arith.constant 3 : index
      %c0_307 = arith.constant 0 : index
      %c0_308 = arith.constant 0 : index
      %319 = vector.load %arg4[%c3_306, %c0_307, %c0_308] : memref<25x32x32xf32, #tpu.memory_space<vmem>>, vector<1x32x32xf32>
      %320 = vector.shape_cast %319 : vector<1x32x32xf32> to vector<32x32xf32>
      %cst_309 = arith.constant dense<0.000000e+00> : vector<128x32xf32>
      %321 = tpu.matmul %318, %320, %cst_309 {dimension_numbers = #tpu.dot_dimension_numbers<[1], [0], [0], [1], [0, 0, 1, 1], [], []>} : vector<128x32xf32>, vector<32x32xf32>, vector<128x32xf32> -> vector<128x32xf32>
      %322 = arith.addf %314, %321 : vector<128x32xf32>
      %c0_i32_310 = arith.constant 0 : i32
      %323 = arith.addi %291, %c0_i32_310 : i32
      %324 = arith.index_cast %323 : i32 to index
      %c10_311 = arith.constant 10 : index
      %c0_312 = arith.constant 0 : index
      %325 = vector.load %arg14[%324, %c10_311, %c0_312] : memref<20x26x32xf32, #tpu.memory_space<vmem>>, vector<8x16x32xf32>
      %326 = vector.shape_cast %325 : vector<8x16x32xf32> to vector<128x32xf32>
      %c4_313 = arith.constant 4 : index
      %c0_314 = arith.constant 0 : index
      %c0_315 = arith.constant 0 : index
      %327 = vector.load %arg4[%c4_313, %c0_314, %c0_315] : memref<25x32x32xf32, #tpu.memory_space<vmem>>, vector<1x32x32xf32>
      %328 = vector.shape_cast %327 : vector<1x32x32xf32> to vector<32x32xf32>
      %cst_316 = arith.constant dense<0.000000e+00> : vector<128x32xf32>
      %329 = tpu.matmul %326, %328, %cst_316 {dimension_numbers = #tpu.dot_dimension_numbers<[1], [0], [0], [1], [0, 0, 1, 1], [], []>} : vector<128x32xf32>, vector<32x32xf32>, vector<128x32xf32> -> vector<128x32xf32>
      %330 = arith.addf %322, %329 : vector<128x32xf32>
      %331 = vector.shape_cast %330 : vector<128x32xf32> to vector<8x16x32xf32>
      %c0_317 = arith.constant 0 : index
      %c0_318 = arith.constant 0 : index
      %c0_319 = arith.constant 0 : index
      %332 = vector.load %arg17[%c0_317, %c0_318, %c0_319] : memref<8x16x32xf32, #tpu.memory_space<vmem>>, vector<8x16x32xf32>
      tpu.vector_store %arg17[%c0_317, %c0_318, %c0_319], %331 {strides = array<i32>} : memref<8x16x32xf32, #tpu.memory_space<vmem>>, vector<8x16x32xf32>,
      %c1_i32_320 = arith.constant 1 : i32
      %333 = arith.addi %291, %c1_i32_320 : i32
      %334 = arith.index_cast %333 : i32 to index
      %c6_321 = arith.constant 6 : index
      %c0_322 = arith.constant 0 : index
      %335 = vector.load %arg14[%334, %c6_321, %c0_322] : memref<20x26x32xf32, #tpu.memory_space<vmem>>, vector<8x16x32xf32>
      %336 = vector.shape_cast %335 : vector<8x16x32xf32> to vector<128x32xf32>
      %c5_323 = arith.constant 5 : index
      %c0_324 = arith.constant 0 : index
      %c0_325 = arith.constant 0 : index
      %337 = vector.load %arg4[%c5_323, %c0_324, %c0_325] : memref<25x32x32xf32, #tpu.memory_space<vmem>>, vector<1x32x32xf32>
      %338 = vector.shape_cast %337 : vector<1x32x32xf32> to vector<32x32xf32>
      %cst_326 = arith.constant dense<0.000000e+00> : vector<128x32xf32>
      %339 = tpu.matmul %336, %338, %cst_326 {dimension_numbers = #tpu.dot_dimension_numbers<[1], [0], [0], [1], [0, 0, 1, 1], [], []>} : vector<128x32xf32>, vector<32x32xf32>, vector<128x32xf32> -> vector<128x32xf32>
      %c1_i32_327 = arith.constant 1 : i32
      %340 = arith.addi %291, %c1_i32_327 : i32
      %341 = arith.index_cast %340 : i32 to index
      %c7_328 = arith.constant 7 : index
      %c0_329 = arith.constant 0 : index
      %342 = vector.load %arg14[%341, %c7_328, %c0_329] : memref<20x26x32xf32, #tpu.memory_space<vmem>>, vector<8x16x32xf32>
      %343 = vector.shape_cast %342 : vector<8x16x32xf32> to vector<128x32xf32>
      %c6_330 = arith.constant 6 : index
      %c0_331 = arith.constant 0 : index
      %c0_332 = arith.constant 0 : index
      %344 = vector.load %arg4[%c6_330, %c0_331, %c0_332] : memref<25x32x32xf32, #tpu.memory_space<vmem>>, vector<1x32x32xf32>
      %345 = vector.shape_cast %344 : vector<1x32x32xf32> to vector<32x32xf32>
      %cst_333 = arith.constant dense<0.000000e+00> : vector<128x32xf32>
      %346 = tpu.matmul %343, %345, %cst_333 {dimension_numbers = #tpu.dot_dimension_numbers<[1], [0], [0], [1], [0, 0, 1, 1], [], []>} : vector<128x32xf32>, vector<32x32xf32>, vector<128x32xf32> -> vector<128x32xf32>
      %347 = arith.addf %339, %346 : vector<128x32xf32>
      %c1_i32_334 = arith.constant 1 : i32
      %348 = arith.addi %291, %c1_i32_334 : i32
      %349 = arith.index_cast %348 : i32 to index
      %c8_335 = arith.constant 8 : index
      %c0_336 = arith.constant 0 : index
      %350 = vector.load %arg14[%349, %c8_335, %c0_336] : memref<20x26x32xf32, #tpu.memory_space<vmem>>, vector<8x16x32xf32>
      %351 = vector.shape_cast %350 : vector<8x16x32xf32> to vector<128x32xf32>
      %c7_337 = arith.constant 7 : index
      %c0_338 = arith.constant 0 : index
      %c0_339 = arith.constant 0 : index
      %352 = vector.load %arg4[%c7_337, %c0_338, %c0_339] : memref<25x32x32xf32, #tpu.memory_space<vmem>>, vector<1x32x32xf32>
      %353 = vector.shape_cast %352 : vector<1x32x32xf32> to vector<32x32xf32>
      %cst_340 = arith.constant dense<0.000000e+00> : vector<128x32xf32>
      %354 = tpu.matmul %351, %353, %cst_340 {dimension_numbers = #tpu.dot_dimension_numbers<[1], [0], [0], [1], [0, 0, 1, 1], [], []>} : vector<128x32xf32>, vector<32x32xf32>, vector<128x32xf32> -> vector<128x32xf32>
      %355 = arith.addf %347, %354 : vector<128x32xf32>
      %c1_i32_341 = arith.constant 1 : i32
      %356 = arith.addi %291, %c1_i32_341 : i32
      %357 = arith.index_cast %356 : i32 to index
      %c9_342 = arith.constant 9 : index
      %c0_343 = arith.constant 0 : index
      %358 = vector.load %arg14[%357, %c9_342, %c0_343] : memref<20x26x32xf32, #tpu.memory_space<vmem>>, vector<8x16x32xf32>
      %359 = vector.shape_cast %358 : vector<8x16x32xf32> to vector<128x32xf32>
      %c8_344 = arith.constant 8 : index
      %c0_345 = arith.constant 0 : index
      %c0_346 = arith.constant 0 : index
      %360 = vector.load %arg4[%c8_344, %c0_345, %c0_346] : memref<25x32x32xf32, #tpu.memory_space<vmem>>, vector<1x32x32xf32>
      %361 = vector.shape_cast %360 : vector<1x32x32xf32> to vector<32x32xf32>
      %cst_347 = arith.constant dense<0.000000e+00> : vector<128x32xf32>
      %362 = tpu.matmul %359, %361, %cst_347 {dimension_numbers = #tpu.dot_dimension_numbers<[1], [0], [0], [1], [0, 0, 1, 1], [], []>} : vector<128x32xf32>, vector<32x32xf32>, vector<128x32xf32> -> vector<128x32xf32>
      %363 = arith.addf %355, %362 : vector<128x32xf32>
      %c1_i32_348 = arith.constant 1 : i32
      %364 = arith.addi %291, %c1_i32_348 : i32
      %365 = arith.index_cast %364 : i32 to index
      %c10_349 = arith.constant 10 : index
      %c0_350 = arith.constant 0 : index
      %366 = vector.load %arg14[%365, %c10_349, %c0_350] : memref<20x26x32xf32, #tpu.memory_space<vmem>>, vector<8x16x32xf32>
      %367 = vector.shape_cast %366 : vector<8x16x32xf32> to vector<128x32xf32>
      %c9_351 = arith.constant 9 : index
      %c0_352 = arith.constant 0 : index
      %c0_353 = arith.constant 0 : index
      %368 = vector.load %arg4[%c9_351, %c0_352, %c0_353] : memref<25x32x32xf32, #tpu.memory_space<vmem>>, vector<1x32x32xf32>
      %369 = vector.shape_cast %368 : vector<1x32x32xf32> to vector<32x32xf32>
      %cst_354 = arith.constant dense<0.000000e+00> : vector<128x32xf32>
      %370 = tpu.matmul %367, %369, %cst_354 {dimension_numbers = #tpu.dot_dimension_numbers<[1], [0], [0], [1], [0, 0, 1, 1], [], []>} : vector<128x32xf32>, vector<32x32xf32>, vector<128x32xf32> -> vector<128x32xf32>
      %371 = arith.addf %363, %370 : vector<128x32xf32>
      %372 = vector.shape_cast %371 : vector<128x32xf32> to vector<8x16x32xf32>
      %c0_355 = arith.constant 0 : index
      %c0_356 = arith.constant 0 : index
      %c0_357 = arith.constant 0 : index
      %373 = vector.load %arg17[%c0_355, %c0_356, %c0_357] : memref<8x16x32xf32, #tpu.memory_space<vmem>>, vector<8x16x32xf32>
      %374 = arith.addf %373, %372 : vector<8x16x32xf32>
      %c0_358 = arith.constant 0 : index
      %c0_359 = arith.constant 0 : index
      %c0_360 = arith.constant 0 : index
      %375 = vector.load %arg17[%c0_358, %c0_359, %c0_360] : memref<8x16x32xf32, #tpu.memory_space<vmem>>, vector<8x16x32xf32>
      tpu.vector_store %arg17[%c0_358, %c0_359, %c0_360], %374 {strides = array<i32>} : memref<8x16x32xf32, #tpu.memory_space<vmem>>, vector<8x16x32xf32>,
      %c2_i32_361 = arith.constant 2 : i32
      %376 = arith.addi %291, %c2_i32_361 : i32
      %377 = arith.index_cast %376 : i32 to index
      %c6_362 = arith.constant 6 : index
      %c0_363 = arith.constant 0 : index
      %378 = vector.load %arg14[%377, %c6_362, %c0_363] : memref<20x26x32xf32, #tpu.memory_space<vmem>>, vector<8x16x32xf32>
      %379 = vector.shape_cast %378 : vector<8x16x32xf32> to vector<128x32xf32>
      %c10_364 = arith.constant 10 : index
      %c0_365 = arith.constant 0 : index
      %c0_366 = arith.constant 0 : index
      %380 = vector.load %arg4[%c10_364, %c0_365, %c0_366] : memref<25x32x32xf32, #tpu.memory_space<vmem>>, vector<1x32x32xf32>
      %381 = vector.shape_cast %380 : vector<1x32x32xf32> to vector<32x32xf32>
      %cst_367 = arith.constant dense<0.000000e+00> : vector<128x32xf32>
      %382 = tpu.matmul %379, %381, %cst_367 {dimension_numbers = #tpu.dot_dimension_numbers<[1], [0], [0], [1], [0, 0, 1, 1], [], []>} : vector<128x32xf32>, vector<32x32xf32>, vector<128x32xf32> -> vector<128x32xf32>
      %c2_i32_368 = arith.constant 2 : i32
      %383 = arith.addi %291, %c2_i32_368 : i32
      %384 = arith.index_cast %383 : i32 to index
      %c7_369 = arith.constant 7 : index
      %c0_370 = arith.constant 0 : index
      %385 = vector.load %arg14[%384, %c7_369, %c0_370] : memref<20x26x32xf32, #tpu.memory_space<vmem>>, vector<8x16x32xf32>
      %386 = vector.shape_cast %385 : vector<8x16x32xf32> to vector<128x32xf32>
      %c11_371 = arith.constant 11 : index
      %c0_372 = arith.constant 0 : index
      %c0_373 = arith.constant 0 : index
      %387 = vector.load %arg4[%c11_371, %c0_372, %c0_373] : memref<25x32x32xf32, #tpu.memory_space<vmem>>, vector<1x32x32xf32>
      %388 = vector.shape_cast %387 : vector<1x32x32xf32> to vector<32x32xf32>
      %cst_374 = arith.constant dense<0.000000e+00> : vector<128x32xf32>
      %389 = tpu.matmul %386, %388, %cst_374 {dimension_numbers = #tpu.dot_dimension_numbers<[1], [0], [0], [1], [0, 0, 1, 1], [], []>} : vector<128x32xf32>, vector<32x32xf32>, vector<128x32xf32> -> vector<128x32xf32>
      %390 = arith.addf %382, %389 : vector<128x32xf32>
      %c2_i32_375 = arith.constant 2 : i32
      %391 = arith.addi %291, %c2_i32_375 : i32
      %392 = arith.index_cast %391 : i32 to index
      %c8_376 = arith.constant 8 : index
      %c0_377 = arith.constant 0 : index
      %393 = vector.load %arg14[%392, %c8_376, %c0_377] : memref<20x26x32xf32, #tpu.memory_space<vmem>>, vector<8x16x32xf32>
      %394 = vector.shape_cast %393 : vector<8x16x32xf32> to vector<128x32xf32>
      %c12_378 = arith.constant 12 : index
      %c0_379 = arith.constant 0 : index
      %c0_380 = arith.constant 0 : index
      %395 = vector.load %arg4[%c12_378, %c0_379, %c0_380] : memref<25x32x32xf32, #tpu.memory_space<vmem>>, vector<1x32x32xf32>
      %396 = vector.shape_cast %395 : vector<1x32x32xf32> to vector<32x32xf32>
      %cst_381 = arith.constant dense<0.000000e+00> : vector<128x32xf32>
      %397 = tpu.matmul %394, %396, %cst_381 {dimension_numbers = #tpu.dot_dimension_numbers<[1], [0], [0], [1], [0, 0, 1, 1], [], []>} : vector<128x32xf32>, vector<32x32xf32>, vector<128x32xf32> -> vector<128x32xf32>
      %398 = arith.addf %390, %397 : vector<128x32xf32>
      %c2_i32_382 = arith.constant 2 : i32
      %399 = arith.addi %291, %c2_i32_382 : i32
      %400 = arith.index_cast %399 : i32 to index
      %c9_383 = arith.constant 9 : index
      %c0_384 = arith.constant 0 : index
      %401 = vector.load %arg14[%400, %c9_383, %c0_384] : memref<20x26x32xf32, #tpu.memory_space<vmem>>, vector<8x16x32xf32>
      %402 = vector.shape_cast %401 : vector<8x16x32xf32> to vector<128x32xf32>
      %c13_385 = arith.constant 13 : index
      %c0_386 = arith.constant 0 : index
      %c0_387 = arith.constant 0 : index
      %403 = vector.load %arg4[%c13_385, %c0_386, %c0_387] : memref<25x32x32xf32, #tpu.memory_space<vmem>>, vector<1x32x32xf32>
      %404 = vector.shape_cast %403 : vector<1x32x32xf32> to vector<32x32xf32>
      %cst_388 = arith.constant dense<0.000000e+00> : vector<128x32xf32>
      %405 = tpu.matmul %402, %404, %cst_388 {dimension_numbers = #tpu.dot_dimension_numbers<[1], [0], [0], [1], [0, 0, 1, 1], [], []>} : vector<128x32xf32>, vector<32x32xf32>, vector<128x32xf32> -> vector<128x32xf32>
      %406 = arith.addf %398, %405 : vector<128x32xf32>
      %c2_i32_389 = arith.constant 2 : i32
      %407 = arith.addi %291, %c2_i32_389 : i32
      %408 = arith.index_cast %407 : i32 to index
      %c10_390 = arith.constant 10 : index
      %c0_391 = arith.constant 0 : index
      %409 = vector.load %arg14[%408, %c10_390, %c0_391] : memref<20x26x32xf32, #tpu.memory_space<vmem>>, vector<8x16x32xf32>
      %410 = vector.shape_cast %409 : vector<8x16x32xf32> to vector<128x32xf32>
      %c14_392 = arith.constant 14 : index
      %c0_393 = arith.constant 0 : index
      %c0_394 = arith.constant 0 : index
      %411 = vector.load %arg4[%c14_392, %c0_393, %c0_394] : memref<25x32x32xf32, #tpu.memory_space<vmem>>, vector<1x32x32xf32>
      %412 = vector.shape_cast %411 : vector<1x32x32xf32> to vector<32x32xf32>
      %cst_395 = arith.constant dense<0.000000e+00> : vector<128x32xf32>
      %413 = tpu.matmul %410, %412, %cst_395 {dimension_numbers = #tpu.dot_dimension_numbers<[1], [0], [0], [1], [0, 0, 1, 1], [], []>} : vector<128x32xf32>, vector<32x32xf32>, vector<128x32xf32> -> vector<128x32xf32>
      %414 = arith.addf %406, %413 : vector<128x32xf32>
      %415 = vector.shape_cast %414 : vector<128x32xf32> to vector<8x16x32xf32>
      %c0_396 = arith.constant 0 : index
      %c0_397 = arith.constant 0 : index
      %c0_398 = arith.constant 0 : index
      %416 = vector.load %arg17[%c0_396, %c0_397, %c0_398] : memref<8x16x32xf32, #tpu.memory_space<vmem>>, vector<8x16x32xf32>
      %417 = arith.addf %416, %415 : vector<8x16x32xf32>
      %c0_399 = arith.constant 0 : index
      %c0_400 = arith.constant 0 : index
      %c0_401 = arith.constant 0 : index
      %418 = vector.load %arg17[%c0_399, %c0_400, %c0_401] : memref<8x16x32xf32, #tpu.memory_space<vmem>>, vector<8x16x32xf32>
      tpu.vector_store %arg17[%c0_399, %c0_400, %c0_401], %417 {strides = array<i32>} : memref<8x16x32xf32, #tpu.memory_space<vmem>>, vector<8x16x32xf32>,
      %c3_i32 = arith.constant 3 : i32
      %419 = arith.addi %291, %c3_i32 : i32
      %420 = arith.index_cast %419 : i32 to index
      %c6_402 = arith.constant 6 : index
      %c0_403 = arith.constant 0 : index
      %421 = vector.load %arg14[%420, %c6_402, %c0_403] : memref<20x26x32xf32, #tpu.memory_space<vmem>>, vector<8x16x32xf32>
      %422 = vector.shape_cast %421 : vector<8x16x32xf32> to vector<128x32xf32>
      %c15_404 = arith.constant 15 : index
      %c0_405 = arith.constant 0 : index
      %c0_406 = arith.constant 0 : index
      %423 = vector.load %arg4[%c15_404, %c0_405, %c0_406] : memref<25x32x32xf32, #tpu.memory_space<vmem>>, vector<1x32x32xf32>
      %424 = vector.shape_cast %423 : vector<1x32x32xf32> to vector<32x32xf32>
      %cst_407 = arith.constant dense<0.000000e+00> : vector<128x32xf32>
      %425 = tpu.matmul %422, %424, %cst_407 {dimension_numbers = #tpu.dot_dimension_numbers<[1], [0], [0], [1], [0, 0, 1, 1], [], []>} : vector<128x32xf32>, vector<32x32xf32>, vector<128x32xf32> -> vector<128x32xf32>
      %c3_i32_408 = arith.constant 3 : i32
      %426 = arith.addi %291, %c3_i32_408 : i32
      %427 = arith.index_cast %426 : i32 to index
      %c7_409 = arith.constant 7 : index
      %c0_410 = arith.constant 0 : index
      %428 = vector.load %arg14[%427, %c7_409, %c0_410] : memref<20x26x32xf32, #tpu.memory_space<vmem>>, vector<8x16x32xf32>
      %429 = vector.shape_cast %428 : vector<8x16x32xf32> to vector<128x32xf32>
      %c16_411 = arith.constant 16 : index
      %c0_412 = arith.constant 0 : index
      %c0_413 = arith.constant 0 : index
      %430 = vector.load %arg4[%c16_411, %c0_412, %c0_413] : memref<25x32x32xf32, #tpu.memory_space<vmem>>, vector<1x32x32xf32>
      %431 = vector.shape_cast %430 : vector<1x32x32xf32> to vector<32x32xf32>
      %cst_414 = arith.constant dense<0.000000e+00> : vector<128x32xf32>
      %432 = tpu.matmul %429, %431, %cst_414 {dimension_numbers = #tpu.dot_dimension_numbers<[1], [0], [0], [1], [0, 0, 1, 1], [], []>} : vector<128x32xf32>, vector<32x32xf32>, vector<128x32xf32> -> vector<128x32xf32>
      %433 = arith.addf %425, %432 : vector<128x32xf32>
      %c3_i32_415 = arith.constant 3 : i32
      %434 = arith.addi %291, %c3_i32_415 : i32
      %435 = arith.index_cast %434 : i32 to index
      %c8_416 = arith.constant 8 : index
      %c0_417 = arith.constant 0 : index
      %436 = vector.load %arg14[%435, %c8_416, %c0_417] : memref<20x26x32xf32, #tpu.memory_space<vmem>>, vector<8x16x32xf32>
      %437 = vector.shape_cast %436 : vector<8x16x32xf32> to vector<128x32xf32>
      %c17_418 = arith.constant 17 : index
      %c0_419 = arith.constant 0 : index
      %c0_420 = arith.constant 0 : index
      %438 = vector.load %arg4[%c17_418, %c0_419, %c0_420] : memref<25x32x32xf32, #tpu.memory_space<vmem>>, vector<1x32x32xf32>
      %439 = vector.shape_cast %438 : vector<1x32x32xf32> to vector<32x32xf32>
      %cst_421 = arith.constant dense<0.000000e+00> : vector<128x32xf32>
      %440 = tpu.matmul %437, %439, %cst_421 {dimension_numbers = #tpu.dot_dimension_numbers<[1], [0], [0], [1], [0, 0, 1, 1], [], []>} : vector<128x32xf32>, vector<32x32xf32>, vector<128x32xf32> -> vector<128x32xf32>
      %441 = arith.addf %433, %440 : vector<128x32xf32>
      %c3_i32_422 = arith.constant 3 : i32
      %442 = arith.addi %291, %c3_i32_422 : i32
      %443 = arith.index_cast %442 : i32 to index
      %c9_423 = arith.constant 9 : index
      %c0_424 = arith.constant 0 : index
      %444 = vector.load %arg14[%443, %c9_423, %c0_424] : memref<20x26x32xf32, #tpu.memory_space<vmem>>, vector<8x16x32xf32>
      %445 = vector.shape_cast %444 : vector<8x16x32xf32> to vector<128x32xf32>
      %c18_425 = arith.constant 18 : index
      %c0_426 = arith.constant 0 : index
      %c0_427 = arith.constant 0 : index
      %446 = vector.load %arg4[%c18_425, %c0_426, %c0_427] : memref<25x32x32xf32, #tpu.memory_space<vmem>>, vector<1x32x32xf32>
      %447 = vector.shape_cast %446 : vector<1x32x32xf32> to vector<32x32xf32>
      %cst_428 = arith.constant dense<0.000000e+00> : vector<128x32xf32>
      %448 = tpu.matmul %445, %447, %cst_428 {dimension_numbers = #tpu.dot_dimension_numbers<[1], [0], [0], [1], [0, 0, 1, 1], [], []>} : vector<128x32xf32>, vector<32x32xf32>, vector<128x32xf32> -> vector<128x32xf32>
      %449 = arith.addf %441, %448 : vector<128x32xf32>
      %c3_i32_429 = arith.constant 3 : i32
      %450 = arith.addi %291, %c3_i32_429 : i32
      %451 = arith.index_cast %450 : i32 to index
      %c10_430 = arith.constant 10 : index
      %c0_431 = arith.constant 0 : index
      %452 = vector.load %arg14[%451, %c10_430, %c0_431] : memref<20x26x32xf32, #tpu.memory_space<vmem>>, vector<8x16x32xf32>
      %453 = vector.shape_cast %452 : vector<8x16x32xf32> to vector<128x32xf32>
      %c19_432 = arith.constant 19 : index
      %c0_433 = arith.constant 0 : index
      %c0_434 = arith.constant 0 : index
      %454 = vector.load %arg4[%c19_432, %c0_433, %c0_434] : memref<25x32x32xf32, #tpu.memory_space<vmem>>, vector<1x32x32xf32>
      %455 = vector.shape_cast %454 : vector<1x32x32xf32> to vector<32x32xf32>
      %cst_435 = arith.constant dense<0.000000e+00> : vector<128x32xf32>
      %456 = tpu.matmul %453, %455, %cst_435 {dimension_numbers = #tpu.dot_dimension_numbers<[1], [0], [0], [1], [0, 0, 1, 1], [], []>} : vector<128x32xf32>, vector<32x32xf32>, vector<128x32xf32> -> vector<128x32xf32>
      %457 = arith.addf %449, %456 : vector<128x32xf32>
      %458 = vector.shape_cast %457 : vector<128x32xf32> to vector<8x16x32xf32>
      %c0_436 = arith.constant 0 : index
      %c0_437 = arith.constant 0 : index
      %c0_438 = arith.constant 0 : index
      %459 = vector.load %arg17[%c0_436, %c0_437, %c0_438] : memref<8x16x32xf32, #tpu.memory_space<vmem>>, vector<8x16x32xf32>
      %460 = arith.addf %459, %458 : vector<8x16x32xf32>
      %c0_439 = arith.constant 0 : index
      %c0_440 = arith.constant 0 : index
      %c0_441 = arith.constant 0 : index
      %461 = vector.load %arg17[%c0_439, %c0_440, %c0_441] : memref<8x16x32xf32, #tpu.memory_space<vmem>>, vector<8x16x32xf32>
      tpu.vector_store %arg17[%c0_439, %c0_440, %c0_441], %460 {strides = array<i32>} : memref<8x16x32xf32, #tpu.memory_space<vmem>>, vector<8x16x32xf32>,
      %c4_i32 = arith.constant 4 : i32
      %462 = arith.addi %291, %c4_i32 : i32
      %463 = arith.index_cast %462 : i32 to index
      %c6_442 = arith.constant 6 : index
      %c0_443 = arith.constant 0 : index
      %464 = vector.load %arg14[%463, %c6_442, %c0_443] : memref<20x26x32xf32, #tpu.memory_space<vmem>>, vector<8x16x32xf32>
      %465 = vector.shape_cast %464 : vector<8x16x32xf32> to vector<128x32xf32>
      %c20_444 = arith.constant 20 : index
      %c0_445 = arith.constant 0 : index
      %c0_446 = arith.constant 0 : index
      %466 = vector.load %arg4[%c20_444, %c0_445, %c0_446] : memref<25x32x32xf32, #tpu.memory_space<vmem>>, vector<1x32x32xf32>
      %467 = vector.shape_cast %466 : vector<1x32x32xf32> to vector<32x32xf32>
      %cst_447 = arith.constant dense<0.000000e+00> : vector<128x32xf32>
      %468 = tpu.matmul %465, %467, %cst_447 {dimension_numbers = #tpu.dot_dimension_numbers<[1], [0], [0], [1], [0, 0, 1, 1], [], []>} : vector<128x32xf32>, vector<32x32xf32>, vector<128x32xf32> -> vector<128x32xf32>
      %c4_i32_448 = arith.constant 4 : i32
      %469 = arith.addi %291, %c4_i32_448 : i32
      %470 = arith.index_cast %469 : i32 to index
      %c7_449 = arith.constant 7 : index
      %c0_450 = arith.constant 0 : index
      %471 = vector.load %arg14[%470, %c7_449, %c0_450] : memref<20x26x32xf32, #tpu.memory_space<vmem>>, vector<8x16x32xf32>
      %472 = vector.shape_cast %471 : vector<8x16x32xf32> to vector<128x32xf32>
      %c21_451 = arith.constant 21 : index
      %c0_452 = arith.constant 0 : index
      %c0_453 = arith.constant 0 : index
      %473 = vector.load %arg4[%c21_451, %c0_452, %c0_453] : memref<25x32x32xf32, #tpu.memory_space<vmem>>, vector<1x32x32xf32>
      %474 = vector.shape_cast %473 : vector<1x32x32xf32> to vector<32x32xf32>
      %cst_454 = arith.constant dense<0.000000e+00> : vector<128x32xf32>
      %475 = tpu.matmul %472, %474, %cst_454 {dimension_numbers = #tpu.dot_dimension_numbers<[1], [0], [0], [1], [0, 0, 1, 1], [], []>} : vector<128x32xf32>, vector<32x32xf32>, vector<128x32xf32> -> vector<128x32xf32>
      %476 = arith.addf %468, %475 : vector<128x32xf32>
      %c4_i32_455 = arith.constant 4 : i32
      %477 = arith.addi %291, %c4_i32_455 : i32
      %478 = arith.index_cast %477 : i32 to index
      %c8_456 = arith.constant 8 : index
      %c0_457 = arith.constant 0 : index
      %479 = vector.load %arg14[%478, %c8_456, %c0_457] : memref<20x26x32xf32, #tpu.memory_space<vmem>>, vector<8x16x32xf32>
      %480 = vector.shape_cast %479 : vector<8x16x32xf32> to vector<128x32xf32>
      %c22_458 = arith.constant 22 : index
      %c0_459 = arith.constant 0 : index
      %c0_460 = arith.constant 0 : index
      %481 = vector.load %arg4[%c22_458, %c0_459, %c0_460] : memref<25x32x32xf32, #tpu.memory_space<vmem>>, vector<1x32x32xf32>
      %482 = vector.shape_cast %481 : vector<1x32x32xf32> to vector<32x32xf32>
      %cst_461 = arith.constant dense<0.000000e+00> : vector<128x32xf32>
      %483 = tpu.matmul %480, %482, %cst_461 {dimension_numbers = #tpu.dot_dimension_numbers<[1], [0], [0], [1], [0, 0, 1, 1], [], []>} : vector<128x32xf32>, vector<32x32xf32>, vector<128x32xf32> -> vector<128x32xf32>
      %484 = arith.addf %476, %483 : vector<128x32xf32>
      %c4_i32_462 = arith.constant 4 : i32
      %485 = arith.addi %291, %c4_i32_462 : i32
      %486 = arith.index_cast %485 : i32 to index
      %c9_463 = arith.constant 9 : index
      %c0_464 = arith.constant 0 : index
      %487 = vector.load %arg14[%486, %c9_463, %c0_464] : memref<20x26x32xf32, #tpu.memory_space<vmem>>, vector<8x16x32xf32>
      %488 = vector.shape_cast %487 : vector<8x16x32xf32> to vector<128x32xf32>
      %c23_465 = arith.constant 23 : index
      %c0_466 = arith.constant 0 : index
      %c0_467 = arith.constant 0 : index
      %489 = vector.load %arg4[%c23_465, %c0_466, %c0_467] : memref<25x32x32xf32, #tpu.memory_space<vmem>>, vector<1x32x32xf32>
      %490 = vector.shape_cast %489 : vector<1x32x32xf32> to vector<32x32xf32>
      %cst_468 = arith.constant dense<0.000000e+00> : vector<128x32xf32>
      %491 = tpu.matmul %488, %490, %cst_468 {dimension_numbers = #tpu.dot_dimension_numbers<[1], [0], [0], [1], [0, 0, 1, 1], [], []>} : vector<128x32xf32>, vector<32x32xf32>, vector<128x32xf32> -> vector<128x32xf32>
      %492 = arith.addf %484, %491 : vector<128x32xf32>
      %c4_i32_469 = arith.constant 4 : i32
      %493 = arith.addi %291, %c4_i32_469 : i32
      %494 = arith.index_cast %493 : i32 to index
      %c10_470 = arith.constant 10 : index
      %c0_471 = arith.constant 0 : index
      %495 = vector.load %arg14[%494, %c10_470, %c0_471] : memref<20x26x32xf32, #tpu.memory_space<vmem>>, vector<8x16x32xf32>
      %496 = vector.shape_cast %495 : vector<8x16x32xf32> to vector<128x32xf32>
      %c24_472 = arith.constant 24 : index
      %c0_473 = arith.constant 0 : index
      %c0_474 = arith.constant 0 : index
      %497 = vector.load %arg4[%c24_472, %c0_473, %c0_474] : memref<25x32x32xf32, #tpu.memory_space<vmem>>, vector<1x32x32xf32>
      %498 = vector.shape_cast %497 : vector<1x32x32xf32> to vector<32x32xf32>
      %cst_475 = arith.constant dense<0.000000e+00> : vector<128x32xf32>
      %499 = tpu.matmul %496, %498, %cst_475 {dimension_numbers = #tpu.dot_dimension_numbers<[1], [0], [0], [1], [0, 0, 1, 1], [], []>} : vector<128x32xf32>, vector<32x32xf32>, vector<128x32xf32> -> vector<128x32xf32>
      %500 = arith.addf %492, %499 : vector<128x32xf32>
      %501 = vector.shape_cast %500 : vector<128x32xf32> to vector<8x16x32xf32>
      %c0_476 = arith.constant 0 : index
      %c0_477 = arith.constant 0 : index
      %c0_478 = arith.constant 0 : index
      %502 = vector.load %arg17[%c0_476, %c0_477, %c0_478] : memref<8x16x32xf32, #tpu.memory_space<vmem>>, vector<8x16x32xf32>
      %503 = arith.addf %502, %501 : vector<8x16x32xf32>
      %c0_479 = arith.constant 0 : index
      %c0_480 = arith.constant 0 : index
      %c0_481 = arith.constant 0 : index
      %504 = vector.load %arg17[%c0_479, %c0_480, %c0_481] : memref<8x16x32xf32, #tpu.memory_space<vmem>>, vector<8x16x32xf32>
      tpu.vector_store %arg17[%c0_479, %c0_480, %c0_481], %503 {strides = array<i32>} : memref<8x16x32xf32, #tpu.memory_space<vmem>>, vector<8x16x32xf32>,
      %c0_482 = arith.constant 0 : index
      %c0_483 = arith.constant 0 : index
      %c0_484 = arith.constant 0 : index
      %505 = tpu.strided_load %arg17[%c0_482, %c0_483, %c0_484] {strides = array<i32: 1, 2, 1>} : memref<8x16x32xf32, #tpu.memory_space<vmem>>, vector<8x8x32xf32>
      %c0_485 = arith.constant 0 : index
      %c1_486 = arith.constant 1 : index
      %c0_487 = arith.constant 0 : index
      %506 = tpu.strided_load %arg17[%c0_485, %c1_486, %c0_487] {strides = array<i32: 1, 2, 1>} : memref<8x16x32xf32, #tpu.memory_space<vmem>>, vector<8x8x32xf32>
      %507 = arith.maximumf %505, %506 : vector<8x8x32xf32>
      %508 = vector.shape_cast %507 : vector<8x8x32xf32> to vector<4x2x8x32xf32>
      %509 = vector.extract_strided_slice %508 {offsets = [0, 0, 0, 0], sizes = [4, 1, 8, 32], strides = [1, 1, 1, 1]} : vector<4x2x8x32xf32> to vector<4x1x8x32xf32>
      %510 = vector.shape_cast %509 : vector<4x1x8x32xf32> to vector<4x8x32xf32>
      %511 = vector.extract_strided_slice %508 {offsets = [0, 1, 0, 0], sizes = [4, 1, 8, 32], strides = [1, 1, 1, 1]} : vector<4x2x8x32xf32> to vector<4x1x8x32xf32>
      %512 = vector.shape_cast %511 : vector<4x1x8x32xf32> to vector<4x8x32xf32>
      %513 = arith.maximumf %510, %512 : vector<4x8x32xf32>
      %c0_488 = arith.constant 0 : index
      %c0_489 = arith.constant 0 : index
      %514 = vector.load %arg5[%c0_488, %c0_489] : memref<1x32xf32, #tpu.memory_space<vmem>>, vector<1x32xf32>
      %515 = vector.shape_cast %514 : vector<1x32xf32> to vector<1x1x32xf32>
      %516 = vector.broadcast %515 : vector<1x1x32xf32> to vector<4x8x32xf32>
      %517 = arith.addf %513, %516 : vector<4x8x32xf32>
      %c4_i32_490 = arith.constant 4 : i32
      %518 = arith.muli %arg19, %c4_i32_490 : i32
      %c2_i32_491 = arith.constant 2 : i32
      %519 = arith.addi %c2_i32_491, %518 : i32
      %520 = arith.index_cast %519 : i32 to index
      %c8_492 = arith.constant 8 : index
      %c0_493 = arith.constant 0 : index
      %521 = vector.load %arg15[%520, %c8_492, %c0_493] : memref<12x18x32xf32, #tpu.memory_space<vmem>>, vector<4x8x32xf32>
      tpu.vector_store %arg15[%520, %c8_492, %c0_493], %517 {strides = array<i32>} : memref<12x18x32xf32, #tpu.memory_space<vmem>>, vector<4x8x32xf32>,
    }
    %c2_i32_18 = arith.constant 2 : i32
    %c0_19 = arith.constant 0 : index
    %c6 = arith.constant 6 : index
    %c0_20 = arith.constant 0 : index
    %11 = vector.load %arg15[%c0_19, %c6, %c0_20] : memref<12x18x32xf32, #tpu.memory_space<vmem>>, vector<8x8x32xf32>
    %12 = vector.shape_cast %11 : vector<8x8x32xf32> to vector<64x32xf32>
    %c0_21 = arith.constant 0 : index
    %c0_22 = arith.constant 0 : index
    %c0_23 = arith.constant 0 : index
    %13 = vector.load %arg6[%c0_21, %c0_22, %c0_23] : memref<25x32x64xf32, #tpu.memory_space<vmem>>, vector<1x32x64xf32>
    %14 = vector.shape_cast %13 : vector<1x32x64xf32> to vector<32x64xf32>
    %cst_24 = arith.constant dense<0.000000e+00> : vector<64x64xf32>
    %15 = tpu.matmul %12, %14, %cst_24 {dimension_numbers = #tpu.dot_dimension_numbers<[1], [0], [0], [1], [0, 0, 1, 1], [], []>} : vector<64x32xf32>, vector<32x64xf32>, vector<64x64xf32> -> vector<64x64xf32>
    %c0_25 = arith.constant 0 : index
    %c7 = arith.constant 7 : index
    %c0_26 = arith.constant 0 : index
    %16 = vector.load %arg15[%c0_25, %c7, %c0_26] : memref<12x18x32xf32, #tpu.memory_space<vmem>>, vector<8x8x32xf32>
    %17 = vector.shape_cast %16 : vector<8x8x32xf32> to vector<64x32xf32>
    %c1 = arith.constant 1 : index
    %c0_27 = arith.constant 0 : index
    %c0_28 = arith.constant 0 : index
    %18 = vector.load %arg6[%c1, %c0_27, %c0_28] : memref<25x32x64xf32, #tpu.memory_space<vmem>>, vector<1x32x64xf32>
    %19 = vector.shape_cast %18 : vector<1x32x64xf32> to vector<32x64xf32>
    %cst_29 = arith.constant dense<0.000000e+00> : vector<64x64xf32>
    %20 = tpu.matmul %17, %19, %cst_29 {dimension_numbers = #tpu.dot_dimension_numbers<[1], [0], [0], [1], [0, 0, 1, 1], [], []>} : vector<64x32xf32>, vector<32x64xf32>, vector<64x64xf32> -> vector<64x64xf32>
    %21 = arith.addf %15, %20 : vector<64x64xf32>
    %c0_30 = arith.constant 0 : index
    %c8_31 = arith.constant 8 : index
    %c0_32 = arith.constant 0 : index
    %22 = vector.load %arg15[%c0_30, %c8_31, %c0_32] : memref<12x18x32xf32, #tpu.memory_space<vmem>>, vector<8x8x32xf32>
    %23 = vector.shape_cast %22 : vector<8x8x32xf32> to vector<64x32xf32>
    %c2_33 = arith.constant 2 : index
    %c0_34 = arith.constant 0 : index
    %c0_35 = arith.constant 0 : index
    %24 = vector.load %arg6[%c2_33, %c0_34, %c0_35] : memref<25x32x64xf32, #tpu.memory_space<vmem>>, vector<1x32x64xf32>
    %25 = vector.shape_cast %24 : vector<1x32x64xf32> to vector<32x64xf32>
    %cst_36 = arith.constant dense<0.000000e+00> : vector<64x64xf32>
    %26 = tpu.matmul %23, %25, %cst_36 {dimension_numbers = #tpu.dot_dimension_numbers<[1], [0], [0], [1], [0, 0, 1, 1], [], []>} : vector<64x32xf32>, vector<32x64xf32>, vector<64x64xf32> -> vector<64x64xf32>
    %27 = arith.addf %21, %26 : vector<64x64xf32>
    %c0_37 = arith.constant 0 : index
    %c9 = arith.constant 9 : index
    %c0_38 = arith.constant 0 : index
    %28 = vector.load %arg15[%c0_37, %c9, %c0_38] : memref<12x18x32xf32, #tpu.memory_space<vmem>>, vector<8x8x32xf32>
    %29 = vector.shape_cast %28 : vector<8x8x32xf32> to vector<64x32xf32>
    %c3 = arith.constant 3 : index
    %c0_39 = arith.constant 0 : index
    %c0_40 = arith.constant 0 : index
    %30 = vector.load %arg6[%c3, %c0_39, %c0_40] : memref<25x32x64xf32, #tpu.memory_space<vmem>>, vector<1x32x64xf32>
    %31 = vector.shape_cast %30 : vector<1x32x64xf32> to vector<32x64xf32>
    %cst_41 = arith.constant dense<0.000000e+00> : vector<64x64xf32>
    %32 = tpu.matmul %29, %31, %cst_41 {dimension_numbers = #tpu.dot_dimension_numbers<[1], [0], [0], [1], [0, 0, 1, 1], [], []>} : vector<64x32xf32>, vector<32x64xf32>, vector<64x64xf32> -> vector<64x64xf32>
    %33 = arith.addf %27, %32 : vector<64x64xf32>
    %c0_42 = arith.constant 0 : index
    %c10 = arith.constant 10 : index
    %c0_43 = arith.constant 0 : index
    %34 = vector.load %arg15[%c0_42, %c10, %c0_43] : memref<12x18x32xf32, #tpu.memory_space<vmem>>, vector<8x8x32xf32>
    %35 = vector.shape_cast %34 : vector<8x8x32xf32> to vector<64x32xf32>
    %c4 = arith.constant 4 : index
    %c0_44 = arith.constant 0 : index
    %c0_45 = arith.constant 0 : index
    %36 = vector.load %arg6[%c4, %c0_44, %c0_45] : memref<25x32x64xf32, #tpu.memory_space<vmem>>, vector<1x32x64xf32>
    %37 = vector.shape_cast %36 : vector<1x32x64xf32> to vector<32x64xf32>
    %cst_46 = arith.constant dense<0.000000e+00> : vector<64x64xf32>
    %38 = tpu.matmul %35, %37, %cst_46 {dimension_numbers = #tpu.dot_dimension_numbers<[1], [0], [0], [1], [0, 0, 1, 1], [], []>} : vector<64x32xf32>, vector<32x64xf32>, vector<64x64xf32> -> vector<64x64xf32>
    %39 = arith.addf %33, %38 : vector<64x64xf32>
    %40 = vector.shape_cast %39 : vector<64x64xf32> to vector<8x8x64xf32>
    %c0_47 = arith.constant 0 : index
    %c0_48 = arith.constant 0 : index
    %c0_49 = arith.constant 0 : index
    %41 = vector.load %arg18[%c0_47, %c0_48, %c0_49] : memref<8x8x64xf32, #tpu.memory_space<vmem>>, vector<8x8x64xf32>
    tpu.vector_store %arg18[%c0_47, %c0_48, %c0_49], %40 {strides = array<i32>} : memref<8x8x64xf32, #tpu.memory_space<vmem>>, vector<8x8x64xf32>,
    %c1_50 = arith.constant 1 : index
    %c6_51 = arith.constant 6 : index
    %c0_52 = arith.constant 0 : index
    %42 = vector.load %arg15[%c1_50, %c6_51, %c0_52] : memref<12x18x32xf32, #tpu.memory_space<vmem>>, vector<8x8x32xf32>
    %43 = vector.shape_cast %42 : vector<8x8x32xf32> to vector<64x32xf32>
    %c5 = arith.constant 5 : index
    %c0_53 = arith.constant 0 : index
    %c0_54 = arith.constant 0 : index
    %44 = vector.load %arg6[%c5, %c0_53, %c0_54] : memref<25x32x64xf32, #tpu.memory_space<vmem>>, vector<1x32x64xf32>
    %45 = vector.shape_cast %44 : vector<1x32x64xf32> to vector<32x64xf32>
    %cst_55 = arith.constant dense<0.000000e+00> : vector<64x64xf32>
    %46 = tpu.matmul %43, %45, %cst_55 {dimension_numbers = #tpu.dot_dimension_numbers<[1], [0], [0], [1], [0, 0, 1, 1], [], []>} : vector<64x32xf32>, vector<32x64xf32>, vector<64x64xf32> -> vector<64x64xf32>
    %c1_56 = arith.constant 1 : index
    %c7_57 = arith.constant 7 : index
    %c0_58 = arith.constant 0 : index
    %47 = vector.load %arg15[%c1_56, %c7_57, %c0_58] : memref<12x18x32xf32, #tpu.memory_space<vmem>>, vector<8x8x32xf32>
    %48 = vector.shape_cast %47 : vector<8x8x32xf32> to vector<64x32xf32>
    %c6_59 = arith.constant 6 : index
    %c0_60 = arith.constant 0 : index
    %c0_61 = arith.constant 0 : index
    %49 = vector.load %arg6[%c6_59, %c0_60, %c0_61] : memref<25x32x64xf32, #tpu.memory_space<vmem>>, vector<1x32x64xf32>
    %50 = vector.shape_cast %49 : vector<1x32x64xf32> to vector<32x64xf32>
    %cst_62 = arith.constant dense<0.000000e+00> : vector<64x64xf32>
    %51 = tpu.matmul %48, %50, %cst_62 {dimension_numbers = #tpu.dot_dimension_numbers<[1], [0], [0], [1], [0, 0, 1, 1], [], []>} : vector<64x32xf32>, vector<32x64xf32>, vector<64x64xf32> -> vector<64x64xf32>
    %52 = arith.addf %46, %51 : vector<64x64xf32>
    %c1_63 = arith.constant 1 : index
    %c8_64 = arith.constant 8 : index
    %c0_65 = arith.constant 0 : index
    %53 = vector.load %arg15[%c1_63, %c8_64, %c0_65] : memref<12x18x32xf32, #tpu.memory_space<vmem>>, vector<8x8x32xf32>
    %54 = vector.shape_cast %53 : vector<8x8x32xf32> to vector<64x32xf32>
    %c7_66 = arith.constant 7 : index
    %c0_67 = arith.constant 0 : index
    %c0_68 = arith.constant 0 : index
    %55 = vector.load %arg6[%c7_66, %c0_67, %c0_68] : memref<25x32x64xf32, #tpu.memory_space<vmem>>, vector<1x32x64xf32>
    %56 = vector.shape_cast %55 : vector<1x32x64xf32> to vector<32x64xf32>
    %cst_69 = arith.constant dense<0.000000e+00> : vector<64x64xf32>
    %57 = tpu.matmul %54, %56, %cst_69 {dimension_numbers = #tpu.dot_dimension_numbers<[1], [0], [0], [1], [0, 0, 1, 1], [], []>} : vector<64x32xf32>, vector<32x64xf32>, vector<64x64xf32> -> vector<64x64xf32>
    %58 = arith.addf %52, %57 : vector<64x64xf32>
    %c1_70 = arith.constant 1 : index
    %c9_71 = arith.constant 9 : index
    %c0_72 = arith.constant 0 : index
    %59 = vector.load %arg15[%c1_70, %c9_71, %c0_72] : memref<12x18x32xf32, #tpu.memory_space<vmem>>, vector<8x8x32xf32>
    %60 = vector.shape_cast %59 : vector<8x8x32xf32> to vector<64x32xf32>
    %c8_73 = arith.constant 8 : index
    %c0_74 = arith.constant 0 : index
    %c0_75 = arith.constant 0 : index
    %61 = vector.load %arg6[%c8_73, %c0_74, %c0_75] : memref<25x32x64xf32, #tpu.memory_space<vmem>>, vector<1x32x64xf32>
    %62 = vector.shape_cast %61 : vector<1x32x64xf32> to vector<32x64xf32>
    %cst_76 = arith.constant dense<0.000000e+00> : vector<64x64xf32>
    %63 = tpu.matmul %60, %62, %cst_76 {dimension_numbers = #tpu.dot_dimension_numbers<[1], [0], [0], [1], [0, 0, 1, 1], [], []>} : vector<64x32xf32>, vector<32x64xf32>, vector<64x64xf32> -> vector<64x64xf32>
    %64 = arith.addf %58, %63 : vector<64x64xf32>
    %c1_77 = arith.constant 1 : index
    %c10_78 = arith.constant 10 : index
    %c0_79 = arith.constant 0 : index
    %65 = vector.load %arg15[%c1_77, %c10_78, %c0_79] : memref<12x18x32xf32, #tpu.memory_space<vmem>>, vector<8x8x32xf32>
    %66 = vector.shape_cast %65 : vector<8x8x32xf32> to vector<64x32xf32>
    %c9_80 = arith.constant 9 : index
    %c0_81 = arith.constant 0 : index
    %c0_82 = arith.constant 0 : index
    %67 = vector.load %arg6[%c9_80, %c0_81, %c0_82] : memref<25x32x64xf32, #tpu.memory_space<vmem>>, vector<1x32x64xf32>
    %68 = vector.shape_cast %67 : vector<1x32x64xf32> to vector<32x64xf32>
    %cst_83 = arith.constant dense<0.000000e+00> : vector<64x64xf32>
    %69 = tpu.matmul %66, %68, %cst_83 {dimension_numbers = #tpu.dot_dimension_numbers<[1], [0], [0], [1], [0, 0, 1, 1], [], []>} : vector<64x32xf32>, vector<32x64xf32>, vector<64x64xf32> -> vector<64x64xf32>
    %70 = arith.addf %64, %69 : vector<64x64xf32>
    %71 = vector.shape_cast %70 : vector<64x64xf32> to vector<8x8x64xf32>
    %c0_84 = arith.constant 0 : index
    %c0_85 = arith.constant 0 : index
    %c0_86 = arith.constant 0 : index
    %72 = vector.load %arg18[%c0_84, %c0_85, %c0_86] : memref<8x8x64xf32, #tpu.memory_space<vmem>>, vector<8x8x64xf32>
    %73 = arith.addf %72, %71 : vector<8x8x64xf32>
    %c0_87 = arith.constant 0 : index
    %c0_88 = arith.constant 0 : index
    %c0_89 = arith.constant 0 : index
    %74 = vector.load %arg18[%c0_87, %c0_88, %c0_89] : memref<8x8x64xf32, #tpu.memory_space<vmem>>, vector<8x8x64xf32>
    tpu.vector_store %arg18[%c0_87, %c0_88, %c0_89], %73 {strides = array<i32>} : memref<8x8x64xf32, #tpu.memory_space<vmem>>, vector<8x8x64xf32>,
    %c2_90 = arith.constant 2 : index
    %c6_91 = arith.constant 6 : index
    %c0_92 = arith.constant 0 : index
    %75 = vector.load %arg15[%c2_90, %c6_91, %c0_92] : memref<12x18x32xf32, #tpu.memory_space<vmem>>, vector<8x8x32xf32>
    %76 = vector.shape_cast %75 : vector<8x8x32xf32> to vector<64x32xf32>
    %c10_93 = arith.constant 10 : index
    %c0_94 = arith.constant 0 : index
    %c0_95 = arith.constant 0 : index
    %77 = vector.load %arg6[%c10_93, %c0_94, %c0_95] : memref<25x32x64xf32, #tpu.memory_space<vmem>>, vector<1x32x64xf32>
    %78 = vector.shape_cast %77 : vector<1x32x64xf32> to vector<32x64xf32>
    %cst_96 = arith.constant dense<0.000000e+00> : vector<64x64xf32>
    %79 = tpu.matmul %76, %78, %cst_96 {dimension_numbers = #tpu.dot_dimension_numbers<[1], [0], [0], [1], [0, 0, 1, 1], [], []>} : vector<64x32xf32>, vector<32x64xf32>, vector<64x64xf32> -> vector<64x64xf32>
    %c2_97 = arith.constant 2 : index
    %c7_98 = arith.constant 7 : index
    %c0_99 = arith.constant 0 : index
    %80 = vector.load %arg15[%c2_97, %c7_98, %c0_99] : memref<12x18x32xf32, #tpu.memory_space<vmem>>, vector<8x8x32xf32>
    %81 = vector.shape_cast %80 : vector<8x8x32xf32> to vector<64x32xf32>
    %c11 = arith.constant 11 : index
    %c0_100 = arith.constant 0 : index
    %c0_101 = arith.constant 0 : index
    %82 = vector.load %arg6[%c11, %c0_100, %c0_101] : memref<25x32x64xf32, #tpu.memory_space<vmem>>, vector<1x32x64xf32>
    %83 = vector.shape_cast %82 : vector<1x32x64xf32> to vector<32x64xf32>
    %cst_102 = arith.constant dense<0.000000e+00> : vector<64x64xf32>
    %84 = tpu.matmul %81, %83, %cst_102 {dimension_numbers = #tpu.dot_dimension_numbers<[1], [0], [0], [1], [0, 0, 1, 1], [], []>} : vector<64x32xf32>, vector<32x64xf32>, vector<64x64xf32> -> vector<64x64xf32>
    %85 = arith.addf %79, %84 : vector<64x64xf32>
    %c2_103 = arith.constant 2 : index
    %c8_104 = arith.constant 8 : index
    %c0_105 = arith.constant 0 : index
    %86 = vector.load %arg15[%c2_103, %c8_104, %c0_105] : memref<12x18x32xf32, #tpu.memory_space<vmem>>, vector<8x8x32xf32>
    %87 = vector.shape_cast %86 : vector<8x8x32xf32> to vector<64x32xf32>
    %c12 = arith.constant 12 : index
    %c0_106 = arith.constant 0 : index
    %c0_107 = arith.constant 0 : index
    %88 = vector.load %arg6[%c12, %c0_106, %c0_107] : memref<25x32x64xf32, #tpu.memory_space<vmem>>, vector<1x32x64xf32>
    %89 = vector.shape_cast %88 : vector<1x32x64xf32> to vector<32x64xf32>
    %cst_108 = arith.constant dense<0.000000e+00> : vector<64x64xf32>
    %90 = tpu.matmul %87, %89, %cst_108 {dimension_numbers = #tpu.dot_dimension_numbers<[1], [0], [0], [1], [0, 0, 1, 1], [], []>} : vector<64x32xf32>, vector<32x64xf32>, vector<64x64xf32> -> vector<64x64xf32>
    %91 = arith.addf %85, %90 : vector<64x64xf32>
    %c2_109 = arith.constant 2 : index
    %c9_110 = arith.constant 9 : index
    %c0_111 = arith.constant 0 : index
    %92 = vector.load %arg15[%c2_109, %c9_110, %c0_111] : memref<12x18x32xf32, #tpu.memory_space<vmem>>, vector<8x8x32xf32>
    %93 = vector.shape_cast %92 : vector<8x8x32xf32> to vector<64x32xf32>
    %c13 = arith.constant 13 : index
    %c0_112 = arith.constant 0 : index
    %c0_113 = arith.constant 0 : index
    %94 = vector.load %arg6[%c13, %c0_112, %c0_113] : memref<25x32x64xf32, #tpu.memory_space<vmem>>, vector<1x32x64xf32>
    %95 = vector.shape_cast %94 : vector<1x32x64xf32> to vector<32x64xf32>
    %cst_114 = arith.constant dense<0.000000e+00> : vector<64x64xf32>
    %96 = tpu.matmul %93, %95, %cst_114 {dimension_numbers = #tpu.dot_dimension_numbers<[1], [0], [0], [1], [0, 0, 1, 1], [], []>} : vector<64x32xf32>, vector<32x64xf32>, vector<64x64xf32> -> vector<64x64xf32>
    %97 = arith.addf %91, %96 : vector<64x64xf32>
    %c2_115 = arith.constant 2 : index
    %c10_116 = arith.constant 10 : index
    %c0_117 = arith.constant 0 : index
    %98 = vector.load %arg15[%c2_115, %c10_116, %c0_117] : memref<12x18x32xf32, #tpu.memory_space<vmem>>, vector<8x8x32xf32>
    %99 = vector.shape_cast %98 : vector<8x8x32xf32> to vector<64x32xf32>
    %c14 = arith.constant 14 : index
    %c0_118 = arith.constant 0 : index
    %c0_119 = arith.constant 0 : index
    %100 = vector.load %arg6[%c14, %c0_118, %c0_119] : memref<25x32x64xf32, #tpu.memory_space<vmem>>, vector<1x32x64xf32>
    %101 = vector.shape_cast %100 : vector<1x32x64xf32> to vector<32x64xf32>
    %cst_120 = arith.constant dense<0.000000e+00> : vector<64x64xf32>
    %102 = tpu.matmul %99, %101, %cst_120 {dimension_numbers = #tpu.dot_dimension_numbers<[1], [0], [0], [1], [0, 0, 1, 1], [], []>} : vector<64x32xf32>, vector<32x64xf32>, vector<64x64xf32> -> vector<64x64xf32>
    %103 = arith.addf %97, %102 : vector<64x64xf32>
    %104 = vector.shape_cast %103 : vector<64x64xf32> to vector<8x8x64xf32>
    %c0_121 = arith.constant 0 : index
    %c0_122 = arith.constant 0 : index
    %c0_123 = arith.constant 0 : index
    %105 = vector.load %arg18[%c0_121, %c0_122, %c0_123] : memref<8x8x64xf32, #tpu.memory_space<vmem>>, vector<8x8x64xf32>
    %106 = arith.addf %105, %104 : vector<8x8x64xf32>
    %c0_124 = arith.constant 0 : index
    %c0_125 = arith.constant 0 : index
    %c0_126 = arith.constant 0 : index
    %107 = vector.load %arg18[%c0_124, %c0_125, %c0_126] : memref<8x8x64xf32, #tpu.memory_space<vmem>>, vector<8x8x64xf32>
    tpu.vector_store %arg18[%c0_124, %c0_125, %c0_126], %106 {strides = array<i32>} : memref<8x8x64xf32, #tpu.memory_space<vmem>>, vector<8x8x64xf32>,
    %c3_127 = arith.constant 3 : index
    %c6_128 = arith.constant 6 : index
    %c0_129 = arith.constant 0 : index
    %108 = vector.load %arg15[%c3_127, %c6_128, %c0_129] : memref<12x18x32xf32, #tpu.memory_space<vmem>>, vector<8x8x32xf32>
    %109 = vector.shape_cast %108 : vector<8x8x32xf32> to vector<64x32xf32>
    %c15 = arith.constant 15 : index
    %c0_130 = arith.constant 0 : index
    %c0_131 = arith.constant 0 : index
    %110 = vector.load %arg6[%c15, %c0_130, %c0_131] : memref<25x32x64xf32, #tpu.memory_space<vmem>>, vector<1x32x64xf32>
    %111 = vector.shape_cast %110 : vector<1x32x64xf32> to vector<32x64xf32>
    %cst_132 = arith.constant dense<0.000000e+00> : vector<64x64xf32>
    %112 = tpu.matmul %109, %111, %cst_132 {dimension_numbers = #tpu.dot_dimension_numbers<[1], [0], [0], [1], [0, 0, 1, 1], [], []>} : vector<64x32xf32>, vector<32x64xf32>, vector<64x64xf32> -> vector<64x64xf32>
    %c3_133 = arith.constant 3 : index
    %c7_134 = arith.constant 7 : index
    %c0_135 = arith.constant 0 : index
    %113 = vector.load %arg15[%c3_133, %c7_134, %c0_135] : memref<12x18x32xf32, #tpu.memory_space<vmem>>, vector<8x8x32xf32>
    %114 = vector.shape_cast %113 : vector<8x8x32xf32> to vector<64x32xf32>
    %c16 = arith.constant 16 : index
    %c0_136 = arith.constant 0 : index
    %c0_137 = arith.constant 0 : index
    %115 = vector.load %arg6[%c16, %c0_136, %c0_137] : memref<25x32x64xf32, #tpu.memory_space<vmem>>, vector<1x32x64xf32>
    %116 = vector.shape_cast %115 : vector<1x32x64xf32> to vector<32x64xf32>
    %cst_138 = arith.constant dense<0.000000e+00> : vector<64x64xf32>
    %117 = tpu.matmul %114, %116, %cst_138 {dimension_numbers = #tpu.dot_dimension_numbers<[1], [0], [0], [1], [0, 0, 1, 1], [], []>} : vector<64x32xf32>, vector<32x64xf32>, vector<64x64xf32> -> vector<64x64xf32>
    %118 = arith.addf %112, %117 : vector<64x64xf32>
    %c3_139 = arith.constant 3 : index
    %c8_140 = arith.constant 8 : index
    %c0_141 = arith.constant 0 : index
    %119 = vector.load %arg15[%c3_139, %c8_140, %c0_141] : memref<12x18x32xf32, #tpu.memory_space<vmem>>, vector<8x8x32xf32>
    %120 = vector.shape_cast %119 : vector<8x8x32xf32> to vector<64x32xf32>
    %c17 = arith.constant 17 : index
    %c0_142 = arith.constant 0 : index
    %c0_143 = arith.constant 0 : index
    %121 = vector.load %arg6[%c17, %c0_142, %c0_143] : memref<25x32x64xf32, #tpu.memory_space<vmem>>, vector<1x32x64xf32>
    %122 = vector.shape_cast %121 : vector<1x32x64xf32> to vector<32x64xf32>
    %cst_144 = arith.constant dense<0.000000e+00> : vector<64x64xf32>
    %123 = tpu.matmul %120, %122, %cst_144 {dimension_numbers = #tpu.dot_dimension_numbers<[1], [0], [0], [1], [0, 0, 1, 1], [], []>} : vector<64x32xf32>, vector<32x64xf32>, vector<64x64xf32> -> vector<64x64xf32>
    %124 = arith.addf %118, %123 : vector<64x64xf32>
    %c3_145 = arith.constant 3 : index
    %c9_146 = arith.constant 9 : index
    %c0_147 = arith.constant 0 : index
    %125 = vector.load %arg15[%c3_145, %c9_146, %c0_147] : memref<12x18x32xf32, #tpu.memory_space<vmem>>, vector<8x8x32xf32>
    %126 = vector.shape_cast %125 : vector<8x8x32xf32> to vector<64x32xf32>
    %c18 = arith.constant 18 : index
    %c0_148 = arith.constant 0 : index
    %c0_149 = arith.constant 0 : index
    %127 = vector.load %arg6[%c18, %c0_148, %c0_149] : memref<25x32x64xf32, #tpu.memory_space<vmem>>, vector<1x32x64xf32>
    %128 = vector.shape_cast %127 : vector<1x32x64xf32> to vector<32x64xf32>
    %cst_150 = arith.constant dense<0.000000e+00> : vector<64x64xf32>
    %129 = tpu.matmul %126, %128, %cst_150 {dimension_numbers = #tpu.dot_dimension_numbers<[1], [0], [0], [1], [0, 0, 1, 1], [], []>} : vector<64x32xf32>, vector<32x64xf32>, vector<64x64xf32> -> vector<64x64xf32>
    %130 = arith.addf %124, %129 : vector<64x64xf32>
    %c3_151 = arith.constant 3 : index
    %c10_152 = arith.constant 10 : index
    %c0_153 = arith.constant 0 : index
    %131 = vector.load %arg15[%c3_151, %c10_152, %c0_153] : memref<12x18x32xf32, #tpu.memory_space<vmem>>, vector<8x8x32xf32>
    %132 = vector.shape_cast %131 : vector<8x8x32xf32> to vector<64x32xf32>
    %c19 = arith.constant 19 : index
    %c0_154 = arith.constant 0 : index
    %c0_155 = arith.constant 0 : index
    %133 = vector.load %arg6[%c19, %c0_154, %c0_155] : memref<25x32x64xf32, #tpu.memory_space<vmem>>, vector<1x32x64xf32>
    %134 = vector.shape_cast %133 : vector<1x32x64xf32> to vector<32x64xf32>
    %cst_156 = arith.constant dense<0.000000e+00> : vector<64x64xf32>
    %135 = tpu.matmul %132, %134, %cst_156 {dimension_numbers = #tpu.dot_dimension_numbers<[1], [0], [0], [1], [0, 0, 1, 1], [], []>} : vector<64x32xf32>, vector<32x64xf32>, vector<64x64xf32> -> vector<64x64xf32>
    %136 = arith.addf %130, %135 : vector<64x64xf32>
    %137 = vector.shape_cast %136 : vector<64x64xf32> to vector<8x8x64xf32>
    %c0_157 = arith.constant 0 : index
    %c0_158 = arith.constant 0 : index
    %c0_159 = arith.constant 0 : index
    %138 = vector.load %arg18[%c0_157, %c0_158, %c0_159] : memref<8x8x64xf32, #tpu.memory_space<vmem>>, vector<8x8x64xf32>
    %139 = arith.addf %138, %137 : vector<8x8x64xf32>
    %c0_160 = arith.constant 0 : index
    %c0_161 = arith.constant 0 : index
    %c0_162 = arith.constant 0 : index
    %140 = vector.load %arg18[%c0_160, %c0_161, %c0_162] : memref<8x8x64xf32, #tpu.memory_space<vmem>>, vector<8x8x64xf32>
    tpu.vector_store %arg18[%c0_160, %c0_161, %c0_162], %139 {strides = array<i32>} : memref<8x8x64xf32, #tpu.memory_space<vmem>>, vector<8x8x64xf32>,
    %c4_163 = arith.constant 4 : index
    %c6_164 = arith.constant 6 : index
    %c0_165 = arith.constant 0 : index
    %141 = vector.load %arg15[%c4_163, %c6_164, %c0_165] : memref<12x18x32xf32, #tpu.memory_space<vmem>>, vector<8x8x32xf32>
    %142 = vector.shape_cast %141 : vector<8x8x32xf32> to vector<64x32xf32>
    %c20 = arith.constant 20 : index
    %c0_166 = arith.constant 0 : index
    %c0_167 = arith.constant 0 : index
    %143 = vector.load %arg6[%c20, %c0_166, %c0_167] : memref<25x32x64xf32, #tpu.memory_space<vmem>>, vector<1x32x64xf32>
    %144 = vector.shape_cast %143 : vector<1x32x64xf32> to vector<32x64xf32>
    %cst_168 = arith.constant dense<0.000000e+00> : vector<64x64xf32>
    %145 = tpu.matmul %142, %144, %cst_168 {dimension_numbers = #tpu.dot_dimension_numbers<[1], [0], [0], [1], [0, 0, 1, 1], [], []>} : vector<64x32xf32>, vector<32x64xf32>, vector<64x64xf32> -> vector<64x64xf32>
    %c4_169 = arith.constant 4 : index
    %c7_170 = arith.constant 7 : index
    %c0_171 = arith.constant 0 : index
    %146 = vector.load %arg15[%c4_169, %c7_170, %c0_171] : memref<12x18x32xf32, #tpu.memory_space<vmem>>, vector<8x8x32xf32>
    %147 = vector.shape_cast %146 : vector<8x8x32xf32> to vector<64x32xf32>
    %c21 = arith.constant 21 : index
    %c0_172 = arith.constant 0 : index
    %c0_173 = arith.constant 0 : index
    %148 = vector.load %arg6[%c21, %c0_172, %c0_173] : memref<25x32x64xf32, #tpu.memory_space<vmem>>, vector<1x32x64xf32>
    %149 = vector.shape_cast %148 : vector<1x32x64xf32> to vector<32x64xf32>
    %cst_174 = arith.constant dense<0.000000e+00> : vector<64x64xf32>
    %150 = tpu.matmul %147, %149, %cst_174 {dimension_numbers = #tpu.dot_dimension_numbers<[1], [0], [0], [1], [0, 0, 1, 1], [], []>} : vector<64x32xf32>, vector<32x64xf32>, vector<64x64xf32> -> vector<64x64xf32>
    %151 = arith.addf %145, %150 : vector<64x64xf32>
    %c4_175 = arith.constant 4 : index
    %c8_176 = arith.constant 8 : index
    %c0_177 = arith.constant 0 : index
    %152 = vector.load %arg15[%c4_175, %c8_176, %c0_177] : memref<12x18x32xf32, #tpu.memory_space<vmem>>, vector<8x8x32xf32>
    %153 = vector.shape_cast %152 : vector<8x8x32xf32> to vector<64x32xf32>
    %c22 = arith.constant 22 : index
    %c0_178 = arith.constant 0 : index
    %c0_179 = arith.constant 0 : index
    %154 = vector.load %arg6[%c22, %c0_178, %c0_179] : memref<25x32x64xf32, #tpu.memory_space<vmem>>, vector<1x32x64xf32>
    %155 = vector.shape_cast %154 : vector<1x32x64xf32> to vector<32x64xf32>
    %cst_180 = arith.constant dense<0.000000e+00> : vector<64x64xf32>
    %156 = tpu.matmul %153, %155, %cst_180 {dimension_numbers = #tpu.dot_dimension_numbers<[1], [0], [0], [1], [0, 0, 1, 1], [], []>} : vector<64x32xf32>, vector<32x64xf32>, vector<64x64xf32> -> vector<64x64xf32>
    %157 = arith.addf %151, %156 : vector<64x64xf32>
    %c4_181 = arith.constant 4 : index
    %c9_182 = arith.constant 9 : index
    %c0_183 = arith.constant 0 : index
    %158 = vector.load %arg15[%c4_181, %c9_182, %c0_183] : memref<12x18x32xf32, #tpu.memory_space<vmem>>, vector<8x8x32xf32>
    %159 = vector.shape_cast %158 : vector<8x8x32xf32> to vector<64x32xf32>
    %c23 = arith.constant 23 : index
    %c0_184 = arith.constant 0 : index
    %c0_185 = arith.constant 0 : index
    %160 = vector.load %arg6[%c23, %c0_184, %c0_185] : memref<25x32x64xf32, #tpu.memory_space<vmem>>, vector<1x32x64xf32>
    %161 = vector.shape_cast %160 : vector<1x32x64xf32> to vector<32x64xf32>
    %cst_186 = arith.constant dense<0.000000e+00> : vector<64x64xf32>
    %162 = tpu.matmul %159, %161, %cst_186 {dimension_numbers = #tpu.dot_dimension_numbers<[1], [0], [0], [1], [0, 0, 1, 1], [], []>} : vector<64x32xf32>, vector<32x64xf32>, vector<64x64xf32> -> vector<64x64xf32>
    %163 = arith.addf %157, %162 : vector<64x64xf32>
    %c4_187 = arith.constant 4 : index
    %c10_188 = arith.constant 10 : index
    %c0_189 = arith.constant 0 : index
    %164 = vector.load %arg15[%c4_187, %c10_188, %c0_189] : memref<12x18x32xf32, #tpu.memory_space<vmem>>, vector<8x8x32xf32>
    %165 = vector.shape_cast %164 : vector<8x8x32xf32> to vector<64x32xf32>
    %c24 = arith.constant 24 : index
    %c0_190 = arith.constant 0 : index
    %c0_191 = arith.constant 0 : index
    %166 = vector.load %arg6[%c24, %c0_190, %c0_191] : memref<25x32x64xf32, #tpu.memory_space<vmem>>, vector<1x32x64xf32>
    %167 = vector.shape_cast %166 : vector<1x32x64xf32> to vector<32x64xf32>
    %cst_192 = arith.constant dense<0.000000e+00> : vector<64x64xf32>
    %168 = tpu.matmul %165, %167, %cst_192 {dimension_numbers = #tpu.dot_dimension_numbers<[1], [0], [0], [1], [0, 0, 1, 1], [], []>} : vector<64x32xf32>, vector<32x64xf32>, vector<64x64xf32> -> vector<64x64xf32>
    %169 = arith.addf %163, %168 : vector<64x64xf32>
    %170 = vector.shape_cast %169 : vector<64x64xf32> to vector<8x8x64xf32>
    %c0_193 = arith.constant 0 : index
    %c0_194 = arith.constant 0 : index
    %c0_195 = arith.constant 0 : index
    %171 = vector.load %arg18[%c0_193, %c0_194, %c0_195] : memref<8x8x64xf32, #tpu.memory_space<vmem>>, vector<8x8x64xf32>
    %172 = arith.addf %171, %170 : vector<8x8x64xf32>
    %c0_196 = arith.constant 0 : index
    %c0_197 = arith.constant 0 : index
    %c0_198 = arith.constant 0 : index
    %173 = vector.load %arg18[%c0_196, %c0_197, %c0_198] : memref<8x8x64xf32, #tpu.memory_space<vmem>>, vector<8x8x64xf32>
    tpu.vector_store %arg18[%c0_196, %c0_197, %c0_198], %172 {strides = array<i32>} : memref<8x8x64xf32, #tpu.memory_space<vmem>>, vector<8x8x64xf32>,
    %c0_199 = arith.constant 0 : index
    %c0_200 = arith.constant 0 : index
    %c0_201 = arith.constant 0 : index
    %174 = tpu.strided_load %arg18[%c0_199, %c0_200, %c0_201] {strides = array<i32: 1, 2, 1>} : memref<8x8x64xf32, #tpu.memory_space<vmem>>, vector<8x4x64xf32>
    %c0_202 = arith.constant 0 : index
    %c1_203 = arith.constant 1 : index
    %c0_204 = arith.constant 0 : index
    %175 = tpu.strided_load %arg18[%c0_202, %c1_203, %c0_204] {strides = array<i32: 1, 2, 1>} : memref<8x8x64xf32, #tpu.memory_space<vmem>>, vector<8x4x64xf32>
    %176 = arith.maximumf %174, %175 : vector<8x4x64xf32>
    %177 = vector.shape_cast %176 : vector<8x4x64xf32> to vector<4x2x4x64xf32>
    %178 = vector.extract_strided_slice %177 {offsets = [0, 0, 0, 0], sizes = [4, 1, 4, 64], strides = [1, 1, 1, 1]} : vector<4x2x4x64xf32> to vector<4x1x4x64xf32>
    %179 = vector.shape_cast %178 : vector<4x1x4x64xf32> to vector<4x4x64xf32>
    %180 = vector.extract_strided_slice %177 {offsets = [0, 1, 0, 0], sizes = [4, 1, 4, 64], strides = [1, 1, 1, 1]} : vector<4x2x4x64xf32> to vector<4x1x4x64xf32>
    %181 = vector.shape_cast %180 : vector<4x1x4x64xf32> to vector<4x4x64xf32>
    %182 = arith.maximumf %179, %181 : vector<4x4x64xf32>
    %c0_205 = arith.constant 0 : index
    %c0_206 = arith.constant 0 : index
    %183 = vector.load %arg7[%c0_205, %c0_206] : memref<1x64xf32, #tpu.memory_space<vmem>>, vector<1x64xf32>
    %184 = vector.shape_cast %183 : vector<1x64xf32> to vector<1x1x64xf32>
    %185 = vector.broadcast %184 : vector<1x1x64xf32> to vector<4x4x64xf32>
    %186 = arith.addf %182, %185 : vector<4x4x64xf32>
    %c0_207 = arith.constant 0 : index
    %c0_208 = arith.constant 0 : index
    %187 = vector.load %arg9[%c0_207, %c0_208] : memref<1x64xf32, #tpu.memory_space<vmem>>, vector<1x64xf32>
    %188 = vector.extract_strided_slice %186 {offsets = [0, 0, 0], sizes = [1, 1, 64], strides = [1, 1, 1]} : vector<4x4x64xf32> to vector<1x1x64xf32>
    %189 = vector.shape_cast %188 : vector<1x1x64xf32> to vector<1x64xf32>
    %c0_209 = arith.constant 0 : index
    %c0_210 = arith.constant 0 : index
    %c0_211 = arith.constant 0 : index
    %190 = vector.load %arg8[%c0_209, %c0_210, %c0_211] : memref<16x64x64xf32, #tpu.memory_space<vmem>>, vector<1x64x64xf32>
    %191 = vector.shape_cast %190 : vector<1x64x64xf32> to vector<64x64xf32>
    %cst_212 = arith.constant dense<0.000000e+00> : vector<1x64xf32>
    %192 = tpu.matmul %189, %191, %cst_212 {dimension_numbers = #tpu.dot_dimension_numbers<[1], [0], [0], [1], [0, 0, 1, 1], [], []>} : vector<1x64xf32>, vector<64x64xf32>, vector<1x64xf32> -> vector<1x64xf32>
    %193 = arith.addf %187, %192 : vector<1x64xf32>
    %194 = vector.extract_strided_slice %186 {offsets = [0, 1, 0], sizes = [1, 1, 64], strides = [1, 1, 1]} : vector<4x4x64xf32> to vector<1x1x64xf32>
    %195 = vector.shape_cast %194 : vector<1x1x64xf32> to vector<1x64xf32>
    %c1_213 = arith.constant 1 : index
    %c0_214 = arith.constant 0 : index
    %c0_215 = arith.constant 0 : index
    %196 = vector.load %arg8[%c1_213, %c0_214, %c0_215] : memref<16x64x64xf32, #tpu.memory_space<vmem>>, vector<1x64x64xf32>
    %197 = vector.shape_cast %196 : vector<1x64x64xf32> to vector<64x64xf32>
    %cst_216 = arith.constant dense<0.000000e+00> : vector<1x64xf32>
    %198 = tpu.matmul %195, %197, %cst_216 {dimension_numbers = #tpu.dot_dimension_numbers<[1], [0], [0], [1], [0, 0, 1, 1], [], []>} : vector<1x64xf32>, vector<64x64xf32>, vector<1x64xf32> -> vector<1x64xf32>
    %199 = arith.addf %193, %198 : vector<1x64xf32>
    %200 = vector.extract_strided_slice %186 {offsets = [0, 2, 0], sizes = [1, 1, 64], strides = [1, 1, 1]} : vector<4x4x64xf32> to vector<1x1x64xf32>
    %201 = vector.shape_cast %200 : vector<1x1x64xf32> to vector<1x64xf32>
    %c2_217 = arith.constant 2 : index
    %c0_218 = arith.constant 0 : index
    %c0_219 = arith.constant 0 : index
    %202 = vector.load %arg8[%c2_217, %c0_218, %c0_219] : memref<16x64x64xf32, #tpu.memory_space<vmem>>, vector<1x64x64xf32>
    %203 = vector.shape_cast %202 : vector<1x64x64xf32> to vector<64x64xf32>
    %cst_220 = arith.constant dense<0.000000e+00> : vector<1x64xf32>
    %204 = tpu.matmul %201, %203, %cst_220 {dimension_numbers = #tpu.dot_dimension_numbers<[1], [0], [0], [1], [0, 0, 1, 1], [], []>} : vector<1x64xf32>, vector<64x64xf32>, vector<1x64xf32> -> vector<1x64xf32>
    %205 = arith.addf %199, %204 : vector<1x64xf32>
    %206 = vector.extract_strided_slice %186 {offsets = [0, 3, 0], sizes = [1, 1, 64], strides = [1, 1, 1]} : vector<4x4x64xf32> to vector<1x1x64xf32>
    %207 = vector.shape_cast %206 : vector<1x1x64xf32> to vector<1x64xf32>
    %c3_221 = arith.constant 3 : index
    %c0_222 = arith.constant 0 : index
    %c0_223 = arith.constant 0 : index
    %208 = vector.load %arg8[%c3_221, %c0_222, %c0_223] : memref<16x64x64xf32, #tpu.memory_space<vmem>>, vector<1x64x64xf32>
    %209 = vector.shape_cast %208 : vector<1x64x64xf32> to vector<64x64xf32>
    %cst_224 = arith.constant dense<0.000000e+00> : vector<1x64xf32>
    %210 = tpu.matmul %207, %209, %cst_224 {dimension_numbers = #tpu.dot_dimension_numbers<[1], [0], [0], [1], [0, 0, 1, 1], [], []>} : vector<1x64xf32>, vector<64x64xf32>, vector<1x64xf32> -> vector<1x64xf32>
    %211 = arith.addf %205, %210 : vector<1x64xf32>
    %212 = vector.extract_strided_slice %186 {offsets = [1, 0, 0], sizes = [1, 1, 64], strides = [1, 1, 1]} : vector<4x4x64xf32> to vector<1x1x64xf32>
    %213 = vector.shape_cast %212 : vector<1x1x64xf32> to vector<1x64xf32>
    %c4_225 = arith.constant 4 : index
    %c0_226 = arith.constant 0 : index
    %c0_227 = arith.constant 0 : index
    %214 = vector.load %arg8[%c4_225, %c0_226, %c0_227] : memref<16x64x64xf32, #tpu.memory_space<vmem>>, vector<1x64x64xf32>
    %215 = vector.shape_cast %214 : vector<1x64x64xf32> to vector<64x64xf32>
    %cst_228 = arith.constant dense<0.000000e+00> : vector<1x64xf32>
    %216 = tpu.matmul %213, %215, %cst_228 {dimension_numbers = #tpu.dot_dimension_numbers<[1], [0], [0], [1], [0, 0, 1, 1], [], []>} : vector<1x64xf32>, vector<64x64xf32>, vector<1x64xf32> -> vector<1x64xf32>
    %217 = arith.addf %211, %216 : vector<1x64xf32>
    %218 = vector.extract_strided_slice %186 {offsets = [1, 1, 0], sizes = [1, 1, 64], strides = [1, 1, 1]} : vector<4x4x64xf32> to vector<1x1x64xf32>
    %219 = vector.shape_cast %218 : vector<1x1x64xf32> to vector<1x64xf32>
    %c5_229 = arith.constant 5 : index
    %c0_230 = arith.constant 0 : index
    %c0_231 = arith.constant 0 : index
    %220 = vector.load %arg8[%c5_229, %c0_230, %c0_231] : memref<16x64x64xf32, #tpu.memory_space<vmem>>, vector<1x64x64xf32>
    %221 = vector.shape_cast %220 : vector<1x64x64xf32> to vector<64x64xf32>
    %cst_232 = arith.constant dense<0.000000e+00> : vector<1x64xf32>
    %222 = tpu.matmul %219, %221, %cst_232 {dimension_numbers = #tpu.dot_dimension_numbers<[1], [0], [0], [1], [0, 0, 1, 1], [], []>} : vector<1x64xf32>, vector<64x64xf32>, vector<1x64xf32> -> vector<1x64xf32>
    %223 = arith.addf %217, %222 : vector<1x64xf32>
    %224 = vector.extract_strided_slice %186 {offsets = [1, 2, 0], sizes = [1, 1, 64], strides = [1, 1, 1]} : vector<4x4x64xf32> to vector<1x1x64xf32>
    %225 = vector.shape_cast %224 : vector<1x1x64xf32> to vector<1x64xf32>
    %c6_233 = arith.constant 6 : index
    %c0_234 = arith.constant 0 : index
    %c0_235 = arith.constant 0 : index
    %226 = vector.load %arg8[%c6_233, %c0_234, %c0_235] : memref<16x64x64xf32, #tpu.memory_space<vmem>>, vector<1x64x64xf32>
    %227 = vector.shape_cast %226 : vector<1x64x64xf32> to vector<64x64xf32>
    %cst_236 = arith.constant dense<0.000000e+00> : vector<1x64xf32>
    %228 = tpu.matmul %225, %227, %cst_236 {dimension_numbers = #tpu.dot_dimension_numbers<[1], [0], [0], [1], [0, 0, 1, 1], [], []>} : vector<1x64xf32>, vector<64x64xf32>, vector<1x64xf32> -> vector<1x64xf32>
    %229 = arith.addf %223, %228 : vector<1x64xf32>
    %230 = vector.extract_strided_slice %186 {offsets = [1, 3, 0], sizes = [1, 1, 64], strides = [1, 1, 1]} : vector<4x4x64xf32> to vector<1x1x64xf32>
    %231 = vector.shape_cast %230 : vector<1x1x64xf32> to vector<1x64xf32>
    %c7_237 = arith.constant 7 : index
    %c0_238 = arith.constant 0 : index
    %c0_239 = arith.constant 0 : index
    %232 = vector.load %arg8[%c7_237, %c0_238, %c0_239] : memref<16x64x64xf32, #tpu.memory_space<vmem>>, vector<1x64x64xf32>
    %233 = vector.shape_cast %232 : vector<1x64x64xf32> to vector<64x64xf32>
    %cst_240 = arith.constant dense<0.000000e+00> : vector<1x64xf32>
    %234 = tpu.matmul %231, %233, %cst_240 {dimension_numbers = #tpu.dot_dimension_numbers<[1], [0], [0], [1], [0, 0, 1, 1], [], []>} : vector<1x64xf32>, vector<64x64xf32>, vector<1x64xf32> -> vector<1x64xf32>
    %235 = arith.addf %229, %234 : vector<1x64xf32>
    %236 = vector.extract_strided_slice %186 {offsets = [2, 0, 0], sizes = [1, 1, 64], strides = [1, 1, 1]} : vector<4x4x64xf32> to vector<1x1x64xf32>
    %237 = vector.shape_cast %236 : vector<1x1x64xf32> to vector<1x64xf32>
    %c8_241 = arith.constant 8 : index
    %c0_242 = arith.constant 0 : index
    %c0_243 = arith.constant 0 : index
    %238 = vector.load %arg8[%c8_241, %c0_242, %c0_243] : memref<16x64x64xf32, #tpu.memory_space<vmem>>, vector<1x64x64xf32>
    %239 = vector.shape_cast %238 : vector<1x64x64xf32> to vector<64x64xf32>
    %cst_244 = arith.constant dense<0.000000e+00> : vector<1x64xf32>
    %240 = tpu.matmul %237, %239, %cst_244 {dimension_numbers = #tpu.dot_dimension_numbers<[1], [0], [0], [1], [0, 0, 1, 1], [], []>} : vector<1x64xf32>, vector<64x64xf32>, vector<1x64xf32> -> vector<1x64xf32>
    %241 = arith.addf %235, %240 : vector<1x64xf32>
    %242 = vector.extract_strided_slice %186 {offsets = [2, 1, 0], sizes = [1, 1, 64], strides = [1, 1, 1]} : vector<4x4x64xf32> to vector<1x1x64xf32>
    %243 = vector.shape_cast %242 : vector<1x1x64xf32> to vector<1x64xf32>
    %c9_245 = arith.constant 9 : index
    %c0_246 = arith.constant 0 : index
    %c0_247 = arith.constant 0 : index
    %244 = vector.load %arg8[%c9_245, %c0_246, %c0_247] : memref<16x64x64xf32, #tpu.memory_space<vmem>>, vector<1x64x64xf32>
    %245 = vector.shape_cast %244 : vector<1x64x64xf32> to vector<64x64xf32>
    %cst_248 = arith.constant dense<0.000000e+00> : vector<1x64xf32>
    %246 = tpu.matmul %243, %245, %cst_248 {dimension_numbers = #tpu.dot_dimension_numbers<[1], [0], [0], [1], [0, 0, 1, 1], [], []>} : vector<1x64xf32>, vector<64x64xf32>, vector<1x64xf32> -> vector<1x64xf32>
    %247 = arith.addf %241, %246 : vector<1x64xf32>
    %248 = vector.extract_strided_slice %186 {offsets = [2, 2, 0], sizes = [1, 1, 64], strides = [1, 1, 1]} : vector<4x4x64xf32> to vector<1x1x64xf32>
    %249 = vector.shape_cast %248 : vector<1x1x64xf32> to vector<1x64xf32>
    %c10_249 = arith.constant 10 : index
    %c0_250 = arith.constant 0 : index
    %c0_251 = arith.constant 0 : index
    %250 = vector.load %arg8[%c10_249, %c0_250, %c0_251] : memref<16x64x64xf32, #tpu.memory_space<vmem>>, vector<1x64x64xf32>
    %251 = vector.shape_cast %250 : vector<1x64x64xf32> to vector<64x64xf32>
    %cst_252 = arith.constant dense<0.000000e+00> : vector<1x64xf32>
    %252 = tpu.matmul %249, %251, %cst_252 {dimension_numbers = #tpu.dot_dimension_numbers<[1], [0], [0], [1], [0, 0, 1, 1], [], []>} : vector<1x64xf32>, vector<64x64xf32>, vector<1x64xf32> -> vector<1x64xf32>
    %253 = arith.addf %247, %252 : vector<1x64xf32>
    %254 = vector.extract_strided_slice %186 {offsets = [2, 3, 0], sizes = [1, 1, 64], strides = [1, 1, 1]} : vector<4x4x64xf32> to vector<1x1x64xf32>
    %255 = vector.shape_cast %254 : vector<1x1x64xf32> to vector<1x64xf32>
    %c11_253 = arith.constant 11 : index
    %c0_254 = arith.constant 0 : index
    %c0_255 = arith.constant 0 : index
    %256 = vector.load %arg8[%c11_253, %c0_254, %c0_255] : memref<16x64x64xf32, #tpu.memory_space<vmem>>, vector<1x64x64xf32>
    %257 = vector.shape_cast %256 : vector<1x64x64xf32> to vector<64x64xf32>
    %cst_256 = arith.constant dense<0.000000e+00> : vector<1x64xf32>
    %258 = tpu.matmul %255, %257, %cst_256 {dimension_numbers = #tpu.dot_dimension_numbers<[1], [0], [0], [1], [0, 0, 1, 1], [], []>} : vector<1x64xf32>, vector<64x64xf32>, vector<1x64xf32> -> vector<1x64xf32>
    %259 = arith.addf %253, %258 : vector<1x64xf32>
    %260 = vector.extract_strided_slice %186 {offsets = [3, 0, 0], sizes = [1, 1, 64], strides = [1, 1, 1]} : vector<4x4x64xf32> to vector<1x1x64xf32>
    %261 = vector.shape_cast %260 : vector<1x1x64xf32> to vector<1x64xf32>
    %c12_257 = arith.constant 12 : index
    %c0_258 = arith.constant 0 : index
    %c0_259 = arith.constant 0 : index
    %262 = vector.load %arg8[%c12_257, %c0_258, %c0_259] : memref<16x64x64xf32, #tpu.memory_space<vmem>>, vector<1x64x64xf32>
    %263 = vector.shape_cast %262 : vector<1x64x64xf32> to vector<64x64xf32>
    %cst_260 = arith.constant dense<0.000000e+00> : vector<1x64xf32>
    %264 = tpu.matmul %261, %263, %cst_260 {dimension_numbers = #tpu.dot_dimension_numbers<[1], [0], [0], [1], [0, 0, 1, 1], [], []>} : vector<1x64xf32>, vector<64x64xf32>, vector<1x64xf32> -> vector<1x64xf32>
    %265 = arith.addf %259, %264 : vector<1x64xf32>
    %266 = vector.extract_strided_slice %186 {offsets = [3, 1, 0], sizes = [1, 1, 64], strides = [1, 1, 1]} : vector<4x4x64xf32> to vector<1x1x64xf32>
    %267 = vector.shape_cast %266 : vector<1x1x64xf32> to vector<1x64xf32>
    %c13_261 = arith.constant 13 : index
    %c0_262 = arith.constant 0 : index
    %c0_263 = arith.constant 0 : index
    %268 = vector.load %arg8[%c13_261, %c0_262, %c0_263] : memref<16x64x64xf32, #tpu.memory_space<vmem>>, vector<1x64x64xf32>
    %269 = vector.shape_cast %268 : vector<1x64x64xf32> to vector<64x64xf32>
    %cst_264 = arith.constant dense<0.000000e+00> : vector<1x64xf32>
    %270 = tpu.matmul %267, %269, %cst_264 {dimension_numbers = #tpu.dot_dimension_numbers<[1], [0], [0], [1], [0, 0, 1, 1], [], []>} : vector<1x64xf32>, vector<64x64xf32>, vector<1x64xf32> -> vector<1x64xf32>
    %271 = arith.addf %265, %270 : vector<1x64xf32>
    %272 = vector.extract_strided_slice %186 {offsets = [3, 2, 0], sizes = [1, 1, 64], strides = [1, 1, 1]} : vector<4x4x64xf32> to vector<1x1x64xf32>
    %273 = vector.shape_cast %272 : vector<1x1x64xf32> to vector<1x64xf32>
    %c14_265 = arith.constant 14 : index
    %c0_266 = arith.constant 0 : index
    %c0_267 = arith.constant 0 : index
    %274 = vector.load %arg8[%c14_265, %c0_266, %c0_267] : memref<16x64x64xf32, #tpu.memory_space<vmem>>, vector<1x64x64xf32>
    %275 = vector.shape_cast %274 : vector<1x64x64xf32> to vector<64x64xf32>
    %cst_268 = arith.constant dense<0.000000e+00> : vector<1x64xf32>
    %276 = tpu.matmul %273, %275, %cst_268 {dimension_numbers = #tpu.dot_dimension_numbers<[1], [0], [0], [1], [0, 0, 1, 1], [], []>} : vector<1x64xf32>, vector<64x64xf32>, vector<1x64xf32> -> vector<1x64xf32>
    %277 = arith.addf %271, %276 : vector<1x64xf32>
    %278 = vector.extract_strided_slice %186 {offsets = [3, 3, 0], sizes = [1, 1, 64], strides = [1, 1, 1]} : vector<4x4x64xf32> to vector<1x1x64xf32>
    %279 = vector.shape_cast %278 : vector<1x1x64xf32> to vector<1x64xf32>
    %c15_269 = arith.constant 15 : index
    %c0_270 = arith.constant 0 : index
    %c0_271 = arith.constant 0 : index
    %280 = vector.load %arg8[%c15_269, %c0_270, %c0_271] : memref<16x64x64xf32, #tpu.memory_space<vmem>>, vector<1x64x64xf32>
    %281 = vector.shape_cast %280 : vector<1x64x64xf32> to vector<64x64xf32>
    %cst_272 = arith.constant dense<0.000000e+00> : vector<1x64xf32>
    %282 = tpu.matmul %279, %281, %cst_272 {dimension_numbers = #tpu.dot_dimension_numbers<[1], [0], [0], [1], [0, 0, 1, 1], [], []>} : vector<1x64xf32>, vector<64x64xf32>, vector<1x64xf32> -> vector<1x64xf32>
    %283 = arith.addf %277, %282 : vector<1x64xf32>
    %c0_273 = arith.constant 0 : index
    %c0_274 = arith.constant 0 : index
    %284 = vector.load %arg10[%c0_273, %c0_274] : memref<64x10xf32, #tpu.memory_space<vmem>>, vector<64x10xf32>
    %cst_275 = arith.constant dense<0.000000e+00> : vector<1x10xf32>
    %285 = tpu.matmul %283, %284, %cst_275 {dimension_numbers = #tpu.dot_dimension_numbers<[1], [0], [0], [1], [0, 0, 1, 1], [], []>} : vector<1x64xf32>, vector<64x10xf32>, vector<1x10xf32> -> vector<1x10xf32>
    %c0_276 = arith.constant 0 : index
    %c0_277 = arith.constant 0 : index
    %286 = vector.load %arg11[%c0_276, %c0_277] : memref<1x10xf32, #tpu.memory_space<vmem>>, vector<1x10xf32>
    %287 = arith.addf %285, %286 : vector<1x10xf32>
    %c0_278 = arith.constant 0 : index
    %c0_279 = arith.constant 0 : index
    %c0_280 = arith.constant 0 : index
    %288 = vector.load %arg12[%c0_278, %c0_279, %c0_280] : memref<1x1x10xf32, #tpu.memory_space<vmem>>, vector<1x1x10xf32>
    %289 = vector.shape_cast %288 : vector<1x1x10xf32> to vector<1x10xf32>
    %290 = vector.shape_cast %287 : vector<1x10xf32> to vector<1x1x10xf32>
    tpu.vector_store %arg12[%c0_278, %c0_279, %c0_280], %290 {strides = array<i32>} : memref<1x1x10xf32, #tpu.memory_space<vmem>>, vector<1x1x10xf32>,
    return
  }
  func.func @transform_0(%arg0: i32) -> (i32, i32, i32, i32) {
    %c0_i32 = arith.constant 0 : i32
    %c0_i32_0 = arith.constant 0 : i32
    %c0_i32_1 = arith.constant 0 : i32
    %c0_i32_2 = arith.constant 0 : i32
    return %arg0, %c0_i32, %c0_i32_0, %c0_i32_1 : i32, i32, i32, i32
  }
  func.func @transform_1(%arg0: i32) -> (i32, i32, i32) {
    %c0_i32 = arith.constant 0 : i32
    %c0_i32_0 = arith.constant 0 : i32
    %c0_i32_1 = arith.constant 0 : i32
    %c0_i32_2 = arith.constant 0 : i32
    return %c0_i32, %c0_i32_0, %c0_i32_1 : i32, i32, i32
  }
  func.func @transform_2(%arg0: i32) -> (i32, i32) {
    %c0_i32 = arith.constant 0 : i32
    %c0_i32_0 = arith.constant 0 : i32
    %c0_i32_1 = arith.constant 0 : i32
    return %c0_i32, %c0_i32_0 : i32, i32
  }
  func.func @transform_3(%arg0: i32) -> (i32, i32, i32) {
    %c0_i32 = arith.constant 0 : i32
    %c0_i32_0 = arith.constant 0 : i32
    %c0_i32_1 = arith.constant 0 : i32
    %c0_i32_2 = arith.constant 0 : i32
    return %c0_i32, %c0_i32_0, %c0_i32_1 : i32, i32, i32
  }
  func.func @transform_4(%arg0: i32) -> (i32, i32) {
    %c0_i32 = arith.constant 0 : i32
    %c0_i32_0 = arith.constant 0 : i32
    %c0_i32_1 = arith.constant 0 : i32
    return %c0_i32, %c0_i32_0 : i32, i32
  }
  func.func @transform_5(%arg0: i32) -> (i32, i32, i32) {
    %c0_i32 = arith.constant 0 : i32
    %c0_i32_0 = arith.constant 0 : i32
    %c0_i32_1 = arith.constant 0 : i32
    %c0_i32_2 = arith.constant 0 : i32
    return %c0_i32, %c0_i32_0, %c0_i32_1 : i32, i32, i32
  }
  func.func @transform_6(%arg0: i32) -> (i32, i32) {
    %c0_i32 = arith.constant 0 : i32
    %c0_i32_0 = arith.constant 0 : i32
    %c0_i32_1 = arith.constant 0 : i32
    return %c0_i32, %c0_i32_0 : i32, i32
  }
  func.func @transform_7(%arg0: i32) -> (i32, i32, i32) {
    %c0_i32 = arith.constant 0 : i32
    %c0_i32_0 = arith.constant 0 : i32
    %c0_i32_1 = arith.constant 0 : i32
    %c0_i32_2 = arith.constant 0 : i32
    return %c0_i32, %c0_i32_0, %c0_i32_1 : i32, i32, i32
  }
  func.func @transform_8(%arg0: i32) -> (i32, i32) {
    %c0_i32 = arith.constant 0 : i32
    %c0_i32_0 = arith.constant 0 : i32
    %c0_i32_1 = arith.constant 0 : i32
    return %c0_i32, %c0_i32_0 : i32, i32
  }
  func.func @transform_9(%arg0: i32) -> (i32, i32) {
    %c0_i32 = arith.constant 0 : i32
    %c0_i32_0 = arith.constant 0 : i32
    %c0_i32_1 = arith.constant 0 : i32
    return %c0_i32, %c0_i32_0 : i32, i32
  }
  func.func @transform_10(%arg0: i32) -> (i32, i32) {
    %c0_i32 = arith.constant 0 : i32
    %c0_i32_0 = arith.constant 0 : i32
    %c0_i32_1 = arith.constant 0 : i32
    return %c0_i32, %c0_i32_0 : i32, i32
  }
  func.func @transform_11(%arg0: i32) -> (i32, i32, i32) {
    %c0_i32 = arith.constant 0 : i32
    %c0_i32_0 = arith.constant 0 : i32
    %c0_i32_1 = arith.constant 0 : i32
    return %arg0, %c0_i32, %c0_i32_0 : i32, i32, i32
  }
}

</mosaic_0001>

<bundles_post_ra>
// kernel: my_layers_forward.1
= control target key start
LH: loop header
LB: loop body
LE: loop exit
PB: predicated region body
PF: predicated region fallthrough
CT: control target
= control target key end

     0   :  { %s30446_s0 = inlined_call_operand.vmem [shape: f32[2,32,32,3], index: 0, kind: input, shape index: {}]   ;;  %s30447_s1 = inlined_call_operand.vmem [shape: f32[25,3,32], index: 1, kind: input, shape index: {}]   ;;  %s30448_s2 = inlined_call_operand.vmem [shape: f32[1,32], index: 2, kind: input, shape index: {}]   ;;  %s30449_s3 = inlined_call_operand.vmem [shape: f32[25,32,32], index: 3, kind: input, shape index: {}]   ;;  %s30450_s4 = inlined_call_operand.vmem [shape: f32[1,32], index: 4, kind: input, shape index: {}]   ;;  %s30451_s5 = inlined_call_operand.hbm [shape: f32[25,32,64], index: 5, kind: input, shape index: {}]   ;;  %s30452_s6 = inlined_call_operand.vmem [shape: f32[1,64], index: 6, kind: input, shape index: {}]   ;;  %s30453_s7 = inlined_call_operand.vmem [shape: f32[16,64,64], index: 7, kind: input, shape index: {}]   ;;  %s30454_s8 = inlined_call_operand.vmem [shape: f32[1,64], index: 8, kind: input, shape index: {}]   ;;  %s30455_s9 = inlined_call_operand.vmem [shape: f32[64,10], index: 9, kind: input, shape index: {}]   ;;  %s30456_s10 = inlined_call_operand.vmem [shape: f32[1,10], index: 10, kind: input, shape index: {}]   ;;  %s30457_s11 = inlined_call_operand.hbm [shape: f32[2,1,10], index: 11, kind: output, shape index: {}]  }
   0x1   :  { %30492 = sst [smem:[#allocation30_spill]] %s30446_s0 }
   0x2   :  { %30493 = sst [smem:[#allocation31_spill]] %s30447_s1 }
   0x3   :  { %16 = vsyncpa [#allocation9], 0 }
   0x4   :  { %17 = vsyncpa [#allocation10], 0 }
   0x5   :  { %19 = vsyncpa [#allocation10 + $0x1], 0  ;;  %s25448_s17 = smov 0   ;;  %s25450_s18 = smov 0  }
   0x6   :  { %s25452_s19 = smov 0   ;;  %s25454_s20 = smov 0  }
   0x7 LB: > { %s25469_s21 = sadd.s32 4294967295, %s25371_s20   ;;  %s18131_s22 = sadd.s32 4294967294, %s25371_s20   ;;  %s25371_s20 = sphi %s25454_s20, %s30542_s20   ;;  %s25367_s19 = sphi %s25452_s19, %s30541_s19   ;;  %s25363_s18 = sphi %s25450_s18, %s30540_s18   ;;  %s25359_s17 = sphi %s25448_s17, %s30539_s17  }
   0x8   : > { %s25473_s23 = sadd.s32 1, %s25371_s20   ;;  %s268_s24 = sadd.s32 1, %s25367_s19 }
   0x9   : > { %s265_s25 = ssub.s32 %s25371_s20, %s25473_s23  ;;  %p278_p0 = scmp.ne.s32.totalorder %s25367_s19, %s25363_s18 }
   0xa   : > { %p266_p1 = scmp.eq.s32.totalorder %s265_s25, 0  ;;  %p279_p2 = scmp.eq.s32.totalorder %s25469_s21, 1 }
   0xb   : > { %p284_p3 = scmp.ne.s32.totalorder %s25363_s18, %s25359_s17  ;;  %p285_p4 = scmp.eq.s32.totalorder %s18131_s22, 1 }
   0xc   : > { %s25484_s26 = scalar_select %p266_p1, %s25367_s19, %s268_s24  }
   0xd   : > { %p25486_p5 = por %p279_p2, %p278_p0  ;;  %p25490_p6 = por %p285_p4, %p284_p3 }
   0xe   : > { %30494 = sst [smem:[#allocation14_spill]] %s25484_s26  ;;  %p18132_p7 = scmp.ge.s32.totalorder %s25371_s20, 1 }
   0xf   : > { %s30495_s27 = scalar_select %p25486_p5, 1, 0 }
  0x10   : > { %s30496_s28 = scalar_select %p25490_p6, 1, 0 }
  0x11   : > { %p292_p8 = scmp.lt.s32.totalorder %s25371_s20, 3  ;;  %p30458_p9 = scmp.eq.s32.totalorder %s25469_s21, 0 }
  0x12   : > { %s25381_s30 = smov [#allocation8]   ;;  %s25269_s16 = scalar_lea.hbm %s30451_s5, 12800 }
  0x13   : > { %p25497_p10 = pnand %p18132_p7, %p292_p8  ;;  %s316_s12 = sshll.u32 %s25381_s30, 4  ;;  %s317_s12 = int_to_ptr.vmem [resolvable:$true] %s316_s12 }
  0x14   : > { %p25270_p13 = scmp.ne.s32.totalorder %s30451_s5, %s25269_s16  ;;  %p25276_p3 = scmp.lt.u32.totalorder %s25269_s16, %s30451_s5 }
  0x15   : > { %s30497_s29 = scalar_select %p25497_p10, 1, 0 }
  0x16   : > { %p25204_p11 = pneg %p25497_p10 }
  0x18   : > { %p25505_p12 = pnand %p30458_p9, %p25204_p11 }
  0x1a   : > { %p25271_p0 = pneg %p25505_p12 }
  0x1c   : > { %p25272_p1 = pnand %p25271_p0, %p25270_p13 }
  0x1e   : > { %p25273_p2 = pneg %p25272_p1 }
  0x20   : > { %p25278_p4 = pnand %p25276_p3, %p25273_p2 }
  0x22   : > { %25281 = shalt.err (!%p25278_p4)
}
  0x23   : > { %s25282_s26 = scalar_lea.vmem %s317_s12, 12800  ;;  %p25290_p9 = scmp.lt.s32.totalorder %s317_s12, %s317_s12 }
  0x24   : > { %p25283_p7 = scmp.ne.s32.totalorder %s317_s12, %s25282_s26  ;;  %p25291_p6 = scmp.lt.s32.totalorder %s25282_s26, %s25282_s26 }
  0x26   : > { %p25285_p8 = pnand %p25283_p7, %p25271_p0  ;;  %p25292_p5 = por %p25291_p6, %p25290_p9 }
  0x28   : > { %p25286_p11 = pneg %p25285_p8 }
  0x2a   : > { %p25293_p10 = pnand %p25292_p5, %p25286_p11 }
  0x2c   : > { %25296 = shalt.err (!%p25293_p10)
}
  0x2d   : > { %s25382_s14 = smov 128   ;;  %s25383_s15 = smov 8  }
  0x2e   : > { %25207 = dma.hbm_to_vmem [thread:$0]  (!%p25505_p12), %s30451_s5, 12800, %s317_s12, [#allocation9], %s25382_s14, %s25382_s14, %s25383_s15  }
  0x2f   : > { %p30499_p13 = scmp.ne.s32.totalorder %s30497_s29, 0 }
  0x30   : > { %p30500_p1 = scmp.eq.s32.totalorder (!%p30499_p13), %s25469_s21, 0 }
  0x31   : > { %355 = sbr.rel (%p30499_p13) target bundleno = 2807 (0xaf7), region = 64 }
  0x38   : > { %25350 = dma.done.wait (%p30500_p1), [#allocation9], 12800   ;;  %p30501_p0 = pmov %p30500_p1 }
  0x39   : > { %vm399_vm0 = vcmask 23552   ;;  %s30463_s26 = sand.u32 1, %s25363_s18   ;;  %vm405_vm1 = vcmask 17408   ;;  %v30461_v0 = vmov 0.0   ;;  %vm617_vm2 = vcmask 261120   ;;  %p394_p5 = scmp.lt.s32.totalorder %s25469_s21, 1 }
  0x3a   : > { %25352 = vsyncadd (%p30501_p0), [#allocation9], 4294954496  ;;  %414 = vst.msk [vmem:[#allocation2 + $0x68] sm:$0xff] %vm399_vm0, %v30461_v0  ;;  %vm621_vm3 = vcmask 254976   ;;  %s30502_s0 = sld [smem:[#allocation30_spill]]  ;;  %s26463_s30 = scalar_lea.vmem [#allocation11], %s30463_s26 }
  0x3b   : > { %400 = vst.msk [vmem:[#allocation2] sm:$0xff] %vm399_vm0, %v30461_v0  ;;  %401 = vst.msk [vmem:[#allocation2 + $0x8] sm:$0xff] %vm399_vm0, %v30461_v0  ;;  %s395_s29 = scalar_select %p394_p5, %s25469_s21, 1 }
  0x3c   : > { %402 = vst.msk [vmem:[#allocation2 + $0x10] sm:$0xff] %vm399_vm0, %v30461_v0  ;;  %403 = vst.msk [vmem:[#allocation2 + $0x18] sm:$0xff] %vm399_vm0, %v30461_v0  ;;  %s26465_s14 = smov 0  }
  0x3d   : > { %404 = vst.msk [vmem:[#allocation2 + $0x20] sm:$0xff] %vm399_vm0, %v30461_v0  ;;  %407 = vst.msk [vmem:[#allocation2 + $0x30] sm:$0xff] %vm399_vm0, %v30461_v0  ;;  %s20099_s12 = sshll.u32 %s395_s29, 10 }
  0x3e   : > { %408 = vst.msk [vmem:[#allocation2 + $0x38] sm:$0xff] %vm399_vm0, %v30461_v0  ;;  %409 = vst.msk [vmem:[#allocation2 + $0x40] sm:$0xff] %vm399_vm0, %v30461_v0 }
  0x3f   : > { %410 = vst.msk [vmem:[#allocation2 + $0x48] sm:$0xff] %vm399_vm0, %v30461_v0  ;;  %411 = vst.msk [vmem:[#allocation2 + $0x50] sm:$0xff] %vm399_vm0, %v30461_v0 }
  0x40   : > { %413 = vst.msk [vmem:[#allocation2 + $0x60] sm:$0xff] %vm399_vm0, %v30461_v0  ;;  %415 = vst.msk [vmem:[#allocation2 + $0x70] sm:$0xff] %vm399_vm0, %v30461_v0  ;;  %s26203_s25 = scalar_lea.vmem %s30502_s0, %s20099_s12 }
  0x41   : > { %416 = vst.msk [vmem:[#allocation2 + $0x78] sm:$0xff] %vm399_vm0, %v30461_v0  ;;  %417 = vst.msk [vmem:[#allocation2 + $0x80] sm:$0xff] %vm399_vm0, %v30461_v0  ;;  %v735_v1 = vld [vmem:[%s26203_s25] sm:$0xff]  ;;  %v736_v2 = vld [vmem:[%s26203_s25 + $0x8] sm:$0xff] }
  0x42   : > { %419 = vst.msk [vmem:[#allocation2 + $0x90] sm:$0xff] %vm399_vm0, %v30461_v0  ;;  %420 = vst.msk [vmem:[#allocation2 + $0x98] sm:$0xff] %vm399_vm0, %v30461_v0  ;;  %v737_v3 = vld [vmem:[%s26203_s25 + $0x10] sm:$0xff]  ;;  %v738_v4 = vld [vmem:[%s26203_s25 + $0x18] sm:$0xff] }
  0x43   : > { %421 = vst.msk [vmem:[#allocation2 + $0xa0] sm:$0xff] %vm399_vm0, %v30461_v0  ;;  %422 = vst.msk [vmem:[#allocation2 + $0xa8] sm:$0xff] %vm399_vm0, %v30461_v0  ;;  %v739_v5 = vld [vmem:[%s26203_s25 + $0x20] sm:$0xff]  ;;  %v740_v6 = vld [vmem:[%s26203_s25 + $0x28] sm:$0xff] }
  0x44   : > { %423 = vst.msk [vmem:[#allocation2 + $0xb0] sm:$0xff] %vm399_vm0, %v30461_v0  ;;  %425 = vst.msk [vmem:[#allocation2 + $0xc0] sm:$0xff] %vm399_vm0, %v30461_v0  ;;  %v741_v7 = vld [vmem:[%s26203_s25 + $0x30] sm:$0xff]  ;;  %v742_v8 = vld [vmem:[%s26203_s25 + $0x38] sm:$0xff] }
  0x45   : > { %426 = vst.msk [vmem:[#allocation2 + $0xc8] sm:$0xff] %vm399_vm0, %v30461_v0  ;;  %427 = vst.msk [vmem:[#allocation2 + $0xd0] sm:$0xff] %vm399_vm0, %v30461_v0  ;;  %v743_v9 = vld [vmem:[%s26203_s25 + $0x40] sm:$0xff]  ;;  %v744_v10 = vld [vmem:[%s26203_s25 + $0x48] sm:$0xff] }
  0x46   : > { %428 = vst.msk [vmem:[#allocation2 + $0xd8] sm:$0xff] %vm399_vm0, %v30461_v0  ;;  %429 = vst.msk [vmem:[#allocation2 + $0xe0] sm:$0xff] %vm399_vm0, %v30461_v0  ;;  %v745_v11 = vld [vmem:[%s26203_s25 + $0x50] sm:$0xff]  ;;  %v746_v12 = vld [vmem:[%s26203_s25 + $0x58] sm:$0xff] }
  0x47   : > { %431 = vst.msk [vmem:[#allocation2 + $0xf0] sm:$0xff] %vm399_vm0, %v30461_v0  ;;  %432 = vst.msk [vmem:[#allocation2 + $0xf8] sm:$0xff] %vm399_vm0, %v30461_v0  ;;  %v747_v13 = vld [vmem:[%s26203_s25 + $0x60] sm:$0xff]  ;;  %v748_v14 = vld [vmem:[%s26203_s25 + $0x68] sm:$0xff] }
  0x48   : > { %433 = vst.msk [vmem:[#allocation2 + $0x100] sm:$0xff] %vm399_vm0, %v30461_v0  ;;  %434 = vst.msk [vmem:[#allocation2 + $0x108] sm:$0xff] %vm399_vm0, %v30461_v0  ;;  %v749_v15 = vld [vmem:[%s26203_s25 + $0x70] sm:$0xff]  ;;  %v750_v16 = vld [vmem:[%s26203_s25 + $0x78] sm:$0xff] }
  0x49   : > { %435 = vst.msk [vmem:[#allocation2 + $0x110] sm:$0xff] %vm399_vm0, %v30461_v0  ;;  %437 = vst.msk [vmem:[#allocation2 + $0x120] sm:$0xff] %vm399_vm0, %v30461_v0  ;;  %v751_v17 = vld [vmem:[%s26203_s25 + $0x80] sm:$0xff]  ;;  %v752_v18 = vld [vmem:[%s26203_s25 + $0x88] sm:$0xff] }
  0x4a   : > { %438 = vst.msk [vmem:[#allocation2 + $0x128] sm:$0xff] %vm399_vm0, %v30461_v0  ;;  %439 = vst.msk [vmem:[#allocation2 + $0x130] sm:$0xff] %vm399_vm0, %v30461_v0  ;;  %v753_v19 = vld [vmem:[%s26203_s25 + $0x90] sm:$0xff]  ;;  %v754_v20 = vld [vmem:[%s26203_s25 + $0x98] sm:$0xff] }
  0x4b   : > { %440 = vst.msk [vmem:[#allocation2 + $0x138] sm:$0xff] %vm399_vm0, %v30461_v0  ;;  %441 = vst.msk [vmem:[#allocation2 + $0x140] sm:$0xff] %vm399_vm0, %v30461_v0  ;;  %v755_v21 = vld [vmem:[%s26203_s25 + $0xa0] sm:$0xff]  ;;  %v756_v22 = vld [vmem:[%s26203_s25 + $0xa8] sm:$0xff] }
  0x4c   : > { %443 = vst.msk [vmem:[#allocation2 + $0x150] sm:$0xff] %vm399_vm0, %v30461_v0  ;;  %444 = vst.msk [vmem:[#allocation2 + $0x158] sm:$0xff] %vm399_vm0, %v30461_v0  ;;  %v757_v23 = vld [vmem:[%s26203_s25 + $0xb0] sm:$0xff]  ;;  %v758_v24 = vld [vmem:[%s26203_s25 + $0xb8] sm:$0xff] }
  0x4d   : > { %445 = vst.msk [vmem:[#allocation2 + $0x160] sm:$0xff] %vm399_vm0, %v30461_v0  ;;  %446 = vst.msk [vmem:[#allocation2 + $0x168] sm:$0xff] %vm399_vm0, %v30461_v0  ;;  %v759_v25 = vld [vmem:[%s26203_s25 + $0xc0] sm:$0xff]  ;;  %v760_v26 = vld [vmem:[%s26203_s25 + $0xc8] sm:$0xff] }
  0x4e   : > { %447 = vst.msk [vmem:[#allocation2 + $0x170] sm:$0xff] %vm399_vm0, %v30461_v0  ;;  %449 = vst.msk [vmem:[#allocation2 + $0x180] sm:$0xff] %vm399_vm0, %v30461_v0  ;;  %v761_v27 = vld [vmem:[%s26203_s25 + $0xd0] sm:$0xff]  ;;  %v762_v28 = vld [vmem:[%s26203_s25 + $0xd8] sm:$0xff] }
  0x4f   : > { %450 = vst.msk [vmem:[#allocation2 + $0x188] sm:$0xff] %vm399_vm0, %v30461_v0  ;;  %451 = vst.msk [vmem:[#allocation2 + $0x190] sm:$0xff] %vm399_vm0, %v30461_v0  ;;  %v763_v29 = vld [vmem:[%s26203_s25 + $0xe0] sm:$0xff]  ;;  %v764_v30 = vld [vmem:[%s26203_s25 + $0xe8] sm:$0xff] }
  0x50   : > { %452 = vst.msk [vmem:[#allocation2 + $0x198] sm:$0xff] %vm399_vm0, %v30461_v0  ;;  %453 = vst.msk [vmem:[#allocation2 + $0x1a0] sm:$0xff] %vm399_vm0, %v30461_v0  ;;  %v765_v31 = vld [vmem:[%s26203_s25 + $0xf0] sm:$0xff]  ;;  %v766_v32 = vld [vmem:[%s26203_s25 + $0xf8] sm:$0xff] }
  0x51   : > { %455 = vst.msk [vmem:[#allocation2 + $0x1b0] sm:$0xff] %vm399_vm0, %v30461_v0  ;;  %456 = vst.msk [vmem:[#allocation2 + $0x1b8] sm:$0xff] %vm399_vm0, %v30461_v0  ;;  %v767_v33 = vld [vmem:[%s26203_s25 + $0x100] sm:$0xff]  ;;  %v768_v34 = vld [vmem:[%s26203_s25 + $0x108] sm:$0xff] }
  0x52   : > { %457 = vst.msk [vmem:[#allocation2 + $0x1c0] sm:$0xff] %vm399_vm0, %v30461_v0  ;;  %458 = vst.msk [vmem:[#allocation2 + $0x1c8] sm:$0xff] %vm399_vm0, %v30461_v0  ;;  %v769_v35 = vld [vmem:[%s26203_s25 + $0x110] sm:$0xff]  ;;  %v770_v36 = vld [vmem:[%s26203_s25 + $0x118] sm:$0xff] }
  0x53   : > { %459 = vst.msk [vmem:[#allocation2 + $0x1d0] sm:$0xff] %vm399_vm0, %v30461_v0  ;;  %461 = vst.msk [vmem:[#allocation2 + $0x1e0] sm:$0xff] %vm399_vm0, %v30461_v0  ;;  %v771_v37 = vld [vmem:[%s26203_s25 + $0x120] sm:$0xff]  ;;  %v772_v38 = vld [vmem:[%s26203_s25 + $0x128] sm:$0xff] }
  0x54   : > { %462 = vst.msk [vmem:[#allocation2 + $0x1e8] sm:$0xff] %vm399_vm0, %v30461_v0  ;;  %463 = vst.msk [vmem:[#allocation2 + $0x1f0] sm:$0xff] %vm399_vm0, %v30461_v0  ;;  %v773_v39 = vld [vmem:[%s26203_s25 + $0x130] sm:$0xff]  ;;  %v774_v40 = vld [vmem:[%s26203_s25 + $0x138] sm:$0xff] }
  0x55   : > { %464 = vst.msk [vmem:[#allocation2 + $0x1f8] sm:$0xff] %vm399_vm0, %v30461_v0  ;;  %465 = vst.msk [vmem:[#allocation2 + $0x200] sm:$0xff] %vm399_vm0, %v30461_v0  ;;  %v775_v41 = vld [vmem:[%s26203_s25 + $0x140] sm:$0xff]  ;;  %v776_v42 = vld [vmem:[%s26203_s25 + $0x148] sm:$0xff] }
  0x56   : > { %467 = vst.msk [vmem:[#allocation2 + $0x210] sm:$0xff] %vm399_vm0, %v30461_v0  ;;  %468 = vst.msk [vmem:[#allocation2 + $0x218] sm:$0xff] %vm399_vm0, %v30461_v0  ;;  %v777_v43 = vld [vmem:[%s26203_s25 + $0x150] sm:$0xff]  ;;  %v778_v44 = vld [vmem:[%s26203_s25 + $0x158] sm:$0xff] }
  0x57   : > { %469 = vst.msk [vmem:[#allocation2 + $0x220] sm:$0xff] %vm399_vm0, %v30461_v0  ;;  %470 = vst.msk [vmem:[#allocation2 + $0x228] sm:$0xff] %vm399_vm0, %v30461_v0  ;;  %v779_v45 = vld [vmem:[%s26203_s25 + $0x160] sm:$0xff]  ;;  %v780_v46 = vld [vmem:[%s26203_s25 + $0x168] sm:$0xff] }
  0x58   : > { %471 = vst.msk [vmem:[#allocation2 + $0x230] sm:$0xff] %vm399_vm0, %v30461_v0  ;;  %473 = vst.msk [vmem:[#allocation2 + $0x240] sm:$0xff] %vm399_vm0, %v30461_v0  ;;  %v781_v47 = vld [vmem:[%s26203_s25 + $0x170] sm:$0xff]  ;;  %v782_v48 = vld [vmem:[%s26203_s25 + $0x178] sm:$0xff] }
  0x59   : > { %474 = vst.msk [vmem:[#allocation2 + $0x248] sm:$0xff] %vm399_vm0, %v30461_v0  ;;  %475 = vst.msk [vmem:[#allocation2 + $0x250] sm:$0xff] %vm399_vm0, %v30461_v0  ;;  %v783_v49 = vld [vmem:[%s26203_s25 + $0x180] sm:$0xff]  ;;  %v784_v50 = vld [vmem:[%s26203_s25 + $0x188] sm:$0xff] }
  0x5a   : > { %476 = vst.msk [vmem:[#allocation2 + $0x258] sm:$0xff] %vm399_vm0, %v30461_v0  ;;  %477 = vst.msk [vmem:[#allocation2 + $0x260] sm:$0xff] %vm399_vm0, %v30461_v0  ;;  %v785_v51 = vld [vmem:[%s26203_s25 + $0x190] sm:$0xff]  ;;  %v786_v52 = vld [vmem:[%s26203_s25 + $0x198] sm:$0xff] }
  0x5b   : > { %479 = vst.msk [vmem:[#allocation2 + $0x270] sm:$0xff] %vm399_vm0, %v30461_v0  ;;  %480 = vst.msk [vmem:[#allocation2 + $0x278] sm:$0xff] %vm399_vm0, %v30461_v0  ;;  %v787_v53 = vld [vmem:[%s26203_s25 + $0x1a0] sm:$0xff]  ;;  %v788_v54 = vld [vmem:[%s26203_s25 + $0x1a8] sm:$0xff] }
  0x5c   : > { %481 = vst.msk [vmem:[#allocation2 + $0x280] sm:$0xff] %vm399_vm0, %v30461_v0  ;;  %482 = vst.msk [vmem:[#allocation2 + $0x288] sm:$0xff] %vm399_vm0, %v30461_v0  ;;  %v789_v55 = vld [vmem:[%s26203_s25 + $0x1b0] sm:$0xff]  ;;  %v790_v56 = vld [vmem:[%s26203_s25 + $0x1b8] sm:$0xff] }
  0x5d   : > { %483 = vst.msk [vmem:[#allocation2 + $0x290] sm:$0xff] %vm399_vm0, %v30461_v0  ;;  %485 = vst.msk [vmem:[#allocation2 + $0x2a0] sm:$0xff] %vm399_vm0, %v30461_v0  ;;  %v791_v57 = vld [vmem:[%s26203_s25 + $0x1c0] sm:$0xff]  ;;  %v792_v58 = vld [vmem:[%s26203_s25 + $0x1c8] sm:$0xff] }
  0x5e   : > { %486 = vst.msk [vmem:[#allocation2 + $0x2a8] sm:$0xff] %vm399_vm0, %v30461_v0  ;;  %487 = vst.msk [vmem:[#allocation2 + $0x2b0] sm:$0xff] %vm399_vm0, %v30461_v0  ;;  %v793_v59 = vld [vmem:[%s26203_s25 + $0x1d0] sm:$0xff]  ;;  %v794_v60 = vld [vmem:[%s26203_s25 + $0x1d8] sm:$0xff] }
  0x5f   : > { %488 = vst.msk [vmem:[#allocation2 + $0x2b8] sm:$0xff] %vm399_vm0, %v30461_v0  ;;  %489 = vst.msk [vmem:[#allocation2 + $0x2c0] sm:$0xff] %vm399_vm0, %v30461_v0  ;;  %v795_v61 = vld [vmem:[%s26203_s25 + $0x1e0] sm:$0xff]  ;;  %v796_v62 = vld [vmem:[%s26203_s25 + $0x1e8] sm:$0xff] }
  0x60   : > { %491 = vst.msk [vmem:[#allocation2 + $0x2d0] sm:$0xff] %vm399_vm0, %v30461_v0  ;;  %492 = vst.msk [vmem:[#allocation2 + $0x2d8] sm:$0xff] %vm399_vm0, %v30461_v0  ;;  %v797_v63 = vld [vmem:[%s26203_s25 + $0x1f0] sm:$0xff] }
  0x61   : > { %493 = vst.msk [vmem:[#allocation2 + $0x2e0] sm:$0xff] %vm399_vm0, %v30461_v0  ;;  %494 = vst.msk [vmem:[#allocation2 + $0x2e8] sm:$0xff] %vm399_vm0, %v30461_v0 }
  0x62   : > { %495 = vst.msk [vmem:[#allocation2 + $0x2f0] sm:$0xff] %vm399_vm0, %v30461_v0  ;;  %497 = vst.msk [vmem:[#allocation2 + $0x300] sm:$0xff] %vm399_vm0, %v30461_v0 }
  0x63   : > { %498 = vst.msk [vmem:[#allocation2 + $0x308] sm:$0xff] %vm399_vm0, %v30461_v0  ;;  %499 = vst.msk [vmem:[#allocation2 + $0x310] sm:$0xff] %vm399_vm0, %v30461_v0 }
  0x64   : > { %500 = vst.msk [vmem:[#allocation2 + $0x318] sm:$0xff] %vm399_vm0, %v30461_v0  ;;  %501 = vst.msk [vmem:[#allocation2 + $0x320] sm:$0xff] %vm399_vm0, %v30461_v0 }
  0x65   : > { %503 = vst.msk [vmem:[#allocation2 + $0x330] sm:$0xff] %vm399_vm0, %v30461_v0  ;;  %504 = vst.msk [vmem:[#allocation2 + $0x338] sm:$0xff] %vm399_vm0, %v30461_v0 }
  0x66   : > { %505 = vst.msk [vmem:[#allocation2 + $0x340] sm:$0xff] %vm399_vm0, %v30461_v0  ;;  %506 = vst.msk [vmem:[#allocation2 + $0x348] sm:$0xff] %vm399_vm0, %v30461_v0 }
  0x67   : > { %507 = vst.msk [vmem:[#allocation2 + $0x350] sm:$0xff] %vm399_vm0, %v30461_v0  ;;  %509 = vst.msk [vmem:[#allocation2 + $0x360] sm:$0xff] %vm399_vm0, %v30461_v0 }
  0x68   : > { %510 = vst.msk [vmem:[#allocation2 + $0x368] sm:$0xff] %vm399_vm0, %v30461_v0  ;;  %511 = vst.msk [vmem:[#allocation2 + $0x370] sm:$0xff] %vm399_vm0, %v30461_v0 }
  0x69   : > { %512 = vst.msk [vmem:[#allocation2 + $0x378] sm:$0xff] %vm399_vm0, %v30461_v0  ;;  %513 = vst.msk [vmem:[#allocation2 + $0x380] sm:$0xff] %vm399_vm0, %v30461_v0 }
  0x6a   : > { %515 = vst.msk [vmem:[#allocation2 + $0x390] sm:$0xff] %vm399_vm0, %v30461_v0  ;;  %516 = vst.msk [vmem:[#allocation2 + $0x398] sm:$0xff] %vm399_vm0, %v30461_v0 }
  0x6b   : > { %517 = vst.msk [vmem:[#allocation2 + $0x3a0] sm:$0xff] %vm399_vm0, %v30461_v0  ;;  %518 = vst.msk [vmem:[#allocation2 + $0x3a8] sm:$0xff] %vm399_vm0, %v30461_v0 }
  0x6c   : > { %519 = vst.msk [vmem:[#allocation2 + $0x3b0] sm:$0xff] %vm399_vm0, %v30461_v0  ;;  %521 = vst.msk [vmem:[#allocation2 + $0x3c0] sm:$0xff] %vm399_vm0, %v30461_v0 }
  0x6d   : > { %522 = vst.msk [vmem:[#allocation2 + $0x3c8] sm:$0xff] %vm399_vm0, %v30461_v0  ;;  %523 = vst.msk [vmem:[#allocation2 + $0x3d0] sm:$0xff] %vm399_vm0, %v30461_v0 }
  0x6e   : > { %524 = vst.msk [vmem:[#allocation2 + $0x3d8] sm:$0xff] %vm399_vm0, %v30461_v0  ;;  %525 = vst.msk [vmem:[#allocation2 + $0x3e0] sm:$0xff] %vm399_vm0, %v30461_v0 }
  0x6f   : > { %527 = vst.msk [vmem:[#allocation2 + $0x3f0] sm:$0xff] %vm399_vm0, %v30461_v0  ;;  %528 = vst.msk [vmem:[#allocation2 + $0x3f8] sm:$0xff] %vm399_vm0, %v30461_v0 }
  0x70   : > { %529 = vst.msk [vmem:[#allocation2 + $0x400] sm:$0xff] %vm399_vm0, %v30461_v0  ;;  %530 = vst.msk [vmem:[#allocation2 + $0x408] sm:$0xff] %vm399_vm0, %v30461_v0 }
  0x71   : > { %531 = vst.msk [vmem:[#allocation2 + $0x410] sm:$0xff] %vm399_vm0, %v30461_v0  ;;  %533 = vst.msk [vmem:[#allocation2 + $0x420] sm:$0xff] %vm399_vm0, %v30461_v0 }
  0x72   : > { %534 = vst.msk [vmem:[#allocation2 + $0x428] sm:$0xff] %vm399_vm0, %v30461_v0  ;;  %535 = vst.msk [vmem:[#allocation2 + $0x430] sm:$0xff] %vm399_vm0, %v30461_v0 }
  0x73   : > { %536 = vst.msk [vmem:[#allocation2 + $0x438] sm:$0xff] %vm399_vm0, %v30461_v0  ;;  %537 = vst.msk [vmem:[#allocation2 + $0x440] sm:$0xff] %vm399_vm0, %v30461_v0 }
  0x74   : > { %539 = vst.msk [vmem:[#allocation2 + $0x450] sm:$0xff] %vm399_vm0, %v30461_v0  ;;  %540 = vst.msk [vmem:[#allocation2 + $0x458] sm:$0xff] %vm399_vm0, %v30461_v0 }
  0x75   : > { %541 = vst.msk [vmem:[#allocation2 + $0x460] sm:$0xff] %vm399_vm0, %v30461_v0  ;;  %542 = vst.msk [vmem:[#allocation2 + $0x468] sm:$0xff] %vm399_vm0, %v30461_v0 }
  0x76   : > { %543 = vst.msk [vmem:[#allocation2 + $0x470] sm:$0xff] %vm399_vm0, %v30461_v0  ;;  %545 = vst.msk [vmem:[#allocation2 + $0x480] sm:$0xff] %vm399_vm0, %v30461_v0 }
  0x77   : > { %546 = vst.msk [vmem:[#allocation2 + $0x488] sm:$0xff] %vm399_vm0, %v30461_v0  ;;  %547 = vst.msk [vmem:[#allocation2 + $0x490] sm:$0xff] %vm399_vm0, %v30461_v0 }
  0x78   : > { %548 = vst.msk [vmem:[#allocation2 + $0x498] sm:$0xff] %vm399_vm0, %v30461_v0  ;;  %549 = vst.msk [vmem:[#allocation2 + $0x4a0] sm:$0xff] %vm399_vm0, %v30461_v0 }
  0x79   : > { %551 = vst.msk [vmem:[#allocation2 + $0x4b0] sm:$0xff] %vm399_vm0, %v30461_v0  ;;  %552 = vst.msk [vmem:[#allocation2 + $0x4b8] sm:$0xff] %vm399_vm0, %v30461_v0 }
  0x7a   : > { %553 = vst.msk [vmem:[#allocation2 + $0x4c0] sm:$0xff] %vm399_vm0, %v30461_v0  ;;  %554 = vst.msk [vmem:[#allocation2 + $0x4c8] sm:$0xff] %vm399_vm0, %v30461_v0 }
  0x7b   : > { %555 = vst.msk [vmem:[#allocation2 + $0x4d0] sm:$0xff] %vm399_vm0, %v30461_v0  ;;  %557 = vst.msk [vmem:[#allocation2 + $0x4e0] sm:$0xff] %vm399_vm0, %v30461_v0 }
  0x7c   : > { %558 = vst.msk [vmem:[#allocation2 + $0x4e8] sm:$0xff] %vm399_vm0, %v30461_v0  ;;  %559 = vst.msk [vmem:[#allocation2 + $0x4f0] sm:$0xff] %vm399_vm0, %v30461_v0 }
  0x7d   : > { %560 = vst.msk [vmem:[#allocation2 + $0x4f8] sm:$0xff] %vm399_vm0, %v30461_v0  ;;  %561 = vst.msk [vmem:[#allocation2 + $0x500] sm:$0xff] %vm399_vm0, %v30461_v0 }
  0x7e   : > { %563 = vst.msk [vmem:[#allocation2 + $0x510] sm:$0xff] %vm399_vm0, %v30461_v0  ;;  %564 = vst.msk [vmem:[#allocation2 + $0x518] sm:$0xff] %vm399_vm0, %v30461_v0 }
  0x7f   : > { %565 = vst.msk [vmem:[#allocation2 + $0x520] sm:$0xff] %vm399_vm0, %v30461_v0  ;;  %566 = vst.msk [vmem:[#allocation2 + $0x528] sm:$0xff] %vm399_vm0, %v30461_v0 }
  0x80   : > { %567 = vst.msk [vmem:[#allocation2 + $0x530] sm:$0xff] %vm399_vm0, %v30461_v0  ;;  %569 = vst.msk [vmem:[#allocation2 + $0x540] sm:$0xff] %vm399_vm0, %v30461_v0 }
  0x81   : > { %570 = vst.msk [vmem:[#allocation2 + $0x548] sm:$0xff] %vm399_vm0, %v30461_v0  ;;  %571 = vst.msk [vmem:[#allocation2 + $0x550] sm:$0xff] %vm399_vm0, %v30461_v0 }
  0x82   : > { %572 = vst.msk [vmem:[#allocation2 + $0x558] sm:$0xff] %vm399_vm0, %v30461_v0  ;;  %573 = vst.msk [vmem:[#allocation2 + $0x560] sm:$0xff] %vm399_vm0, %v30461_v0 }
  0x83   : > { %575 = vst.msk [vmem:[#allocation2 + $0x570] sm:$0xff] %vm399_vm0, %v30461_v0  ;;  %576 = vst.msk [vmem:[#allocation2 + $0x578] sm:$0xff] %vm399_vm0, %v30461_v0 }
  0x84   : > { %577 = vst.msk [vmem:[#allocation2 + $0x580] sm:$0xff] %vm399_vm0, %v30461_v0  ;;  %578 = vst.msk [vmem:[#allocation2 + $0x588] sm:$0xff] %vm399_vm0, %v30461_v0 }
  0x85   : > { %579 = vst.msk [vmem:[#allocation2 + $0x590] sm:$0xff] %vm399_vm0, %v30461_v0  ;;  %581 = vst.msk [vmem:[#allocation2 + $0x5a0] sm:$0xff] %vm399_vm0, %v30461_v0 }
  0x86   : > { %582 = vst.msk [vmem:[#allocation2 + $0x5a8] sm:$0xff] %vm399_vm0, %v30461_v0  ;;  %583 = vst.msk [vmem:[#allocation2 + $0x5b0] sm:$0xff] %vm399_vm0, %v30461_v0 }
  0x87   : > { %584 = vst.msk [vmem:[#allocation2 + $0x5b8] sm:$0xff] %vm399_vm0, %v30461_v0  ;;  %585 = vst.msk [vmem:[#allocation2 + $0x5c0] sm:$0xff] %vm399_vm0, %v30461_v0 }
  0x88   : > { %587 = vst.msk [vmem:[#allocation2 + $0x5d0] sm:$0xff] %vm399_vm0, %v30461_v0  ;;  %588 = vst.msk [vmem:[#allocation2 + $0x5d8] sm:$0xff] %vm399_vm0, %v30461_v0 }
  0x89   : > { %589 = vst.msk [vmem:[#allocation2 + $0x5e0] sm:$0xff] %vm399_vm0, %v30461_v0  ;;  %590 = vst.msk [vmem:[#allocation2 + $0x5e8] sm:$0xff] %vm399_vm0, %v30461_v0 }
  0x8a   : > { %591 = vst.msk [vmem:[#allocation2 + $0x5f0] sm:$0xff] %vm399_vm0, %v30461_v0  ;;  %593 = vst.msk [vmem:[#allocation2 + $0x600] sm:$0xff] %vm399_vm0, %v30461_v0 }
  0x8b   : > { %594 = vst.msk [vmem:[#allocation2 + $0x608] sm:$0xff] %vm399_vm0, %v30461_v0  ;;  %595 = vst.msk [vmem:[#allocation2 + $0x610] sm:$0xff] %vm399_vm0, %v30461_v0 }
  0x8c   : > { %596 = vst.msk [vmem:[#allocation2 + $0x618] sm:$0xff] %vm399_vm0, %v30461_v0  ;;  %597 = vst.msk [vmem:[#allocation2 + $0x620] sm:$0xff] %vm399_vm0, %v30461_v0 }
  0x8d   : > { %599 = vst.msk [vmem:[#allocation2 + $0x630] sm:$0xff] %vm399_vm0, %v30461_v0  ;;  %600 = vst.msk [vmem:[#allocation2 + $0x638] sm:$0xff] %vm399_vm0, %v30461_v0 }
  0x8e   : > { %601 = vst.msk [vmem:[#allocation2 + $0x640] sm:$0xff] %vm399_vm0, %v30461_v0  ;;  %602 = vst.msk [vmem:[#allocation2 + $0x648] sm:$0xff] %vm399_vm0, %v30461_v0 }
  0x8f   : > { %603 = vst.msk [vmem:[#allocation2 + $0x650] sm:$0xff] %vm399_vm0, %v30461_v0  ;;  %605 = vst.msk [vmem:[#allocation2 + $0x660] sm:$0xff] %vm399_vm0, %v30461_v0 }
  0x90   : > { %606 = vst.msk [vmem:[#allocation2 + $0x668] sm:$0xff] %vm399_vm0, %v30461_v0  ;;  %607 = vst.msk [vmem:[#allocation2 + $0x670] sm:$0xff] %vm399_vm0, %v30461_v0 }
  0x91   : > { %608 = vst.msk [vmem:[#allocation2 + $0x678] sm:$0xff] %vm399_vm0, %v30461_v0  ;;  %609 = vst.msk [vmem:[#allocation2 + $0x680] sm:$0xff] %vm399_vm0, %v30461_v0 }
  0x92   : > { %611 = vst.msk [vmem:[#allocation2 + $0x690] sm:$0xff] %vm399_vm0, %v30461_v0  ;;  %612 = vst.msk [vmem:[#allocation2 + $0x698] sm:$0xff] %vm399_vm0, %v30461_v0 }
  0x93   : > { %613 = vst.msk [vmem:[#allocation2 + $0x6a0] sm:$0xff] %vm399_vm0, %v30461_v0  ;;  %614 = vst.msk [vmem:[#allocation2 + $0x6a8] sm:$0xff] %vm399_vm0, %v30461_v0 }
  0x94   : > { %615 = vst.msk [vmem:[#allocation2 + $0x6b0] sm:$0xff] %vm399_vm0, %v30461_v0  ;;  %864 = vst.msk [vmem:[#allocation2 + $0x68] sm:$0xff] %vm399_vm0, %v735_v1  ;;  %v798_v1 = vld [vmem:[%s26203_s25 + $0x1f8] sm:$0xff] }
  0x95   : > { %406 = vst.msk [vmem:[#allocation2 + $0x28] sm:$0x3] %vm405_vm1, %v30461_v0  ;;  %412 = vst.msk [vmem:[#allocation2 + $0x58] sm:$0x3] %vm405_vm1, %v30461_v0 }
  0x96   : > { %418 = vst.msk [vmem:[#allocation2 + $0x88] sm:$0x3] %vm405_vm1, %v30461_v0  ;;  %424 = vst.msk [vmem:[#allocation2 + $0xb8] sm:$0x3] %vm405_vm1, %v30461_v0 }
  0x97   : > { %430 = vst.msk [vmem:[#allocation2 + $0xe8] sm:$0x3] %vm405_vm1, %v30461_v0  ;;  %436 = vst.msk [vmem:[#allocation2 + $0x118] sm:$0x3] %vm405_vm1, %v30461_v0 }
  0x98   : > { %442 = vst.msk [vmem:[#allocation2 + $0x148] sm:$0x3] %vm405_vm1, %v30461_v0  ;;  %448 = vst.msk [vmem:[#allocation2 + $0x178] sm:$0x3] %vm405_vm1, %v30461_v0 }
  0x99   : > { %454 = vst.msk [vmem:[#allocation2 + $0x1a8] sm:$0x3] %vm405_vm1, %v30461_v0  ;;  %460 = vst.msk [vmem:[#allocation2 + $0x1d8] sm:$0x3] %vm405_vm1, %v30461_v0 }
  0x9a   : > { %466 = vst.msk [vmem:[#allocation2 + $0x208] sm:$0x3] %vm405_vm1, %v30461_v0  ;;  %472 = vst.msk [vmem:[#allocation2 + $0x238] sm:$0x3] %vm405_vm1, %v30461_v0 }
  0x9b   : > { %478 = vst.msk [vmem:[#allocation2 + $0x268] sm:$0x3] %vm405_vm1, %v30461_v0  ;;  %484 = vst.msk [vmem:[#allocation2 + $0x298] sm:$0x3] %vm405_vm1, %v30461_v0 }
  0x9c   : > { %490 = vst.msk [vmem:[#allocation2 + $0x2c8] sm:$0x3] %vm405_vm1, %v30461_v0  ;;  %496 = vst.msk [vmem:[#allocation2 + $0x2f8] sm:$0x3] %vm405_vm1, %v30461_v0 }
  0x9d   : > { %502 = vst.msk [vmem:[#allocation2 + $0x328] sm:$0x3] %vm405_vm1, %v30461_v0  ;;  %508 = vst.msk [vmem:[#allocation2 + $0x358] sm:$0x3] %vm405_vm1, %v30461_v0 }
  0x9e   : > { %514 = vst.msk [vmem:[#allocation2 + $0x388] sm:$0x3] %vm405_vm1, %v30461_v0  ;;  %520 = vst.msk [vmem:[#allocation2 + $0x3b8] sm:$0x3] %vm405_vm1, %v30461_v0 }
  0x9f   : > { %526 = vst.msk [vmem:[#allocation2 + $0x3e8] sm:$0x3] %vm405_vm1, %v30461_v0  ;;  %532 = vst.msk [vmem:[#allocation2 + $0x418] sm:$0x3] %vm405_vm1, %v30461_v0 }
  0xa0   : > { %538 = vst.msk [vmem:[#allocation2 + $0x448] sm:$0x3] %vm405_vm1, %v30461_v0  ;;  %544 = vst.msk [vmem:[#allocation2 + $0x478] sm:$0x3] %vm405_vm1, %v30461_v0 }
  0xa1   : > { %550 = vst.msk [vmem:[#allocation2 + $0x4a8] sm:$0x3] %vm405_vm1, %v30461_v0  ;;  %556 = vst.msk [vmem:[#allocation2 + $0x4d8] sm:$0x3] %vm405_vm1, %v30461_v0 }
  0xa2   : > { %562 = vst.msk [vmem:[#allocation2 + $0x508] sm:$0x3] %vm405_vm1, %v30461_v0  ;;  %568 = vst.msk [vmem:[#allocation2 + $0x538] sm:$0x3] %vm405_vm1, %v30461_v0 }
  0xa3   : > { %574 = vst.msk [vmem:[#allocation2 + $0x568] sm:$0x3] %vm405_vm1, %v30461_v0  ;;  %580 = vst.msk [vmem:[#allocation2 + $0x598] sm:$0x3] %vm405_vm1, %v30461_v0 }
  0xa4   : > { %586 = vst.msk [vmem:[#allocation2 + $0x5c8] sm:$0x3] %vm405_vm1, %v30461_v0  ;;  %592 = vst.msk [vmem:[#allocation2 + $0x5f8] sm:$0x3] %vm405_vm1, %v30461_v0 }
  0xa5   : > { %598 = vst.msk [vmem:[#allocation2 + $0x628] sm:$0x3] %vm405_vm1, %v30461_v0  ;;  %604 = vst.msk [vmem:[#allocation2 + $0x658] sm:$0x3] %vm405_vm1, %v30461_v0 }
  0xa6   : > { %610 = vst.msk [vmem:[#allocation2 + $0x688] sm:$0x3] %vm405_vm1, %v30461_v0  ;;  %616 = vst.msk [vmem:[#allocation2 + $0x6b8] sm:$0x3] %vm405_vm1, %v30461_v0 }
  0xa7   : > { %618 = vst.msk [vmem:[#allocation3] sm:$0xff] %vm617_vm2, %v30461_v0  ;;  %619 = vst.msk [vmem:[#allocation3 + $0x8] sm:$0xff] %vm617_vm2, %v30461_v0 }
  0xa8   : > { %620 = vst.msk [vmem:[#allocation3 + $0x10] sm:$0xff] %vm617_vm2, %v30461_v0  ;;  %623 = vst.msk [vmem:[#allocation3 + $0x20] sm:$0xff] %vm617_vm2, %v30461_v0 }
  0xa9   : > { %624 = vst.msk [vmem:[#allocation3 + $0x28] sm:$0xff] %vm617_vm2, %v30461_v0  ;;  %625 = vst.msk [vmem:[#allocation3 + $0x30] sm:$0xff] %vm617_vm2, %v30461_v0 }
  0xaa   : > { %627 = vst.msk [vmem:[#allocation3 + $0x40] sm:$0xff] %vm617_vm2, %v30461_v0  ;;  %628 = vst.msk [vmem:[#allocation3 + $0x48] sm:$0xff] %vm617_vm2, %v30461_v0 }
  0xab   : > { %629 = vst.msk [vmem:[#allocation3 + $0x50] sm:$0xff] %vm617_vm2, %v30461_v0  ;;  %631 = vst.msk [vmem:[#allocation3 + $0x60] sm:$0xff] %vm617_vm2, %v30461_v0 }
  0xac   : > { %632 = vst.msk [vmem:[#allocation3 + $0x68] sm:$0xff] %vm617_vm2, %v30461_v0  ;;  %633 = vst.msk [vmem:[#allocation3 + $0x70] sm:$0xff] %vm617_vm2, %v30461_v0 }
  0xad   : > { %635 = vst.msk [vmem:[#allocation3 + $0x80] sm:$0xff] %vm617_vm2, %v30461_v0  ;;  %636 = vst.msk [vmem:[#allocation3 + $0x88] sm:$0xff] %vm617_vm2, %v30461_v0 }
  0xae   : > { %637 = vst.msk [vmem:[#allocation3 + $0x90] sm:$0xff] %vm617_vm2, %v30461_v0  ;;  %639 = vst.msk [vmem:[#allocation3 + $0xa0] sm:$0xff] %vm617_vm2, %v30461_v0 }
  0xaf   : > { %640 = vst.msk [vmem:[#allocation3 + $0xa8] sm:$0xff] %vm617_vm2, %v30461_v0  ;;  %641 = vst.msk [vmem:[#allocation3 + $0xb0] sm:$0xff] %vm617_vm2, %v30461_v0 }
  0xb0   : > { %643 = vst.msk [vmem:[#allocation3 + $0xc0] sm:$0xff] %vm617_vm2, %v30461_v0  ;;  %644 = vst.msk [vmem:[#allocation3 + $0xc8] sm:$0xff] %vm617_vm2, %v30461_v0 }
  0xb1   : > { %645 = vst.msk [vmem:[#allocation3 + $0xd0] sm:$0xff] %vm617_vm2, %v30461_v0  ;;  %647 = vst.msk [vmem:[#allocation3 + $0xe0] sm:$0xff] %vm617_vm2, %v30461_v0 }
  0xb2   : > { %648 = vst.msk [vmem:[#allocation3 + $0xe8] sm:$0xff] %vm617_vm2, %v30461_v0  ;;  %649 = vst.msk [vmem:[#allocation3 + $0xf0] sm:$0xff] %vm617_vm2, %v30461_v0 }
  0xb3   : > { %651 = vst.msk [vmem:[#allocation3 + $0x100] sm:$0xff] %vm617_vm2, %v30461_v0  ;;  %652 = vst.msk [vmem:[#allocation3 + $0x108] sm:$0xff] %vm617_vm2, %v30461_v0 }
  0xb4   : > { %653 = vst.msk [vmem:[#allocation3 + $0x110] sm:$0xff] %vm617_vm2, %v30461_v0  ;;  %655 = vst.msk [vmem:[#allocation3 + $0x120] sm:$0xff] %vm617_vm2, %v30461_v0 }
  0xb5   : > { %656 = vst.msk [vmem:[#allocation3 + $0x128] sm:$0xff] %vm617_vm2, %v30461_v0  ;;  %657 = vst.msk [vmem:[#allocation3 + $0x130] sm:$0xff] %vm617_vm2, %v30461_v0 }
  0xb6   : > { %659 = vst.msk [vmem:[#allocation3 + $0x140] sm:$0xff] %vm617_vm2, %v30461_v0  ;;  %660 = vst.msk [vmem:[#allocation3 + $0x148] sm:$0xff] %vm617_vm2, %v30461_v0 }
  0xb7   : > { %661 = vst.msk [vmem:[#allocation3 + $0x150] sm:$0xff] %vm617_vm2, %v30461_v0  ;;  %663 = vst.msk [vmem:[#allocation3 + $0x160] sm:$0xff] %vm617_vm2, %v30461_v0 }
  0xb8   : > { %664 = vst.msk [vmem:[#allocation3 + $0x168] sm:$0xff] %vm617_vm2, %v30461_v0  ;;  %665 = vst.msk [vmem:[#allocation3 + $0x170] sm:$0xff] %vm617_vm2, %v30461_v0 }
  0xb9   : > { %667 = vst.msk [vmem:[#allocation3 + $0x180] sm:$0xff] %vm617_vm2, %v30461_v0  ;;  %668 = vst.msk [vmem:[#allocation3 + $0x188] sm:$0xff] %vm617_vm2, %v30461_v0 }
  0xba   : > { %669 = vst.msk [vmem:[#allocation3 + $0x190] sm:$0xff] %vm617_vm2, %v30461_v0  ;;  %671 = vst.msk [vmem:[#allocation3 + $0x1a0] sm:$0xff] %vm617_vm2, %v30461_v0 }
  0xbb   : > { %672 = vst.msk [vmem:[#allocation3 + $0x1a8] sm:$0xff] %vm617_vm2, %v30461_v0  ;;  %673 = vst.msk [vmem:[#allocation3 + $0x1b0] sm:$0xff] %vm617_vm2, %v30461_v0 }
  0xbc   : > { %675 = vst.msk [vmem:[#allocation3 + $0x1c0] sm:$0xff] %vm617_vm2, %v30461_v0  ;;  %676 = vst.msk [vmem:[#allocation3 + $0x1c8] sm:$0xff] %vm617_vm2, %v30461_v0 }
  0xbd   : > { %677 = vst.msk [vmem:[#allocation3 + $0x1d0] sm:$0xff] %vm617_vm2, %v30461_v0  ;;  %679 = vst.msk [vmem:[#allocation3 + $0x1e0] sm:$0xff] %vm617_vm2, %v30461_v0 }
  0xbe   : > { %680 = vst.msk [vmem:[#allocation3 + $0x1e8] sm:$0xff] %vm617_vm2, %v30461_v0  ;;  %681 = vst.msk [vmem:[#allocation3 + $0x1f0] sm:$0xff] %vm617_vm2, %v30461_v0 }
  0xbf   : > { %683 = vst.msk [vmem:[#allocation3 + $0x200] sm:$0xff] %vm617_vm2, %v30461_v0  ;;  %684 = vst.msk [vmem:[#allocation3 + $0x208] sm:$0xff] %vm617_vm2, %v30461_v0 }
  0xc0   : > { %685 = vst.msk [vmem:[#allocation3 + $0x210] sm:$0xff] %vm617_vm2, %v30461_v0  ;;  %687 = vst.msk [vmem:[#allocation3 + $0x220] sm:$0xff] %vm617_vm2, %v30461_v0 }
  0xc1   : > { %688 = vst.msk [vmem:[#allocation3 + $0x228] sm:$0xff] %vm617_vm2, %v30461_v0  ;;  %689 = vst.msk [vmem:[#allocation3 + $0x230] sm:$0xff] %vm617_vm2, %v30461_v0 }
  0xc2   : > { %691 = vst.msk [vmem:[#allocation3 + $0x240] sm:$0xff] %vm617_vm2, %v30461_v0  ;;  %692 = vst.msk [vmem:[#allocation3 + $0x248] sm:$0xff] %vm617_vm2, %v30461_v0 }
  0xc3   : > { %693 = vst.msk [vmem:[#allocation3 + $0x250] sm:$0xff] %vm617_vm2, %v30461_v0  ;;  %695 = vst.msk [vmem:[#allocation3 + $0x260] sm:$0xff] %vm617_vm2, %v30461_v0 }
  0xc4   : > { %696 = vst.msk [vmem:[#allocation3 + $0x268] sm:$0xff] %vm617_vm2, %v30461_v0  ;;  %697 = vst.msk [vmem:[#allocation3 + $0x270] sm:$0xff] %vm617_vm2, %v30461_v0 }
  0xc5   : > { %699 = vst.msk [vmem:[#allocation4] sm:$0xff] %vm617_vm2, %v30461_v0  ;;  %700 = vst.msk [vmem:[#allocation4 + $0x8] sm:$0xff] %vm617_vm2, %v30461_v0 }
  0xc6   : > { %702 = vst.msk [vmem:[#allocation4 + $0x18] sm:$0xff] %vm617_vm2, %v30461_v0  ;;  %703 = vst.msk [vmem:[#allocation4 + $0x20] sm:$0xff] %vm617_vm2, %v30461_v0 }
  0xc7   : > { %705 = vst.msk [vmem:[#allocation4 + $0x30] sm:$0xff] %vm617_vm2, %v30461_v0  ;;  %706 = vst.msk [vmem:[#allocation4 + $0x38] sm:$0xff] %vm617_vm2, %v30461_v0 }
  0xc8   : > { %708 = vst.msk [vmem:[#allocation4 + $0x48] sm:$0xff] %vm617_vm2, %v30461_v0  ;;  %709 = vst.msk [vmem:[#allocation4 + $0x50] sm:$0xff] %vm617_vm2, %v30461_v0 }
  0xc9   : > { %711 = vst.msk [vmem:[#allocation4 + $0x60] sm:$0xff] %vm617_vm2, %v30461_v0  ;;  %712 = vst.msk [vmem:[#allocation4 + $0x68] sm:$0xff] %vm617_vm2, %v30461_v0 }
  0xca   : > { %714 = vst.msk [vmem:[#allocation4 + $0x78] sm:$0xff] %vm617_vm2, %v30461_v0  ;;  %715 = vst.msk [vmem:[#allocation4 + $0x80] sm:$0xff] %vm617_vm2, %v30461_v0 }
  0xcb   : > { %717 = vst.msk [vmem:[#allocation4 + $0x90] sm:$0xff] %vm617_vm2, %v30461_v0  ;;  %718 = vst.msk [vmem:[#allocation4 + $0x98] sm:$0xff] %vm617_vm2, %v30461_v0 }
  0xcc   : > { %720 = vst.msk [vmem:[#allocation4 + $0xa8] sm:$0xff] %vm617_vm2, %v30461_v0  ;;  %721 = vst.msk [vmem:[#allocation4 + $0xb0] sm:$0xff] %vm617_vm2, %v30461_v0 }
  0xcd   : > { %723 = vst.msk [vmem:[#allocation4 + $0xc0] sm:$0xff] %vm617_vm2, %v30461_v0  ;;  %724 = vst.msk [vmem:[#allocation4 + $0xc8] sm:$0xff] %vm617_vm2, %v30461_v0 }
  0xce   : > { %726 = vst.msk [vmem:[#allocation4 + $0xd8] sm:$0xff] %vm617_vm2, %v30461_v0  ;;  %727 = vst.msk [vmem:[#allocation4 + $0xe0] sm:$0xff] %vm617_vm2, %v30461_v0 }
  0xcf   : > { %729 = vst.msk [vmem:[#allocation4 + $0xf0] sm:$0xff] %vm617_vm2, %v30461_v0  ;;  %730 = vst.msk [vmem:[#allocation4 + $0xf8] sm:$0xff] %vm617_vm2, %v30461_v0 }
  0xd0   : > { %732 = vst.msk [vmem:[#allocation4 + $0x108] sm:$0xff] %vm617_vm2, %v30461_v0  ;;  %733 = vst.msk [vmem:[#allocation4 + $0x110] sm:$0xff] %vm617_vm2, %v30461_v0 }
  0xd1   : > { %622 = vst.msk [vmem:[#allocation3 + $0x18] sm:$0x3] %vm621_vm3, %v30461_v0  ;;  %626 = vst.msk [vmem:[#allocation3 + $0x38] sm:$0x3] %vm621_vm3, %v30461_v0 }
  0xd2   : > { %630 = vst.msk [vmem:[#allocation3 + $0x58] sm:$0x3] %vm621_vm3, %v30461_v0  ;;  %634 = vst.msk [vmem:[#allocation3 + $0x78] sm:$0x3] %vm621_vm3, %v30461_v0 }
  0xd3   : > { %638 = vst.msk [vmem:[#allocation3 + $0x98] sm:$0x3] %vm621_vm3, %v30461_v0  ;;  %642 = vst.msk [vmem:[#allocation3 + $0xb8] sm:$0x3] %vm621_vm3, %v30461_v0 }
  0xd4   : > { %646 = vst.msk [vmem:[#allocation3 + $0xd8] sm:$0x3] %vm621_vm3, %v30461_v0  ;;  %650 = vst.msk [vmem:[#allocation3 + $0xf8] sm:$0x3] %vm621_vm3, %v30461_v0 }
  0xd5   : > { %654 = vst.msk [vmem:[#allocation3 + $0x118] sm:$0x3] %vm621_vm3, %v30461_v0  ;;  %658 = vst.msk [vmem:[#allocation3 + $0x138] sm:$0x3] %vm621_vm3, %v30461_v0 }
  0xd6   : > { %662 = vst.msk [vmem:[#allocation3 + $0x158] sm:$0x3] %vm621_vm3, %v30461_v0  ;;  %666 = vst.msk [vmem:[#allocation3 + $0x178] sm:$0x3] %vm621_vm3, %v30461_v0 }
  0xd7   : > { %670 = vst.msk [vmem:[#allocation3 + $0x198] sm:$0x3] %vm621_vm3, %v30461_v0  ;;  %674 = vst.msk [vmem:[#allocation3 + $0x1b8] sm:$0x3] %vm621_vm3, %v30461_v0 }
  0xd8   : > { %678 = vst.msk [vmem:[#allocation3 + $0x1d8] sm:$0x3] %vm621_vm3, %v30461_v0  ;;  %682 = vst.msk [vmem:[#allocation3 + $0x1f8] sm:$0x3] %vm621_vm3, %v30461_v0 }
  0xd9   : > { %686 = vst.msk [vmem:[#allocation3 + $0x218] sm:$0x3] %vm621_vm3, %v30461_v0  ;;  %690 = vst.msk [vmem:[#allocation3 + $0x238] sm:$0x3] %vm621_vm3, %v30461_v0 }
  0xda   : > { %694 = vst.msk [vmem:[#allocation3 + $0x258] sm:$0x3] %vm621_vm3, %v30461_v0  ;;  %698 = vst.msk [vmem:[#allocation3 + $0x278] sm:$0x3] %vm621_vm3, %v30461_v0 }
  0xdb   : > { %701 = vst.msk [vmem:[#allocation4 + $0x10] sm:$0x3] %vm621_vm3, %v30461_v0  ;;  %704 = vst.msk [vmem:[#allocation4 + $0x28] sm:$0x3] %vm621_vm3, %v30461_v0 }
  0xdc   : > { %707 = vst.msk [vmem:[#allocation4 + $0x40] sm:$0x3] %vm621_vm3, %v30461_v0  ;;  %710 = vst.msk [vmem:[#allocation4 + $0x58] sm:$0x3] %vm621_vm3, %v30461_v0 }
  0xdd   : > { %713 = vst.msk [vmem:[#allocation4 + $0x70] sm:$0x3] %vm621_vm3, %v30461_v0  ;;  %716 = vst.msk [vmem:[#allocation4 + $0x88] sm:$0x3] %vm621_vm3, %v30461_v0 }
  0xde   : > { %719 = vst.msk [vmem:[#allocation4 + $0xa0] sm:$0x3] %vm621_vm3, %v30461_v0  ;;  %722 = vst.msk [vmem:[#allocation4 + $0xb8] sm:$0x3] %vm621_vm3, %v30461_v0 }
  0xdf   : > { %725 = vst.msk [vmem:[#allocation4 + $0xd0] sm:$0x3] %vm621_vm3, %v30461_v0  ;;  %728 = vst.msk [vmem:[#allocation4 + $0xe8] sm:$0x3] %vm621_vm3, %v30461_v0 }
  0xe0   : > { %731 = vst.msk [vmem:[#allocation4 + $0x100] sm:$0x3] %vm621_vm3, %v30461_v0  ;;  %734 = vst.msk [vmem:[#allocation4 + $0x118] sm:$0x3] %vm621_vm3, %v30461_v0 }
  0xe1   : > { %865 = vst.msk [vmem:[#allocation2 + $0x70] sm:$0xff] %vm399_vm0, %v736_v2  ;;  %866 = vst.msk [vmem:[#allocation2 + $0x78] sm:$0xff] %vm399_vm0, %v737_v3  ;;  %v799_v2 = vld [vmem:[%s26203_s25 + $0x200] sm:$0xff]  ;;  %v800_v3 = vld [vmem:[%s26203_s25 + $0x208] sm:$0xff] }
  0xe2   : > { %867 = vst.msk [vmem:[#allocation2 + $0x80] sm:$0xff] %vm399_vm0, %v738_v4  ;;  %868 = vst.msk [vmem:[#allocation2 + $0x98] sm:$0xff] %vm399_vm0, %v739_v5  ;;  %v801_v4 = vld [vmem:[%s26203_s25 + $0x210] sm:$0xff]  ;;  %v802_v5 = vld [vmem:[%s26203_s25 + $0x218] sm:$0xff] }
  0xe3   : > { %869 = vst.msk [vmem:[#allocation2 + $0xa0] sm:$0xff] %vm399_vm0, %v740_v6  ;;  %870 = vst.msk [vmem:[#allocation2 + $0xa8] sm:$0xff] %vm399_vm0, %v741_v7  ;;  %v803_v6 = vld [vmem:[%s26203_s25 + $0x220] sm:$0xff]  ;;  %v804_v7 = vld [vmem:[%s26203_s25 + $0x228] sm:$0xff] }
  0xe4   : > { %871 = vst.msk [vmem:[#allocation2 + $0xb0] sm:$0xff] %vm399_vm0, %v742_v8  ;;  %872 = vst.msk [vmem:[#allocation2 + $0xc8] sm:$0xff] %vm399_vm0, %v743_v9  ;;  %v805_v8 = vld [vmem:[%s26203_s25 + $0x230] sm:$0xff]  ;;  %v806_v9 = vld [vmem:[%s26203_s25 + $0x238] sm:$0xff] }
  0xe5   : > { %873 = vst.msk [vmem:[#allocation2 + $0xd0] sm:$0xff] %vm399_vm0, %v744_v10  ;;  %874 = vst.msk [vmem:[#allocation2 + $0xd8] sm:$0xff] %vm399_vm0, %v745_v11  ;;  %v807_v10 = vld [vmem:[%s26203_s25 + $0x240] sm:$0xff]  ;;  %v808_v11 = vld [vmem:[%s26203_s25 + $0x248] sm:$0xff] }
  0xe6   : > { %875 = vst.msk [vmem:[#allocation2 + $0xe0] sm:$0xff] %vm399_vm0, %v746_v12  ;;  %876 = vst.msk [vmem:[#allocation2 + $0xf8] sm:$0xff] %vm399_vm0, %v747_v13  ;;  %v809_v12 = vld [vmem:[%s26203_s25 + $0x250] sm:$0xff]  ;;  %v810_v13 = vld [vmem:[%s26203_s25 + $0x258] sm:$0xff] }
  0xe7   : > { %877 = vst.msk [vmem:[#allocation2 + $0x100] sm:$0xff] %vm399_vm0, %v748_v14  ;;  %878 = vst.msk [vmem:[#allocation2 + $0x108] sm:$0xff] %vm399_vm0, %v749_v15  ;;  %v811_v14 = vld [vmem:[%s26203_s25 + $0x260] sm:$0xff]  ;;  %v812_v15 = vld [vmem:[%s26203_s25 + $0x268] sm:$0xff] }
  0xe8   : > { %879 = vst.msk [vmem:[#allocation2 + $0x110] sm:$0xff] %vm399_vm0, %v750_v16  ;;  %880 = vst.msk [vmem:[#allocation2 + $0x128] sm:$0xff] %vm399_vm0, %v751_v17  ;;  %v813_v16 = vld [vmem:[%s26203_s25 + $0x270] sm:$0xff]  ;;  %v814_v17 = vld [vmem:[%s26203_s25 + $0x278] sm:$0xff] }
  0xe9   : > { %881 = vst.msk [vmem:[#allocation2 + $0x130] sm:$0xff] %vm399_vm0, %v752_v18  ;;  %882 = vst.msk [vmem:[#allocation2 + $0x138] sm:$0xff] %vm399_vm0, %v753_v19  ;;  %v815_v18 = vld [vmem:[%s26203_s25 + $0x280] sm:$0xff]  ;;  %v816_v19 = vld [vmem:[%s26203_s25 + $0x288] sm:$0xff] }
  0xea   : > { %883 = vst.msk [vmem:[#allocation2 + $0x140] sm:$0xff] %vm399_vm0, %v754_v20  ;;  %884 = vst.msk [vmem:[#allocation2 + $0x158] sm:$0xff] %vm399_vm0, %v755_v21  ;;  %v817_v20 = vld [vmem:[%s26203_s25 + $0x290] sm:$0xff]  ;;  %v818_v21 = vld [vmem:[%s26203_s25 + $0x298] sm:$0xff] }
  0xeb   : > { %885 = vst.msk [vmem:[#allocation2 + $0x160] sm:$0xff] %vm399_vm0, %v756_v22  ;;  %886 = vst.msk [vmem:[#allocation2 + $0x168] sm:$0xff] %vm399_vm0, %v757_v23  ;;  %v819_v22 = vld [vmem:[%s26203_s25 + $0x2a0] sm:$0xff]  ;;  %v820_v23 = vld [vmem:[%s26203_s25 + $0x2a8] sm:$0xff] }
  0xec   : > { %887 = vst.msk [vmem:[#allocation2 + $0x170] sm:$0xff] %vm399_vm0, %v758_v24  ;;  %888 = vst.msk [vmem:[#allocation2 + $0x188] sm:$0xff] %vm399_vm0, %v759_v25  ;;  %v821_v24 = vld [vmem:[%s26203_s25 + $0x2b0] sm:$0xff]  ;;  %v822_v25 = vld [vmem:[%s26203_s25 + $0x2b8] sm:$0xff] }
  0xed   : > { %889 = vst.msk [vmem:[#allocation2 + $0x190] sm:$0xff] %vm399_vm0, %v760_v26  ;;  %890 = vst.msk [vmem:[#allocation2 + $0x198] sm:$0xff] %vm399_vm0, %v761_v27  ;;  %v823_v26 = vld [vmem:[%s26203_s25 + $0x2c0] sm:$0xff]  ;;  %v824_v27 = vld [vmem:[%s26203_s25 + $0x2c8] sm:$0xff] }
  0xee   : > { %891 = vst.msk [vmem:[#allocation2 + $0x1a0] sm:$0xff] %vm399_vm0, %v762_v28  ;;  %892 = vst.msk [vmem:[#allocation2 + $0x1b8] sm:$0xff] %vm399_vm0, %v763_v29  ;;  %v825_v28 = vld [vmem:[%s26203_s25 + $0x2d0] sm:$0xff]  ;;  %v826_v29 = vld [vmem:[%s26203_s25 + $0x2d8] sm:$0xff] }
  0xef   : > { %893 = vst.msk [vmem:[#allocation2 + $0x1c0] sm:$0xff] %vm399_vm0, %v764_v30  ;;  %894 = vst.msk [vmem:[#allocation2 + $0x1c8] sm:$0xff] %vm399_vm0, %v765_v31  ;;  %v827_v30 = vld [vmem:[%s26203_s25 + $0x2e0] sm:$0xff]  ;;  %v828_v31 = vld [vmem:[%s26203_s25 + $0x2e8] sm:$0xff] }
  0xf0   : > { %895 = vst.msk [vmem:[#allocation2 + $0x1d0] sm:$0xff] %vm399_vm0, %v766_v32  ;;  %896 = vst.msk [vmem:[#allocation2 + $0x1e8] sm:$0xff] %vm399_vm0, %v767_v33  ;;  %v829_v32 = vld [vmem:[%s26203_s25 + $0x2f0] sm:$0xff]  ;;  %v830_v33 = vld [vmem:[%s26203_s25 + $0x2f8] sm:$0xff] }
  0xf1   : > { %897 = vst.msk [vmem:[#allocation2 + $0x1f0] sm:$0xff] %vm399_vm0, %v768_v34  ;;  %898 = vst.msk [vmem:[#allocation2 + $0x1f8] sm:$0xff] %vm399_vm0, %v769_v35  ;;  %v831_v34 = vld [vmem:[%s26203_s25 + $0x300] sm:$0xff]  ;;  %v832_v35 = vld [vmem:[%s26203_s25 + $0x308] sm:$0xff] }
  0xf2   : > { %899 = vst.msk [vmem:[#allocation2 + $0x200] sm:$0xff] %vm399_vm0, %v770_v36  ;;  %900 = vst.msk [vmem:[#allocation2 + $0x218] sm:$0xff] %vm399_vm0, %v771_v37  ;;  %v833_v36 = vld [vmem:[%s26203_s25 + $0x310] sm:$0xff]  ;;  %v834_v37 = vld [vmem:[%s26203_s25 + $0x318] sm:$0xff] }
  0xf3   : > { %901 = vst.msk [vmem:[#allocation2 + $0x220] sm:$0xff] %vm399_vm0, %v772_v38  ;;  %902 = vst.msk [vmem:[#allocation2 + $0x228] sm:$0xff] %vm399_vm0, %v773_v39  ;;  %v835_v38 = vld [vmem:[%s26203_s25 + $0x320] sm:$0xff]  ;;  %v836_v39 = vld [vmem:[%s26203_s25 + $0x328] sm:$0xff] }
  0xf4   : > { %903 = vst.msk [vmem:[#allocation2 + $0x230] sm:$0xff] %vm399_vm0, %v774_v40  ;;  %904 = vst.msk [vmem:[#allocation2 + $0x248] sm:$0xff] %vm399_vm0, %v775_v41  ;;  %v837_v40 = vld [vmem:[%s26203_s25 + $0x330] sm:$0xff]  ;;  %v838_v41 = vld [vmem:[%s26203_s25 + $0x338] sm:$0xff] }
  0xf5   : > { %905 = vst.msk [vmem:[#allocation2 + $0x250] sm:$0xff] %vm399_vm0, %v776_v42  ;;  %906 = vst.msk [vmem:[#allocation2 + $0x258] sm:$0xff] %vm399_vm0, %v777_v43  ;;  %v839_v42 = vld [vmem:[%s26203_s25 + $0x340] sm:$0xff]  ;;  %v840_v43 = vld [vmem:[%s26203_s25 + $0x348] sm:$0xff] }
  0xf6   : > { %907 = vst.msk [vmem:[#allocation2 + $0x260] sm:$0xff] %vm399_vm0, %v778_v44  ;;  %908 = vst.msk [vmem:[#allocation2 + $0x278] sm:$0xff] %vm399_vm0, %v779_v45  ;;  %v841_v44 = vld [vmem:[%s26203_s25 + $0x350] sm:$0xff]  ;;  %v842_v45 = vld [vmem:[%s26203_s25 + $0x358] sm:$0xff] }
  0xf7   : > { %909 = vst.msk [vmem:[#allocation2 + $0x280] sm:$0xff] %vm399_vm0, %v780_v46  ;;  %910 = vst.msk [vmem:[#allocation2 + $0x288] sm:$0xff] %vm399_vm0, %v781_v47  ;;  %v843_v46 = vld [vmem:[%s26203_s25 + $0x360] sm:$0xff]  ;;  %v844_v47 = vld [vmem:[%s26203_s25 + $0x368] sm:$0xff] }
  0xf8   : > { %911 = vst.msk [vmem:[#allocation2 + $0x290] sm:$0xff] %vm399_vm0, %v782_v48  ;;  %912 = vst.msk [vmem:[#allocation2 + $0x2a8] sm:$0xff] %vm399_vm0, %v783_v49  ;;  %v845_v48 = vld [vmem:[%s26203_s25 + $0x370] sm:$0xff]  ;;  %v846_v49 = vld [vmem:[%s26203_s25 + $0x378] sm:$0xff] }
  0xf9   : > { %913 = vst.msk [vmem:[#allocation2 + $0x2b0] sm:$0xff] %vm399_vm0, %v784_v50  ;;  %914 = vst.msk [vmem:[#allocation2 + $0x2b8] sm:$0xff] %vm399_vm0, %v785_v51  ;;  %v847_v50 = vld [vmem:[%s26203_s25 + $0x380] sm:$0xff]  ;;  %v848_v51 = vld [vmem:[%s26203_s25 + $0x388] sm:$0xff] }
  0xfa   : > { %915 = vst.msk [vmem:[#allocation2 + $0x2c0] sm:$0xff] %vm399_vm0, %v786_v52  ;;  %916 = vst.msk [vmem:[#allocation2 + $0x2d8] sm:$0xff] %vm399_vm0, %v787_v53  ;;  %v849_v52 = vld [vmem:[%s26203_s25 + $0x390] sm:$0xff]  ;;  %v850_v53 = vld [vmem:[%s26203_s25 + $0x398] sm:$0xff] }
  0xfb   : > { %917 = vst.msk [vmem:[#allocation2 + $0x2e0] sm:$0xff] %vm399_vm0, %v788_v54  ;;  %918 = vst.msk [vmem:[#allocation2 + $0x2e8] sm:$0xff] %vm399_vm0, %v789_v55  ;;  %v851_v54 = vld [vmem:[%s26203_s25 + $0x3a0] sm:$0xff]  ;;  %v852_v55 = vld [vmem:[%s26203_s25 + $0x3a8] sm:$0xff] }
  0xfc   : > { %919 = vst.msk [vmem:[#allocation2 + $0x2f0] sm:$0xff] %vm399_vm0, %v790_v56  ;;  %920 = vst.msk [vmem:[#allocation2 + $0x308] sm:$0xff] %vm399_vm0, %v791_v57  ;;  %v853_v56 = vld [vmem:[%s26203_s25 + $0x3b0] sm:$0xff]  ;;  %v854_v57 = vld [vmem:[%s26203_s25 + $0x3b8] sm:$0xff] }
  0xfd   : > { %921 = vst.msk [vmem:[#allocation2 + $0x310] sm:$0xff] %vm399_vm0, %v792_v58  ;;  %922 = vst.msk [vmem:[#allocation2 + $0x318] sm:$0xff] %vm399_vm0, %v793_v59  ;;  %v855_v58 = vld [vmem:[%s26203_s25 + $0x3c0] sm:$0xff]  ;;  %v856_v59 = vld [vmem:[%s26203_s25 + $0x3c8] sm:$0xff] }
  0xfe   : > { %923 = vst.msk [vmem:[#allocation2 + $0x320] sm:$0xff] %vm399_vm0, %v794_v60  ;;  %924 = vst.msk [vmem:[#allocation2 + $0x338] sm:$0xff] %vm399_vm0, %v795_v61  ;;  %v857_v60 = vld [vmem:[%s26203_s25 + $0x3d0] sm:$0xff]  ;;  %v858_v61 = vld [vmem:[%s26203_s25 + $0x3d8] sm:$0xff] }
  0xff   : > { %925 = vst.msk [vmem:[#allocation2 + $0x340] sm:$0xff] %vm399_vm0, %v796_v62  ;;  %926 = vst.msk [vmem:[#allocation2 + $0x348] sm:$0xff] %vm399_vm0, %v797_v63  ;;  %v859_v62 = vld [vmem:[%s26203_s25 + $0x3e0] sm:$0xff]  ;;  %v860_v63 = vld [vmem:[%s26203_s25 + $0x3e8] sm:$0xff] }
 0x100   : > { %927 = vst.msk [vmem:[#allocation2 + $0x350] sm:$0xff] %vm399_vm0, %v798_v1  ;;  %928 = vst.msk [vmem:[#allocation2 + $0x368] sm:$0xff] %vm399_vm0, %v799_v2  ;;  %v861_v1 = vld [vmem:[%s26203_s25 + $0x3f0] sm:$0xff]  ;;  %v862_v2 = vld [vmem:[%s26203_s25 + $0x3f8] sm:$0xff] }
 0x101   : > { %929 = vst.msk [vmem:[#allocation2 + $0x370] sm:$0xff] %vm399_vm0, %v800_v3  ;;  %930 = vst.msk [vmem:[#allocation2 + $0x378] sm:$0xff] %vm399_vm0, %v801_v4 }
 0x102   : > { %931 = vst.msk [vmem:[#allocation2 + $0x380] sm:$0xff] %vm399_vm0, %v802_v5  ;;  %932 = vst.msk [vmem:[#allocation2 + $0x398] sm:$0xff] %vm399_vm0, %v803_v6 }
 0x103   : > { %933 = vst.msk [vmem:[#allocation2 + $0x3a0] sm:$0xff] %vm399_vm0, %v804_v7  ;;  %934 = vst.msk [vmem:[#allocation2 + $0x3a8] sm:$0xff] %vm399_vm0, %v805_v8 }
 0x104   : > { %935 = vst.msk [vmem:[#allocation2 + $0x3b0] sm:$0xff] %vm399_vm0, %v806_v9  ;;  %936 = vst.msk [vmem:[#allocation2 + $0x3c8] sm:$0xff] %vm399_vm0, %v807_v10 }
 0x105   : > { %937 = vst.msk [vmem:[#allocation2 + $0x3d0] sm:$0xff] %vm399_vm0, %v808_v11  ;;  %938 = vst.msk [vmem:[#allocation2 + $0x3d8] sm:$0xff] %vm399_vm0, %v809_v12 }
 0x106   : > { %939 = vst.msk [vmem:[#allocation2 + $0x3e0] sm:$0xff] %vm399_vm0, %v810_v13  ;;  %940 = vst.msk [vmem:[#allocation2 + $0x3f8] sm:$0xff] %vm399_vm0, %v811_v14 }
 0x107   : > { %941 = vst.msk [vmem:[#allocation2 + $0x400] sm:$0xff] %vm399_vm0, %v812_v15  ;;  %942 = vst.msk [vmem:[#allocation2 + $0x408] sm:$0xff] %vm399_vm0, %v813_v16 }
 0x108   : > { %943 = vst.msk [vmem:[#allocation2 + $0x410] sm:$0xff] %vm399_vm0, %v814_v17  ;;  %944 = vst.msk [vmem:[#allocation2 + $0x428] sm:$0xff] %vm399_vm0, %v815_v18 }
 0x109   : > { %945 = vst.msk [vmem:[#allocation2 + $0x430] sm:$0xff] %vm399_vm0, %v816_v19  ;;  %946 = vst.msk [vmem:[#allocation2 + $0x438] sm:$0xff] %vm399_vm0, %v817_v20 }
 0x10a   : > { %947 = vst.msk [vmem:[#allocation2 + $0x440] sm:$0xff] %vm399_vm0, %v818_v21  ;;  %948 = vst.msk [vmem:[#allocation2 + $0x458] sm:$0xff] %vm399_vm0, %v819_v22 }
 0x10b   : > { %949 = vst.msk [vmem:[#allocation2 + $0x460] sm:$0xff] %vm399_vm0, %v820_v23  ;;  %950 = vst.msk [vmem:[#allocation2 + $0x468] sm:$0xff] %vm399_vm0, %v821_v24 }
 0x10c   : > { %951 = vst.msk [vmem:[#allocation2 + $0x470] sm:$0xff] %vm399_vm0, %v822_v25  ;;  %952 = vst.msk [vmem:[#allocation2 + $0x488] sm:$0xff] %vm399_vm0, %v823_v26 }
 0x10d   : > { %953 = vst.msk [vmem:[#allocation2 + $0x490] sm:$0xff] %vm399_vm0, %v824_v27  ;;  %954 = vst.msk [vmem:[#allocation2 + $0x498] sm:$0xff] %vm399_vm0, %v825_v28 }
 0x10e   : > { %955 = vst.msk [vmem:[#allocation2 + $0x4a0] sm:$0xff] %vm399_vm0, %v826_v29  ;;  %956 = vst.msk [vmem:[#allocation2 + $0x4b8] sm:$0xff] %vm399_vm0, %v827_v30 }
 0x10f   : > { %957 = vst.msk [vmem:[#allocation2 + $0x4c0] sm:$0xff] %vm399_vm0, %v828_v31  ;;  %958 = vst.msk [vmem:[#allocation2 + $0x4c8] sm:$0xff] %vm399_vm0, %v829_v32 }
 0x110   : > { %959 = vst.msk [vmem:[#allocation2 + $0x4d0] sm:$0xff] %vm399_vm0, %v830_v33  ;;  %960 = vst.msk [vmem:[#allocation2 + $0x4e8] sm:$0xff] %vm399_vm0, %v831_v34 }
 0x111   : > { %961 = vst.msk [vmem:[#allocation2 + $0x4f0] sm:$0xff] %vm399_vm0, %v832_v35  ;;  %962 = vst.msk [vmem:[#allocation2 + $0x4f8] sm:$0xff] %vm399_vm0, %v833_v36 }
 0x112   : > { %963 = vst.msk [vmem:[#allocation2 + $0x500] sm:$0xff] %vm399_vm0, %v834_v37  ;;  %964 = vst.msk [vmem:[#allocation2 + $0x518] sm:$0xff] %vm399_vm0, %v835_v38 }
 0x113   : > { %965 = vst.msk [vmem:[#allocation2 + $0x520] sm:$0xff] %vm399_vm0, %v836_v39  ;;  %966 = vst.msk [vmem:[#allocation2 + $0x528] sm:$0xff] %vm399_vm0, %v837_v40 }
 0x114   : > { %967 = vst.msk [vmem:[#allocation2 + $0x530] sm:$0xff] %vm399_vm0, %v838_v41  ;;  %968 = vst.msk [vmem:[#allocation2 + $0x548] sm:$0xff] %vm399_vm0, %v839_v42 }
 0x115   : > { %969 = vst.msk [vmem:[#allocation2 + $0x550] sm:$0xff] %vm399_vm0, %v840_v43  ;;  %970 = vst.msk [vmem:[#allocation2 + $0x558] sm:$0xff] %vm399_vm0, %v841_v44 }
 0x116   : > { %971 = vst.msk [vmem:[#allocation2 + $0x560] sm:$0xff] %vm399_vm0, %v842_v45  ;;  %972 = vst.msk [vmem:[#allocation2 + $0x578] sm:$0xff] %vm399_vm0, %v843_v46 }
 0x117   : > { %973 = vst.msk [vmem:[#allocation2 + $0x580] sm:$0xff] %vm399_vm0, %v844_v47  ;;  %974 = vst.msk [vmem:[#allocation2 + $0x588] sm:$0xff] %vm399_vm0, %v845_v48 }
 0x118   : > { %975 = vst.msk [vmem:[#allocation2 + $0x590] sm:$0xff] %vm399_vm0, %v846_v49  ;;  %976 = vst.msk [vmem:[#allocation2 + $0x5a8] sm:$0xff] %vm399_vm0, %v847_v50 }
 0x119   : > { %977 = vst.msk [vmem:[#allocation2 + $0x5b0] sm:$0xff] %vm399_vm0, %v848_v51  ;;  %978 = vst.msk [vmem:[#allocation2 + $0x5b8] sm:$0xff] %vm399_vm0, %v849_v52 }
 0x11a   : > { %979 = vst.msk [vmem:[#allocation2 + $0x5c0] sm:$0xff] %vm399_vm0, %v850_v53  ;;  %980 = vst.msk [vmem:[#allocation2 + $0x5d8] sm:$0xff] %vm399_vm0, %v851_v54 }
 0x11b   : > { %981 = vst.msk [vmem:[#allocation2 + $0x5e0] sm:$0xff] %vm399_vm0, %v852_v55  ;;  %982 = vst.msk [vmem:[#allocation2 + $0x5e8] sm:$0xff] %vm399_vm0, %v853_v56 }
 0x11c   : > { %983 = vst.msk [vmem:[#allocation2 + $0x5f0] sm:$0xff] %vm399_vm0, %v854_v57  ;;  %984 = vst.msk [vmem:[#allocation2 + $0x608] sm:$0xff] %vm399_vm0, %v855_v58 }
 0x11d   : > { %985 = vst.msk [vmem:[#allocation2 + $0x610] sm:$0xff] %vm399_vm0, %v856_v59  ;;  %986 = vst.msk [vmem:[#allocation2 + $0x618] sm:$0xff] %vm399_vm0, %v857_v60 }
 0x11e   : > { %987 = vst.msk [vmem:[#allocation2 + $0x620] sm:$0xff] %vm399_vm0, %v858_v61  ;;  %988 = vst.msk [vmem:[#allocation2 + $0x638] sm:$0xff] %vm399_vm0, %v859_v62 }
 0x11f   : > { %989 = vst.msk [vmem:[#allocation2 + $0x640] sm:$0xff] %vm399_vm0, %v860_v63  ;;  %990 = vst.msk [vmem:[#allocation2 + $0x648] sm:$0xff] %vm399_vm0, %v861_v1 }
 0x120   : > { %991 = vst.msk [vmem:[#allocation2 + $0x650] sm:$0xff] %vm399_vm0, %v862_v2 }
 0x121 LB: >> { %s30503_s1 = sld [smem:[#allocation31_spill]]  ;;  %vm1084_vm4 = vcmask 1042432   ;;  %s18140_s15 = smul.u32 192, %s25375_s14  ;;  %s25375_s14 = sphi %s26465_s14, %s997_s14  }
 0x122   : >> { %s20100_s29 = sshll.u32 %s25375_s14, 6  ;;  %s997_s14 = sadd.s32 1, %s25375_s14  }
 0x123   : >> { %s26493_s22 = scalar_lea.vmem [#allocation2], %s18140_s15  ;;  %s27794_s12 = scalar_lea.vmem [#allocation3], %s20100_s29 }
 0x124   : >> { %p994_p6 = scmp.ge.s32.totalorder %s997_s14, 8  }
 0x125   : > { %s27811_s13 = smov (%p994_p6), 0  }
 0x127   : >> { %v18141_v3 = vld [vmem:[%s30503_s1 + $0x4] sm:$0x7]  ;;  %v26476_v4 = vld [vmem:[%s30503_s1 + $0x8] sm:$0x7]  ;;  %v1017_v5 = vld [vmem:[%s30503_s1] sm:$0x7] }
 0x128   : >> { %21484 = vmatprep.subr.msk.mxu1 %vm1084_vm4, %v18141_v3  ;;  %21536 = vmatprep.subr.msk.mxu0 %vm1084_vm4, %v26476_v4  ;;  %v18194_v6 = vld [vmem:[%s30503_s1 + $0xc] sm:$0x7]  ;;  %v1019_v9 = vld [vmem:[%s26493_s22 + $0xf] sm:$0xff]  ;;  %v1020_v11 = vld [vmem:[%s26493_s22 + $0x17] sm:$0xff] }
 0x129   : >> { %21485 = vmatpush3.msk.msra.mxu1 %vm1084_vm4, %v18141_v3  ;;  %21537 = vmatpush3.msk.msra.mxu0 %vm1084_vm4, %v26476_v4  ;;  %v1018_v7 = vld [vmem:[%s26493_s22 + $0x7] sm:$0xff]  ;;  %v1430_v10 = vld [vmem:[%s26493_s22 + $0x10] sm:$0xff]  ;;  %v1431_v12 = vld [vmem:[%s26493_s22 + $0x18] sm:$0xff] }
 0x12a   : >> { %21510 = vmatprep.subr.msk.mxu1 %vm1084_vm4, %v1017_v5  ;;  %21562 = vmatprep.subr.msk.mxu0 %vm1084_vm4, %v18194_v6  ;;  %v1429_v8 = vld [vmem:[%s26493_s22 + $0x8] sm:$0xff]  ;;  %v18212_v13 = vld [vmem:[%s30503_s1 + $0x10] sm:$0x7]  ;;  %v1021_v14 = vld [vmem:[%s26493_s22 + $0x1f] sm:$0xff] }
 0x12b   : >> { %21486 = vmatprep.mubr.msk.f32.mxu1 %vm399_vm0, %v1018_v7  ;;  %21538 = vmatprep.mubr.msk.f32.mxu0 %vm399_vm0, %v1429_v8  ;;  %v1432_v15 = vld [vmem:[%s26493_s22 + $0x20] sm:$0xff]  ;;  %v26514_v16 = vld [vmem:[%s26493_s22 + $0x37] sm:$0xff]  ;;  %v26539_v21 = vld [vmem:[%s26493_s22 + $0x48] sm:$0xff] }
 0x12c   : >> { %21487 = vmatmul.mubr.msk.f32.vlgmr.msra.gmra.mrb[0].mxu1 %vm399_vm0, %v1019_v9  ;;  %21539 = vmatmul.mubr.msk.f32.vlgmr.msra.gmra.mrb[0].mxu0 %vm399_vm0, %v1430_v10  ;;  %v26517_v17 = vld [vmem:[%s26493_s22 + $0x38] sm:$0xff]  ;;  %v26533_v19 = vld [vmem:[%s26493_s22 + $0x40] sm:$0xff]  ;;  %v26550_v22 = vld [vmem:[%s26493_s22 + $0x4f] sm:$0xff] }
 0x12d   : >> { %21511 = vmatpush3.msk.msra.mxu1 %vm1084_vm4, %v1017_v5  ;;  %21489 = vmatprep.mubr.msk.f32.mxu1 %vm399_vm0, %v1020_v11  ;;  %v26530_v18 = vld [vmem:[%s26493_s22 + $0x3f] sm:$0xff]  ;;  %v26536_v20 = vld [vmem:[%s26493_s22 + $0x47] sm:$0xff]  ;;  %v26553_v23 = vld [vmem:[%s26493_s22 + $0x50] sm:$0xff] }
 0x12e   : >> { %21541 = vmatprep.mubr.msk.f32.mxu0 %vm399_vm0, %v1431_v12  ;;  %21563 = vmatpush3.msk.msra.mxu0 %vm1084_vm4, %v18194_v6  ;;  %v26556_v24 = vld [vmem:[%s26493_s22 + $0x67] sm:$0xff]  ;;  %v26567_v26 = vld [vmem:[%s26493_s22 + $0x6f] sm:$0xff]  ;;  %v26571_v28 = vld [vmem:[%s26493_s22 + $0x77] sm:$0xff] }
 0x12f   : >> { %21588 = vmatprep.subr.msk.mxu0 %vm1084_vm4, %v18212_v13  ;;  %24361 = vmatprep.subr.msk.mxu1 %vm1084_vm4, %v26476_v4  ;;  %v1659_v25 = vld [vmem:[%s26493_s22 + $0x9] sm:$0xff]  ;;  %v1660_v27 = vld [vmem:[%s26493_s22 + $0x11] sm:$0xff]  ;;  %v1661_v29 = vld [vmem:[%s26493_s22 + $0x19] sm:$0xff] }
 0x130   : >> { %21490 = vmatmul.mubr.msk.f32.gmra.mrb[2].mxu1 %vm399_vm0, %v1021_v14  ;;  %21542 = vmatmul.mubr.msk.f32.gmra.mrb[2].mxu0 %vm399_vm0, %v1432_v15  ;;  %v26580_v30 = vld [vmem:[%s30503_s1 + $0x2c] sm:$0x7]  ;;  %v26586_v31 = vld [vmem:[%s26493_s22 + $0x7f] sm:$0xff]  ;;  %v26590_v33 = vld [vmem:[%s26493_s22 + $0x97] sm:$0xff] }
 0x131   : >> { %21492 = vmatprep.mubr.msk.f32.mxu1 %vm399_vm0, %v26514_v16  ;;  %21544 = vmatprep.mubr.msk.f32.mxu0 %vm399_vm0, %v26517_v17  ;;  %v1662_v32 = vld [vmem:[%s26493_s22 + $0x21] sm:$0xff]  ;;  %v26593_v34 = vld [vmem:[%s26493_s22 + $0x39] sm:$0xff]  ;;  %v26615_v38 = vld [vmem:[%s26493_s22 + $0x49] sm:$0xff] }
 0x132   : >> { %v26606_v35 = vld [vmem:[%s26493_s22 + $0x9f] sm:$0xff]  ;;  %v26612_v37 = vld [vmem:[%s26493_s22 + $0xa7] sm:$0xff]  ;;  %v26626_v39 = vld [vmem:[%s26493_s22 + $0xaf] sm:$0xff] }
 0x133   : >> { %v26609_v36 = vld [vmem:[%s26493_s22 + $0x41] sm:$0xff]  ;;  %v26629_v40 = vld [vmem:[%s26493_s22 + $0x51] sm:$0xff]  ;;  %v26633_v42 = vld [vmem:[%s26493_s22 + $0x69] sm:$0xff] }
 0x134   : >> { %21493 = vmatmul.mubr.msk.f32.gmra.mrb[4].mxu1 %vm399_vm0, %v26530_v18  ;;  %21545 = vmatmul.mubr.msk.f32.gmra.mrb[4].mxu0 %vm399_vm0, %v26533_v19  ;;  %v1001_v41 = vld [vmem:[%s26493_s22 + $0x6] sm:$0xff]  ;;  %v1002_v43 = vld [vmem:[%s26493_s22 + $0xe] sm:$0xff]  ;;  %v1003_v45 = vld [vmem:[%s26493_s22 + $0x16] sm:$0xff] }
 0x135   : >> { %21495 = vmatprep.mubr.msk.f32.mxu1 %vm399_vm0, %v26536_v20  ;;  %21547 = vmatprep.mubr.msk.f32.mxu0 %vm399_vm0, %v26539_v21  ;;  %v26644_v44 = vld [vmem:[%s26493_s22 + $0x71] sm:$0xff]  ;;  %v26648_v46 = vld [vmem:[%s26493_s22 + $0x79] sm:$0xff]  ;;  %v26663_v49 = vld [vmem:[%s26493_s22 + $0x81] sm:$0xff] }
 0x136   : >> { %v26653_v47 = vld [vmem:[%s30503_s1 + $0x18] sm:$0x7]  ;;  %v1004_v48 = vld [vmem:[%s26493_s22 + $0x1e] sm:$0xff]  ;;  %v26689_v54 = vld [vmem:[%s26493_s22 + $0x46] sm:$0xff] }
 0x137   : >> { %v26668_v50 = vld [vmem:[%s26493_s22 + $0x36] sm:$0xff]  ;;  %v26683_v52 = vld [vmem:[%s26493_s22 + $0x3e] sm:$0xff]  ;;  %v26692_v55 = vld [vmem:[%s26493_s22 + $0xa9] sm:$0xff] }
 0x138   : >> { %21496 = vmatmul.mubr.msk.f32.gmra.mrb[6].mxu1 %vm399_vm0, %v26550_v22  ;;  %21548 = vmatmul.mubr.msk.f32.gmra.mrb[6].mxu0 %vm399_vm0, %v26553_v23  ;;  %v26671_v51 = vld [vmem:[%s26493_s22 + $0x99] sm:$0xff]  ;;  %v26686_v53 = vld [vmem:[%s26493_s22 + $0xa1] sm:$0xff]  ;;  %v26703_v56 = vld [vmem:[%s26493_s22 + $0x4e] sm:$0xff] }
 0x139   : >> { %21498 = vmatprep.mubr.msk.f32.mxu1 %vm399_vm0, %v26556_v24  ;;  %21564 = vmatprep.mubr.msk.f32.mxu0 %vm399_vm0, %v1659_v25  ;;  %v26706_v57 = vld [vmem:[%s26493_s22 + $0xb1] sm:$0xff]  ;;  %v26709_v58 = vld [vmem:[%s26493_s22 + $0x66] sm:$0xff]  ;;  %v1891_v63 = vld [vmem:[%s26493_s22 + $0x1a] sm:$0xff] }
 0x13a   : >> { %v1889_v59 = vld [vmem:[%s26493_s22 + $0xa] sm:$0xff]  ;;  %v1890_v61 = vld [vmem:[%s26493_s22 + $0x12] sm:$0xff]  ;;  %v26739_v2 = vld [vmem:[%s26493_s22 + $0x7e] sm:$0xff] }
 0x13b   : >> { %v26720_v60 = vld [vmem:[%s26493_s22 + $0x6e] sm:$0xff]  ;;  %v26724_v62 = vld [vmem:[%s26493_s22 + $0x76] sm:$0xff]  ;;  %v26733_v1 = vld [vmem:[%s30503_s1 + $0x28] sm:$0x7] }
 0x13c   : >> { %21499 = vmatmul.mubr.msk.f32.gmra.mrb[8].mxu1 %vm399_vm0, %v26567_v26  ;;  %21565 = vmatmul.mubr.msk.f32.vlgmr.msra.gmra.mrb[0].mxu0 %vm399_vm0, %v1660_v27  ;;  %v1892_v3 = vld [vmem:[%s26493_s22 + $0x22] sm:$0xff]  ;;  %v26746_v5 = vld [vmem:[%s26493_s22 + $0x3a] sm:$0xff]  ;;  %v26769_v9 = vld [vmem:[%s26493_s22 + $0x4a] sm:$0xff] }
 0x13d   : >> { %21501 = vmatprep.mubr.msk.f32.mxu1 %vm399_vm0, %v26571_v28  ;;  %21567 = vmatprep.mubr.msk.f32.mxu0 %vm399_vm0, %v1661_v29  ;;  %v26760_v6 = vld [vmem:[%s26493_s22 + $0x9e] sm:$0xff]  ;;  %v26766_v8 = vld [vmem:[%s26493_s22 + $0xa6] sm:$0xff]  ;;  %v26780_v10 = vld [vmem:[%s26493_s22 + $0xae] sm:$0xff] }
 0x13e   : >> { %21589 = vmatpush3.msk.msra.mxu0 %vm1084_vm4, %v18212_v13  ;;  %v26763_v7 = vld [vmem:[%s26493_s22 + $0x42] sm:$0xff]  ;;  %v26783_v11 = vld [vmem:[%s26493_s22 + $0x52] sm:$0xff]  ;;  %v26789_v13 = vld [vmem:[%s26493_s22 + $0x6a] sm:$0xff] }
 0x13f   : >> { %21744 = vmatprep.subr.msk.mxu0 %vm1084_vm4, %v26580_v30  ;;  %v26786_v12 = vld [vmem:[%s26493_s22 + $0x68] sm:$0xff]  ;;  %v26800_v14 = vld [vmem:[%s26493_s22 + $0x70] sm:$0xff]  ;;  %v26806_v25 = vld [vmem:[%s26493_s22 + $0x78] sm:$0xff] }
 0x140   : >> { %21502 = vmatmul.mubr.msk.f32.gmra.mrb[10].mxu1 %vm399_vm0, %v26586_v31  ;;  %21568 = vmatmul.mubr.msk.f32.gmra.mrb[2].mxu0 %vm399_vm0, %v1662_v32  ;;  %v26803_v15 = vld [vmem:[%s26493_s22 + $0x72] sm:$0xff]  ;;  %v26809_v27 = vld [vmem:[%s26493_s22 + $0x7a] sm:$0xff]  ;;  %v26826_v32 = vld [vmem:[%s26493_s22 + $0x82] sm:$0xff] }
 0x141   : >> { %21504 = vmatprep.mubr.msk.f32.mxu1 %vm399_vm0, %v26590_v33  ;;  %21570 = vmatprep.mubr.msk.f32.mxu0 %vm399_vm0, %v26593_v34  ;;  %v18248_v29 = vld [vmem:[%s30503_s1 + $0x14] sm:$0x7]  ;;  %v18488_v0 = vld [vmem:[%s30503_s1 + $0x30] sm:$0x7] }
 0x144   : >> { %21505 = vmatmul.mubr.msk.f32.gmra.mrb[12].mxu1 %vm399_vm0, %v26606_v35  ;;  %21571 = vmatmul.mubr.msk.f32.gmra.mrb[4].mxu0 %vm399_vm0, %v26609_v36 }
 0x145   : >> { %21507 = vmatprep.mubr.msk.f32.mxu1 %vm399_vm0, %v26612_v37  ;;  %21573 = vmatprep.mubr.msk.f32.mxu0 %vm399_vm0, %v26615_v38 }
 0x148   : >> { %21508 = vmatmul.mubr.msk.f32.gmra.mrb[14].mxu1 %vm399_vm0, %v26626_v39  ;;  %21574 = vmatmul.mubr.msk.f32.gmra.mrb[6].mxu0 %vm399_vm0, %v26629_v40 }
 0x149   : >> { %21512 = vmatprep.mubr.msk.f32.mxu1 %vm399_vm0, %v1001_v41  ;;  %21576 = vmatprep.mubr.msk.f32.mxu0 %vm399_vm0, %v26633_v42  ;;  %v26831_v41 = vld [vmem:[%s26493_s22 + $0x98] sm:$0xff] }
 0x14c   : >> { %21513 = vmatmul.mubr.msk.f32.vlgmr.msra.gmra.mrb[0].mxu1 %vm399_vm0, %v1002_v43  ;;  %21577 = vmatmul.mubr.msk.f32.gmra.mrb[8].mxu0 %vm399_vm0, %v26644_v44  ;;  %v26834_v43 = vld [vmem:[%s26493_s22 + $0x9a] sm:$0xff] }
 0x14d   : >> { %24362 = vmatpush3.msk.msra.mxu1 %vm1084_vm4, %v26476_v4  ;;  %21515 = vmatprep.mubr.msk.f32.mxu1 %vm399_vm0, %v1003_v45  ;;  %v26743_v4 = vld [vmem:[%s26493_s22 + $0x96] sm:$0xff]  ;;  %v26846_v45 = vld [vmem:[%s26493_s22 + $0xa0] sm:$0xff] }
 0x14e   : >> { %21579 = vmatprep.mubr.msk.f32.mxu0 %vm399_vm0, %v26648_v46  ;;  %21614 = vmatprep.subr.msk.mxu1 %vm1084_vm4, %v26653_v47 }
 0x150   : >> { %21516 = vmatmul.mubr.msk.f32.gmra.mrb[2].mxu1 %vm399_vm0, %v1004_v48  ;;  %21580 = vmatmul.mubr.msk.f32.gmra.mrb[10].mxu0 %vm399_vm0, %v26663_v49  ;;  %v26852_v48 = vld [vmem:[%s26493_s22 + $0xa8] sm:$0xff] }
 0x151   : >> { %21518 = vmatprep.mubr.msk.f32.mxu1 %vm399_vm0, %v26668_v50  ;;  %21582 = vmatprep.mubr.msk.f32.mxu0 %vm399_vm0, %v26671_v51 }
 0x154   : >> { %21519 = vmatmul.mubr.msk.f32.gmra.mrb[4].mxu1 %vm399_vm0, %v26683_v52  ;;  %21583 = vmatmul.mubr.msk.f32.gmra.mrb[12].mxu0 %vm399_vm0, %v26686_v53 }
 0x155   : >> { %21521 = vmatprep.mubr.msk.f32.mxu1 %vm399_vm0, %v26689_v54  ;;  %21585 = vmatprep.mubr.msk.f32.mxu0 %vm399_vm0, %v26692_v55 }
 0x158   : >> { %21522 = vmatmul.mubr.msk.f32.gmra.mrb[6].mxu1 %vm399_vm0, %v26703_v56  ;;  %21586 = vmatmul.mubr.msk.f32.gmra.mrb[14].mxu0 %vm399_vm0, %v26706_v57 }
 0x159   : >> { %21524 = vmatprep.mubr.msk.f32.mxu1 %vm399_vm0, %v26709_v58  ;;  %21590 = vmatprep.mubr.msk.f32.mxu0 %vm399_vm0, %v1889_v59  ;;  %v26855_v59 = vld [vmem:[%s26493_s22 + $0xaa] sm:$0xff] }
 0x15c   : >> { %21525 = vmatmul.mubr.msk.f32.gmra.mrb[8].mxu1 %vm399_vm0, %v26720_v60  ;;  %21591 = vmatmul.mubr.msk.f32.vlgmr.msra.gmra.mrb[0].mxu0 %vm399_vm0, %v1890_v61  ;;  %v26866_v61 = vld [vmem:[%s26493_s22 + $0xb0] sm:$0xff] }
 0x15d   : >> { %21527 = vmatprep.mubr.msk.f32.mxu1 %vm399_vm0, %v26724_v62  ;;  %21593 = vmatprep.mubr.msk.f32.mxu0 %vm399_vm0, %v1891_v63  ;;  %v26869_v63 = vld [vmem:[%s26493_s22 + $0xb2] sm:$0xff] }
 0x15e   : >> { %21745 = vmatpush3.msk.msra.mxu0 %vm1084_vm4, %v26580_v30  ;;  %v26823_v30 = vld [vmem:[%s26493_s22 + $0x80] sm:$0xff] }
 0x15f   : >> { %21770 = vmatprep.subr.msk.mxu0 %vm1084_vm4, %v26733_v1 }
 0x160   : >> { %21528 = vmatmul.mubr.msk.f32.gmra.mrb[10].mxu1 %vm399_vm0, %v26739_v2  ;;  %21594 = vmatmul.mubr.msk.f32.gmra.mrb[2].mxu0 %vm399_vm0, %v1892_v3  ;;  %v18316_v3 = vld [vmem:[%s30503_s1 + $0x1c] sm:$0x7] }
 0x161   : >> { %21530 = vmatprep.mubr.msk.f32.mxu1 %vm399_vm0, %v26743_v4  ;;  %21596 = vmatprep.mubr.msk.f32.mxu0 %vm399_vm0, %v26746_v5 }
 0x164   : >> { %21531 = vmatmul.mubr.msk.f32.gmra.mrb[12].mxu1 %vm399_vm0, %v26760_v6  ;;  %21597 = vmatmul.mubr.msk.f32.gmra.mrb[4].mxu0 %vm399_vm0, %v26763_v7 }
 0x165   : >> { %21533 = vmatprep.mubr.msk.f32.mxu1 %vm399_vm0, %v26766_v8  ;;  %21599 = vmatprep.mubr.msk.f32.mxu0 %vm399_vm0, %v26769_v9 }
 0x168   : >> { %21534 = vmatmul.mubr.msk.f32.gmra.mrb[14].mxu1 %vm399_vm0, %v26780_v10  ;;  %21600 = vmatmul.mubr.msk.f32.gmra.mrb[6].mxu0 %vm399_vm0, %v26783_v11 }
 0x169   : >> { %21550 = vmatprep.mubr.msk.f32.mxu1 %vm399_vm0, %v26786_v12  ;;  %21602 = vmatprep.mubr.msk.f32.mxu0 %vm399_vm0, %v26789_v13 }
 0x16c   : >> { %21551 = vmatmul.mubr.msk.f32.vlgmr.msra.gmra.mrb[8].mxu1 %vm399_vm0, %v26800_v14  ;;  %21603 = vmatmul.mubr.msk.f32.gmra.mrb[8].mxu0 %vm399_vm0, %v26803_v15 }
 0x16d   : >> { %21615 = vmatpush3.msk.msra.mxu1 %vm1084_vm4, %v26653_v47  ;;  %21553 = vmatprep.mubr.msk.f32.mxu1 %vm399_vm0, %v26806_v25  ;;  %v26849_v47 = vld [vmem:[%s26493_s22 + $0xa2] sm:$0xff] }
 0x16e   : >> { %21605 = vmatprep.mubr.msk.f32.mxu0 %vm399_vm0, %v26809_v27  ;;  %21640 = vmatprep.subr.msk.mxu1 %vm1084_vm4, %v18248_v29 }
 0x170   : >> { %21554 = vmatmul.mubr.msk.f32.gmra.mrb[10].mxu1 %vm399_vm0, %v26823_v30  ;;  %21606 = vmatmul.mubr.msk.f32.gmra.mrb[10].mxu0 %vm399_vm0, %v26826_v32 }
 0x171   : >> { %21556 = vmatprep.mubr.msk.f32.mxu1 %vm399_vm0, %v26831_v41  ;;  %21608 = vmatprep.mubr.msk.f32.mxu0 %vm399_vm0, %v26834_v43 }
 0x174   : >> { %21557 = vmatmul.mubr.msk.f32.gmra.mrb[12].mxu1 %vm399_vm0, %v26846_v45  ;;  %21609 = vmatmul.mubr.msk.f32.gmra.mrb[12].mxu0 %vm399_vm0, %v26849_v47 }
 0x175   : >> { %21559 = vmatprep.mubr.msk.f32.mxu1 %vm399_vm0, %v26852_v48  ;;  %21611 = vmatprep.mubr.msk.f32.mxu0 %vm399_vm0, %v26855_v59 }
 0x178   : >> { %21560 = vmatmul.mubr.msk.f32.gmra.mrb[14].mxu1 %vm399_vm0, %v26866_v61  ;;  %21612 = vmatmul.mubr.msk.f32.gmra.mrb[14].mxu0 %vm399_vm0, %v26869_v63 }
 0x179   : >> { %21616 = vmatprep.mubr.msk.f32.mxu1 %vm399_vm0, %v26514_v16  ;;  %21746 = vmatprep.mubr.msk.f32.mxu0 %vm399_vm0, %v26556_v24  ;;  %v26915_v16 = vld [vmem:[%s26493_s22 + $0xc7] sm:$0xff] }
 0x17c   : >> { %21617 = vmatmul.mubr.msk.f32.vlgmr.msra.gmra.mrb[16].mxu1 %vm399_vm0, %v26530_v18  ;;  %21747 = vmatmul.mubr.msk.f32.vlgmr.msra.gmra.mrb[16].mxu0 %vm399_vm0, %v26567_v26  ;;  %v26926_v18 = vld [vmem:[%s26493_s22 + $0xcf] sm:$0xff] }
 0x17d   : >> { %21641 = vmatpush3.msk.msra.mxu1 %vm1084_vm4, %v18248_v29  ;;  %21619 = vmatprep.mubr.msk.f32.mxu1 %vm399_vm0, %v26536_v20  ;;  %v26929_v20 = vld [vmem:[%s26493_s22 + $0xd7] sm:$0xff]  ;;  %v18522_v29 = vld [vmem:[%s30503_s1 + $0x34] sm:$0x7] }
 0x17e   : >> { %21749 = vmatprep.mubr.msk.f32.mxu0 %vm399_vm0, %v26571_v28  ;;  %21771 = vmatpush3.msk.msra.mxu0 %vm1084_vm4, %v26733_v1  ;;  %v18350_v1 = vld [vmem:[%s30503_s1 + $0x20] sm:$0x7] }
 0x17f   : >> { %21666 = vmatprep.subr.msk.mxu1 %vm1084_vm4, %v18316_v3  ;;  %21796 = vmatprep.subr.msk.mxu0 %vm1084_vm4, %v18488_v0 }
 0x180   : >> { %21620 = vmatmul.mubr.msk.f32.gmra.mrb[18].mxu1 %vm399_vm0, %v26550_v22  ;;  %21750 = vmatmul.mubr.msk.f32.gmra.mrb[18].mxu0 %vm399_vm0, %v26586_v31  ;;  %v26940_v22 = vld [vmem:[%s26493_s22 + $0xdf] sm:$0xff] }
 0x181   : >> { %21622 = vmatprep.mubr.msk.f32.mxu1 %vm399_vm0, %v26556_v24  ;;  %21752 = vmatprep.mubr.msk.f32.mxu0 %vm399_vm0, %v26590_v33  ;;  %v26943_v24 = vld [vmem:[%s26493_s22 + $0xf7] sm:$0xff] }
 0x184   : >> { %21623 = vmatmul.mubr.msk.f32.gmra.mrb[20].mxu1 %vm399_vm0, %v26567_v26  ;;  %21753 = vmatmul.mubr.msk.f32.gmra.mrb[20].mxu0 %vm399_vm0, %v26606_v35  ;;  %v26954_v26 = vld [vmem:[%s26493_s22 + $0xff] sm:$0xff] }
 0x185   : >> { %21625 = vmatprep.mubr.msk.f32.mxu1 %vm399_vm0, %v26571_v28  ;;  %21755 = vmatprep.mubr.msk.f32.mxu0 %vm399_vm0, %v26612_v37  ;;  %v26957_v28 = vld [vmem:[%s26493_s22 + $0x107] sm:$0xff] }
 0x188   : >> { %21626 = vmatmul.mubr.msk.f32.gmra.mrb[22].mxu1 %vm399_vm0, %v26586_v31  ;;  %21756 = vmatmul.mubr.msk.f32.gmra.mrb[22].mxu0 %vm399_vm0, %v26626_v39  ;;  %v26968_v31 = vld [vmem:[%s26493_s22 + $0x10f] sm:$0xff] }
 0x189   : >> { %21628 = vmatprep.mubr.msk.f32.mxu1 %vm399_vm0, %v26590_v33  ;;  %21758 = vmatprep.mubr.msk.f32.mxu0 %vm399_vm0, %v26915_v16 }
 0x18c   : >> { %21629 = vmatmul.mubr.msk.f32.gmra.mrb[24].mxu1 %vm399_vm0, %v26606_v35  ;;  %21759 = vmatmul.mubr.msk.f32.gmra.mrb[24].mxu0 %vm399_vm0, %v26926_v18 }
 0x18d   : >> { %21631 = vmatprep.mubr.msk.f32.mxu1 %vm399_vm0, %v26612_v37  ;;  %21761 = vmatprep.mubr.msk.f32.mxu0 %vm399_vm0, %v26929_v20 }
 0x190   : >> { %21632 = vmatmul.mubr.msk.f32.gmra.mrb[26].mxu1 %vm399_vm0, %v26626_v39  ;;  %21762 = vmatmul.mubr.msk.f32.gmra.mrb[26].mxu0 %vm399_vm0, %v26940_v22 }
 0x191   : >> { %21634 = vmatprep.mubr.msk.f32.mxu1 %vm399_vm0, %v26915_v16  ;;  %21764 = vmatprep.mubr.msk.f32.mxu0 %vm399_vm0, %v26943_v24 }
 0x194   : >> { %21635 = vmatmul.mubr.msk.f32.gmra.mrb[28].mxu1 %vm399_vm0, %v26926_v18  ;;  %21765 = vmatmul.mubr.msk.f32.gmra.mrb[28].mxu0 %vm399_vm0, %v26954_v26 }
 0x195   : >> { %21637 = vmatprep.mubr.msk.f32.mxu1 %vm399_vm0, %v26929_v20  ;;  %21767 = vmatprep.mubr.msk.f32.mxu0 %vm399_vm0, %v26957_v28 }
 0x198   : >> { %21638 = vmatmul.mubr.msk.f32.gmra.mrb[30].mxu1 %vm399_vm0, %v26940_v22  ;;  %21768 = vmatmul.mubr.msk.f32.gmra.mrb[30].mxu0 %vm399_vm0, %v26968_v31 }
 0x199   : >> { %21642 = vmatprep.mubr.msk.f32.mxu1 %vm399_vm0, %v26668_v50  ;;  %21772 = vmatprep.mubr.msk.f32.mxu0 %vm399_vm0, %v26709_v58  ;;  %v27024_v50 = vld [vmem:[%s26493_s22 + $0xce] sm:$0xff] }
 0x19c   : >> { %21643 = vmatmul.mubr.msk.f32.vlgmr.msra.gmra.mrb[16].mxu1 %vm399_vm0, %v26683_v52  ;;  %21773 = vmatmul.mubr.msk.f32.vlgmr.msra.gmra.mrb[16].mxu0 %vm399_vm0, %v26720_v60  ;;  %v27027_v52 = vld [vmem:[%s26493_s22 + $0xd6] sm:$0xff] }
 0x19d   : >> { %21667 = vmatpush3.msk.msra.mxu1 %vm1084_vm4, %v18316_v3  ;;  %21645 = vmatprep.mubr.msk.f32.mxu1 %vm399_vm0, %v26689_v54  ;;  %v27038_v54 = vld [vmem:[%s26493_s22 + $0xde] sm:$0xff] }
 0x19e   : >> { %21775 = vmatprep.mubr.msk.f32.mxu0 %vm399_vm0, %v26724_v62  ;;  %21797 = vmatpush3.msk.msra.mxu0 %vm1084_vm4, %v18488_v0  ;;  %v27013_v0 = vld [vmem:[%s26493_s22 + $0xc6] sm:$0xff] }
 0x19f   : >> { %21692 = vmatprep.subr.msk.mxu1 %vm1084_vm4, %v18350_v1  ;;  %21822 = vmatprep.subr.msk.mxu0 %vm1084_vm4, %v18522_v29 }
 0x1a0   : >> { %21646 = vmatmul.mubr.msk.f32.gmra.mrb[18].mxu1 %vm399_vm0, %v26703_v56  ;;  %21776 = vmatmul.mubr.msk.f32.gmra.mrb[18].mxu0 %vm399_vm0, %v26739_v2  ;;  %v27041_v56 = vld [vmem:[%s26493_s22 + $0xf6] sm:$0xff] }
 0x1a1   : >> { %21648 = vmatprep.mubr.msk.f32.mxu1 %vm399_vm0, %v26709_v58  ;;  %21778 = vmatprep.mubr.msk.f32.mxu0 %vm399_vm0, %v26743_v4  ;;  %v27052_v58 = vld [vmem:[%s26493_s22 + $0xfe] sm:$0xff] }
 0x1a4   : >> { %21649 = vmatmul.mubr.msk.f32.gmra.mrb[20].mxu1 %vm399_vm0, %v26720_v60  ;;  %21779 = vmatmul.mubr.msk.f32.gmra.mrb[20].mxu0 %vm399_vm0, %v26760_v6  ;;  %v27055_v60 = vld [vmem:[%s26493_s22 + $0x106] sm:$0xff] }
 0x1a5   : >> { %21651 = vmatprep.mubr.msk.f32.mxu1 %vm399_vm0, %v26724_v62  ;;  %21781 = vmatprep.mubr.msk.f32.mxu0 %vm399_vm0, %v26766_v8  ;;  %v27066_v62 = vld [vmem:[%s26493_s22 + $0x10e] sm:$0xff] }
 0x1a8   : >> { %21652 = vmatmul.mubr.msk.f32.gmra.mrb[22].mxu1 %vm399_vm0, %v26739_v2  ;;  %21782 = vmatmul.mubr.msk.f32.gmra.mrb[22].mxu0 %vm399_vm0, %v26780_v10  ;;  %v18384_v2 = vld [vmem:[%s30503_s1 + $0x24] sm:$0x7] }
 0x1a9   : >> { %21654 = vmatprep.mubr.msk.f32.mxu1 %vm399_vm0, %v26743_v4  ;;  %21784 = vmatprep.mubr.msk.f32.mxu0 %vm399_vm0, %v27013_v0 }
 0x1ac   : >> { %21655 = vmatmul.mubr.msk.f32.gmra.mrb[24].mxu1 %vm399_vm0, %v26760_v6  ;;  %21785 = vmatmul.mubr.msk.f32.gmra.mrb[24].mxu0 %vm399_vm0, %v27024_v50 }
 0x1ad   : >> { %21657 = vmatprep.mubr.msk.f32.mxu1 %vm399_vm0, %v26766_v8  ;;  %21787 = vmatprep.mubr.msk.f32.mxu0 %vm399_vm0, %v27027_v52 }
 0x1b0   : >> { %21658 = vmatmul.mubr.msk.f32.gmra.mrb[26].mxu1 %vm399_vm0, %v26780_v10  ;;  %21788 = vmatmul.mubr.msk.f32.gmra.mrb[26].mxu0 %vm399_vm0, %v27038_v54  ;;  %v18556_v10 = vld [vmem:[%s30503_s1 + $0x38] sm:$0x7] }
 0x1b1   : >> { %21660 = vmatprep.mubr.msk.f32.mxu1 %vm399_vm0, %v27013_v0  ;;  %21790 = vmatprep.mubr.msk.f32.mxu0 %vm399_vm0, %v27041_v56 }
 0x1b4   : >> { %21661 = vmatmul.mubr.msk.f32.gmra.mrb[28].mxu1 %vm399_vm0, %v27024_v50  ;;  %21791 = vmatmul.mubr.msk.f32.gmra.mrb[28].mxu0 %vm399_vm0, %v27052_v58 }
 0x1b5   : >> { %21663 = vmatprep.mubr.msk.f32.mxu1 %vm399_vm0, %v27027_v52  ;;  %21793 = vmatprep.mubr.msk.f32.mxu0 %vm399_vm0, %v27055_v60 }
 0x1b8   : >> { %21664 = vmatmul.mubr.msk.f32.gmra.mrb[30].mxu1 %vm399_vm0, %v27038_v54  ;;  %21794 = vmatmul.mubr.msk.f32.gmra.mrb[30].mxu0 %vm399_vm0, %v27066_v62 }
 0x1b9   : >> { %21668 = vmatprep.mubr.msk.f32.mxu1 %vm399_vm0, %v26517_v17  ;;  %21798 = vmatprep.mubr.msk.f32.mxu0 %vm399_vm0, %v26786_v12  ;;  %v27111_v17 = vld [vmem:[%s26493_s22 + $0xc8] sm:$0xff] }
 0x1bc   : >> { %21669 = vmatmul.mubr.msk.f32.vlgmr.msra.gmra.mrb[16].mxu1 %vm399_vm0, %v26533_v19  ;;  %21799 = vmatmul.mubr.msk.f32.vlgmr.msra.gmra.mrb[16].mxu0 %vm399_vm0, %v26800_v14  ;;  %v27122_v19 = vld [vmem:[%s26493_s22 + $0xd0] sm:$0xff] }
 0x1bd   : >> { %21693 = vmatpush3.msk.msra.mxu1 %vm1084_vm4, %v18350_v1  ;;  %21671 = vmatprep.mubr.msk.f32.mxu1 %vm399_vm0, %v26539_v21  ;;  %v27125_v21 = vld [vmem:[%s26493_s22 + $0xd8] sm:$0xff] }
 0x1be   : >> { %21801 = vmatprep.mubr.msk.f32.mxu0 %vm399_vm0, %v26806_v25  ;;  %21823 = vmatpush3.msk.msra.mxu0 %vm1084_vm4, %v18522_v29  ;;  %v18778_v1 = vld [vmem:[%s26493_s22 + $0x15f] sm:$0xff] }
 0x1bf   : >> { %21718 = vmatprep.subr.msk.mxu1 %vm1084_vm4, %v18384_v2  ;;  %21848 = vmatprep.subr.msk.mxu0 %vm1084_vm4, %v18556_v10 }
 0x1c0   : >> { %21672 = vmatmul.mubr.msk.f32.gmra.mrb[18].mxu1 %vm399_vm0, %v26553_v23  ;;  %21802 = vmatmul.mubr.msk.f32.gmra.mrb[18].mxu0 %vm399_vm0, %v26823_v30  ;;  %v27136_v23 = vld [vmem:[%s26493_s22 + $0xe0] sm:$0xff] }
 0x1c1   : >> { %21674 = vmatprep.mubr.msk.f32.mxu1 %vm399_vm0, %v26786_v12  ;;  %21804 = vmatprep.mubr.msk.f32.mxu0 %vm399_vm0, %v26831_v41  ;;  %v27139_v12 = vld [vmem:[%s26493_s22 + $0xf8] sm:$0xff] }
 0x1c4   : >> { %21675 = vmatmul.mubr.msk.f32.gmra.mrb[20].mxu1 %vm399_vm0, %v26800_v14  ;;  %21805 = vmatmul.mubr.msk.f32.gmra.mrb[20].mxu0 %vm399_vm0, %v26846_v45  ;;  %v27150_v14 = vld [vmem:[%s26493_s22 + $0x100] sm:$0xff] }
 0x1c5   : >> { %21677 = vmatprep.mubr.msk.f32.mxu1 %vm399_vm0, %v26806_v25  ;;  %21807 = vmatprep.mubr.msk.f32.mxu0 %vm399_vm0, %v26852_v48  ;;  %v27153_v25 = vld [vmem:[%s26493_s22 + $0x108] sm:$0xff] }
 0x1c8   : >> { %21678 = vmatmul.mubr.msk.f32.gmra.mrb[22].mxu1 %vm399_vm0, %v26823_v30  ;;  %21808 = vmatmul.mubr.msk.f32.gmra.mrb[22].mxu0 %vm399_vm0, %v26866_v61  ;;  %v27164_v30 = vld [vmem:[%s26493_s22 + $0x110] sm:$0xff] }
 0x1c9   : >> { %21680 = vmatprep.mubr.msk.f32.mxu1 %vm399_vm0, %v26831_v41  ;;  %21810 = vmatprep.mubr.msk.f32.mxu0 %vm399_vm0, %v27111_v17  ;;  %v18609_v41 = vld [vmem:[%s30503_s1 + $0x40] sm:$0x7] }
 0x1cc   : >> { %21681 = vmatmul.mubr.msk.f32.gmra.mrb[24].mxu1 %vm399_vm0, %v26846_v45  ;;  %21811 = vmatmul.mubr.msk.f32.gmra.mrb[24].mxu0 %vm399_vm0, %v27122_v19  ;;  %v18781_v45 = vld [vmem:[%s30503_s1 + $0x54] sm:$0x7] }
 0x1cd   : >> { %21683 = vmatprep.mubr.msk.f32.mxu1 %vm399_vm0, %v26852_v48  ;;  %21813 = vmatprep.mubr.msk.f32.mxu0 %vm399_vm0, %v27125_v21 }
 0x1d0   : >> { %21684 = vmatmul.mubr.msk.f32.gmra.mrb[26].mxu1 %vm399_vm0, %v26866_v61  ;;  %21814 = vmatmul.mubr.msk.f32.gmra.mrb[26].mxu0 %vm399_vm0, %v27136_v23  ;;  %v18775_v61 = vld [vmem:[%s26493_s22 + $0x137] sm:$0xff] }
 0x1d1   : >> { %21686 = vmatprep.mubr.msk.f32.mxu1 %vm399_vm0, %v27111_v17  ;;  %21816 = vmatprep.mubr.msk.f32.mxu0 %vm399_vm0, %v27139_v12 }
 0x1d4   : >> { %21687 = vmatmul.mubr.msk.f32.gmra.mrb[28].mxu1 %vm399_vm0, %v27122_v19  ;;  %21817 = vmatmul.mubr.msk.f32.gmra.mrb[28].mxu0 %vm399_vm0, %v27150_v14 }
 0x1d5   : >> { %21689 = vmatprep.mubr.msk.f32.mxu1 %vm399_vm0, %v27125_v21  ;;  %21819 = vmatprep.mubr.msk.f32.mxu0 %vm399_vm0, %v27153_v25 }
 0x1d8   : >> { %21690 = vmatmul.mubr.msk.f32.gmra.mrb[30].mxu1 %vm399_vm0, %v27136_v23  ;;  %21820 = vmatmul.mubr.msk.f32.gmra.mrb[30].mxu0 %vm399_vm0, %v27164_v30 }
 0x1d9   : >> { %21694 = vmatprep.mubr.msk.f32.mxu1 %vm399_vm0, %v26593_v34  ;;  %21824 = vmatprep.mubr.msk.f32.mxu0 %vm399_vm0, %v26633_v42  ;;  %v27209_v34 = vld [vmem:[%s26493_s22 + $0xc9] sm:$0xff] }
 0x1dc   : >> { %21695 = vmatmul.mubr.msk.f32.vlgmr.msra.gmra.mrb[16].mxu1 %vm399_vm0, %v26609_v36  ;;  %21825 = vmatmul.mubr.msk.f32.vlgmr.msra.gmra.mrb[16].mxu0 %vm399_vm0, %v26644_v44  ;;  %v27220_v36 = vld [vmem:[%s26493_s22 + $0xd1] sm:$0xff] }
 0x1dd   : >> { %21719 = vmatpush3.msk.msra.mxu1 %vm1084_vm4, %v18384_v2  ;;  %21697 = vmatprep.mubr.msk.f32.mxu1 %vm399_vm0, %v26615_v38  ;;  %v27223_v38 = vld [vmem:[%s26493_s22 + $0xd9] sm:$0xff] }
 0x1de   : >> { %21827 = vmatprep.mubr.msk.f32.mxu0 %vm399_vm0, %v26648_v46  ;;  %21849 = vmatpush3.msk.msra.mxu0 %vm1084_vm4, %v18556_v10 }
 0x1df   : >> { %21874 = vmatprep.subr.msk.mxu1 %vm1084_vm4, %v18609_v41  ;;  %22004 = vmatprep.subr.msk.mxu0 %vm1084_vm4, %v18781_v45 }
 0x1e0   : >> { %21698 = vmatmul.mubr.msk.f32.gmra.mrb[18].mxu1 %vm399_vm0, %v26629_v40  ;;  %21828 = vmatmul.mubr.msk.f32.gmra.mrb[18].mxu0 %vm399_vm0, %v26663_v49  ;;  %v27234_v40 = vld [vmem:[%s26493_s22 + $0xe1] sm:$0xff] }
 0x1e1   : >> { %21700 = vmatprep.mubr.msk.f32.mxu1 %vm399_vm0, %v26633_v42  ;;  %21830 = vmatprep.mubr.msk.f32.mxu0 %vm399_vm0, %v26671_v51  ;;  %v27237_v42 = vld [vmem:[%s26493_s22 + $0xf9] sm:$0xff] }
 0x1e4   : >> { %21701 = vmatmul.mubr.msk.f32.gmra.mrb[20].mxu1 %vm399_vm0, %v26644_v44  ;;  %21831 = vmatmul.mubr.msk.f32.gmra.mrb[20].mxu0 %vm399_vm0, %v26686_v53  ;;  %v27248_v44 = vld [vmem:[%s26493_s22 + $0x101] sm:$0xff] }
 0x1e5   : >> { %21703 = vmatprep.mubr.msk.f32.mxu1 %vm399_vm0, %v26648_v46  ;;  %21833 = vmatprep.mubr.msk.f32.mxu0 %vm399_vm0, %v26692_v55  ;;  %v27251_v46 = vld [vmem:[%s26493_s22 + $0x109] sm:$0xff] }
 0x1e8   : >> { %21704 = vmatmul.mubr.msk.f32.gmra.mrb[22].mxu1 %vm399_vm0, %v26663_v49  ;;  %21834 = vmatmul.mubr.msk.f32.gmra.mrb[22].mxu0 %vm399_vm0, %v26706_v57  ;;  %v27262_v49 = vld [vmem:[%s26493_s22 + $0x111] sm:$0xff] }
 0x1e9   : >> { %21706 = vmatprep.mubr.msk.f32.mxu1 %vm399_vm0, %v26671_v51  ;;  %21836 = vmatprep.mubr.msk.f32.mxu0 %vm399_vm0, %v27209_v34  ;;  %v18592_v51 = vld [vmem:[%s30503_s1 + $0x3c] sm:$0x7] }
 0x1ec   : >> { %21707 = vmatmul.mubr.msk.f32.gmra.mrb[24].mxu1 %vm399_vm0, %v26686_v53  ;;  %21837 = vmatmul.mubr.msk.f32.gmra.mrb[24].mxu0 %vm399_vm0, %v27220_v36  ;;  %v18764_v53 = vld [vmem:[%s30503_s1 + $0x50] sm:$0x7] }
 0x1ed   : >> { %21709 = vmatprep.mubr.msk.f32.mxu1 %vm399_vm0, %v26692_v55  ;;  %21839 = vmatprep.mubr.msk.f32.mxu0 %vm399_vm0, %v27223_v38  ;;  %v27307_v55 = vld [vmem:[%s26493_s22 + $0xca] sm:$0xff] }
 0x1f0   : >> { %21710 = vmatmul.mubr.msk.f32.gmra.mrb[26].mxu1 %vm399_vm0, %v26706_v57  ;;  %21840 = vmatmul.mubr.msk.f32.gmra.mrb[26].mxu0 %vm399_vm0, %v27234_v40  ;;  %v27318_v57 = vld [vmem:[%s26493_s22 + $0xd2] sm:$0xff] }
 0x1f1   : >> { %21712 = vmatprep.mubr.msk.f32.mxu1 %vm399_vm0, %v27209_v34  ;;  %21842 = vmatprep.mubr.msk.f32.mxu0 %vm399_vm0, %v27237_v42 }
 0x1f4   : >> { %21713 = vmatmul.mubr.msk.f32.gmra.mrb[28].mxu1 %vm399_vm0, %v27220_v36  ;;  %21843 = vmatmul.mubr.msk.f32.gmra.mrb[28].mxu0 %vm399_vm0, %v27248_v44 }
 0x1f5   : >> { %21715 = vmatprep.mubr.msk.f32.mxu1 %vm399_vm0, %v27223_v38  ;;  %21845 = vmatprep.mubr.msk.f32.mxu0 %vm399_vm0, %v27251_v46 }
 0x1f8   : >> { %21716 = vmatmul.mubr.msk.f32.gmra.mrb[30].mxu1 %vm399_vm0, %v27234_v40  ;;  %21846 = vmatmul.mubr.msk.f32.gmra.mrb[30].mxu0 %vm399_vm0, %v27262_v49 }
 0x1f9   : >> { %21720 = vmatprep.mubr.msk.f32.mxu1 %vm399_vm0, %v26746_v5  ;;  %21850 = vmatprep.mubr.msk.f32.mxu0 %vm399_vm0, %v26789_v13  ;;  %v27321_v5 = vld [vmem:[%s26493_s22 + $0xda] sm:$0xff] }
 0x1fc   : >> { %21721 = vmatmul.mubr.msk.f32.vlgmr.msra.gmra.mrb[16].mxu1 %vm399_vm0, %v26763_v7  ;;  %21851 = vmatmul.mubr.msk.f32.vlgmr.msra.gmra.mrb[16].mxu0 %vm399_vm0, %v26803_v15  ;;  %v27332_v7 = vld [vmem:[%s26493_s22 + $0xe2] sm:$0xff] }
 0x1fd   : >> { %21875 = vmatpush3.msk.msra.mxu1 %vm1084_vm4, %v18609_v41  ;;  %21723 = vmatprep.mubr.msk.f32.mxu1 %vm399_vm0, %v26769_v9  ;;  %v27335_v9 = vld [vmem:[%s26493_s22 + $0xfa] sm:$0xff]  ;;  %v18780_v41 = vld [vmem:[%s26493_s22 + $0x16f] sm:$0xff] }
 0x1fe   : >> { %21853 = vmatprep.mubr.msk.f32.mxu0 %vm399_vm0, %v26809_v27  ;;  %22005 = vmatpush3.msk.msra.mxu0 %vm1084_vm4, %v18781_v45 }
 0x1ff   : >> { %21900 = vmatprep.subr.msk.mxu1 %vm1084_vm4, %v18592_v51  ;;  %22030 = vmatprep.subr.msk.mxu0 %vm1084_vm4, %v18764_v53 }
 0x200   : >> { %21724 = vmatmul.mubr.msk.f32.gmra.mrb[18].mxu1 %vm399_vm0, %v26783_v11  ;;  %21854 = vmatmul.mubr.msk.f32.gmra.mrb[18].mxu0 %vm399_vm0, %v26826_v32  ;;  %v27346_v11 = vld [vmem:[%s26493_s22 + $0x102] sm:$0xff] }
 0x201   : >> { %21726 = vmatprep.mubr.msk.f32.mxu1 %vm399_vm0, %v26789_v13  ;;  %21856 = vmatprep.mubr.msk.f32.mxu0 %vm399_vm0, %v26834_v43  ;;  %v27349_v13 = vld [vmem:[%s26493_s22 + $0x10a] sm:$0xff] }
 0x204   : >> { %21727 = vmatmul.mubr.msk.f32.gmra.mrb[20].mxu1 %vm399_vm0, %v26803_v15  ;;  %21857 = vmatmul.mubr.msk.f32.gmra.mrb[20].mxu0 %vm399_vm0, %v26849_v47  ;;  %v27360_v15 = vld [vmem:[%s26493_s22 + $0x112] sm:$0xff] }
 0x205   : >> { %21729 = vmatprep.mubr.msk.f32.mxu1 %vm399_vm0, %v26809_v27  ;;  %21859 = vmatprep.mubr.msk.f32.mxu0 %vm399_vm0, %v26855_v59  ;;  %v27377_v27 = vld [vmem:[%s30503_s1 + $0x44] sm:$0x7] }
 0x208   : >> { %21730 = vmatmul.mubr.msk.f32.gmra.mrb[22].mxu1 %vm399_vm0, %v26826_v32  ;;  %21860 = vmatmul.mubr.msk.f32.gmra.mrb[22].mxu0 %vm399_vm0, %v26869_v63  ;;  %v27382_v32 = vld [vmem:[%s30503_s1 + $0x58] sm:$0x7] }
 0x209   : >> { %21732 = vmatprep.mubr.msk.f32.mxu1 %vm399_vm0, %v26834_v43  ;;  %21862 = vmatprep.mubr.msk.f32.mxu0 %vm399_vm0, %v27307_v55 }
 0x20c   : >> { %21733 = vmatmul.mubr.msk.f32.gmra.mrb[24].mxu1 %vm399_vm0, %v26849_v47  ;;  %21863 = vmatmul.mubr.msk.f32.gmra.mrb[24].mxu0 %vm399_vm0, %v27318_v57 }
 0x20d   : >> { %21735 = vmatprep.mubr.msk.f32.mxu1 %vm399_vm0, %v26855_v59  ;;  %21865 = vmatprep.mubr.msk.f32.mxu0 %vm399_vm0, %v27321_v5  ;;  %v18774_v59 = vld [vmem:[%s26493_s22 + $0x12f] sm:$0xff] }
 0x210   : >> { %21736 = vmatmul.mubr.msk.f32.gmra.mrb[26].mxu1 %vm399_vm0, %v26869_v63  ;;  %21866 = vmatmul.mubr.msk.f32.gmra.mrb[26].mxu0 %vm399_vm0, %v27332_v7 }
 0x211   : >> { %21738 = vmatprep.mubr.msk.f32.mxu1 %vm399_vm0, %v27307_v55  ;;  %21868 = vmatprep.mubr.msk.f32.mxu0 %vm399_vm0, %v27335_v9 }
 0x214   : >> { %21739 = vmatmul.mubr.msk.f32.gmra.mrb[28].mxu1 %vm399_vm0, %v27318_v57  ;;  %21869 = vmatmul.mubr.msk.f32.gmra.mrb[28].mxu0 %vm399_vm0, %v27346_v11 }
 0x215   : >> { %21741 = vmatprep.mubr.msk.f32.mxu1 %vm399_vm0, %v27321_v5  ;;  %21871 = vmatprep.mubr.msk.f32.mxu0 %vm399_vm0, %v27349_v13 }
 0x218   : >> { %21742 = vmatmul.mubr.msk.f32.gmra.mrb[30].mxu1 %vm399_vm0, %v27332_v7  ;;  %21872 = vmatmul.mubr.msk.f32.gmra.mrb[30].mxu0 %vm399_vm0, %v27360_v15 }
 0x219   : >> { %21876 = vmatprep.mubr.msk.f32.mxu1 %vm399_vm0, %v26590_v33  ;;  %22006 = vmatprep.mubr.msk.f32.mxu0 %vm399_vm0, %v26915_v16 }
 0x21c   : >> { %21877 = vmatmul.mubr.msk.f32.vlgmr.msra.gmra.mrb[32].mxu1 %vm399_vm0, %v26606_v35  ;;  %22007 = vmatmul.mubr.msk.f32.vlgmr.msra.gmra.mrb[32].mxu0 %vm399_vm0, %v26926_v18 }
 0x21d   : >> { %21901 = vmatpush3.msk.msra.mxu1 %vm1084_vm4, %v18592_v51  ;;  %21879 = vmatprep.mubr.msk.f32.mxu1 %vm399_vm0, %v26612_v37 }
 0x21e   : >> { %22009 = vmatprep.mubr.msk.f32.mxu0 %vm399_vm0, %v26929_v20  ;;  %22031 = vmatpush3.msk.msra.mxu0 %vm1084_vm4, %v18764_v53 }
 0x21f   : >> { %v21514_v33 = vpop.f32.mrb[0].mxu1  ;;  %21926 = vmatprep.subr.msk.mxu1 %vm1084_vm4, %v27377_v27  ;;  %22056 = vmatprep.subr.msk.mxu0 %vm1084_vm4, %v27382_v32 }
 0x220   : >> { %v1350_v35 = vpop.f32.mrb[1].mxu1  ;;  %21880 = vmatmul.mubr.msk.f32.gmra.mrb[34].mxu1 %vm399_vm0, %v26626_v39  ;;  %22010 = vmatmul.mubr.msk.f32.gmra.mrb[34].mxu0 %vm399_vm0, %v26940_v22  ;;  %v18773_v39 = vld [vmem:[%s26493_s22 + $0x127] sm:$0xff] }
 0x221   : >> { %21882 = vmatprep.mubr.msk.f32.mxu1 %vm399_vm0, %v26915_v16  ;;  %22012 = vmatprep.mubr.msk.f32.mxu0 %vm399_vm0, %v26943_v24  ;;  %v18776_v16 = vld [vmem:[%s26493_s22 + $0x13f] sm:$0xff] }
 0x223   : >> { %v21517_v37 = vpop.f32.mrb[2].mxu1 }
 0x224   : >> { %v1360_v43 = vpop.f32.mrb[3].mxu1  ;;  %21883 = vmatmul.mubr.msk.f32.gmra.mrb[36].mxu1 %vm399_vm0, %v26926_v18  ;;  %22013 = vmatmul.mubr.msk.f32.gmra.mrb[36].mxu0 %vm399_vm0, %v26954_v26  ;;  %v18777_v18 = vld [vmem:[%s26493_s22 + $0x157] sm:$0xff] }
 0x225   : >> { %21885 = vmatprep.mubr.msk.f32.mxu1 %vm399_vm0, %v26929_v20  ;;  %22015 = vmatprep.mubr.msk.f32.mxu0 %vm399_vm0, %v26957_v28 }
 0x227   : >> { %v21520_v47 = vpop.f32.mrb[4].mxu1 }
 0x228   : >> { %v1370_v48 = vpop.f32.mrb[5].mxu1  ;;  %21886 = vmatmul.mubr.msk.f32.gmra.mrb[38].mxu1 %vm399_vm0, %v26940_v22  ;;  %22016 = vmatmul.mubr.msk.f32.gmra.mrb[38].mxu0 %vm399_vm0, %v26968_v31 }
 0x229   : >> { %21888 = vmatprep.mubr.msk.f32.mxu1 %vm399_vm0, %v26943_v24  ;;  %22018 = vmatprep.mubr.msk.f32.mxu0 %vm399_vm0, %v18773_v39 }
 0x22b   : >> { %v21523_v63 = vpop.f32.mrb[6].mxu1 }
 0x22c   : >> { %v1380_v3 = vpop.f32.mrb[7].mxu1  ;;  %21889 = vmatmul.mubr.msk.f32.gmra.mrb[40].mxu1 %vm399_vm0, %v26954_v26  ;;  %22019 = vmatmul.mubr.msk.f32.gmra.mrb[40].mxu0 %vm399_vm0, %v18774_v59 }
 0x22d   : >> { %21891 = vmatprep.mubr.msk.f32.mxu1 %vm399_vm0, %v26957_v28  ;;  %22021 = vmatprep.mubr.msk.f32.mxu0 %vm399_vm0, %v18775_v61  ;;  %v18779_v28 = vld [vmem:[%s26493_s22 + $0x167] sm:$0xff] }
 0x22f   : >> { %v21592_v20 = vpop.f32.mrb[0].mxu0 }
 0x230   : >> { %v24363_v22 = vadd.f32 %v21592_v20, %v21514_v33  ;;  %v2024_v24 = vpop.f32.mrb[1].mxu0  ;;  %21892 = vmatmul.mubr.msk.f32.gmra.mrb[42].mxu1 %vm399_vm0, %v26968_v31  ;;  %22022 = vmatmul.mubr.msk.f32.gmra.mrb[42].mxu0 %vm399_vm0, %v18776_v16 }
 0x231   : >> { %v24364_v26 = vadd.f32 %v2024_v24, %v1350_v35  ;;  %21894 = vmatprep.mubr.msk.f32.mxu1 %vm399_vm0, %v18773_v39  ;;  %22024 = vmatprep.mubr.msk.f32.mxu0 %vm399_vm0, %v18777_v18  ;;  %v27464_v39 = vld [vmem:[%s30503_s1 + $0x5c] sm:$0x7] }
 0x232   : >> { %2120 = vst.msk [vmem:[#allocation5 + $0x8] sm:$0xff] %vm617_vm2, %v24363_v22 }
 0x233   : >> { %2119 = vst.msk [vmem:[#allocation5] sm:$0xff] %vm617_vm2, %v24364_v26  ;;  %v21595_v29 = vpop.f32.mrb[2].mxu0 }
 0x234   : >> { %v24365_v2 = vadd.f32 %v21595_v29, %v21517_v37  ;;  %v2034_v10 = vpop.f32.mrb[3].mxu0  ;;  %21895 = vmatmul.mubr.msk.f32.gmra.mrb[44].mxu1 %vm399_vm0, %v18774_v59  ;;  %22025 = vmatmul.mubr.msk.f32.gmra.mrb[44].mxu0 %vm399_vm0, %v18778_v1  ;;  %v18757_v29 = vld [vmem:[%s26493_s22 + $0x12e] sm:$0xff] }
 0x235   : >> { %v24366_v31 = vadd.f32 %v2034_v10, %v1360_v43  ;;  %21897 = vmatprep.mubr.msk.f32.mxu1 %vm399_vm0, %v18775_v61  ;;  %22027 = vmatprep.mubr.msk.f32.mxu0 %vm399_vm0, %v18779_v28 }
 0x236   : >> { %2122 = vst.msk [vmem:[#allocation5 + $0x18] sm:$0xff] %vm617_vm2, %v24365_v2  ;;  %v18758_v2 = vld [vmem:[%s26493_s22 + $0x136] sm:$0xff] }
 0x237   : >> { %2121 = vst.msk [vmem:[#allocation5 + $0x10] sm:$0xff] %vm617_vm2, %v24366_v31  ;;  %v21598_v45 = vpop.f32.mrb[4].mxu0 }
 0x238   : >> { %v24367_v51 = vadd.f32 %v21598_v45, %v21520_v47  ;;  %v2044_v53 = vpop.f32.mrb[5].mxu0  ;;  %21898 = vmatmul.mubr.msk.f32.gmra.mrb[46].mxu1 %vm399_vm0, %v18776_v16  ;;  %22028 = vmatmul.mubr.msk.f32.gmra.mrb[46].mxu0 %vm399_vm0, %v18780_v41 }
 0x239   : >> { %v24368_v33 = vadd.f32 %v2044_v53, %v1370_v48  ;;  %21902 = vmatprep.mubr.msk.f32.mxu1 %vm399_vm0, %v26743_v4  ;;  %22032 = vmatprep.mubr.msk.f32.mxu0 %vm399_vm0, %v27013_v0  ;;  %v27459_v4 = vld [vmem:[%s30503_s1 + $0x48] sm:$0x7]  ;;  %v18760_v53 = vld [vmem:[%s26493_s22 + $0x156] sm:$0xff] }
 0x23a   : >> { %2124 = vst.msk [vmem:[#allocation5 + $0x28] sm:$0xff] %vm617_vm2, %v24367_v51  ;;  %v18759_v51 = vld [vmem:[%s26493_s22 + $0x13e] sm:$0xff] }
 0x23b   : >> { %2123 = vst.msk [vmem:[#allocation5 + $0x20] sm:$0xff] %vm617_vm2, %v24368_v33  ;;  %v21601_v35 = vpop.f32.mrb[6].mxu0  ;;  %v18644_v33 = vld [vmem:[%s26493_s22 + $0x98] sm:$0xff] }
 0x23c   : >> { %v24369_v37 = vadd.f32 %v21601_v35, %v21523_v63  ;;  %v2054_v43 = vpop.f32.mrb[7].mxu0  ;;  %21903 = vmatmul.mubr.msk.f32.vlgmr.msra.gmra.mrb[32].mxu1 %vm399_vm0, %v26760_v6  ;;  %22033 = vmatmul.mubr.msk.f32.vlgmr.msra.gmra.mrb[32].mxu0 %vm399_vm0, %v27024_v50  ;;  %v18579_v6 = vld [vmem:[%s26493_s22 + $0xae] sm:$0xff]  ;;  %v18645_v35 = vld [vmem:[%s26493_s22 + $0xa0] sm:$0xff] }
 0x23d   : >> { %v24370_v47 = vadd.f32 %v2054_v43, %v1380_v3  ;;  %21927 = vmatpush3.msk.msra.mxu1 %vm1084_vm4, %v27377_v27  ;;  %21905 = vmatprep.mubr.msk.f32.mxu1 %vm399_vm0, %v26766_v8  ;;  %v18728_v43 = vld [vmem:[%s30503_s1 + $0x4c] sm:$0x7] }
 0x23e   : >> { %2126 = vst.msk [vmem:[#allocation5 + $0x38] sm:$0xff] %vm617_vm2, %v24369_v37  ;;  %22035 = vmatprep.mubr.msk.f32.mxu0 %vm399_vm0, %v27027_v52  ;;  %22057 = vmatpush3.msk.msra.mxu0 %vm1084_vm4, %v27382_v32  ;;  %v18646_v37 = vld [vmem:[%s26493_s22 + $0xa8] sm:$0xff] }
 0x23f   : >> { %2125 = vst.msk [vmem:[#allocation5 + $0x30] sm:$0xff] %vm617_vm2, %v24370_v47  ;;  %v21552_v48 = vpop.f32.mrb[8].mxu1  ;;  %v21604_v59 = vpop.f32.mrb[8].mxu0  ;;  %21952 = vmatprep.subr.msk.mxu1 %vm1084_vm4, %v27459_v4  ;;  %22082 = vmatprep.subr.msk.mxu0 %vm1084_vm4, %v27464_v39  ;;  %v18900_v47 = vld [vmem:[%s30503_s1 + $0x60] sm:$0x7] }
 0x240   : >> { %v24371_v8 = vadd.f32 %v21604_v59, %v21552_v48  ;;  %v1604_v27 = vpop.f32.mrb[9].mxu1  ;;  %v2064_v61 = vpop.f32.mrb[9].mxu0  ;;  %21906 = vmatmul.mubr.msk.f32.gmra.mrb[34].mxu1 %vm399_vm0, %v18579_v6  ;;  %22036 = vmatmul.mubr.msk.f32.gmra.mrb[34].mxu0 %vm399_vm0, %v27038_v54  ;;  %v18647_v6 = vld [vmem:[%s26493_s22 + $0xb0] sm:$0xff] }
 0x241   : >> { %v24372_v63 = vadd.f32 %v2064_v61, %v1604_v27  ;;  %21908 = vmatprep.mubr.msk.f32.mxu1 %vm399_vm0, %v27013_v0  ;;  %22038 = vmatprep.mubr.msk.f32.mxu0 %vm399_vm0, %v27041_v56  ;;  %v18756_v0 = vld [vmem:[%s26493_s22 + $0x126] sm:$0xff]  ;;  %v18681_v59 = vld [vmem:[%s26493_s22 + $0xb1] sm:$0xff] }
 0x242   : >> { %2128 = vst.msk [vmem:[#allocation5 + $0x48] sm:$0xff] %vm617_vm2, %v24371_v8  ;;  %v18680_v48 = vld [vmem:[%s26493_s22 + $0xa9] sm:$0xff] }
 0x243   : >> { %2127 = vst.msk [vmem:[#allocation5 + $0x40] sm:$0xff] %vm617_vm2, %v24372_v63  ;;  %v21555_v32 = vpop.f32.mrb[10].mxu1  ;;  %v21607_v3 = vpop.f32.mrb[10].mxu0  ;;  %v18858_v8 = vld [vmem:[%s26493_s22 + $0x129] sm:$0xff]  ;;  %v18715_v63 = vld [vmem:[%s26493_s22 + $0xb2] sm:$0xff] }
 0x244   : >> { %v24373_v16 = vadd.f32 %v21607_v3, %v21555_v32  ;;  %v1614_v18 = vpop.f32.mrb[11].mxu1  ;;  %v2074_v20 = vpop.f32.mrb[11].mxu0  ;;  %21909 = vmatmul.mubr.msk.f32.gmra.mrb[36].mxu1 %vm399_vm0, %v27024_v50  ;;  %22039 = vmatmul.mubr.msk.f32.gmra.mrb[36].mxu0 %vm399_vm0, %v27052_v58  ;;  %v18713_v27 = vld [vmem:[%s26493_s22 + $0xa2] sm:$0xff]  ;;  %v18714_v61 = vld [vmem:[%s26493_s22 + $0xaa] sm:$0xff] }
 0x245   : >> { %v24374_v22 = vadd.f32 %v2074_v20, %v1614_v18  ;;  %21911 = vmatprep.mubr.msk.f32.mxu1 %vm399_vm0, %v27027_v52  ;;  %22041 = vmatprep.mubr.msk.f32.mxu0 %vm399_vm0, %v27055_v60  ;;  %v18892_v32 = vld [vmem:[%s26493_s22 + $0x12a] sm:$0xff] }
 0x246   : >> { %2130 = vst.msk [vmem:[#allocation5 + $0x58] sm:$0xff] %vm617_vm2, %v24373_v16  ;;  %v3257_v3 = vld [vmem:[#allocation5 + $0x8] sm:$0xff] }
 0x247   : >> { %2129 = vst.msk [vmem:[#allocation5 + $0x50] sm:$0xff] %vm617_vm2, %v24374_v22  ;;  %v21558_v24 = vpop.f32.mrb[12].mxu1  ;;  %v21610_v26 = vpop.f32.mrb[12].mxu0  ;;  %v3256_v22 = vld [vmem:[#allocation5] sm:$0xff] }
 0x248   : >> { %v24375_v50 = vadd.f32 %v21610_v26, %v21558_v24  ;;  %v1624_v1 = vpop.f32.mrb[13].mxu1  ;;  %v2084_v28 = vpop.f32.mrb[13].mxu0  ;;  %21912 = vmatmul.mubr.msk.f32.gmra.mrb[38].mxu1 %vm399_vm0, %v27038_v54  ;;  %22042 = vmatmul.mubr.msk.f32.gmra.mrb[38].mxu0 %vm399_vm0, %v27066_v62 }
 0x249   : >> { %v24376_v52 = vadd.f32 %v2084_v28, %v1624_v1  ;;  %21914 = vmatprep.mubr.msk.f32.mxu1 %vm399_vm0, %v27041_v56  ;;  %22044 = vmatprep.mubr.msk.f32.mxu0 %vm399_vm0, %v18756_v0 }
 0x24a   : >> { %2132 = vst.msk [vmem:[#allocation5 + $0x68] sm:$0xff] %vm617_vm2, %v24375_v50  ;;  %v3259_v50 = vld [vmem:[#allocation5 + $0x18] sm:$0xff] }
 0x24b   : >> { %2131 = vst.msk [vmem:[#allocation5 + $0x60] sm:$0xff] %vm617_vm2, %v24376_v52  ;;  %v21561_v10 = vpop.f32.mrb[14].mxu1  ;;  %v21613_v31 = vpop.f32.mrb[14].mxu0 }
 0x24c   : >> { %v24377_v54 = vadd.f32 %v21613_v31, %v21561_v10  ;;  %v1634_v41 = vpop.f32.mrb[15].mxu1  ;;  %v2094_v45 = vpop.f32.mrb[15].mxu0  ;;  %21915 = vmatmul.mubr.msk.f32.gmra.mrb[40].mxu1 %vm399_vm0, %v27052_v58  ;;  %22045 = vmatmul.mubr.msk.f32.gmra.mrb[40].mxu0 %vm399_vm0, %v18757_v29  ;;  %v18761_v58 = vld [vmem:[%s26493_s22 + $0x15e] sm:$0xff] }
 0x24d   : >> { %v24378_v56 = vadd.f32 %v2094_v45, %v1634_v41  ;;  %21917 = vmatprep.mubr.msk.f32.mxu1 %vm399_vm0, %v27055_v60  ;;  %22047 = vmatprep.mubr.msk.f32.mxu0 %vm399_vm0, %v18758_v2  ;;  %v18762_v60 = vld [vmem:[%s26493_s22 + $0x166] sm:$0xff] }
 0x24e   : >> { %2134 = vst.msk [vmem:[#allocation5 + $0x78] sm:$0xff] %vm617_vm2, %v24377_v54  ;;  %v3261_v54 = vld [vmem:[#allocation5 + $0x28] sm:$0xff] }
 0x24f   : >> { %2133 = vst.msk [vmem:[#allocation5 + $0x70] sm:$0xff] %vm617_vm2, %v24378_v56 }
 0x250   : >> { %21918 = vmatmul.mubr.msk.f32.gmra.mrb[42].mxu1 %vm399_vm0, %v27066_v62  ;;  %22048 = vmatmul.mubr.msk.f32.gmra.mrb[42].mxu0 %vm399_vm0, %v18759_v51  ;;  %v18763_v62 = vld [vmem:[%s26493_s22 + $0x16e] sm:$0xff] }
 0x251   : >> { %21920 = vmatprep.mubr.msk.f32.mxu1 %vm399_vm0, %v18756_v0  ;;  %22050 = vmatprep.mubr.msk.f32.mxu0 %vm399_vm0, %v18760_v53 }
 0x254   : >> { %21921 = vmatmul.mubr.msk.f32.gmra.mrb[44].mxu1 %vm399_vm0, %v18757_v29  ;;  %22051 = vmatmul.mubr.msk.f32.gmra.mrb[44].mxu0 %vm399_vm0, %v18761_v58  ;;  %v3258_v29 = vld [vmem:[#allocation5 + $0x10] sm:$0xff] }
 0x255   : >> { %21923 = vmatprep.mubr.msk.f32.mxu1 %vm399_vm0, %v18758_v2  ;;  %22053 = vmatprep.mubr.msk.f32.mxu0 %vm399_vm0, %v18762_v60 }
 0x258   : >> { %21924 = vmatmul.mubr.msk.f32.gmra.mrb[46].mxu1 %vm399_vm0, %v18759_v51  ;;  %22054 = vmatmul.mubr.msk.f32.gmra.mrb[46].mxu0 %vm399_vm0, %v18763_v62  ;;  %v3260_v51 = vld [vmem:[#allocation5 + $0x20] sm:$0xff] }
 0x259   : >> { %21928 = vmatprep.mubr.msk.f32.mxu1 %vm399_vm0, %v18644_v33  ;;  %22058 = vmatprep.mubr.msk.f32.mxu0 %vm399_vm0, %v27111_v17 }
 0x25c   : >> { %21929 = vmatmul.mubr.msk.f32.vlgmr.msra.gmra.mrb[32].mxu1 %vm399_vm0, %v18645_v35  ;;  %22059 = vmatmul.mubr.msk.f32.vlgmr.msra.gmra.mrb[32].mxu0 %vm399_vm0, %v27122_v19 }
 0x25d   : >> { %21953 = vmatpush3.msk.msra.mxu1 %vm1084_vm4, %v27459_v4  ;;  %21931 = vmatprep.mubr.msk.f32.mxu1 %vm399_vm0, %v18646_v37  ;;  %v18824_v4 = vld [vmem:[%s26493_s22 + $0x128] sm:$0xff] }
 0x25e   : >> { %22061 = vmatprep.mubr.msk.f32.mxu0 %vm399_vm0, %v27125_v21  ;;  %22083 = vmatpush3.msk.msra.mxu0 %vm1084_vm4, %v27464_v39  ;;  %v18679_v39 = vld [vmem:[%s26493_s22 + $0xa1] sm:$0xff] }
 0x25f   : >> { %21978 = vmatprep.subr.msk.mxu1 %vm1084_vm4, %v18728_v43  ;;  %22108 = vmatprep.subr.msk.mxu0 %vm1084_vm4, %v18900_v47 }
 0x260   : >> { %21932 = vmatmul.mubr.msk.f32.gmra.mrb[34].mxu1 %vm399_vm0, %v18647_v6  ;;  %22062 = vmatmul.mubr.msk.f32.gmra.mrb[34].mxu0 %vm399_vm0, %v27136_v23 }
 0x261   : >> { %21934 = vmatprep.mubr.msk.f32.mxu1 %vm399_vm0, %v27111_v17  ;;  %22064 = vmatprep.mubr.msk.f32.mxu0 %vm399_vm0, %v27139_v12  ;;  %v18825_v17 = vld [vmem:[%s26493_s22 + $0x130] sm:$0xff] }
 0x264   : >> { %21935 = vmatmul.mubr.msk.f32.gmra.mrb[36].mxu1 %vm399_vm0, %v27122_v19  ;;  %22065 = vmatmul.mubr.msk.f32.gmra.mrb[36].mxu0 %vm399_vm0, %v27150_v14  ;;  %v18826_v19 = vld [vmem:[%s26493_s22 + $0x138] sm:$0xff] }
 0x265   : >> { %21937 = vmatprep.mubr.msk.f32.mxu1 %vm399_vm0, %v27125_v21  ;;  %22067 = vmatprep.mubr.msk.f32.mxu0 %vm399_vm0, %v27153_v25  ;;  %v18827_v21 = vld [vmem:[%s26493_s22 + $0x140] sm:$0xff] }
 0x268   : >> { %21938 = vmatmul.mubr.msk.f32.gmra.mrb[38].mxu1 %vm399_vm0, %v27136_v23  ;;  %22068 = vmatmul.mubr.msk.f32.gmra.mrb[38].mxu0 %vm399_vm0, %v27164_v30  ;;  %v18828_v23 = vld [vmem:[%s26493_s22 + $0x158] sm:$0xff] }
 0x269   : >> { %21940 = vmatprep.mubr.msk.f32.mxu1 %vm399_vm0, %v27139_v12  ;;  %22070 = vmatprep.mubr.msk.f32.mxu0 %vm399_vm0, %v18824_v4  ;;  %v18829_v12 = vld [vmem:[%s26493_s22 + $0x160] sm:$0xff] }
 0x26c   : >> { %21941 = vmatmul.mubr.msk.f32.gmra.mrb[40].mxu1 %vm399_vm0, %v27150_v14  ;;  %22071 = vmatmul.mubr.msk.f32.gmra.mrb[40].mxu0 %vm399_vm0, %v18825_v17  ;;  %v18830_v14 = vld [vmem:[%s26493_s22 + $0x168] sm:$0xff] }
 0x26d   : >> { %21943 = vmatprep.mubr.msk.f32.mxu1 %vm399_vm0, %v27153_v25  ;;  %22073 = vmatprep.mubr.msk.f32.mxu0 %vm399_vm0, %v18826_v19  ;;  %v18831_v25 = vld [vmem:[%s26493_s22 + $0x170] sm:$0xff] }
 0x270   : >> { %21944 = vmatmul.mubr.msk.f32.gmra.mrb[42].mxu1 %vm399_vm0, %v27164_v30  ;;  %22074 = vmatmul.mubr.msk.f32.gmra.mrb[42].mxu0 %vm399_vm0, %v18827_v21  ;;  %v18678_v30 = vld [vmem:[%s26493_s22 + $0x99] sm:$0xff] }
 0x271   : >> { %21946 = vmatprep.mubr.msk.f32.mxu1 %vm399_vm0, %v18824_v4  ;;  %22076 = vmatprep.mubr.msk.f32.mxu0 %vm399_vm0, %v18828_v23 }
 0x274   : >> { %21947 = vmatmul.mubr.msk.f32.gmra.mrb[44].mxu1 %vm399_vm0, %v18825_v17  ;;  %22077 = vmatmul.mubr.msk.f32.gmra.mrb[44].mxu0 %vm399_vm0, %v18829_v12  ;;  %v3262_v17 = vld [vmem:[#allocation5 + $0x30] sm:$0xff] }
 0x275   : >> { %21949 = vmatprep.mubr.msk.f32.mxu1 %vm399_vm0, %v18826_v19  ;;  %22079 = vmatprep.mubr.msk.f32.mxu0 %vm399_vm0, %v18830_v14 }
 0x278   : >> { %21950 = vmatmul.mubr.msk.f32.gmra.mrb[46].mxu1 %vm399_vm0, %v18827_v21  ;;  %22080 = vmatmul.mubr.msk.f32.gmra.mrb[46].mxu0 %vm399_vm0, %v18831_v25 }
 0x279   : >> { %21954 = vmatprep.mubr.msk.f32.mxu1 %vm399_vm0, %v18678_v30  ;;  %22084 = vmatprep.mubr.msk.f32.mxu0 %vm399_vm0, %v27209_v34 }
 0x27c   : >> { %21955 = vmatmul.mubr.msk.f32.vlgmr.msra.gmra.mrb[32].mxu1 %vm399_vm0, %v18679_v39  ;;  %22085 = vmatmul.mubr.msk.f32.vlgmr.msra.gmra.mrb[32].mxu0 %vm399_vm0, %v27220_v36  ;;  %v3265_v39 = vld [vmem:[#allocation5 + $0x48] sm:$0xff] }
 0x27d   : >> { %21979 = vmatpush3.msk.msra.mxu1 %vm1084_vm4, %v18728_v43  ;;  %21957 = vmatprep.mubr.msk.f32.mxu1 %vm399_vm0, %v18680_v48  ;;  %v3263_v43 = vld [vmem:[#allocation5 + $0x38] sm:$0xff] }
 0x27e   : >> { %22087 = vmatprep.mubr.msk.f32.mxu0 %vm399_vm0, %v27223_v38  ;;  %22109 = vmatpush3.msk.msra.mxu0 %vm1084_vm4, %v18900_v47 }
 0x280   : >> { %21958 = vmatmul.mubr.msk.f32.gmra.mrb[34].mxu1 %vm399_vm0, %v18681_v59  ;;  %22088 = vmatmul.mubr.msk.f32.gmra.mrb[34].mxu0 %vm399_vm0, %v27234_v40 }
 0x281   : >> { %21960 = vmatprep.mubr.msk.f32.mxu1 %vm399_vm0, %v27209_v34  ;;  %22090 = vmatprep.mubr.msk.f32.mxu0 %vm399_vm0, %v27237_v42  ;;  %v18859_v34 = vld [vmem:[%s26493_s22 + $0x131] sm:$0xff] }
 0x284   : >> { %21961 = vmatmul.mubr.msk.f32.gmra.mrb[36].mxu1 %vm399_vm0, %v27220_v36  ;;  %22091 = vmatmul.mubr.msk.f32.gmra.mrb[36].mxu0 %vm399_vm0, %v27248_v44  ;;  %v18860_v36 = vld [vmem:[%s26493_s22 + $0x139] sm:$0xff] }
 0x285   : >> { %21963 = vmatprep.mubr.msk.f32.mxu1 %vm399_vm0, %v27223_v38  ;;  %22093 = vmatprep.mubr.msk.f32.mxu0 %vm399_vm0, %v27251_v46  ;;  %v18861_v38 = vld [vmem:[%s26493_s22 + $0x141] sm:$0xff] }
 0x288   : >> { %21964 = vmatmul.mubr.msk.f32.gmra.mrb[38].mxu1 %vm399_vm0, %v27234_v40  ;;  %22094 = vmatmul.mubr.msk.f32.gmra.mrb[38].mxu0 %vm399_vm0, %v27262_v49  ;;  %v18862_v40 = vld [vmem:[%s26493_s22 + $0x159] sm:$0xff] }
 0x289   : >> { %21966 = vmatprep.mubr.msk.f32.mxu1 %vm399_vm0, %v27237_v42  ;;  %22096 = vmatprep.mubr.msk.f32.mxu0 %vm399_vm0, %v18858_v8  ;;  %v18863_v42 = vld [vmem:[%s26493_s22 + $0x161] sm:$0xff] }
 0x28c   : >> { %21967 = vmatmul.mubr.msk.f32.gmra.mrb[40].mxu1 %vm399_vm0, %v27248_v44  ;;  %22097 = vmatmul.mubr.msk.f32.gmra.mrb[40].mxu0 %vm399_vm0, %v18859_v34  ;;  %v18864_v44 = vld [vmem:[%s26493_s22 + $0x169] sm:$0xff] }
 0x28d   : >> { %21969 = vmatprep.mubr.msk.f32.mxu1 %vm399_vm0, %v27251_v46  ;;  %22099 = vmatprep.mubr.msk.f32.mxu0 %vm399_vm0, %v18860_v36  ;;  %v18865_v46 = vld [vmem:[%s26493_s22 + $0x171] sm:$0xff] }
 0x290   : >> { %21970 = vmatmul.mubr.msk.f32.gmra.mrb[42].mxu1 %vm399_vm0, %v27262_v49  ;;  %22100 = vmatmul.mubr.msk.f32.gmra.mrb[42].mxu0 %vm399_vm0, %v18861_v38  ;;  %v18712_v49 = vld [vmem:[%s26493_s22 + $0x9a] sm:$0xff] }
 0x291   : >> { %21972 = vmatprep.mubr.msk.f32.mxu1 %vm399_vm0, %v18858_v8  ;;  %22102 = vmatprep.mubr.msk.f32.mxu0 %vm399_vm0, %v18862_v40 }
 0x294   : >> { %21973 = vmatmul.mubr.msk.f32.gmra.mrb[44].mxu1 %vm399_vm0, %v18859_v34  ;;  %22103 = vmatmul.mubr.msk.f32.gmra.mrb[44].mxu0 %vm399_vm0, %v18863_v42  ;;  %v3264_v34 = vld [vmem:[#allocation5 + $0x40] sm:$0xff] }
 0x295   : >> { %21975 = vmatprep.mubr.msk.f32.mxu1 %vm399_vm0, %v18860_v36  ;;  %22105 = vmatprep.mubr.msk.f32.mxu0 %vm399_vm0, %v18864_v44 }
 0x298   : >> { %21976 = vmatmul.mubr.msk.f32.gmra.mrb[46].mxu1 %vm399_vm0, %v18861_v38  ;;  %22106 = vmatmul.mubr.msk.f32.gmra.mrb[46].mxu0 %vm399_vm0, %v18865_v46 }
 0x299   : >> { %21980 = vmatprep.mubr.msk.f32.mxu1 %vm399_vm0, %v18712_v49  ;;  %22110 = vmatprep.mubr.msk.f32.mxu0 %vm399_vm0, %v27307_v55 }
 0x29c   : >> { %21981 = vmatmul.mubr.msk.f32.vlgmr.msra.gmra.mrb[32].mxu1 %vm399_vm0, %v18713_v27  ;;  %22111 = vmatmul.mubr.msk.f32.vlgmr.msra.gmra.mrb[32].mxu0 %vm399_vm0, %v27318_v57  ;;  %v3267_v27 = vld [vmem:[#allocation5 + $0x58] sm:$0xff] }
 0x29d   : >> { %21983 = vmatprep.mubr.msk.f32.mxu1 %vm399_vm0, %v18714_v61  ;;  %22113 = vmatprep.mubr.msk.f32.mxu0 %vm399_vm0, %v27321_v5 }
 0x2a0   : >> { %21984 = vmatmul.mubr.msk.f32.gmra.mrb[34].mxu1 %vm399_vm0, %v18715_v63  ;;  %22114 = vmatmul.mubr.msk.f32.gmra.mrb[34].mxu0 %vm399_vm0, %v27332_v7 }
 0x2a1   : >> { %21986 = vmatprep.mubr.msk.f32.mxu1 %vm399_vm0, %v27307_v55  ;;  %22116 = vmatprep.mubr.msk.f32.mxu0 %vm399_vm0, %v27335_v9  ;;  %v18893_v55 = vld [vmem:[%s26493_s22 + $0x132] sm:$0xff] }
 0x2a4   : >> { %21987 = vmatmul.mubr.msk.f32.gmra.mrb[36].mxu1 %vm399_vm0, %v27318_v57  ;;  %22117 = vmatmul.mubr.msk.f32.gmra.mrb[36].mxu0 %vm399_vm0, %v27346_v11  ;;  %v18894_v57 = vld [vmem:[%s26493_s22 + $0x13a] sm:$0xff] }
 0x2a5   : >> { %21989 = vmatprep.mubr.msk.f32.mxu1 %vm399_vm0, %v27321_v5  ;;  %22119 = vmatprep.mubr.msk.f32.mxu0 %vm399_vm0, %v27349_v13  ;;  %v18895_v5 = vld [vmem:[%s26493_s22 + $0x142] sm:$0xff] }
 0x2a8   : >> { %21990 = vmatmul.mubr.msk.f32.gmra.mrb[38].mxu1 %vm399_vm0, %v27332_v7  ;;  %22120 = vmatmul.mubr.msk.f32.gmra.mrb[38].mxu0 %vm399_vm0, %v27360_v15  ;;  %v18896_v7 = vld [vmem:[%s26493_s22 + $0x15a] sm:$0xff] }
 0x2a9   : >> { %21992 = vmatprep.mubr.msk.f32.mxu1 %vm399_vm0, %v27335_v9  ;;  %22122 = vmatprep.mubr.msk.f32.mxu0 %vm399_vm0, %v18892_v32  ;;  %v18897_v9 = vld [vmem:[%s26493_s22 + $0x162] sm:$0xff] }
 0x2ac   : >> { %21993 = vmatmul.mubr.msk.f32.gmra.mrb[40].mxu1 %vm399_vm0, %v27346_v11  ;;  %22123 = vmatmul.mubr.msk.f32.gmra.mrb[40].mxu0 %vm399_vm0, %v18893_v55  ;;  %v18898_v11 = vld [vmem:[%s26493_s22 + $0x16a] sm:$0xff] }
 0x2ad   : >> { %21995 = vmatprep.mubr.msk.f32.mxu1 %vm399_vm0, %v27349_v13  ;;  %22125 = vmatprep.mubr.msk.f32.mxu0 %vm399_vm0, %v18894_v57  ;;  %v18899_v13 = vld [vmem:[%s26493_s22 + $0x172] sm:$0xff] }
 0x2b0   : >> { %21996 = vmatmul.mubr.msk.f32.gmra.mrb[42].mxu1 %vm399_vm0, %v27360_v15  ;;  %22126 = vmatmul.mubr.msk.f32.gmra.mrb[42].mxu0 %vm399_vm0, %v18895_v5 }
 0x2b1   : >> { %21998 = vmatprep.mubr.msk.f32.mxu1 %vm399_vm0, %v18892_v32  ;;  %22128 = vmatprep.mubr.msk.f32.mxu0 %vm399_vm0, %v18896_v7 }
 0x2b4   : >> { %21999 = vmatmul.mubr.msk.f32.gmra.mrb[44].mxu1 %vm399_vm0, %v18893_v55  ;;  %22129 = vmatmul.mubr.msk.f32.gmra.mrb[44].mxu0 %vm399_vm0, %v18897_v9  ;;  %v3266_v55 = vld [vmem:[#allocation5 + $0x50] sm:$0xff] }
 0x2b5   : >> { %22001 = vmatprep.mubr.msk.f32.mxu1 %vm399_vm0, %v18894_v57  ;;  %22131 = vmatprep.mubr.msk.f32.mxu0 %vm399_vm0, %v18898_v11 }
 0x2b8   : >> { %22002 = vmatmul.mubr.msk.f32.gmra.mrb[46].mxu1 %vm399_vm0, %v18895_v5  ;;  %22132 = vmatmul.mubr.msk.f32.gmra.mrb[46].mxu0 %vm399_vm0, %v18899_v13 }
 0x2cf   : >> { %v21722_v15 = vpop.f32.mrb[16].mxu1  ;;  %v21852_v16 = vpop.f32.mrb[16].mxu0 }
 0x2d0   : >> { %v3273_v18 = vadd.f32 %v21722_v15, %v3257_v3  ;;  %v3161_v20 = vpop.f32.mrb[17].mxu1  ;;  %v4330_v0 = vpop.f32.mrb[17].mxu0  ;;  %v3269_v3 = vld [vmem:[#allocation5 + $0x68] sm:$0xff] }
 0x2d1   : >> { %v3272_v24 = vadd.f32 %v3256_v22, %v3161_v20  ;;  %v3268_v22 = vld [vmem:[#allocation5 + $0x60] sm:$0xff] }
 0x2d2   : >> { %3289 = vst.msk [vmem:[#allocation5 + $0x8] sm:$0xff] %vm617_vm2, %v3273_v18 }
 0x2d3   : >> { %3288 = vst.msk [vmem:[#allocation5] sm:$0xff] %vm617_vm2, %v3272_v24  ;;  %v21725_v26 = vpop.f32.mrb[18].mxu1  ;;  %v21855_v1 = vpop.f32.mrb[18].mxu0 }
 0x2d4   : >> { %v3275_v28 = vadd.f32 %v21725_v26, %v3259_v50  ;;  %v3171_v52 = vpop.f32.mrb[19].mxu1  ;;  %v4340_v2 = vpop.f32.mrb[19].mxu0 }
 0x2d5   : >> { %v3274_v10 = vadd.f32 %v3258_v29, %v3171_v52  ;;  %v3271_v29 = vld [vmem:[#allocation5 + $0x78] sm:$0xff] }
 0x2d6   : >> { %3291 = vst.msk [vmem:[#allocation5 + $0x18] sm:$0xff] %vm617_vm2, %v3275_v28 }
 0x2d7   : >> { %3290 = vst.msk [vmem:[#allocation5 + $0x10] sm:$0xff] %vm617_vm2, %v3274_v10  ;;  %v21728_v31 = vpop.f32.mrb[20].mxu1  ;;  %v21858_v41 = vpop.f32.mrb[20].mxu0 }
 0x2d8   : >> { %v3277_v45 = vadd.f32 %v21728_v31, %v3261_v54  ;;  %v3181_v56 = vpop.f32.mrb[21].mxu1  ;;  %v4350_v53 = vpop.f32.mrb[21].mxu0  ;;  %v3270_v54 = vld [vmem:[#allocation5 + $0x70] sm:$0xff] }
 0x2d9   : >> { %v4426_v58 = vld [vmem:[#allocation5 + $0x8] sm:$0xff]  ;;  %v3276_v60 = vadd.f32 %v3260_v51, %v3181_v56 }
 0x2da   : >> { %v4442_v62 = vadd.f32 %v21852_v16, %v4426_v58  ;;  %v4425_v33 = vld [vmem:[#allocation5] sm:$0xff]  ;;  %3293 = vst.msk [vmem:[#allocation5 + $0x28] sm:$0xff] %vm617_vm2, %v3277_v45 }
 0x2db   : >> { %v4441_v35 = vadd.f32 %v4425_v33, %v4330_v0  ;;  %3292 = vst.msk [vmem:[#allocation5 + $0x20] sm:$0xff] %vm617_vm2, %v3276_v60  ;;  %v21731_v37 = vpop.f32.mrb[22].mxu1  ;;  %v21861_v47 = vpop.f32.mrb[22].mxu0 }
 0x2dc   : >> { %4458 = vst.msk [vmem:[#allocation5 + $0x8] sm:$0xff] %vm617_vm2, %v4442_v62  ;;  %v3279_v6 = vadd.f32 %v21731_v37, %v3263_v43  ;;  %v3191_v4 = vpop.f32.mrb[23].mxu1  ;;  %v4360_v19 = vpop.f32.mrb[23].mxu0 }
 0x2dd   : >> { %4457 = vst.msk [vmem:[#allocation5] sm:$0xff] %vm617_vm2, %v4441_v35  ;;  %v4428_v21 = vld [vmem:[#allocation5 + $0x18] sm:$0xff]  ;;  %v3278_v23 = vadd.f32 %v3262_v17, %v3191_v4 }
 0x2de   : >> { %v4444_v12 = vadd.f32 %v21855_v1, %v4428_v21  ;;  %v4427_v14 = vld [vmem:[#allocation5 + $0x10] sm:$0xff]  ;;  %3295 = vst.msk [vmem:[#allocation5 + $0x38] sm:$0xff] %vm617_vm2, %v3279_v6 }
 0x2df   : >> { %v4443_v25 = vadd.f32 %v4427_v14, %v4340_v2  ;;  %3294 = vst.msk [vmem:[#allocation5 + $0x30] sm:$0xff] %vm617_vm2, %v3278_v23  ;;  %v21734_v30 = vpop.f32.mrb[24].mxu1  ;;  %v21864_v48 = vpop.f32.mrb[24].mxu0 }
 0x2e0   : >> { %4460 = vst.msk [vmem:[#allocation5 + $0x18] sm:$0xff] %vm617_vm2, %v4444_v12  ;;  %v3281_v59 = vadd.f32 %v21734_v30, %v3265_v39  ;;  %v3201_v8 = vpop.f32.mrb[25].mxu1  ;;  %v4370_v36 = vpop.f32.mrb[25].mxu0 }
 0x2e1   : >> { %4459 = vst.msk [vmem:[#allocation5 + $0x10] sm:$0xff] %vm617_vm2, %v4443_v25  ;;  %v4430_v38 = vld [vmem:[#allocation5 + $0x28] sm:$0xff]  ;;  %v3280_v40 = vadd.f32 %v3264_v34, %v3201_v8 }
 0x2e2   : >> { %v4446_v42 = vadd.f32 %v21858_v41, %v4430_v38  ;;  %v4429_v44 = vld [vmem:[#allocation5 + $0x20] sm:$0xff]  ;;  %3297 = vst.msk [vmem:[#allocation5 + $0x48] sm:$0xff] %vm617_vm2, %v3281_v59 }
 0x2e3   : >> { %v4445_v46 = vadd.f32 %v4429_v44, %v4350_v53  ;;  %3296 = vst.msk [vmem:[#allocation5 + $0x40] sm:$0xff] %vm617_vm2, %v3280_v40  ;;  %v21737_v49 = vpop.f32.mrb[26].mxu1  ;;  %v21867_v61 = vpop.f32.mrb[26].mxu0  ;;  %v5595_v17 = vld [vmem:[#allocation5 + $0x8] sm:$0xff] }
 0x2e4   : >> { %4462 = vst.msk [vmem:[#allocation5 + $0x28] sm:$0xff] %vm617_vm2, %v4446_v42  ;;  %v3283_v63 = vadd.f32 %v21737_v49, %v3267_v27  ;;  %v3211_v32 = vpop.f32.mrb[27].mxu1  ;;  %v4380_v57 = vpop.f32.mrb[27].mxu0  ;;  %v5594_v12 = vld [vmem:[#allocation5] sm:$0xff] }
 0x2e5   : >> { %4461 = vst.msk [vmem:[#allocation5 + $0x20] sm:$0xff] %vm617_vm2, %v4445_v46  ;;  %v4432_v5 = vld [vmem:[#allocation5 + $0x38] sm:$0xff]  ;;  %v3282_v7 = vadd.f32 %v3266_v55, %v3211_v32 }
 0x2e6   : >> { %v4448_v9 = vadd.f32 %v21861_v47, %v4432_v5  ;;  %v4431_v11 = vld [vmem:[#allocation5 + $0x30] sm:$0xff]  ;;  %3299 = vst.msk [vmem:[#allocation5 + $0x58] sm:$0xff] %vm617_vm2, %v3283_v63 }
 0x2e7   : >> { %v4447_v13 = vadd.f32 %v4431_v11, %v4360_v19  ;;  %3298 = vst.msk [vmem:[#allocation5 + $0x50] sm:$0xff] %vm617_vm2, %v3282_v7  ;;  %v21740_v15 = vpop.f32.mrb[28].mxu1  ;;  %v21870_v16 = vpop.f32.mrb[28].mxu0  ;;  %v5597_v39 = vld [vmem:[#allocation5 + $0x18] sm:$0xff] }
 0x2e8   : >> { %4464 = vst.msk [vmem:[#allocation5 + $0x38] sm:$0xff] %vm617_vm2, %v4448_v9  ;;  %v3285_v18 = vadd.f32 %v21740_v15, %v3269_v3  ;;  %v3221_v20 = vpop.f32.mrb[29].mxu1  ;;  %v4390_v0 = vpop.f32.mrb[29].mxu0  ;;  %v5596_v34 = vld [vmem:[#allocation5 + $0x10] sm:$0xff] }
 0x2e9   : >> { %4463 = vst.msk [vmem:[#allocation5 + $0x30] sm:$0xff] %vm617_vm2, %v4447_v13  ;;  %v4434_v24 = vld [vmem:[#allocation5 + $0x48] sm:$0xff]  ;;  %v3284_v26 = vadd.f32 %v3268_v22, %v3221_v20 }
 0x2ea   : >> { %v4450_v50 = vadd.f32 %v21864_v48, %v4434_v24  ;;  %v4433_v1 = vld [vmem:[#allocation5 + $0x40] sm:$0xff]  ;;  %3301 = vst.msk [vmem:[#allocation5 + $0x68] sm:$0xff] %vm617_vm2, %v3285_v18 }
 0x2eb   : >> { %v4449_v28 = vadd.f32 %v4433_v1, %v4370_v36  ;;  %3300 = vst.msk [vmem:[#allocation5 + $0x60] sm:$0xff] %vm617_vm2, %v3284_v26  ;;  %v21743_v52 = vpop.f32.mrb[30].mxu1  ;;  %v21873_v2 = vpop.f32.mrb[30].mxu0  ;;  %v5599_v42 = vld [vmem:[#allocation5 + $0x28] sm:$0xff] }
 0x2ec   : >> { %4466 = vst.msk [vmem:[#allocation5 + $0x48] sm:$0xff] %vm617_vm2, %v4450_v50  ;;  %v3287_v10 = vadd.f32 %v21743_v52, %v3271_v29  ;;  %v3231_v31 = vpop.f32.mrb[31].mxu1  ;;  %v4400_v41 = vpop.f32.mrb[31].mxu0  ;;  %v5598_v27 = vld [vmem:[#allocation5 + $0x20] sm:$0xff] }
 0x2ed   : >> { %4465 = vst.msk [vmem:[#allocation5 + $0x40] sm:$0xff] %vm617_vm2, %v4449_v28  ;;  %v4436_v45 = vld [vmem:[#allocation5 + $0x58] sm:$0xff]  ;;  %v3286_v56 = vadd.f32 %v3270_v54, %v3231_v31 }
 0x2ee   : >> { %v4452_v51 = vadd.f32 %v21867_v61, %v4436_v45  ;;  %v4435_v53 = vld [vmem:[#allocation5 + $0x50] sm:$0xff]  ;;  %3303 = vst.msk [vmem:[#allocation5 + $0x78] sm:$0xff] %vm617_vm2, %v3287_v10 }
 0x2ef   : >> { %v4451_v58 = vadd.f32 %v4435_v53, %v4380_v57  ;;  %3302 = vst.msk [vmem:[#allocation5 + $0x70] sm:$0xff] %vm617_vm2, %v3286_v56  ;;  %v5601_v9 = vld [vmem:[#allocation5 + $0x38] sm:$0xff] }
 0x2f0   : >> { %4468 = vst.msk [vmem:[#allocation5 + $0x58] sm:$0xff] %vm617_vm2, %v4452_v51  ;;  %v5600_v3 = vld [vmem:[#allocation5 + $0x30] sm:$0xff] }
 0x2f1   : >> { %4467 = vst.msk [vmem:[#allocation5 + $0x50] sm:$0xff] %vm617_vm2, %v4451_v58  ;;  %v4438_v60 = vld [vmem:[#allocation5 + $0x68] sm:$0xff] }
 0x2f2   : >> { %v4454_v62 = vadd.f32 %v21870_v16, %v4438_v60  ;;  %v4437_v33 = vld [vmem:[#allocation5 + $0x60] sm:$0xff] }
 0x2f3   : >> { %v4453_v35 = vadd.f32 %v4437_v33, %v4390_v0  ;;  %v5603_v50 = vld [vmem:[#allocation5 + $0x48] sm:$0xff] }
 0x2f4   : >> { %4470 = vst.msk [vmem:[#allocation5 + $0x68] sm:$0xff] %vm617_vm2, %v4454_v62  ;;  %v5602_v29 = vld [vmem:[#allocation5 + $0x40] sm:$0xff] }
 0x2f5   : >> { %4469 = vst.msk [vmem:[#allocation5 + $0x60] sm:$0xff] %vm617_vm2, %v4453_v35  ;;  %v4440_v37 = vld [vmem:[#allocation5 + $0x78] sm:$0xff] }
 0x2f6   : >> { %v4456_v43 = vadd.f32 %v21873_v2, %v4440_v37  ;;  %v4439_v47 = vld [vmem:[#allocation5 + $0x70] sm:$0xff] }
 0x2f7   : >> { %v4455_v6 = vadd.f32 %v4439_v47, %v4400_v41  ;;  %v5605_v51 = vld [vmem:[#allocation5 + $0x58] sm:$0xff] }
 0x2f8   : >> { %4472 = vst.msk [vmem:[#allocation5 + $0x78] sm:$0xff] %vm617_vm2, %v4456_v43  ;;  %v5604_v62 = vld [vmem:[#allocation5 + $0x50] sm:$0xff] }
 0x2f9   : >> { %4471 = vst.msk [vmem:[#allocation5 + $0x70] sm:$0xff] %vm617_vm2, %v4455_v6 }
 0x36f   : >> { %v21982_v4 = vpop.f32.mrb[32].mxu1  ;;  %v22112_v19 = vpop.f32.mrb[32].mxu0 }
 0x370   : >> { %v5611_v21 = vadd.f32 %v21982_v4, %v5595_v17  ;;  %v5499_v23 = vpop.f32.mrb[33].mxu1  ;;  %v6668_v14 = vpop.f32.mrb[33].mxu0  ;;  %v5607_v17 = vld [vmem:[#allocation5 + $0x68] sm:$0xff] }
 0x371   : >> { %v5610_v25 = vadd.f32 %v5594_v12, %v5499_v23  ;;  %v5606_v12 = vld [vmem:[#allocation5 + $0x60] sm:$0xff] }
 0x372   : >> { %5627 = vst.msk [vmem:[#allocation5 + $0x8] sm:$0xff] %vm617_vm2, %v5611_v21 }
 0x373   : >> { %5626 = vst.msk [vmem:[#allocation5] sm:$0xff] %vm617_vm2, %v5610_v25  ;;  %v21985_v30 = vpop.f32.mrb[34].mxu1  ;;  %v22115_v48 = vpop.f32.mrb[34].mxu0 }
 0x374   : >> { %v5613_v59 = vadd.f32 %v21985_v30, %v5597_v39  ;;  %v5509_v8 = vpop.f32.mrb[35].mxu1  ;;  %v6678_v36 = vpop.f32.mrb[35].mxu0 }
 0x375   : >> { %v5612_v38 = vadd.f32 %v5596_v34, %v5509_v8 }
 0x376   : >> { %5629 = vst.msk [vmem:[#allocation5 + $0x18] sm:$0xff] %vm617_vm2, %v5613_v59 }
 0x377   : >> { %5628 = vst.msk [vmem:[#allocation5 + $0x10] sm:$0xff] %vm617_vm2, %v5612_v38  ;;  %v21988_v40 = vpop.f32.mrb[36].mxu1  ;;  %v22118_v44 = vpop.f32.mrb[36].mxu0  ;;  %v5609_v38 = vld [vmem:[#allocation5 + $0x78] sm:$0xff] }
 0x378   : >> { %v5615_v46 = vadd.f32 %v21988_v40, %v5599_v42  ;;  %v5519_v49 = vpop.f32.mrb[37].mxu1  ;;  %v6688_v61 = vpop.f32.mrb[37].mxu0  ;;  %v5608_v42 = vld [vmem:[#allocation5 + $0x70] sm:$0xff] }
 0x379   : >> { %v6764_v63 = vld [vmem:[#allocation5 + $0x8] sm:$0xff]  ;;  %v5614_v32 = vadd.f32 %v5598_v27, %v5519_v49 }
 0x37a   : >> { %v6780_v55 = vadd.f32 %v22112_v19, %v6764_v63  ;;  %v6763_v57 = vld [vmem:[#allocation5] sm:$0xff]  ;;  %5631 = vst.msk [vmem:[#allocation5 + $0x28] sm:$0xff] %vm617_vm2, %v5615_v46 }
 0x37b   : >> { %v6779_v5 = vadd.f32 %v6763_v57, %v6668_v14  ;;  %5630 = vst.msk [vmem:[#allocation5 + $0x20] sm:$0xff] %vm617_vm2, %v5614_v32  ;;  %v21991_v7 = vpop.f32.mrb[38].mxu1  ;;  %v22121_v11 = vpop.f32.mrb[38].mxu0 }
 0x37c   : >> { %6796 = vst.msk [vmem:[#allocation5 + $0x8] sm:$0xff] %vm617_vm2, %v6780_v55  ;;  %v5617_v13 = vadd.f32 %v21991_v7, %v5601_v9  ;;  %v5529_v15 = vpop.f32.mrb[39].mxu1  ;;  %v6698_v16 = vpop.f32.mrb[39].mxu0  ;;  %v18918_v55 = vld [vmem:[%s30448_s2] ss:$0 sm:$0xff] }
 0x37d   : >> { %6795 = vst.msk [vmem:[#allocation5] sm:$0xff] %vm617_vm2, %v6779_v5  ;;  %v6766_v18 = vld [vmem:[#allocation5 + $0x18] sm:$0xff]  ;;  %v5616_v20 = vadd.f32 %v5600_v3, %v5529_v15 }
 0x37e   : >> { %v6782_v22 = vadd.f32 %v22115_v48, %v6766_v18  ;;  %v6765_v0 = vld [vmem:[#allocation5 + $0x10] sm:$0xff]  ;;  %5633 = vst.msk [vmem:[#allocation5 + $0x38] sm:$0xff] %vm617_vm2, %v5617_v13 }
 0x37f   : >> { %v6781_v24 = vadd.f32 %v6765_v0, %v6678_v36  ;;  %5632 = vst.msk [vmem:[#allocation5 + $0x30] sm:$0xff] %vm617_vm2, %v5616_v20  ;;  %v21994_v26 = vpop.f32.mrb[40].mxu1  ;;  %v22124_v1 = vpop.f32.mrb[40].mxu0 }
 0x380   : >> { %6798 = vst.msk [vmem:[#allocation5 + $0x18] sm:$0xff] %vm617_vm2, %v6782_v22  ;;  %v5619_v28 = vadd.f32 %v21994_v26, %v5603_v50  ;;  %v5539_v52 = vpop.f32.mrb[41].mxu1  ;;  %v6708_v2 = vpop.f32.mrb[41].mxu0 }
 0x381   : >> { %6797 = vst.msk [vmem:[#allocation5 + $0x10] sm:$0xff] %vm617_vm2, %v6781_v24  ;;  %v6768_v10 = vld [vmem:[#allocation5 + $0x28] sm:$0xff]  ;;  %v5618_v31 = vadd.f32 %v5602_v29, %v5539_v52 }
 0x382   : >> { %v6784_v54 = vadd.f32 %v22118_v44, %v6768_v10  ;;  %v6767_v41 = vld [vmem:[#allocation5 + $0x20] sm:$0xff]  ;;  %5635 = vst.msk [vmem:[#allocation5 + $0x48] sm:$0xff] %vm617_vm2, %v5619_v28 }
 0x383   : >> { %v6783_v45 = vadd.f32 %v6767_v41, %v6688_v61  ;;  %5634 = vst.msk [vmem:[#allocation5 + $0x40] sm:$0xff] %vm617_vm2, %v5618_v31  ;;  %v21997_v56 = vpop.f32.mrb[42].mxu1  ;;  %v22127_v53 = vpop.f32.mrb[42].mxu0 }
 0x384   : >> { %6800 = vst.msk [vmem:[#allocation5 + $0x28] sm:$0xff] %vm617_vm2, %v6784_v54  ;;  %v5621_v58 = vadd.f32 %v21997_v56, %v5605_v51  ;;  %v5549_v60 = vpop.f32.mrb[43].mxu1  ;;  %v6718_v33 = vpop.f32.mrb[43].mxu0  ;;  %v6811_v39 = vld [vmem:[#allocation5] ss:$2 sm:$0xff] }
 0x385   : >> { %6799 = vst.msk [vmem:[#allocation5 + $0x20] sm:$0xff] %vm617_vm2, %v6783_v45  ;;  %v6770_v35 = vld [vmem:[#allocation5 + $0x38] sm:$0xff]  ;;  %v5620_v37 = vadd.f32 %v5604_v62, %v5549_v60  ;;  %v6827_v48 = vld [vmem:[#allocation5 + $0x1] ss:$2 sm:$0xff] }
 0x386   : >> { %v6786_v43 = vadd.f32 %v22121_v11, %v6770_v35  ;;  %v6769_v47 = vld [vmem:[#allocation5 + $0x30] sm:$0xff]  ;;  %5637 = vst.msk [vmem:[#allocation5 + $0x58] sm:$0xff] %vm617_vm2, %v5621_v58  ;;  %v6842_v63 = vmax.f32 %v6811_v39, %v6827_v48 }
 0x387   : >> { %v6785_v6 = vadd.f32 %v6769_v47, %v6698_v16  ;;  %5636 = vst.msk [vmem:[#allocation5 + $0x50] sm:$0xff] %vm617_vm2, %v5620_v37  ;;  %v22000_v4 = vpop.f32.mrb[44].mxu1  ;;  %v22130_v19 = vpop.f32.mrb[44].mxu0 }
 0x388   : >> { %6802 = vst.msk [vmem:[#allocation5 + $0x38] sm:$0xff] %vm617_vm2, %v6786_v43  ;;  %v5623_v21 = vadd.f32 %v22000_v4, %v5607_v17  ;;  %v5559_v23 = vpop.f32.mrb[45].mxu1  ;;  %v6728_v14 = vpop.f32.mrb[45].mxu0  ;;  %v6813_v7 = vld [vmem:[#allocation5 + $0x10] ss:$2 sm:$0xff] }
 0x389   : >> { %6801 = vst.msk [vmem:[#allocation5 + $0x30] sm:$0xff] %vm617_vm2, %v6785_v6  ;;  %v6772_v25 = vld [vmem:[#allocation5 + $0x48] sm:$0xff]  ;;  %v5622_v30 = vadd.f32 %v5606_v12, %v5559_v23  ;;  %v6829_v9 = vld [vmem:[#allocation5 + $0x11] ss:$2 sm:$0xff] }
 0x38a   : >> { %v6788_v59 = vadd.f32 %v22124_v1, %v6772_v25  ;;  %v6771_v8 = vld [vmem:[#allocation5 + $0x40] sm:$0xff]  ;;  %5639 = vst.msk [vmem:[#allocation5 + $0x68] sm:$0xff] %vm617_vm2, %v5623_v21  ;;  %v6843_v20 = vmax.f32 %v6813_v7, %v6829_v9 }
 0x38b   : >> { %v6787_v34 = vadd.f32 %v6771_v8, %v6708_v2  ;;  %5638 = vst.msk [vmem:[#allocation5 + $0x60] sm:$0xff] %vm617_vm2, %v5622_v30  ;;  %v22003_v36 = vpop.f32.mrb[46].mxu1  ;;  %v22133_v40 = vpop.f32.mrb[46].mxu0 }
 0x38c   : >> { %v6815_v44 = vld [vmem:[#allocation5 + $0x20] ss:$2 sm:$0xff]  ;;  %v6831_v46 = vld [vmem:[#allocation5 + $0x21] ss:$2 sm:$0xff]  ;;  %6804 = vst.msk [vmem:[#allocation5 + $0x48] sm:$0xff] %vm617_vm2, %v6788_v59  ;;  %v5625_v49 = vadd.f32 %v22003_v36, %v5609_v38  ;;  %v5569_v27 = vpop.f32.mrb[47].mxu1 }
 0x38d   : >> { %v6738_v61 = vpop.f32.mrb[47].mxu0  ;;  %v6844_v32 = vmax.f32 %v6815_v44, %v6831_v46  ;;  %6803 = vst.msk [vmem:[#allocation5 + $0x40] sm:$0xff] %vm617_vm2, %v6787_v34  ;;  %v6774_v57 = vld [vmem:[#allocation5 + $0x58] sm:$0xff]  ;;  %v5624_v5 = vadd.f32 %v5608_v42, %v5569_v27 }
 0x38e   : >> { %v6790_v11 = vadd.f32 %v22127_v53, %v6774_v57  ;;  %v6773_v13 = vld [vmem:[#allocation5 + $0x50] sm:$0xff]  ;;  %5641 = vst.msk [vmem:[#allocation5 + $0x78] sm:$0xff] %vm617_vm2, %v5625_v49 }
 0x38f   : >> { %v6850_v15 = vmax.f32 %v6842_v63, %v6844_v32  ;;  %v6789_v3 = vadd.f32 %v6773_v13, %v6718_v33  ;;  %5640 = vst.msk [vmem:[#allocation5 + $0x70] sm:$0xff] %vm617_vm2, %v5624_v5 }
 0x390   : >> { %v6817_v16 = vld [vmem:[#allocation5 + $0x30] ss:$2 sm:$0xff]  ;;  %v6833_v18 = vld [vmem:[#allocation5 + $0x31] ss:$2 sm:$0xff]  ;;  %6806 = vst.msk [vmem:[#allocation5 + $0x58] sm:$0xff] %vm617_vm2, %v6790_v11 }
 0x391   : >> { %v6861_v22 = vadd.f32 %v18918_v55, %v6850_v15  ;;  %v6845_v0 = vmax.f32 %v6817_v16, %v6833_v18  ;;  %6805 = vst.msk [vmem:[#allocation5 + $0x50] sm:$0xff] %vm617_vm2, %v6789_v3  ;;  %v6776_v24 = vld [vmem:[#allocation5 + $0x68] sm:$0xff] }
 0x392   : >> { %v6792_v26 = vadd.f32 %v22130_v19, %v6776_v24  ;;  %v6775_v50 = vld [vmem:[#allocation5 + $0x60] sm:$0xff] }
 0x393   : >> { %18921 = vst.msk [vmem:[%s27794_s12 + $0x48] sm:$0xff] %vm617_vm2, %v6861_v22  ;;  %v6851_v1 = vmax.f32 %v6843_v20, %v6845_v0  ;;  %v6791_v28 = vadd.f32 %v6775_v50, %v6728_v14 }
 0x394   : >> { %6808 = vst.msk [vmem:[#allocation5 + $0x68] sm:$0xff] %vm617_vm2, %v6792_v26  ;;  %v6819_v54 = vld [vmem:[#allocation5 + $0x40] ss:$2 sm:$0xff]  ;;  %v6835_v41 = vld [vmem:[#allocation5 + $0x41] ss:$2 sm:$0xff] }
 0x395   : >> { %v6862_v52 = vadd.f32 %v18918_v55, %v6851_v1  ;;  %6807 = vst.msk [vmem:[#allocation5 + $0x60] sm:$0xff] %vm617_vm2, %v6791_v28  ;;  %v6778_v29 = vld [vmem:[#allocation5 + $0x78] sm:$0xff]  ;;  %v6846_v51 = vmax.f32 %v6819_v54, %v6835_v41 }
 0x396   : >> { %v6794_v2 = vadd.f32 %v22133_v40, %v6778_v29  ;;  %v6777_v10 = vld [vmem:[#allocation5 + $0x70] sm:$0xff] }
 0x397   : >> { %18922 = vst.msk [vmem:[%s27794_s12 + $0x50] sm:$0xff] %vm617_vm2, %v6862_v52  ;;  %v6793_v31 = vadd.f32 %v6777_v10, %v6738_v61 }
 0x398   : >> { %6810 = vst.msk [vmem:[#allocation5 + $0x78] sm:$0xff] %vm617_vm2, %v6794_v2  ;;  %v6821_v58 = vld [vmem:[#allocation5 + $0x50] ss:$2 sm:$0xff]  ;;  %v6837_v60 = vld [vmem:[#allocation5 + $0x51] ss:$2 sm:$0xff] }
 0x399   : >> { %6809 = vst.msk [vmem:[#allocation5 + $0x70] sm:$0xff] %vm617_vm2, %v6793_v31  ;;  %v6847_v37 = vmax.f32 %v6821_v58, %v6837_v60 }
 0x39c   : >> { %v6823_v45 = vld [vmem:[#allocation5 + $0x60] ss:$2 sm:$0xff]  ;;  %v6839_v56 = vld [vmem:[#allocation5 + $0x61] ss:$2 sm:$0xff] }
 0x39d   : >> { %v6848_v53 = vmax.f32 %v6823_v45, %v6839_v56 }
 0x39f   : >> { %v6852_v62 = vmax.f32 %v6846_v51, %v6848_v53 }
 0x3a0   : >> { %v6825_v33 = vld [vmem:[#allocation5 + $0x70] ss:$2 sm:$0xff]  ;;  %v6841_v35 = vld [vmem:[#allocation5 + $0x71] ss:$2 sm:$0xff] }
 0x3a1   : >> { %v6863_v43 = vadd.f32 %v18918_v55, %v6852_v62  ;;  %v6849_v47 = vmax.f32 %v6825_v33, %v6841_v35  ;;  %996 = sbr.rel (!%p994_p6) target bundleno = 289 (0x121), region = 267 }
 0x3a3   : >> { %18923 = vst.msk [vmem:[%s27794_s12 + $0x68] sm:$0xff] %vm617_vm2, %v6863_v43  ;;  %v6853_v6 = vmax.f32 %v6847_v37, %v6849_v47 }
 0x3a5   : >> { %v6864_v4 = vadd.f32 %v18918_v55, %v6853_v6 }
 0x3a7   : >> { %18924 = vst.msk [vmem:[%s27794_s12 + $0x70] sm:$0xff] %vm617_vm2, %v6864_v4 }
 0x3a8 LB: >> { %v18927_v17 = vld [vmem:[%s30449_s3 + $0x20] sm:$0xff]  ;;  %v18928_v19 = vld [vmem:[%s30449_s3 + $0x28] sm:$0xff]  ;;  %v18929_v14 = vld [vmem:[%s30449_s3 + $0x30] sm:$0xff]  ;;  %s20101_s14 = sshll.u32 %s25379_s13, 8  ;;  %s25379_s13 = sphi %s27811_s13, %s6878_s13  }
 0x3a9   : >> { %v18963_v21 = vld [vmem:[%s30449_s3 + $0x40] sm:$0xff]  ;;  %v23757_v23 = vpack.c.bf16 %v18928_v19, %v18927_v17  ;;  %v18964_v12 = vld [vmem:[%s30449_s3 + $0x48] sm:$0xff]  ;;  %v18930_v25 = vld [vmem:[%s30449_s3 + $0x38] sm:$0xff]  ;;  %s27858_s1 = scalar_lea.vmem [#allocation3], %s20101_s14 }
 0x3aa   : >> { %v27834_v30 = vpack.c.bf16 %v18964_v12, %v18963_v21  ;;  %v23761_v39 = vpack.c.bf16 %v18930_v25, %v18929_v14  ;;  %v18965_v48 = vld [vmem:[%s30449_s3 + $0x50] sm:$0xff]  ;;  %v18966_v59 = vld [vmem:[%s30449_s3 + $0x58] sm:$0xff]  ;;  %v6898_v8 = vld [vmem:[%s30449_s3] sm:$0xff] }
 0x3ab   : >> { %23758 = vmatprep.subr.bf16.mxu1 %v23757_v23  ;;  %v27846_v34 = vpack.c.bf16 %v18966_v59, %v18965_v48  ;;  %v6899_v36 = vld [vmem:[%s30449_s3 + $0x8] sm:$0xff]  ;;  %v18983_v38 = vld [vmem:[%s30449_s3 + $0x60] sm:$0xff]  ;;  %v18985_v63 = vld [vmem:[%s30449_s3 + $0x70] sm:$0xff] }
 0x3ac   : >> { %v18984_v40 = vld [vmem:[%s30449_s3 + $0x68] sm:$0xff]  ;;  %23774 = vmatprep.subr.bf16.mxu0 %v27834_v30  ;;  %23760 = vmatpush3.bf16.msra.mxu1 %v23757_v23  ;;  %v23765_v46 = vpack.c.bf16 %v6899_v36, %v6898_v8  ;;  %v18986_v32 = vld [vmem:[%s30449_s3 + $0x78] sm:$0xff]  ;;  %v6900_v7 = vld [vmem:[%s30449_s3 + $0x10] sm:$0xff] }
 0x3ad   : >> { %23776 = vmatpush3.bf16.msra.mxu0 %v27834_v30  ;;  %23762 = vmatprep.subr.bf16.mxu1 %v23761_v39  ;;  %v23781_v49 = vpack.c.bf16 %v18984_v40, %v18983_v38  ;;  %v23785_v5 = vpack.c.bf16 %v18986_v32, %v18985_v63  ;;  %v6901_v9 = vld [vmem:[%s30449_s3 + $0x18] sm:$0xff]  ;;  %v19003_v18 = vld [vmem:[%s30449_s3 + $0x80] sm:$0xff]  ;;  %v19004_v20 = vld [vmem:[%s30449_s3 + $0x88] sm:$0xff] }
 0x3ae   : >> { %v6902_v42 = vld [vmem:[%s27858_s1 + $0x7] sm:$0xff]  ;;  %23778 = vmatprep.subr.bf16.mxu0 %v27846_v34  ;;  %v6903_v27 = vld [vmem:[%s27858_s1 + $0xf] sm:$0xff]  ;;  %v23769_v13 = vpack.c.bf16 %v6901_v9, %v6900_v7  ;;  %v23789_v0 = vpack.c.bf16 %v19004_v20, %v19003_v18  ;;  %v19006_v10 = vld [vmem:[%s30449_s3 + $0x98] sm:$0xff] }
 0x3af   : >> { %v7309_v44 = vld [vmem:[%s27858_s1 + $0x8] sm:$0xff]  ;;  %22142 = vmatprep.mubr.msk.f32.mxu1 %vm617_vm2, %v6902_v42  ;;  %v7310_v61 = vld [vmem:[%s27858_s1 + $0x10] sm:$0xff]  ;;  %v19243_v51 = vld [vmem:[%s30449_s3 + $0x160] sm:$0xff] }
 0x3b0   : >> { %22206 = vmatprep.mubr.msk.f32.mxu0 %vm617_vm2, %v7309_v44  ;;  %23764 = vmatpush3.bf16.msra.mxu1 %v23761_v39  ;;  %v27876_v55 = vld [vmem:[%s27858_s1 + $0x27] sm:$0xff]  ;;  %v27890_v11 = vld [vmem:[%s27858_s1 + $0x2f] sm:$0xff]  ;;  %v19246_v32 = vld [vmem:[%s30449_s3 + $0x178] sm:$0xff] }
 0x3b1   : >> { %23780 = vmatpush3.bf16.msra.mxu0 %v27846_v34  ;;  %23766 = vmatprep.subr.bf16.mxu1 %v23765_v46  ;;  %v27879_v57 = vld [vmem:[%s27858_s1 + $0x28] sm:$0xff]  ;;  %v27897_v15 = vld [vmem:[%s27858_s1 + $0x30] sm:$0xff]  ;;  %v19061_v39 = vld [vmem:[%s30449_s3 + $0xc0] sm:$0xff] }
 0x3b2   : >> { %23782 = vmatprep.subr.bf16.mxu0 %v23781_v49  ;;  %v27900_v3 = vld [vmem:[%s27858_s1 + $0x47] sm:$0xff]  ;;  %v27918_v22 = vld [vmem:[%s27858_s1 + $0x4f] sm:$0xff] }
 0x3b3   : >> { %22143 = vmatmul.mubr.msk.f32.vlgmr.msra.gmra.mrb[0].mxu1 %vm617_vm2, %v6903_v27  ;;  %v27903_v16 = vld [vmem:[%s27858_s1 + $0x48] sm:$0xff]  ;;  %v27923_v24 = vld [vmem:[%s27858_s1 + $0x50] sm:$0xff]  ;;  %v19223_v20 = vld [vmem:[%s30449_s3 + $0x140] sm:$0xff] }
 0x3b4   : >> { %22207 = vmatmul.mubr.msk.f32.vlgmr.msra.gmra.mrb[0].mxu0 %vm617_vm2, %v7310_v61  ;;  %23768 = vmatpush3.bf16.msra.mxu1 %v23765_v46  ;;  %v27926_v26 = vld [vmem:[%s27858_s1 + $0x67] sm:$0xff]  ;;  %v27939_v1 = vld [vmem:[%s27858_s1 + $0x6f] sm:$0xff] }
 0x3b5   : >> { %22145 = vmatprep.mubr.msk.f32.mxu1 %vm617_vm2, %v27876_v55  ;;  %22209 = vmatprep.mubr.msk.f32.mxu0 %vm617_vm2, %v27879_v57  ;;  %v27929_v50 = vld [vmem:[%s27858_s1 + $0x68] sm:$0xff]  ;;  %v27944_v28 = vld [vmem:[%s27858_s1 + $0x70] sm:$0xff] }
 0x3b6   : >> { %23784 = vmatpush3.bf16.msra.mxu0 %v23781_v49  ;;  %23770 = vmatprep.subr.bf16.mxu1 %v23769_v13  ;;  %v27947_v52 = vld [vmem:[%s27858_s1 + $0x87] sm:$0xff]  ;;  %v19005_v2 = vld [vmem:[%s30449_s3 + $0x90] sm:$0xff] }
 0x3b7   : >> { %22146 = vmatmul.mubr.msk.f32.gmra.mrb[2].mxu1 %vm617_vm2, %v27890_v11  ;;  %23786 = vmatprep.subr.bf16.mxu0 %v23785_v5  ;;  %v7539_v29 = vld [vmem:[%s27858_s1 + $0x9] sm:$0xff]  ;;  %v7540_v54 = vld [vmem:[%s27858_s1 + $0x11] sm:$0xff]  ;;  %v23793_v56 = vpack.c.bf16 %v19006_v10, %v19005_v2 }
 0x3b8   : >> { %22210 = vmatmul.mubr.msk.f32.gmra.mrb[2].mxu0 %vm617_vm2, %v27897_v15  ;;  %22148 = vmatprep.mubr.msk.f32.mxu1 %vm617_vm2, %v27900_v3  ;;  %v27963_v31 = vld [vmem:[%s27858_s1 + $0x8f] sm:$0xff]  ;;  %v27968_v41 = vld [vmem:[%s27858_s1 + $0xa7] sm:$0xff] }
 0x3b9   : >> { %22212 = vmatprep.mubr.msk.f32.mxu0 %vm617_vm2, %v27903_v16  ;;  %23772 = vmatpush3.bf16.msra.mxu1 %v23769_v13  ;;  %v27971_v45 = vld [vmem:[%s27858_s1 + $0x29] sm:$0xff]  ;;  %v27990_v60 = vld [vmem:[%s27858_s1 + $0x31] sm:$0xff] }
 0x3ba   : >> { %23788 = vmatpush3.bf16.msra.mxu0 %v23785_v5  ;;  %24683 = vmatprep.subr.bf16.mxu1 %v27834_v30  ;;  %v19244_v53 = vld [vmem:[%s30449_s3 + $0x168] sm:$0xff]  ;;  %v28012_v43 = vld [vmem:[%s27858_s1 + $0x51] sm:$0xff] }
 0x3bb   : >> { %22149 = vmatmul.mubr.msk.f32.gmra.mrb[4].mxu1 %vm617_vm2, %v27918_v22  ;;  %23790 = vmatprep.subr.bf16.mxu0 %v23789_v0  ;;  %v27985_v58 = vld [vmem:[%s27858_s1 + $0xaf] sm:$0xff]  ;;  %v27993_v62 = vld [vmem:[%s27858_s1 + $0xc7] sm:$0xff]  ;;  %v27998_v35 = vpack.c.bf16 %v19244_v53, %v19243_v51 }
 0x3bc   : >> { %22213 = vmatmul.mubr.msk.f32.gmra.mrb[4].mxu0 %vm617_vm2, %v27923_v24  ;;  %22151 = vmatprep.mubr.msk.f32.mxu1 %vm617_vm2, %v27926_v26  ;;  %v27996_v33 = vld [vmem:[%s27858_s1 + $0x49] sm:$0xff]  ;;  %v28033_v17 = vld [vmem:[%s27858_s1 + $0x71] sm:$0xff] }
 0x3bd   : >> { %22215 = vmatprep.mubr.msk.f32.mxu0 %vm617_vm2, %v27929_v50  ;;  %v28007_v37 = vld [vmem:[%s27858_s1 + $0xcf] sm:$0xff]  ;;  %v28015_v47 = vld [vmem:[%s27858_s1 + $0xe7] sm:$0xff] }
 0x3be   : >> { %v28018_v6 = vld [vmem:[%s27858_s1 + $0x69] sm:$0xff]  ;;  %v28048_v12 = vld [vmem:[%s27858_s1 + $0x91] sm:$0xff] }
 0x3bf   : >> { %22152 = vmatmul.mubr.msk.f32.gmra.mrb[6].mxu1 %vm617_vm2, %v27939_v1  ;;  %v28028_v4 = vld [vmem:[%s27858_s1 + $0xef] sm:$0xff]  ;;  %v6882_v19 = vld [vmem:[%s27858_s1 + $0x6] sm:$0xff] }
 0x3c0   : >> { %22216 = vmatmul.mubr.msk.f32.gmra.mrb[6].mxu0 %vm617_vm2, %v27944_v28  ;;  %22154 = vmatprep.mubr.msk.f32.mxu1 %vm617_vm2, %v27947_v52  ;;  %v28037_v21 = vld [vmem:[%s27858_s1 + $0x89] sm:$0xff]  ;;  %v28074_v8 = vld [vmem:[%s27858_s1 + $0xb1] sm:$0xff] }
 0x3c1   : >> { %22238 = vmatprep.mubr.msk.f32.mxu0 %vm617_vm2, %v7539_v29  ;;  %v6883_v23 = vld [vmem:[%s27858_s1 + $0xe] sm:$0xff]  ;;  %v28051_v14 = vld [vmem:[%s27858_s1 + $0x26] sm:$0xff] }
 0x3c2   : >> { %v28054_v25 = vld [vmem:[%s27858_s1 + $0xa9] sm:$0xff]  ;;  %v28097_v42 = vld [vmem:[%s27858_s1 + $0xd1] sm:$0xff] }
 0x3c3   : >> { %22155 = vmatmul.mubr.msk.f32.gmra.mrb[8].mxu1 %vm617_vm2, %v27963_v31  ;;  %v19062_v48 = vld [vmem:[%s30449_s3 + $0xc8] sm:$0xff]  ;;  %v19245_v63 = vld [vmem:[%s30449_s3 + $0x170] sm:$0xff] }
 0x3c4   : >> { %22239 = vmatmul.mubr.msk.f32.vlgmr.msra.gmra.mrb[0].mxu0 %vm617_vm2, %v7540_v54  ;;  %22157 = vmatprep.mubr.msk.f32.mxu1 %vm617_vm2, %v27968_v41  ;;  %v28067_v59 = vld [vmem:[%s27858_s1 + $0x2e] sm:$0xff]  ;;  %v28077_v36 = vld [vmem:[%s27858_s1 + $0x46] sm:$0xff]  ;;  %v28083_v40 = vpack.c.bf16 %v19062_v48, %v19061_v39  ;;  %v23841_v18 = vpack.c.bf16 %v19246_v32, %v19245_v63  ;;  %v19064_v32 = vld [vmem:[%s30449_s3 + $0xd8] sm:$0xff] }
 0x3c5   : >> { %22241 = vmatprep.mubr.msk.f32.mxu0 %vm617_vm2, %v27971_v45  ;;  %23792 = vmatpush3.bf16.msra.mxu0 %v23789_v0  ;;  %v28080_v38 = vld [vmem:[%s27858_s1 + $0xc9] sm:$0xff]  ;;  %v7770_v7 = vld [vmem:[%s27858_s1 + $0x12] sm:$0xff] }
 0x3c6   : >> { %23794 = vmatprep.subr.bf16.mxu0 %v23793_v56  ;;  %v28100_v44 = vld [vmem:[%s27858_s1 + $0x66] sm:$0xff]  ;;  %v28114_v49 = vld [vmem:[%s27858_s1 + $0x6e] sm:$0xff] }
 0x3c7   : >> { %22158 = vmatmul.mubr.msk.f32.gmra.mrb[10].mxu1 %vm617_vm2, %v27985_v58  ;;  %v28104_v46 = vld [vmem:[%s27858_s1 + $0xe9] sm:$0xff]  ;;  %v28165_v2 = vld [vmem:[%s27858_s1 + $0x32] sm:$0xff] }
 0x3c8   : >> { %22242 = vmatmul.mubr.msk.f32.gmra.mrb[2].mxu0 %vm617_vm2, %v27990_v60  ;;  %22160 = vmatprep.mubr.msk.f32.mxu1 %vm617_vm2, %v27993_v62  ;;  %v28122_v27 = vld [vmem:[%s27858_s1 + $0x86] sm:$0xff]  ;;  %v28138_v5 = vld [vmem:[%s27858_s1 + $0x8e] sm:$0xff]  ;;  %30506 = vst [vmem:[#allocation17_spill] sm:$0xff] %v28165_v2 }
 0x3c9   : >> { %22244 = vmatprep.mubr.msk.f32.mxu0 %vm617_vm2, %v27996_v33  ;;  %23796 = vmatpush3.bf16.msra.mxu0 %v23793_v56  ;;  %v7769_v61 = vld [vmem:[%s27858_s1 + $0xa] sm:$0xff]  ;;  %v28188_v53 = vld [vmem:[%s27858_s1 + $0x52] sm:$0xff] }
 0x3ca   : >> { %23838 = vmatprep.subr.bf16.mxu0 %v27998_v35  ;;  %v28143_v9 = vld [vmem:[%s27858_s1 + $0xa6] sm:$0xff]  ;;  %v28160_v29 = vld [vmem:[%s27858_s1 + $0xae] sm:$0xff]  ;;  %30508 = vst [vmem:[#allocation19_spill] sm:$0xff] %v28188_v53 }
 0x3cb   : >> { %22161 = vmatmul.mubr.msk.f32.gmra.mrb[12].mxu1 %vm617_vm2, %v28007_v37  ;;  %v28146_v13 = vld [vmem:[%s27858_s1 + $0x2a] sm:$0xff]  ;;  %v28209_v39 = vld [vmem:[%s27858_s1 + $0x72] sm:$0xff] }
 0x3cc   : >> { %22245 = vmatmul.mubr.msk.f32.gmra.mrb[4].mxu0 %vm617_vm2, %v28012_v43  ;;  %22163 = vmatprep.mubr.msk.f32.mxu1 %vm617_vm2, %v28015_v47  ;;  %30505 = vst [vmem:[#allocation16_spill] sm:$0xff] %v28146_v13  ;;  %v19224_v0 = vld [vmem:[%s30449_s3 + $0x148] sm:$0xff]  ;;  %30510 = vst [vmem:[#allocation21_spill] sm:$0xff] %v28209_v39  ;;  %v19063_v63 = vld [vmem:[%s30449_s3 + $0xd0] sm:$0xff] }
 0x3cd   : >> { %22247 = vmatprep.mubr.msk.f32.mxu0 %vm617_vm2, %v28018_v6  ;;  %v28168_v10 = vld [vmem:[%s27858_s1 + $0xc6] sm:$0xff]  ;;  %v28174_v56 = vpack.c.bf16 %v19224_v0, %v19223_v20  ;;  %v28183_v51 = vld [vmem:[%s27858_s1 + $0xce] sm:$0xff] }
 0x3ce   : >> { %v28172_v54 = vld [vmem:[%s27858_s1 + $0x4a] sm:$0xff] }
 0x3cf   : >> { %22164 = vmatmul.mubr.msk.f32.gmra.mrb[14].mxu1 %vm617_vm2, %v28028_v4  ;;  %30507 = vst [vmem:[#allocation18_spill] sm:$0xff] %v28172_v54  ;;  %v28212_v48 = vld [vmem:[%s27858_s1 + $0x88] sm:$0xff] }
 0x3d0   : >> { %22248 = vmatmul.mubr.msk.f32.gmra.mrb[6].mxu0 %vm617_vm2, %v28033_v17  ;;  %22174 = vmatprep.mubr.msk.f32.mxu1 %vm617_vm2, %v6882_v19  ;;  %v28194_v19 = vld [vmem:[%s27858_s1 + $0x6a] sm:$0xff] }
 0x3d1   : >> { %22250 = vmatprep.mubr.msk.f32.mxu0 %vm617_vm2, %v28037_v21  ;;  %30509 = vst [vmem:[#allocation20_spill] sm:$0xff] %v28194_v19  ;;  %v28238_v20 = vld [vmem:[%s27858_s1 + $0xa8] sm:$0xff] }
 0x3d2   : >> { %v28241_v0 = vld [vmem:[%s27858_s1 + $0xaa] sm:$0xff] }
 0x3d3   : >> { %22175 = vmatmul.mubr.msk.f32.vlgmr.msra.gmra.mrb[0].mxu1 %vm617_vm2, %v6883_v23  ;;  %v28204_v23 = vld [vmem:[%s27858_s1 + $0xee] sm:$0xff]  ;;  %30513 = vst [vmem:[#allocation24_spill] sm:$0xff] %v28241_v0 }
 0x3d4   : >> { %22251 = vmatmul.mubr.msk.f32.gmra.mrb[8].mxu0 %vm617_vm2, %v28048_v12  ;;  %24685 = vmatpush3.bf16.msra.mxu1 %v27834_v30  ;;  %v28092_v30 = vld [vmem:[%s27858_s1 + $0x4e] sm:$0xff] }
 0x3d5   : >> { %22177 = vmatprep.mubr.msk.f32.mxu1 %vm617_vm2, %v28051_v14  ;;  %22253 = vmatprep.mubr.msk.f32.mxu0 %vm617_vm2, %v28054_v25 }
 0x3d6   : >> { %24684 = vmatprep.subr.bf16.mxu1 %v27846_v34 }
 0x3d7   : >> { %22178 = vmatmul.mubr.msk.f32.gmra.mrb[2].mxu1 %vm617_vm2, %v28067_v59 }
 0x3d8   : >> { %22254 = vmatmul.mubr.msk.f32.gmra.mrb[10].mxu0 %vm617_vm2, %v28074_v8  ;;  %22180 = vmatprep.mubr.msk.f32.mxu1 %vm617_vm2, %v28077_v36 }
 0x3d9   : >> { %22256 = vmatprep.mubr.msk.f32.mxu0 %vm617_vm2, %v28080_v38  ;;  %24686 = vmatpush3.bf16.msra.mxu1 %v27846_v34  ;;  %v28119_v34 = vld [vmem:[%s27858_s1 + $0xf1] sm:$0xff] }
 0x3da   : >> { %23798 = vmatprep.subr.bf16.mxu1 %v28083_v40  ;;  %30504 = vst [vmem:[#allocation15_spill] sm:$0xff] %v28119_v34 }
 0x3db   : >> { %22181 = vmatmul.mubr.msk.f32.gmra.mrb[4].mxu1 %vm617_vm2, %v28092_v30 }
 0x3dc   : >> { %22257 = vmatmul.mubr.msk.f32.gmra.mrb[12].mxu0 %vm617_vm2, %v28097_v42  ;;  %22183 = vmatprep.mubr.msk.f32.mxu1 %vm617_vm2, %v28100_v44 }
 0x3dd   : >> { %22259 = vmatprep.mubr.msk.f32.mxu0 %vm617_vm2, %v28104_v46 }
 0x3df   : >> { %22184 = vmatmul.mubr.msk.f32.gmra.mrb[6].mxu1 %vm617_vm2, %v28114_v49 }
 0x3e0   : >> { %22260 = vmatmul.mubr.msk.f32.gmra.mrb[14].mxu0 %vm617_vm2, %v28119_v34  ;;  %22186 = vmatprep.mubr.msk.f32.mxu1 %vm617_vm2, %v28122_v27 }
 0x3e1   : >> { %22270 = vmatprep.mubr.msk.f32.mxu0 %vm617_vm2, %v7769_v61  ;;  %v28215_v61 = vld [vmem:[%s27858_s1 + $0x8a] sm:$0xff] }
 0x3e2   : >> { %30511 = vst [vmem:[#allocation22_spill] sm:$0xff] %v28215_v61 }
 0x3e3   : >> { %22187 = vmatmul.mubr.msk.f32.gmra.mrb[8].mxu1 %vm617_vm2, %v28138_v5 }
 0x3e4   : >> { %22271 = vmatmul.mubr.msk.f32.vlgmr.msra.gmra.mrb[0].mxu0 %vm617_vm2, %v7770_v7  ;;  %22189 = vmatprep.mubr.msk.f32.mxu1 %vm617_vm2, %v28143_v9  ;;  %v28230_v7 = vld [vmem:[%s27858_s1 + $0x90] sm:$0xff] }
 0x3e5   : >> { %22273 = vmatprep.mubr.msk.f32.mxu0 %vm617_vm2, %v28146_v13  ;;  %23840 = vmatpush3.bf16.msra.mxu0 %v27998_v35  ;;  %v28191_v35 = vld [vmem:[%s27858_s1 + $0xe6] sm:$0xff] }
 0x3e6   : >> { %23842 = vmatprep.subr.bf16.mxu0 %v23841_v18 }
 0x3e7   : >> { %22190 = vmatmul.mubr.msk.f32.gmra.mrb[10].mxu1 %vm617_vm2, %v28160_v29 }
 0x3e8   : >> { %22274 = vmatmul.mubr.msk.f32.gmra.mrb[2].mxu0 %vm617_vm2, %v28165_v2  ;;  %22192 = vmatprep.mubr.msk.f32.mxu1 %vm617_vm2, %v28168_v10  ;;  %v28268_v2 = vld [vmem:[%s27858_s1 + $0xca] sm:$0xff] }
 0x3e9   : >> { %22276 = vmatprep.mubr.msk.f32.mxu0 %vm617_vm2, %v28172_v54  ;;  %23844 = vmatpush3.bf16.msra.mxu0 %v23841_v18  ;;  %v28235_v18 = vld [vmem:[%s27858_s1 + $0x92] sm:$0xff]  ;;  %30515 = vst [vmem:[#allocation26_spill] sm:$0xff] %v28268_v2  ;;  %v28285_v54 = vld [vmem:[%s27858_s1 + $0xe8] sm:$0xff] }
 0x3ea   : >> { %23846 = vmatprep.subr.bf16.mxu0 %v28174_v56  ;;  %30512 = vst [vmem:[#allocation23_spill] sm:$0xff] %v28235_v18 }
 0x3eb   : >> { %22193 = vmatmul.mubr.msk.f32.gmra.mrb[12].mxu1 %vm617_vm2, %v28183_v51 }
 0x3ec   : >> { %22277 = vmatmul.mubr.msk.f32.gmra.mrb[4].mxu0 %vm617_vm2, %v28188_v53  ;;  %22195 = vmatprep.mubr.msk.f32.mxu1 %vm617_vm2, %v28191_v35  ;;  %v19042_v53 = vld [vmem:[%s30449_s3 + $0xa8] sm:$0xff] }
 0x3ed   : >> { %22279 = vmatprep.mubr.msk.f32.mxu0 %vm617_vm2, %v28194_v19  ;;  %v23801_v19 = vpack.c.bf16 %v19064_v32, %v19063_v63  ;;  %v28255_v63 = vld [vmem:[%s27858_s1 + $0xb0] sm:$0xff] }
 0x3ee   : >> { %v28262_v32 = vld [vmem:[%s27858_s1 + $0xb2] sm:$0xff] }
 0x3ef   : >> { %22196 = vmatmul.mubr.msk.f32.gmra.mrb[14].mxu1 %vm617_vm2, %v28204_v23  ;;  %30514 = vst [vmem:[#allocation25_spill] sm:$0xff] %v28262_v32 }
 0x3f0   : >> { %22280 = vmatmul.mubr.msk.f32.gmra.mrb[6].mxu0 %vm617_vm2, %v28209_v39  ;;  %22218 = vmatprep.mubr.msk.f32.mxu1 %vm617_vm2, %v28212_v48  ;;  %v19041_v39 = vld [vmem:[%s30449_s3 + $0xa0] sm:$0xff] }
 0x3f1   : >> { %22282 = vmatprep.mubr.msk.f32.mxu0 %vm617_vm2, %v28215_v61  ;;  %v28265_v61 = vld [vmem:[%s27858_s1 + $0xc8] sm:$0xff] }
 0x3f3   : >> { %22219 = vmatmul.mubr.msk.f32.vlgmr.msra.gmra.mrb[8].mxu1 %vm617_vm2, %v28230_v7 }
 0x3f4   : >> { %22283 = vmatmul.mubr.msk.f32.gmra.mrb[8].mxu0 %vm617_vm2, %v28235_v18  ;;  %23800 = vmatpush3.bf16.msra.mxu1 %v28083_v40  ;;  %v23805_v18 = vpack.c.bf16 %v19042_v53, %v19041_v39  ;;  %v28277_v40 = vld [vmem:[%s27858_s1 + $0xd0] sm:$0xff] }
 0x3f5   : >> { %22221 = vmatprep.mubr.msk.f32.mxu1 %vm617_vm2, %v28238_v20  ;;  %22285 = vmatprep.mubr.msk.f32.mxu0 %vm617_vm2, %v28241_v0  ;;  %v28282_v0 = vld [vmem:[%s27858_s1 + $0xd2] sm:$0xff]  ;;  %v28288_v53 = vld [vmem:[%s27858_s1 + $0xea] sm:$0xff] }
 0x3f6   : >> { %23802 = vmatprep.subr.bf16.mxu1 %v23801_v19  ;;  %30516 = vst [vmem:[#allocation27_spill] sm:$0xff] %v28282_v0  ;;  %30517 = vst [vmem:[#allocation28_spill] sm:$0xff] %v28288_v53  ;;  %v28297_v39 = vld [vmem:[%s27858_s1 + $0xf0] sm:$0xff] }
 0x3f7   : >> { %22222 = vmatmul.mubr.msk.f32.gmra.mrb[10].mxu1 %vm617_vm2, %v28255_v63 }
 0x3f8   : >> { %22286 = vmatmul.mubr.msk.f32.gmra.mrb[10].mxu0 %vm617_vm2, %v28262_v32  ;;  %22224 = vmatprep.mubr.msk.f32.mxu1 %vm617_vm2, %v28265_v61  ;;  %v19226_v32 = vld [vmem:[%s30449_s3 + $0x158] sm:$0xff] }
 0x3f9   : >> { %22288 = vmatprep.mubr.msk.f32.mxu0 %vm617_vm2, %v28268_v2  ;;  %23804 = vmatpush3.bf16.msra.mxu1 %v23801_v19  ;;  %v28302_v19 = vld [vmem:[%s27858_s1 + $0xf2] sm:$0xff] }
 0x3fa   : >> { %23806 = vmatprep.subr.bf16.mxu1 %v23805_v18  ;;  %30518 = vst [vmem:[#allocation29_spill] sm:$0xff] %v28302_v19  ;;  %v19043_v2 = vld [vmem:[%s30449_s3 + $0xb0] sm:$0xff] }
 0x3fb   : >> { %22225 = vmatmul.mubr.msk.f32.gmra.mrb[12].mxu1 %vm617_vm2, %v28277_v40 }
 0x3fc   : >> { %22289 = vmatmul.mubr.msk.f32.gmra.mrb[12].mxu0 %vm617_vm2, %v28282_v0  ;;  %22227 = vmatprep.mubr.msk.f32.mxu1 %vm617_vm2, %v28285_v54  ;;  %v19044_v0 = vld [vmem:[%s30449_s3 + $0xb8] sm:$0xff] }
 0x3fd   : >> { %22291 = vmatprep.mubr.msk.f32.mxu0 %vm617_vm2, %v28288_v53  ;;  %v19225_v53 = vld [vmem:[%s30449_s3 + $0x150] sm:$0xff]  ;;  %v23809_v13 = vpack.c.bf16 %v19044_v0, %v19043_v2  ;;  %v19295_v2 = vld [vmem:[%s30449_s3 + $0x180] sm:$0xff] }
 0x3fe   : >> { %v23849_v34 = vpack.c.bf16 %v19226_v32, %v19225_v53  ;;  %v19607_v53 = vld [vmem:[%s30449_s3 + $0x2a0] sm:$0xff] }
 0x3ff   : >> { %22228 = vmatmul.mubr.msk.f32.gmra.mrb[14].mxu1 %vm617_vm2, %v28297_v39 }
 0x400   : >> { %22292 = vmatmul.mubr.msk.f32.gmra.mrb[14].mxu0 %vm617_vm2, %v28302_v19  ;;  %22302 = vmatprep.mubr.msk.f32.mxu1 %vm617_vm2, %v27876_v55  ;;  %v19113_v55 = vld [vmem:[%s30449_s3 + $0xe0] sm:$0xff]  ;;  %v19114_v19 = vld [vmem:[%s30449_s3 + $0xe8] sm:$0xff] }
 0x401   : >> { %22462 = vmatprep.mubr.msk.f32.mxu0 %vm617_vm2, %v27900_v3  ;;  %v23813_v0 = vpack.c.bf16 %v19114_v19, %v19113_v55 }
 0x403   : >> { %22303 = vmatmul.mubr.msk.f32.vlgmr.msra.gmra.mrb[16].mxu1 %vm617_vm2, %v27890_v11  ;;  %v19296_v11 = vld [vmem:[%s30449_s3 + $0x188] sm:$0xff] }
 0x404   : >> { %22463 = vmatmul.mubr.msk.f32.vlgmr.msra.gmra.mrb[16].mxu0 %vm617_vm2, %v27918_v22  ;;  %23808 = vmatpush3.bf16.msra.mxu1 %v23805_v18  ;;  %v23853_v18 = vpack.c.bf16 %v19296_v11, %v19295_v2  ;;  %v30522_v2 = vld [vmem:[#allocation17_spill] sm:$0xff] }
 0x405   : >> { %22305 = vmatprep.mubr.msk.f32.mxu1 %vm617_vm2, %v27900_v3  ;;  %22465 = vmatprep.mubr.msk.f32.mxu0 %vm617_vm2, %v27926_v26  ;;  %v28378_v3 = vld [vmem:[%s27858_s1 + $0x107] sm:$0xff] }
 0x406   : >> { %23848 = vmatpush3.bf16.msra.mxu0 %v28174_v56  ;;  %23810 = vmatprep.subr.bf16.mxu1 %v23809_v13 }
 0x407   : >> { %22306 = vmatmul.mubr.msk.f32.gmra.mrb[18].mxu1 %vm617_vm2, %v27918_v22  ;;  %23850 = vmatprep.subr.bf16.mxu0 %v23849_v34  ;;  %v28389_v22 = vld [vmem:[%s27858_s1 + $0x10f] sm:$0xff] }
 0x408   : >> { %22466 = vmatmul.mubr.msk.f32.gmra.mrb[18].mxu0 %vm617_vm2, %v27939_v1  ;;  %22308 = vmatprep.mubr.msk.f32.mxu1 %vm617_vm2, %v27926_v26  ;;  %v28392_v26 = vld [vmem:[%s27858_s1 + $0x127] sm:$0xff] }
 0x409   : >> { %22468 = vmatprep.mubr.msk.f32.mxu0 %vm617_vm2, %v27947_v52  ;;  %23812 = vmatpush3.bf16.msra.mxu1 %v23809_v13 }
 0x40a   : >> { %23852 = vmatpush3.bf16.msra.mxu0 %v23849_v34  ;;  %23814 = vmatprep.subr.bf16.mxu1 %v23813_v0 }
 0x40b   : >> { %22309 = vmatmul.mubr.msk.f32.gmra.mrb[20].mxu1 %vm617_vm2, %v27939_v1  ;;  %23854 = vmatprep.subr.bf16.mxu0 %v23853_v18  ;;  %v28403_v1 = vld [vmem:[%s27858_s1 + $0x12f] sm:$0xff] }
 0x40c   : >> { %22469 = vmatmul.mubr.msk.f32.gmra.mrb[20].mxu0 %vm617_vm2, %v27963_v31  ;;  %22311 = vmatprep.mubr.msk.f32.mxu1 %vm617_vm2, %v27947_v52  ;;  %v19115_v52 = vld [vmem:[%s30449_s3 + $0xf0] sm:$0xff] }
 0x40d   : >> { %22471 = vmatprep.mubr.msk.f32.mxu0 %vm617_vm2, %v27968_v41 }
 0x40f   : >> { %22312 = vmatmul.mubr.msk.f32.gmra.mrb[22].mxu1 %vm617_vm2, %v27963_v31  ;;  %v19116_v31 = vld [vmem:[%s30449_s3 + $0xf8] sm:$0xff] }
 0x410   : >> { %22472 = vmatmul.mubr.msk.f32.gmra.mrb[22].mxu0 %vm617_vm2, %v27985_v58  ;;  %22314 = vmatprep.mubr.msk.f32.mxu1 %vm617_vm2, %v27968_v41  ;;  %v19297_v41 = vld [vmem:[%s30449_s3 + $0x190] sm:$0xff] }
 0x411   : >> { %22474 = vmatprep.mubr.msk.f32.mxu0 %vm617_vm2, %v27993_v62 }
 0x413   : >> { %22315 = vmatmul.mubr.msk.f32.gmra.mrb[24].mxu1 %vm617_vm2, %v27985_v58  ;;  %v19298_v58 = vld [vmem:[%s30449_s3 + $0x198] sm:$0xff] }
 0x414   : >> { %22475 = vmatmul.mubr.msk.f32.gmra.mrb[24].mxu0 %vm617_vm2, %v28007_v37  ;;  %22317 = vmatprep.mubr.msk.f32.mxu1 %vm617_vm2, %v27993_v62  ;;  %v23817_v62 = vpack.c.bf16 %v19116_v31, %v19115_v52  ;;  %v30523_v52 = vld [vmem:[#allocation19_spill] sm:$0xff] }
 0x415   : >> { %22477 = vmatprep.mubr.msk.f32.mxu0 %vm617_vm2, %v28015_v47  ;;  %v19587_v31 = vld [vmem:[%s30449_s3 + $0x280] sm:$0xff] }
 0x417   : >> { %22318 = vmatmul.mubr.msk.f32.gmra.mrb[26].mxu1 %vm617_vm2, %v28007_v37  ;;  %v23857_v37 = vpack.c.bf16 %v19298_v58, %v19297_v41  ;;  %v19588_v41 = vld [vmem:[%s30449_s3 + $0x288] sm:$0xff] }
 0x418   : >> { %22478 = vmatmul.mubr.msk.f32.gmra.mrb[26].mxu0 %vm617_vm2, %v28028_v4  ;;  %22320 = vmatprep.mubr.msk.f32.mxu1 %vm617_vm2, %v28015_v47  ;;  %v19149_v47 = vld [vmem:[%s30449_s3 + $0x100] sm:$0xff]  ;;  %v30524_v58 = vld [vmem:[#allocation20_spill] sm:$0xff] }
 0x419   : >> { %22480 = vmatprep.mubr.msk.f32.mxu0 %vm617_vm2, %v28378_v3 }
 0x41b   : >> { %22321 = vmatmul.mubr.msk.f32.gmra.mrb[28].mxu1 %vm617_vm2, %v28028_v4  ;;  %v19150_v4 = vld [vmem:[%s30449_s3 + $0x108] sm:$0xff] }
 0x41c   : >> { %22481 = vmatmul.mubr.msk.f32.gmra.mrb[28].mxu0 %vm617_vm2, %v28389_v22  ;;  %22323 = vmatprep.mubr.msk.f32.mxu1 %vm617_vm2, %v28378_v3  ;;  %v23821_v34 = vpack.c.bf16 %v19150_v4, %v19149_v47  ;;  %v30525_v47 = vld [vmem:[#allocation21_spill] sm:$0xff]  ;;  %v30526_v4 = vld [vmem:[#allocation22_spill] sm:$0xff] }
 0x41d   : >> { %22483 = vmatprep.mubr.msk.f32.mxu0 %vm617_vm2, %v28392_v26 }
 0x41f   : >> { %22324 = vmatmul.mubr.msk.f32.gmra.mrb[30].mxu1 %vm617_vm2, %v28389_v22 }
 0x420   : >> { %22484 = vmatmul.mubr.msk.f32.gmra.mrb[30].mxu0 %vm617_vm2, %v28403_v1  ;;  %22334 = vmatprep.mubr.msk.f32.mxu1 %vm617_vm2, %v28051_v14  ;;  %v19331_v14 = vld [vmem:[%s30449_s3 + $0x1a0] sm:$0xff] }
 0x421   : >> { %22494 = vmatprep.mubr.msk.f32.mxu0 %vm617_vm2, %v28077_v36 }
 0x423   : >> { %22335 = vmatmul.mubr.msk.f32.vlgmr.msra.gmra.mrb[16].mxu1 %vm617_vm2, %v28067_v59  ;;  %v19332_v59 = vld [vmem:[%s30449_s3 + $0x1a8] sm:$0xff] }
 0x424   : >> { %22495 = vmatmul.mubr.msk.f32.vlgmr.msra.gmra.mrb[16].mxu0 %vm617_vm2, %v28092_v30  ;;  %23816 = vmatpush3.bf16.msra.mxu1 %v23813_v0  ;;  %v23861_v13 = vpack.c.bf16 %v19332_v59, %v19331_v14  ;;  %v19405_v0 = vld [vmem:[%s30449_s3 + $0x1e0] sm:$0xff]  ;;  %v30528_v59 = vld [vmem:[#allocation24_spill] sm:$0xff] }
 0x425   : >> { %22337 = vmatprep.mubr.msk.f32.mxu1 %vm617_vm2, %v28077_v36  ;;  %22497 = vmatprep.mubr.msk.f32.mxu0 %vm617_vm2, %v28100_v44  ;;  %v28478_v36 = vld [vmem:[%s27858_s1 + $0x106] sm:$0xff] }
 0x426   : >> { %23856 = vmatpush3.bf16.msra.mxu0 %v23853_v18  ;;  %23818 = vmatprep.subr.bf16.mxu1 %v23817_v62  ;;  %v19406_v18 = vld [vmem:[%s30449_s3 + $0x1e8] sm:$0xff] }
 0x427   : >> { %22338 = vmatmul.mubr.msk.f32.gmra.mrb[18].mxu1 %vm617_vm2, %v28092_v30  ;;  %23858 = vmatprep.subr.bf16.mxu0 %v23857_v37  ;;  %v28489_v30 = vld [vmem:[%s27858_s1 + $0x10e] sm:$0xff]  ;;  %v30527_v14 = vld [vmem:[#allocation23_spill] sm:$0xff] }
 0x428   : >> { %22498 = vmatmul.mubr.msk.f32.gmra.mrb[18].mxu0 %vm617_vm2, %v28114_v49  ;;  %22340 = vmatprep.mubr.msk.f32.mxu1 %vm617_vm2, %v28100_v44  ;;  %v28492_v44 = vld [vmem:[%s27858_s1 + $0x126] sm:$0xff] }
 0x429   : >> { %22500 = vmatprep.mubr.msk.f32.mxu0 %vm617_vm2, %v28122_v27  ;;  %23820 = vmatpush3.bf16.msra.mxu1 %v23817_v62  ;;  %v23885_v62 = vpack.c.bf16 %v19406_v18, %v19405_v0 }
 0x42a   : >> { %23860 = vmatpush3.bf16.msra.mxu0 %v23857_v37  ;;  %23822 = vmatprep.subr.bf16.mxu1 %v23821_v34  ;;  %v23925_v37 = vpack.c.bf16 %v19588_v41, %v19587_v31  ;;  %v19603_v31 = vld [vmem:[%s27858_s1 + $0x147] sm:$0xff] }
 0x42b   : >> { %22341 = vmatmul.mubr.msk.f32.gmra.mrb[20].mxu1 %vm617_vm2, %v28114_v49  ;;  %23862 = vmatprep.subr.bf16.mxu0 %v23861_v13  ;;  %v28503_v49 = vld [vmem:[%s27858_s1 + $0x12e] sm:$0xff] }
 0x42c   : >> { %22501 = vmatmul.mubr.msk.f32.gmra.mrb[20].mxu0 %vm617_vm2, %v28138_v5  ;;  %22343 = vmatprep.mubr.msk.f32.mxu1 %vm617_vm2, %v28122_v27  ;;  %v19151_v27 = vld [vmem:[%s30449_s3 + $0x110] sm:$0xff] }
 0x42d   : >> { %22503 = vmatprep.mubr.msk.f32.mxu0 %vm617_vm2, %v28143_v9 }
 0x42f   : >> { %22344 = vmatmul.mubr.msk.f32.gmra.mrb[22].mxu1 %vm617_vm2, %v28138_v5  ;;  %v19152_v5 = vld [vmem:[%s30449_s3 + $0x118] sm:$0xff] }
 0x430   : >> { %22504 = vmatmul.mubr.msk.f32.gmra.mrb[22].mxu0 %vm617_vm2, %v28160_v29  ;;  %22346 = vmatprep.mubr.msk.f32.mxu1 %vm617_vm2, %v28143_v9  ;;  %v19333_v9 = vld [vmem:[%s30449_s3 + $0x1b0] sm:$0xff] }
 0x431   : >> { %22506 = vmatprep.mubr.msk.f32.mxu0 %vm617_vm2, %v28168_v10 }
 0x433   : >> { %22347 = vmatmul.mubr.msk.f32.gmra.mrb[24].mxu1 %vm617_vm2, %v28160_v29  ;;  %v19334_v29 = vld [vmem:[%s30449_s3 + $0x1b8] sm:$0xff] }
 0x434   : >> { %22507 = vmatmul.mubr.msk.f32.gmra.mrb[24].mxu0 %vm617_vm2, %v28183_v51  ;;  %22349 = vmatprep.mubr.msk.f32.mxu1 %vm617_vm2, %v28168_v10  ;;  %v23825_v10 = vpack.c.bf16 %v19152_v5, %v19151_v27  ;;  %v23865_v56 = vpack.c.bf16 %v19334_v29, %v19333_v9  ;;  %v30531_v27 = vld [vmem:[#allocation27_spill] sm:$0xff]  ;;  %v30532_v5 = vld [vmem:[#allocation28_spill] sm:$0xff]  ;;  %v30533_v29 = vld [vmem:[#allocation29_spill] sm:$0xff] }
 0x435   : >> { %22509 = vmatprep.mubr.msk.f32.mxu0 %vm617_vm2, %v28191_v35  ;;  %v28778_v9 = vld [vmem:[%s27858_s1 + $0x10a] sm:$0xff] }
 0x437   : >> { %22350 = vmatmul.mubr.msk.f32.gmra.mrb[26].mxu1 %vm617_vm2, %v28183_v51  ;;  %v19186_v51 = vld [vmem:[%s30449_s3 + $0x128] sm:$0xff] }
 0x438   : >> { %22510 = vmatmul.mubr.msk.f32.gmra.mrb[26].mxu0 %vm617_vm2, %v28204_v23  ;;  %22352 = vmatprep.mubr.msk.f32.mxu1 %vm617_vm2, %v28191_v35  ;;  %v19367_v35 = vld [vmem:[%s30449_s3 + $0x1c0] sm:$0xff] }
 0x439   : >> { %22512 = vmatprep.mubr.msk.f32.mxu0 %vm617_vm2, %v28478_v36 }
 0x43b   : >> { %22353 = vmatmul.mubr.msk.f32.gmra.mrb[28].mxu1 %vm617_vm2, %v28204_v23 }
 0x43c   : >> { %22513 = vmatmul.mubr.msk.f32.gmra.mrb[28].mxu0 %vm617_vm2, %v28489_v30  ;;  %22355 = vmatprep.mubr.msk.f32.mxu1 %vm617_vm2, %v28478_v36 }
 0x43d   : >> { %22515 = vmatprep.mubr.msk.f32.mxu0 %vm617_vm2, %v28492_v44 }
 0x43f   : >> { %22356 = vmatmul.mubr.msk.f32.gmra.mrb[30].mxu1 %vm617_vm2, %v28489_v30 }
 0x440   : >> { %22516 = vmatmul.mubr.msk.f32.gmra.mrb[30].mxu0 %vm617_vm2, %v28503_v49  ;;  %22366 = vmatprep.mubr.msk.f32.mxu1 %vm617_vm2, %v27879_v57  ;;  %v19185_v57 = vld [vmem:[%s30449_s3 + $0x120] sm:$0xff] }
 0x441   : >> { %22526 = vmatprep.mubr.msk.f32.mxu0 %vm617_vm2, %v27903_v16  ;;  %v23829_v23 = vpack.c.bf16 %v19186_v51, %v19185_v57  ;;  %v28803_v57 = vld [vmem:[%s27858_s1 + $0x132] sm:$0xff]  ;;  %v19409_v51 = vld [vmem:[%s27858_s1 + $0x67] sm:$0xff] }
 0x443   : >> { %22367 = vmatmul.mubr.msk.f32.vlgmr.msra.gmra.mrb[16].mxu1 %vm617_vm2, %v27897_v15  ;;  %v19368_v15 = vld [vmem:[%s30449_s3 + $0x1c8] sm:$0xff] }
 0x444   : >> { %22527 = vmatmul.mubr.msk.f32.vlgmr.msra.gmra.mrb[16].mxu0 %vm617_vm2, %v27923_v24  ;;  %23824 = vmatpush3.bf16.msra.mxu1 %v23821_v34  ;;  %v23869_v32 = vpack.c.bf16 %v19368_v15, %v19367_v35  ;;  %v30529_v34 = vld [vmem:[#allocation25_spill] sm:$0xff]  ;;  %v19591_v35 = vld [vmem:[%s27858_s1 + $0x87] sm:$0xff] }
 0x445   : >> { %22369 = vmatprep.mubr.msk.f32.mxu1 %vm617_vm2, %v27903_v16  ;;  %22529 = vmatprep.mubr.msk.f32.mxu0 %vm617_vm2, %v27929_v50  ;;  %v28578_v16 = vld [vmem:[%s27858_s1 + $0x108] sm:$0xff]  ;;  %v19407_v15 = vld [vmem:[%s30449_s3 + $0x1f0] sm:$0xff] }
 0x446   : >> { %23864 = vmatpush3.bf16.msra.mxu0 %v23861_v13  ;;  %23826 = vmatprep.subr.bf16.mxu1 %v23825_v10  ;;  %v30530_v13 = vld [vmem:[#allocation26_spill] sm:$0xff] }
 0x447   : >> { %22370 = vmatmul.mubr.msk.f32.gmra.mrb[18].mxu1 %vm617_vm2, %v27923_v24  ;;  %23866 = vmatprep.subr.bf16.mxu0 %v23865_v56  ;;  %v28589_v24 = vld [vmem:[%s27858_s1 + $0x110] sm:$0xff] }
 0x448   : >> { %22530 = vmatmul.mubr.msk.f32.gmra.mrb[18].mxu0 %vm617_vm2, %v27944_v28  ;;  %22372 = vmatprep.mubr.msk.f32.mxu1 %vm617_vm2, %v27929_v50  ;;  %v28592_v50 = vld [vmem:[%s27858_s1 + $0x128] sm:$0xff] }
 0x449   : >> { %22532 = vmatprep.mubr.msk.f32.mxu0 %vm617_vm2, %v28212_v48  ;;  %23828 = vmatpush3.bf16.msra.mxu1 %v23825_v10  ;;  %v28789_v10 = vld [vmem:[%s27858_s1 + $0x112] sm:$0xff] }
 0x44a   : >> { %23868 = vmatpush3.bf16.msra.mxu0 %v23865_v56  ;;  %23830 = vmatprep.subr.bf16.mxu1 %v23829_v23  ;;  %v28792_v56 = vld [vmem:[%s27858_s1 + $0x12a] sm:$0xff] }
 0x44b   : >> { %22373 = vmatmul.mubr.msk.f32.gmra.mrb[20].mxu1 %vm617_vm2, %v27944_v28  ;;  %23870 = vmatprep.subr.bf16.mxu0 %v23869_v32  ;;  %v28603_v28 = vld [vmem:[%s27858_s1 + $0x130] sm:$0xff] }
 0x44c   : >> { %22533 = vmatmul.mubr.msk.f32.gmra.mrb[20].mxu0 %vm617_vm2, %v28230_v7  ;;  %22375 = vmatprep.mubr.msk.f32.mxu1 %vm617_vm2, %v28212_v48  ;;  %v19188_v48 = vld [vmem:[%s30449_s3 + $0x138] sm:$0xff] }
 0x44d   : >> { %22535 = vmatprep.mubr.msk.f32.mxu0 %vm617_vm2, %v28238_v20 }
 0x44f   : >> { %22376 = vmatmul.mubr.msk.f32.gmra.mrb[22].mxu1 %vm617_vm2, %v28230_v7  ;;  %v19370_v7 = vld [vmem:[%s30449_s3 + $0x1d8] sm:$0xff] }
 0x450   : >> { %22536 = vmatmul.mubr.msk.f32.gmra.mrb[22].mxu0 %vm617_vm2, %v28255_v63  ;;  %22378 = vmatprep.mubr.msk.f32.mxu1 %vm617_vm2, %v28238_v20 }
 0x451   : >> { %22538 = vmatprep.mubr.msk.f32.mxu0 %vm617_vm2, %v28265_v61 }
 0x453   : >> { %22379 = vmatmul.mubr.msk.f32.gmra.mrb[24].mxu1 %vm617_vm2, %v28255_v63 }
 0x454   : >> { %22539 = vmatmul.mubr.msk.f32.gmra.mrb[24].mxu0 %vm617_vm2, %v28277_v40  ;;  %22381 = vmatprep.mubr.msk.f32.mxu1 %vm617_vm2, %v28265_v61  ;;  %v19369_v61 = vld [vmem:[%s30449_s3 + $0x1d0] sm:$0xff] }
 0x455   : >> { %22541 = vmatprep.mubr.msk.f32.mxu0 %vm617_vm2, %v28285_v54  ;;  %v23873_v63 = vpack.c.bf16 %v19370_v7, %v19369_v61  ;;  %v19592_v61 = vld [vmem:[%s27858_s1 + $0x8f] sm:$0xff]  ;;  %v19593_v7 = vld [vmem:[%s27858_s1 + $0xa7] sm:$0xff] }
 0x457   : >> { %22382 = vmatmul.mubr.msk.f32.gmra.mrb[26].mxu1 %vm617_vm2, %v28277_v40  ;;  %v19426_v40 = vld [vmem:[%s30449_s3 + $0x208] sm:$0xff] }
 0x458   : >> { %22542 = vmatmul.mubr.msk.f32.gmra.mrb[26].mxu0 %vm617_vm2, %v28297_v39  ;;  %22384 = vmatprep.mubr.msk.f32.mxu1 %vm617_vm2, %v28285_v54  ;;  %v19187_v54 = vld [vmem:[%s30449_s3 + $0x130] sm:$0xff] }
 0x459   : >> { %22544 = vmatprep.mubr.msk.f32.mxu0 %vm617_vm2, %v28578_v16  ;;  %v23833_v20 = vpack.c.bf16 %v19188_v48, %v19187_v54  ;;  %v19589_v54 = vld [vmem:[%s30449_s3 + $0x290] sm:$0xff]  ;;  %v19590_v48 = vld [vmem:[%s30449_s3 + $0x298] sm:$0xff] }
 0x45b   : >> { %22385 = vmatmul.mubr.msk.f32.gmra.mrb[28].mxu1 %vm617_vm2, %v28297_v39 }
 0x45c   : >> { %22545 = vmatmul.mubr.msk.f32.gmra.mrb[28].mxu0 %vm617_vm2, %v28589_v24  ;;  %22387 = vmatprep.mubr.msk.f32.mxu1 %vm617_vm2, %v28578_v16 }
 0x45d   : >> { %22547 = vmatprep.mubr.msk.f32.mxu0 %vm617_vm2, %v28592_v50 }
 0x45f   : >> { %22388 = vmatmul.mubr.msk.f32.gmra.mrb[30].mxu1 %vm617_vm2, %v28589_v24 }
 0x460   : >> { %22548 = vmatmul.mubr.msk.f32.gmra.mrb[30].mxu0 %vm617_vm2, %v28603_v28  ;;  %22398 = vmatprep.mubr.msk.f32.mxu1 %vm617_vm2, %v27971_v45  ;;  %v19425_v45 = vld [vmem:[%s30449_s3 + $0x200] sm:$0xff] }
 0x461   : >> { %22558 = vmatprep.mubr.msk.f32.mxu0 %vm617_vm2, %v27996_v33  ;;  %v23877_v39 = vpack.c.bf16 %v19426_v40, %v19425_v45  ;;  %v19477_v45 = vld [vmem:[%s30449_s3 + $0x220] sm:$0xff]  ;;  %v19478_v40 = vld [vmem:[%s30449_s3 + $0x228] sm:$0xff] }
 0x463   : >> { %22399 = vmatmul.mubr.msk.f32.vlgmr.msra.gmra.mrb[16].mxu1 %vm617_vm2, %v27990_v60  ;;  %v19608_v60 = vld [vmem:[%s30449_s3 + $0x2a8] sm:$0xff] }
 0x464   : >> { %22559 = vmatmul.mubr.msk.f32.vlgmr.msra.gmra.mrb[16].mxu0 %vm617_vm2, %v28012_v43  ;;  %23832 = vmatpush3.bf16.msra.mxu1 %v23829_v23  ;;  %v23917_v19 = vpack.c.bf16 %v19608_v60, %v19607_v53  ;;  %v19408_v23 = vld [vmem:[%s30449_s3 + $0x1f8] sm:$0xff]  ;;  %v19659_v53 = vld [vmem:[%s30449_s3 + $0x2c0] sm:$0xff]  ;;  %v19660_v60 = vld [vmem:[%s30449_s3 + $0x2c8] sm:$0xff] }
 0x465   : >> { %22401 = vmatprep.mubr.msk.f32.mxu1 %vm617_vm2, %v27996_v33  ;;  %22561 = vmatprep.mubr.msk.f32.mxu0 %vm617_vm2, %v28018_v6  ;;  %v28678_v33 = vld [vmem:[%s27858_s1 + $0x109] sm:$0xff] }
 0x466   : >> { %23872 = vmatpush3.bf16.msra.mxu0 %v23869_v32  ;;  %23834 = vmatprep.subr.bf16.mxu1 %v23833_v20  ;;  %v19410_v32 = vld [vmem:[%s27858_s1 + $0x6f] sm:$0xff] }
 0x467   : >> { %22402 = vmatmul.mubr.msk.f32.gmra.mrb[18].mxu1 %vm617_vm2, %v28012_v43  ;;  %23874 = vmatprep.subr.bf16.mxu0 %v23873_v63  ;;  %v30519_v43 = vld [vmem:[#allocation15_spill] sm:$0xff] }
 0x468   : >> { %22562 = vmatmul.mubr.msk.f32.gmra.mrb[18].mxu0 %vm617_vm2, %v28033_v17  ;;  %22404 = vmatprep.mubr.msk.f32.mxu1 %vm617_vm2, %v28018_v6  ;;  %v28689_v6 = vld [vmem:[%s27858_s1 + $0x111] sm:$0xff] }
 0x469   : >> { %22564 = vmatprep.mubr.msk.f32.mxu0 %vm617_vm2, %v28037_v21  ;;  %23836 = vmatpush3.bf16.msra.mxu1 %v23833_v20  ;;  %v23889_v20 = vpack.c.bf16 %v19408_v23, %v19407_v15  ;;  %v19661_v15 = vld [vmem:[%s30449_s3 + $0x2d0] sm:$0xff]  ;;  %v19662_v23 = vld [vmem:[%s30449_s3 + $0x2d8] sm:$0xff] }
 0x46a   : >> { %23876 = vmatpush3.bf16.msra.mxu0 %v23873_v63  ;;  %23878 = vmatprep.subr.bf16.mxu1 %v23877_v39  ;;  %v23929_v63 = vpack.c.bf16 %v19590_v48, %v19589_v54  ;;  %v19572_v54 = vld [vmem:[%s27858_s1 + $0x8e] sm:$0xff]  ;;  %v19573_v48 = vld [vmem:[%s27858_s1 + $0xa6] sm:$0xff] }
 0x46b   : >> { %22405 = vmatmul.mubr.msk.f32.gmra.mrb[20].mxu1 %vm617_vm2, %v28033_v17  ;;  %23918 = vmatprep.subr.bf16.mxu0 %v23917_v19  ;;  %v28692_v17 = vld [vmem:[%s27858_s1 + $0x129] sm:$0xff] }
 0x46c   : >> { %22565 = vmatmul.mubr.msk.f32.gmra.mrb[20].mxu0 %vm617_vm2, %v28048_v12  ;;  %22407 = vmatprep.mubr.msk.f32.mxu1 %vm617_vm2, %v28037_v21  ;;  %v28703_v21 = vld [vmem:[%s27858_s1 + $0x131] sm:$0xff] }
 0x46d   : >> { %22567 = vmatprep.mubr.msk.f32.mxu0 %vm617_vm2, %v28054_v25 }
 0x46f   : >> { %22408 = vmatmul.mubr.msk.f32.gmra.mrb[22].mxu1 %vm617_vm2, %v28048_v12  ;;  %v19427_v12 = vld [vmem:[%s30449_s3 + $0x210] sm:$0xff] }
 0x470   : >> { %22568 = vmatmul.mubr.msk.f32.gmra.mrb[22].mxu0 %vm617_vm2, %v28074_v8  ;;  %22410 = vmatprep.mubr.msk.f32.mxu1 %vm617_vm2, %v28054_v25  ;;  %v19428_v25 = vld [vmem:[%s30449_s3 + $0x218] sm:$0xff] }
 0x471   : >> { %22570 = vmatprep.mubr.msk.f32.mxu0 %vm617_vm2, %v28080_v38  ;;  %v23881_v55 = vpack.c.bf16 %v19428_v25, %v19427_v12  ;;  %v28846_v12 = vpack.c.bf16 %v19478_v40, %v19477_v45  ;;  %v19514_v45 = vld [vmem:[%s30449_s3 + $0x248] sm:$0xff] }
 0x473   : >> { %22411 = vmatmul.mubr.msk.f32.gmra.mrb[24].mxu1 %vm617_vm2, %v28074_v8  ;;  %v30520_v8 = vld [vmem:[#allocation16_spill] sm:$0xff] }
 0x474   : >> { %22571 = vmatmul.mubr.msk.f32.gmra.mrb[24].mxu0 %vm617_vm2, %v28097_v42  ;;  %22413 = vmatprep.mubr.msk.f32.mxu1 %vm617_vm2, %v28080_v38  ;;  %v19609_v38 = vld [vmem:[%s30449_s3 + $0x2b0] sm:$0xff] }
 0x475   : >> { %22573 = vmatprep.mubr.msk.f32.mxu0 %vm617_vm2, %v28104_v46 }
 0x477   : >> { %22414 = vmatmul.mubr.msk.f32.gmra.mrb[26].mxu1 %vm617_vm2, %v28097_v42  ;;  %v19610_v42 = vld [vmem:[%s30449_s3 + $0x2b8] sm:$0xff] }
 0x478   : >> { %22574 = vmatmul.mubr.msk.f32.gmra.mrb[26].mxu0 %vm617_vm2, %v30519_v43  ;;  %22416 = vmatprep.mubr.msk.f32.mxu1 %vm617_vm2, %v28104_v46  ;;  %v30521_v46 = vld [vmem:[#allocation18_spill] sm:$0xff]  ;;  %v23921_v11 = vpack.c.bf16 %v19610_v42, %v19609_v38  ;;  %v19596_v38 = vld [vmem:[%s27858_s1 + $0xcf] sm:$0xff] }
 0x479   : >> { %22576 = vmatprep.mubr.msk.f32.mxu0 %vm617_vm2, %v28678_v33 }
 0x47b   : >> { %22417 = vmatmul.mubr.msk.f32.gmra.mrb[28].mxu1 %vm617_vm2, %v30519_v43  ;;  %v19595_v43 = vld [vmem:[%s27858_s1 + $0xc7] sm:$0xff] }
 0x47c   : >> { %22577 = vmatmul.mubr.msk.f32.gmra.mrb[28].mxu0 %vm617_vm2, %v28689_v6  ;;  %22419 = vmatprep.mubr.msk.f32.mxu1 %vm617_vm2, %v28678_v33 }
 0x47d   : >> { %22579 = vmatprep.mubr.msk.f32.mxu0 %vm617_vm2, %v28692_v17 }
 0x47f   : >> { %22420 = vmatmul.mubr.msk.f32.gmra.mrb[30].mxu1 %vm617_vm2, %v28689_v6 }
 0x480   : >> { %22580 = vmatmul.mubr.msk.f32.gmra.mrb[30].mxu0 %vm617_vm2, %v28703_v21  ;;  %22430 = vmatprep.mubr.msk.f32.mxu1 %vm617_vm2, %v30520_v8  ;;  %v28849_v8 = vpack.c.bf16 %v19660_v60, %v19659_v53  ;;  %v19695_v60 = vld [vmem:[%s30449_s3 + $0x2e0] sm:$0xff] }
 0x481   : >> { %22590 = vmatprep.mubr.msk.f32.mxu0 %vm617_vm2, %v30521_v46 }
 0x483   : >> { %22431 = vmatmul.mubr.msk.f32.vlgmr.msra.gmra.mrb[16].mxu1 %vm617_vm2, %v30522_v2  ;;  %v19598_v2 = vld [vmem:[%s27858_s1 + $0xef] sm:$0xff] }
 0x484   : >> { %22591 = vmatmul.mubr.msk.f32.vlgmr.msra.gmra.mrb[16].mxu0 %vm617_vm2, %v30523_v52  ;;  %23880 = vmatpush3.bf16.msra.mxu1 %v23877_v39  ;;  %v19594_v39 = vld [vmem:[%s27858_s1 + $0xaf] sm:$0xff] }
 0x485   : >> { %22433 = vmatprep.mubr.msk.f32.mxu1 %vm617_vm2, %v30521_v46  ;;  %22593 = vmatprep.mubr.msk.f32.mxu0 %vm617_vm2, %v30524_v58  ;;  %v19597_v46 = vld [vmem:[%s27858_s1 + $0xe7] sm:$0xff] }
 0x486   : >> { %23920 = vmatpush3.bf16.msra.mxu0 %v23917_v19  ;;  %23882 = vmatprep.subr.bf16.mxu1 %v23881_v55 }
 0x487   : >> { %22434 = vmatmul.mubr.msk.f32.gmra.mrb[18].mxu1 %vm617_vm2, %v30523_v52  ;;  %23922 = vmatprep.subr.bf16.mxu0 %v23921_v11 }
 0x488   : >> { %22594 = vmatmul.mubr.msk.f32.gmra.mrb[18].mxu0 %vm617_vm2, %v30525_v47  ;;  %22436 = vmatprep.mubr.msk.f32.mxu1 %vm617_vm2, %v30524_v58 }
 0x489   : >> { %22596 = vmatprep.mubr.msk.f32.mxu0 %vm617_vm2, %v30526_v4  ;;  %23884 = vmatpush3.bf16.msra.mxu1 %v23881_v55 }
 0x48a   : >> { %23924 = vmatpush3.bf16.msra.mxu0 %v23921_v11  ;;  %23886 = vmatprep.subr.bf16.mxu1 %v23885_v62 }
 0x48b   : >> { %22437 = vmatmul.mubr.msk.f32.gmra.mrb[20].mxu1 %vm617_vm2, %v30525_v47  ;;  %23926 = vmatprep.subr.bf16.mxu0 %v23925_v37  ;;  %v19605_v47 = vld [vmem:[%s27858_s1 + $0x167] sm:$0xff] }
 0x48c   : >> { %22597 = vmatmul.mubr.msk.f32.gmra.mrb[20].mxu0 %vm617_vm2, %v30527_v14  ;;  %22439 = vmatprep.mubr.msk.f32.mxu1 %vm617_vm2, %v30526_v4 }
 0x48d   : >> { %22599 = vmatprep.mubr.msk.f32.mxu0 %vm617_vm2, %v30528_v59 }
 0x48f   : >> { %22440 = vmatmul.mubr.msk.f32.gmra.mrb[22].mxu1 %vm617_vm2, %v30527_v14 }
 0x490   : >> { %22600 = vmatmul.mubr.msk.f32.gmra.mrb[22].mxu0 %vm617_vm2, %v30529_v34  ;;  %22442 = vmatprep.mubr.msk.f32.mxu1 %vm617_vm2, %v30528_v59  ;;  %v19606_v59 = vld [vmem:[%s27858_s1 + $0x16f] sm:$0xff] }
 0x491   : >> { %22602 = vmatprep.mubr.msk.f32.mxu0 %vm617_vm2, %v30530_v13 }
 0x493   : >> { %22443 = vmatmul.mubr.msk.f32.gmra.mrb[24].mxu1 %vm617_vm2, %v30529_v34  ;;  %v19389_v34 = vld [vmem:[%s27858_s1 + $0x66] sm:$0xff] }
 0x494   : >> { %22603 = vmatmul.mubr.msk.f32.gmra.mrb[24].mxu0 %vm617_vm2, %v30531_v27  ;;  %22445 = vmatprep.mubr.msk.f32.mxu1 %vm617_vm2, %v30530_v13  ;;  %v19571_v13 = vld [vmem:[%s27858_s1 + $0x86] sm:$0xff] }
 0x495   : >> { %22605 = vmatprep.mubr.msk.f32.mxu0 %vm617_vm2, %v30532_v5 }
 0x497   : >> { %22446 = vmatmul.mubr.msk.f32.gmra.mrb[26].mxu1 %vm617_vm2, %v30531_v27  ;;  %v19479_v27 = vld [vmem:[%s30449_s3 + $0x230] sm:$0xff] }
 0x498   : >> { %22606 = vmatmul.mubr.msk.f32.gmra.mrb[26].mxu0 %vm617_vm2, %v30533_v29  ;;  %22448 = vmatprep.mubr.msk.f32.mxu1 %vm617_vm2, %v30532_v5  ;;  %v19480_v5 = vld [vmem:[%s30449_s3 + $0x238] sm:$0xff] }
 0x499   : >> { %22608 = vmatprep.mubr.msk.f32.mxu0 %vm617_vm2, %v28778_v9 }
 0x49b   : >> { %22449 = vmatmul.mubr.msk.f32.gmra.mrb[28].mxu1 %vm617_vm2, %v30533_v29 }
 0x49c   : >> { %22609 = vmatmul.mubr.msk.f32.gmra.mrb[28].mxu0 %vm617_vm2, %v28789_v10  ;;  %22451 = vmatprep.mubr.msk.f32.mxu1 %vm617_vm2, %v28778_v9 }
 0x49d   : >> { %22611 = vmatprep.mubr.msk.f32.mxu0 %vm617_vm2, %v28792_v56 }
 0x49f   : >> { %22452 = vmatmul.mubr.msk.f32.gmra.mrb[30].mxu1 %vm617_vm2, %v28789_v10 }
 0x4a0   : >> { %22612 = vmatmul.mubr.msk.f32.gmra.mrb[30].mxu0 %vm617_vm2, %v28803_v57  ;;  %22622 = vmatprep.mubr.msk.f32.mxu1 %vm617_vm2, %v19409_v51 }
 0x4a1   : >> { %22782 = vmatprep.mubr.msk.f32.mxu0 %vm617_vm2, %v19591_v35 }
 0x4a3   : >> { %22623 = vmatmul.mubr.msk.f32.vlgmr.msra.gmra.mrb[32].mxu1 %vm617_vm2, %v19410_v32 }
 0x4a4   : >> { %22783 = vmatmul.mubr.msk.f32.vlgmr.msra.gmra.mrb[32].mxu0 %vm617_vm2, %v19592_v61  ;;  %23888 = vmatpush3.bf16.msra.mxu1 %v23885_v62 }
 0x4a5   : >> { %22625 = vmatprep.mubr.msk.f32.mxu1 %vm617_vm2, %v19591_v35  ;;  %22785 = vmatprep.mubr.msk.f32.mxu0 %vm617_vm2, %v19593_v7  ;;  %v19390_v35 = vld [vmem:[%s27858_s1 + $0x6e] sm:$0xff] }
 0x4a6   : >> { %v22176_v19 = vpop.f32.mrb[0].mxu1  ;;  %23928 = vmatpush3.bf16.msra.mxu0 %v23925_v37  ;;  %23890 = vmatprep.subr.bf16.mxu1 %v23889_v20 }
 0x4a7   : >> { %v7230_v25 = vpop.f32.mrb[1].mxu1  ;;  %22626 = vmatmul.mubr.msk.f32.gmra.mrb[34].mxu1 %vm617_vm2, %v19592_v61  ;;  %23930 = vmatprep.subr.bf16.mxu0 %v23929_v63  ;;  %v23897_v61 = vpack.c.bf16 %v19480_v5, %v19479_v27 }
 0x4a8   : >> { %22786 = vmatmul.mubr.msk.f32.gmra.mrb[34].mxu0 %vm617_vm2, %v19594_v39  ;;  %22628 = vmatprep.mubr.msk.f32.mxu1 %vm617_vm2, %v19593_v7 }
 0x4a9   : >> { %22788 = vmatprep.mubr.msk.f32.mxu0 %vm617_vm2, %v19595_v43  ;;  %23892 = vmatpush3.bf16.msra.mxu1 %v23889_v20  ;;  %v23937_v20 = vpack.c.bf16 %v19662_v23, %v19661_v15  ;;  %v19461_v15 = vld [vmem:[%s27858_s1 + $0x68] sm:$0xff] }
 0x4aa   : >> { %v22179_v42 = vpop.f32.mrb[2].mxu1  ;;  %23932 = vmatpush3.bf16.msra.mxu0 %v23929_v63  ;;  %23894 = vmatprep.subr.bf16.mxu1 %v28846_v12  ;;  %v19513_v63 = vld [vmem:[%s30449_s3 + $0x240] sm:$0xff]  ;;  %v19643_v23 = vld [vmem:[%s27858_s1 + $0x88] sm:$0xff] }
 0x4ab   : >> { %v7240_v55 = vpop.f32.mrb[3].mxu1  ;;  %22629 = vmatmul.mubr.msk.f32.gmra.mrb[36].mxu1 %vm617_vm2, %v19594_v39  ;;  %23934 = vmatprep.subr.bf16.mxu0 %v28849_v8  ;;  %v19696_v39 = vld [vmem:[%s30449_s3 + $0x2e8] sm:$0xff] }
 0x4ac   : >> { %22789 = vmatmul.mubr.msk.f32.gmra.mrb[36].mxu0 %vm617_vm2, %v19596_v38  ;;  %22631 = vmatprep.mubr.msk.f32.mxu1 %vm617_vm2, %v19595_v43  ;;  %v19574_v43 = vld [vmem:[%s27858_s1 + $0xae] sm:$0xff] }
 0x4ad   : >> { %22791 = vmatprep.mubr.msk.f32.mxu0 %vm617_vm2, %v19597_v46 }
 0x4ae   : >> { %v22182_v11 = vpop.f32.mrb[4].mxu1 }
 0x4af   : >> { %v7250_v0 = vpop.f32.mrb[5].mxu1  ;;  %22632 = vmatmul.mubr.msk.f32.gmra.mrb[38].mxu1 %vm617_vm2, %v19596_v38  ;;  %v19575_v38 = vld [vmem:[%s27858_s1 + $0xc6] sm:$0xff] }
 0x4b0   : >> { %22792 = vmatmul.mubr.msk.f32.gmra.mrb[38].mxu0 %vm617_vm2, %v19598_v2  ;;  %22634 = vmatprep.mubr.msk.f32.mxu1 %vm617_vm2, %v19597_v46 }
 0x4b1   : >> { %22794 = vmatprep.mubr.msk.f32.mxu0 %vm617_vm2, %v28378_v3 }
 0x4b2   : >> { %v22185_v18 = vpop.f32.mrb[6].mxu1 }
 0x4b3   : >> { %v7260_v52 = vpop.f32.mrb[7].mxu1  ;;  %22635 = vmatmul.mubr.msk.f32.gmra.mrb[40].mxu1 %vm617_vm2, %v19598_v2 }
 0x4b4   : >> { %22795 = vmatmul.mubr.msk.f32.gmra.mrb[40].mxu0 %vm617_vm2, %v28389_v22  ;;  %22637 = vmatprep.mubr.msk.f32.mxu1 %vm617_vm2, %v28378_v3  ;;  %v19604_v3 = vld [vmem:[%s27858_s1 + $0x14f] sm:$0xff] }
 0x4b5   : >> { %22797 = vmatprep.mubr.msk.f32.mxu0 %vm617_vm2, %v28392_v26 }
 0x4b7   : >> { %v22272_v41 = vpop.f32.mrb[0].mxu0  ;;  %22638 = vmatmul.mubr.msk.f32.gmra.mrb[42].mxu1 %vm617_vm2, %v28389_v22 }
 0x4b8   : >> { %v24687_v58 = vadd.f32 %v22272_v41, %v22176_v19  ;;  %v7904_v62 = vpop.f32.mrb[1].mxu0  ;;  %22798 = vmatmul.mubr.msk.f32.gmra.mrb[42].mxu0 %vm617_vm2, %v28403_v1  ;;  %22640 = vmatprep.mubr.msk.f32.mxu1 %vm617_vm2, %v28392_v26 }
 0x4b9   : >> { %v24688_v37 = vadd.f32 %v7904_v62, %v7230_v25  ;;  %22800 = vmatprep.mubr.msk.f32.mxu0 %vm617_vm2, %v19603_v31 }
 0x4ba   : >> { %8000 = vst.msk [vmem:[#allocation6 + $0x8] sm:$0xff] %vm617_vm2, %v24687_v58 }
 0x4bb   : >> { %7999 = vst.msk [vmem:[#allocation6] sm:$0xff] %vm617_vm2, %v24688_v37  ;;  %v22275_v22 = vpop.f32.mrb[2].mxu0  ;;  %22641 = vmatmul.mubr.msk.f32.gmra.mrb[44].mxu1 %vm617_vm2, %v28403_v1 }
 0x4bc   : >> { %v24689_v4 = vadd.f32 %v22275_v22, %v22179_v42  ;;  %v7914_v14 = vpop.f32.mrb[3].mxu0  ;;  %22801 = vmatmul.mubr.msk.f32.gmra.mrb[44].mxu0 %vm617_vm2, %v19604_v3  ;;  %22643 = vmatprep.mubr.msk.f32.mxu1 %vm617_vm2, %v19603_v31 }
 0x4bd   : >> { %v24690_v26 = vadd.f32 %v7914_v14, %v7240_v55  ;;  %22803 = vmatprep.mubr.msk.f32.mxu0 %vm617_vm2, %v19605_v47  ;;  %v28943_v55 = vpack.c.bf16 %v19696_v39, %v19695_v60  ;;  %v19732_v60 = vld [vmem:[%s30449_s3 + $0x308] sm:$0xff]  ;;  %v19646_v39 = vld [vmem:[%s27858_s1 + $0xb0] sm:$0xff] }
 0x4be   : >> { %8002 = vst.msk [vmem:[#allocation6 + $0x18] sm:$0xff] %vm617_vm2, %v24689_v4 }
 0x4bf   : >> { %8001 = vst.msk [vmem:[#allocation6 + $0x10] sm:$0xff] %vm617_vm2, %v24690_v26  ;;  %v22278_v1 = vpop.f32.mrb[4].mxu0  ;;  %22644 = vmatmul.mubr.msk.f32.gmra.mrb[46].mxu1 %vm617_vm2, %v19604_v3  ;;  %v19578_v3 = vld [vmem:[%s27858_s1 + $0xee] sm:$0xff] }
 0x4c0   : >> { %v24691_v29 = vadd.f32 %v22278_v1, %v22182_v11  ;;  %v7924_v51 = vpop.f32.mrb[5].mxu0  ;;  %22804 = vmatmul.mubr.msk.f32.gmra.mrb[46].mxu0 %vm617_vm2, %v19606_v59  ;;  %22654 = vmatprep.mubr.msk.f32.mxu1 %vm617_vm2, %v19389_v34 }
 0x4c1   : >> { %v24692_v32 = vadd.f32 %v7924_v51, %v7250_v0  ;;  %22814 = vmatprep.mubr.msk.f32.mxu0 %vm617_vm2, %v19571_v13  ;;  %v19576_v0 = vld [vmem:[%s27858_s1 + $0xce] sm:$0xff]  ;;  %v19583_v51 = vld [vmem:[%s27858_s1 + $0x146] sm:$0xff] }
 0x4c2   : >> { %8004 = vst.msk [vmem:[#allocation6 + $0x28] sm:$0xff] %vm617_vm2, %v24691_v29 }
 0x4c3   : >> { %8003 = vst.msk [vmem:[#allocation6 + $0x20] sm:$0xff] %vm617_vm2, %v24692_v32  ;;  %v22281_v7 = vpop.f32.mrb[6].mxu0  ;;  %22655 = vmatmul.mubr.msk.f32.vlgmr.msra.gmra.mrb[32].mxu1 %vm617_vm2, %v19390_v35  ;;  %v19585_v35 = vld [vmem:[%s27858_s1 + $0x166] sm:$0xff]  ;;  %v19462_v32 = vld [vmem:[%s27858_s1 + $0x70] sm:$0xff] }
 0x4c4   : >> { %v24693_v40 = vadd.f32 %v22281_v7, %v22185_v18  ;;  %v7934_v53 = vpop.f32.mrb[7].mxu0  ;;  %22815 = vmatmul.mubr.msk.f32.vlgmr.msra.gmra.mrb[32].mxu0 %vm617_vm2, %v19572_v54  ;;  %23896 = vmatpush3.bf16.msra.mxu1 %v28846_v12  ;;  %v28939_v12 = vpack.c.bf16 %v19514_v45, %v19513_v63  ;;  %v19645_v7 = vld [vmem:[%s27858_s1 + $0xa8] sm:$0xff]  ;;  %v19549_v45 = vld [vmem:[%s30449_s3 + $0x260] sm:$0xff] }
 0x4c5   : >> { %v24694_v19 = vadd.f32 %v7934_v53, %v7260_v52  ;;  %22657 = vmatprep.mubr.msk.f32.mxu1 %vm617_vm2, %v19571_v13  ;;  %22817 = vmatprep.mubr.msk.f32.mxu0 %vm617_vm2, %v19573_v48  ;;  %v19577_v52 = vld [vmem:[%s27858_s1 + $0xe6] sm:$0xff] }
 0x4c6   : >> { %8006 = vst.msk [vmem:[#allocation6 + $0x38] sm:$0xff] %vm617_vm2, %v24693_v40  ;;  %v22220_v25 = vpop.f32.mrb[8].mxu1  ;;  %23936 = vmatpush3.bf16.msra.mxu0 %v28849_v8  ;;  %23898 = vmatprep.subr.bf16.mxu1 %v23897_v61  ;;  %v19550_v40 = vld [vmem:[%s30449_s3 + $0x268] sm:$0xff]  ;;  %v19731_v53 = vld [vmem:[%s30449_s3 + $0x300] sm:$0xff] }
 0x4c7   : >> { %8005 = vst.msk [vmem:[#allocation6 + $0x30] sm:$0xff] %vm617_vm2, %v24694_v19  ;;  %v22284_v42 = vpop.f32.mrb[8].mxu0  ;;  %v7484_v46 = vpop.f32.mrb[9].mxu1  ;;  %22658 = vmatmul.mubr.msk.f32.gmra.mrb[34].mxu1 %vm617_vm2, %v19572_v54  ;;  %23938 = vmatprep.subr.bf16.mxu0 %v23937_v20  ;;  %v19697_v54 = vld [vmem:[%s30449_s3 + $0x2f0] sm:$0xff]  ;;  %v19647_v19 = vld [vmem:[%s27858_s1 + $0xc8] sm:$0xff] }
 0x4c8   : >> { %v24695_v2 = vadd.f32 %v22284_v42, %v22220_v25  ;;  %v7944_v11 = vpop.f32.mrb[9].mxu0  ;;  %22818 = vmatmul.mubr.msk.f32.gmra.mrb[34].mxu0 %vm617_vm2, %v19574_v43  ;;  %22660 = vmatprep.mubr.msk.f32.mxu1 %vm617_vm2, %v19573_v48  ;;  %v19698_v48 = vld [vmem:[%s30449_s3 + $0x2f8] sm:$0xff]  ;;  %v23949_v25 = vpack.c.bf16 %v19732_v60, %v19731_v53  ;;  %v19650_v42 = vld [vmem:[%s27858_s1 + $0xf0] sm:$0xff] }
 0x4c9   : >> { %v24696_v8 = vadd.f32 %v7944_v11, %v7484_v46  ;;  %22820 = vmatprep.mubr.msk.f32.mxu0 %vm617_vm2, %v19575_v38  ;;  %23900 = vmatpush3.bf16.msra.mxu1 %v23897_v61  ;;  %v19644_v61 = vld [vmem:[%s27858_s1 + $0x90] sm:$0xff]  ;;  %v23945_v63 = vpack.c.bf16 %v19698_v48, %v19697_v54  ;;  %v19655_v46 = vld [vmem:[%s27858_s1 + $0x148] sm:$0xff]  ;;  %v9139_v54 = vld [vmem:[#allocation6 + $0x18] sm:$0xff] }
 0x4ca   : >> { %8008 = vst.msk [vmem:[#allocation6 + $0x48] sm:$0xff] %vm617_vm2, %v24695_v2  ;;  %v22223_v18 = vpop.f32.mrb[10].mxu1  ;;  %23940 = vmatpush3.bf16.msra.mxu0 %v23937_v20  ;;  %23902 = vmatprep.subr.bf16.mxu1 %v28939_v12  ;;  %v19657_v2 = vld [vmem:[%s27858_s1 + $0x168] sm:$0xff] }
 0x4cb   : >> { %8007 = vst.msk [vmem:[#allocation6 + $0x40] sm:$0xff] %vm617_vm2, %v24696_v8  ;;  %v22287_v31 = vpop.f32.mrb[10].mxu0  ;;  %v7494_v41 = vpop.f32.mrb[11].mxu1  ;;  %22661 = vmatmul.mubr.msk.f32.gmra.mrb[36].mxu1 %vm617_vm2, %v19574_v43  ;;  %23942 = vmatprep.subr.bf16.mxu0 %v28943_v55  ;;  %v23909_v43 = vpack.c.bf16 %v19550_v40, %v19549_v45  ;;  %v19679_v11 = vld [vmem:[%s27858_s1 + $0x89] sm:$0xff]  ;;  %v19498_v8 = vld [vmem:[%s27858_s1 + $0x71] sm:$0xff] }
 0x4cc   : >> { %v24697_v58 = vadd.f32 %v22287_v31, %v22223_v18  ;;  %v7954_v62 = vpop.f32.mrb[11].mxu0  ;;  %22821 = vmatmul.mubr.msk.f32.gmra.mrb[36].mxu0 %vm617_vm2, %v19576_v0  ;;  %22663 = vmatprep.mubr.msk.f32.mxu1 %vm617_vm2, %v19575_v38  ;;  %v19648_v38 = vld [vmem:[%s27858_s1 + $0xd0] sm:$0xff]  ;;  %v19734_v18 = vld [vmem:[%s30449_s3 + $0x318] sm:$0xff]  ;;  %v9141_v53 = vld [vmem:[#allocation6 + $0x28] sm:$0xff] }
 0x4cd   : >> { %v24698_v37 = vadd.f32 %v7954_v62, %v7494_v41  ;;  %22823 = vmatprep.mubr.msk.f32.mxu0 %vm617_vm2, %v19577_v52  ;;  %v19681_v31 = vld [vmem:[%s27858_s1 + $0xa9] sm:$0xff]  ;;  %v19682_v62 = vld [vmem:[%s27858_s1 + $0xb1] sm:$0xff] }
 0x4ce   : >> { %8010 = vst.msk [vmem:[#allocation6 + $0x58] sm:$0xff] %vm617_vm2, %v24697_v58  ;;  %v22226_v47 = vpop.f32.mrb[12].mxu1 }
 0x4cf   : >> { %8009 = vst.msk [vmem:[#allocation6 + $0x50] sm:$0xff] %vm617_vm2, %v24698_v37  ;;  %v22290_v22 = vpop.f32.mrb[12].mxu0  ;;  %v7504_v4 = vpop.f32.mrb[13].mxu1  ;;  %22664 = vmatmul.mubr.msk.f32.gmra.mrb[38].mxu1 %vm617_vm2, %v19576_v0  ;;  %v19733_v0 = vld [vmem:[%s30449_s3 + $0x310] sm:$0xff] }
 0x4d0   : >> { %v24699_v14 = vadd.f32 %v22290_v22, %v22226_v47  ;;  %v7964_v26 = vpop.f32.mrb[13].mxu0  ;;  %22824 = vmatmul.mubr.msk.f32.gmra.mrb[38].mxu0 %vm617_vm2, %v19578_v3  ;;  %22666 = vmatprep.mubr.msk.f32.mxu1 %vm617_vm2, %v19577_v52  ;;  %v19680_v52 = vld [vmem:[%s27858_s1 + $0x91] sm:$0xff]  ;;  %v23953_v58 = vpack.c.bf16 %v19734_v18, %v19733_v0  ;;  %v19683_v37 = vld [vmem:[%s27858_s1 + $0xc9] sm:$0xff] }
 0x4d1   : >> { %v24700_v59 = vadd.f32 %v7964_v26, %v7504_v4  ;;  %22826 = vmatprep.mubr.msk.f32.mxu0 %vm617_vm2, %v28478_v36  ;;  %v19685_v47 = vld [vmem:[%s27858_s1 + $0xe9] sm:$0xff]  ;;  %v19686_v22 = vld [vmem:[%s27858_s1 + $0xf1] sm:$0xff] }
 0x4d2   : >> { %8012 = vst.msk [vmem:[#allocation6 + $0x68] sm:$0xff] %vm617_vm2, %v24699_v14  ;;  %v22229_v34 = vpop.f32.mrb[14].mxu1  ;;  %v19691_v4 = vld [vmem:[%s27858_s1 + $0x149] sm:$0xff]  ;;  %v19692_v14 = vld [vmem:[%s27858_s1 + $0x151] sm:$0xff] }
 0x4d3   : >> { %8011 = vst.msk [vmem:[#allocation6 + $0x60] sm:$0xff] %vm617_vm2, %v24700_v59  ;;  %v22293_v13 = vpop.f32.mrb[14].mxu0  ;;  %v7514_v1 = vpop.f32.mrb[15].mxu1  ;;  %22667 = vmatmul.mubr.msk.f32.gmra.mrb[40].mxu1 %vm617_vm2, %v19578_v3  ;;  %v19684_v3 = vld [vmem:[%s27858_s1 + $0xd1] sm:$0xff] }
 0x4d4   : >> { %v24701_v27 = vadd.f32 %v22293_v13, %v22229_v34  ;;  %v7974_v5 = vpop.f32.mrb[15].mxu0  ;;  %22827 = vmatmul.mubr.msk.f32.gmra.mrb[40].mxu0 %vm617_vm2, %v28489_v30  ;;  %22669 = vmatprep.mubr.msk.f32.mxu1 %vm617_vm2, %v28478_v36  ;;  %v19584_v36 = vld [vmem:[%s27858_s1 + $0x14e] sm:$0xff] }
 0x4d5   : >> { %v24702_v29 = vadd.f32 %v7974_v5, %v7514_v1  ;;  %22829 = vmatprep.mubr.msk.f32.mxu0 %vm617_vm2, %v28492_v44  ;;  %v19533_v26 = vld [vmem:[%s27858_s1 + $0x6a] sm:$0xff]  ;;  %v19716_v59 = vld [vmem:[%s27858_s1 + $0x92] sm:$0xff] }
 0x4d6   : >> { %8014 = vst.msk [vmem:[#allocation6 + $0x78] sm:$0xff] %vm617_vm2, %v24701_v27  ;;  %v19717_v34 = vld [vmem:[%s27858_s1 + $0xaa] sm:$0xff]  ;;  %v19718_v13 = vld [vmem:[%s27858_s1 + $0xb2] sm:$0xff] }
 0x4d7   : >> { %8013 = vst.msk [vmem:[#allocation6 + $0x70] sm:$0xff] %vm617_vm2, %v24702_v29  ;;  %22670 = vmatmul.mubr.msk.f32.gmra.mrb[42].mxu1 %vm617_vm2, %v28489_v30  ;;  %v19586_v30 = vld [vmem:[%s27858_s1 + $0x16e] sm:$0xff] }
 0x4d8   : >> { %22830 = vmatmul.mubr.msk.f32.gmra.mrb[42].mxu0 %vm617_vm2, %v28503_v49  ;;  %22672 = vmatprep.mubr.msk.f32.mxu1 %vm617_vm2, %v28492_v44  ;;  %v19515_v44 = vld [vmem:[%s30449_s3 + $0x250] sm:$0xff] }
 0x4d9   : >> { %22832 = vmatprep.mubr.msk.f32.mxu0 %vm617_vm2, %v19583_v51  ;;  %v19719_v1 = vld [vmem:[%s27858_s1 + $0xca] sm:$0xff]  ;;  %v19720_v27 = vld [vmem:[%s27858_s1 + $0xd2] sm:$0xff] }
 0x4da   : >> { %v19721_v5 = vld [vmem:[%s27858_s1 + $0xea] sm:$0xff]  ;;  %v19722_v29 = vld [vmem:[%s27858_s1 + $0xf2] sm:$0xff] }
 0x4db   : >> { %22673 = vmatmul.mubr.msk.f32.gmra.mrb[44].mxu1 %vm617_vm2, %v28503_v49  ;;  %v19516_v49 = vld [vmem:[%s30449_s3 + $0x258] sm:$0xff] }
 0x4dc   : >> { %22833 = vmatmul.mubr.msk.f32.gmra.mrb[44].mxu0 %vm617_vm2, %v19584_v36  ;;  %22675 = vmatprep.mubr.msk.f32.mxu1 %vm617_vm2, %v19583_v51  ;;  %v23905_v20 = vpack.c.bf16 %v19516_v49, %v19515_v44  ;;  %v19727_v51 = vld [vmem:[%s27858_s1 + $0x14a] sm:$0xff]  ;;  %v9136_v44 = vld [vmem:[#allocation6] sm:$0xff] }
 0x4dd   : >> { %22835 = vmatprep.mubr.msk.f32.mxu0 %vm617_vm2, %v19585_v35  ;;  %v19729_v35 = vld [vmem:[%s27858_s1 + $0x16a] sm:$0xff] }
 0x4df   : >> { %22676 = vmatmul.mubr.msk.f32.gmra.mrb[46].mxu1 %vm617_vm2, %v19584_v36  ;;  %v19728_v36 = vld [vmem:[%s27858_s1 + $0x152] sm:$0xff] }
 0x4e0   : >> { %22836 = vmatmul.mubr.msk.f32.gmra.mrb[46].mxu0 %vm617_vm2, %v19586_v30  ;;  %22686 = vmatprep.mubr.msk.f32.mxu1 %vm617_vm2, %v19461_v15 }
 0x4e1   : >> { %22846 = vmatprep.mubr.msk.f32.mxu0 %vm617_vm2, %v19643_v23 }
 0x4e3   : >> { %22687 = vmatmul.mubr.msk.f32.vlgmr.msra.gmra.mrb[32].mxu1 %vm617_vm2, %v19462_v32 }
 0x4e4   : >> { %22847 = vmatmul.mubr.msk.f32.vlgmr.msra.gmra.mrb[32].mxu0 %vm617_vm2, %v19644_v61  ;;  %23904 = vmatpush3.bf16.msra.mxu1 %v28939_v12  ;;  %v19649_v12 = vld [vmem:[%s27858_s1 + $0xe8] sm:$0xff] }
 0x4e5   : >> { %22689 = vmatprep.mubr.msk.f32.mxu1 %vm617_vm2, %v19643_v23  ;;  %22849 = vmatprep.mubr.msk.f32.mxu0 %vm617_vm2, %v19645_v7 }
 0x4e6   : >> { %23944 = vmatpush3.bf16.msra.mxu0 %v28943_v55  ;;  %23906 = vmatprep.subr.bf16.mxu1 %v23905_v20  ;;  %v19656_v55 = vld [vmem:[%s27858_s1 + $0x150] sm:$0xff] }
 0x4e7   : >> { %22690 = vmatmul.mubr.msk.f32.gmra.mrb[34].mxu1 %vm617_vm2, %v19644_v61  ;;  %23946 = vmatprep.subr.bf16.mxu0 %v23945_v63 }
 0x4e8   : >> { %22850 = vmatmul.mubr.msk.f32.gmra.mrb[34].mxu0 %vm617_vm2, %v19646_v39  ;;  %22692 = vmatprep.mubr.msk.f32.mxu1 %vm617_vm2, %v19645_v7 }
 0x4e9   : >> { %22852 = vmatprep.mubr.msk.f32.mxu0 %vm617_vm2, %v19647_v19  ;;  %23908 = vmatpush3.bf16.msra.mxu1 %v23905_v20  ;;  %v9138_v20 = vld [vmem:[#allocation6 + $0x10] sm:$0xff] }
 0x4ea   : >> { %23948 = vmatpush3.bf16.msra.mxu0 %v23945_v63  ;;  %23910 = vmatprep.subr.bf16.mxu1 %v23909_v43 }
 0x4eb   : >> { %22693 = vmatmul.mubr.msk.f32.gmra.mrb[36].mxu1 %vm617_vm2, %v19646_v39  ;;  %23950 = vmatprep.subr.bf16.mxu0 %v23949_v25 }
 0x4ec   : >> { %22853 = vmatmul.mubr.msk.f32.gmra.mrb[36].mxu0 %vm617_vm2, %v19648_v38  ;;  %22695 = vmatprep.mubr.msk.f32.mxu1 %vm617_vm2, %v19647_v19 }
 0x4ed   : >> { %22855 = vmatprep.mubr.msk.f32.mxu0 %vm617_vm2, %v19649_v12 }
 0x4ef   : >> { %22696 = vmatmul.mubr.msk.f32.gmra.mrb[38].mxu1 %vm617_vm2, %v19648_v38 }
 0x4f0   : >> { %22856 = vmatmul.mubr.msk.f32.gmra.mrb[38].mxu0 %vm617_vm2, %v19650_v42  ;;  %22698 = vmatprep.mubr.msk.f32.mxu1 %vm617_vm2, %v19649_v12 }
 0x4f1   : >> { %22858 = vmatprep.mubr.msk.f32.mxu0 %vm617_vm2, %v28578_v16 }
 0x4f3   : >> { %22699 = vmatmul.mubr.msk.f32.gmra.mrb[40].mxu1 %vm617_vm2, %v19650_v42 }
 0x4f4   : >> { %22859 = vmatmul.mubr.msk.f32.gmra.mrb[40].mxu0 %vm617_vm2, %v28589_v24  ;;  %22701 = vmatprep.mubr.msk.f32.mxu1 %vm617_vm2, %v28578_v16  ;;  %v19658_v16 = vld [vmem:[%s27858_s1 + $0x170] sm:$0xff] }
 0x4f5   : >> { %22861 = vmatprep.mubr.msk.f32.mxu0 %vm617_vm2, %v28592_v50 }
 0x4f7   : >> { %22702 = vmatmul.mubr.msk.f32.gmra.mrb[42].mxu1 %vm617_vm2, %v28589_v24  ;;  %v19497_v24 = vld [vmem:[%s27858_s1 + $0x69] sm:$0xff] }
 0x4f8   : >> { %22862 = vmatmul.mubr.msk.f32.gmra.mrb[42].mxu0 %vm617_vm2, %v28603_v28  ;;  %22704 = vmatprep.mubr.msk.f32.mxu1 %vm617_vm2, %v28592_v50  ;;  %v19551_v50 = vld [vmem:[%s30449_s3 + $0x270] sm:$0xff] }
 0x4f9   : >> { %22864 = vmatprep.mubr.msk.f32.mxu0 %vm617_vm2, %v19655_v46 }
 0x4fb   : >> { %22705 = vmatmul.mubr.msk.f32.gmra.mrb[44].mxu1 %vm617_vm2, %v28603_v28  ;;  %v19552_v28 = vld [vmem:[%s30449_s3 + $0x278] sm:$0xff] }
 0x4fc   : >> { %22865 = vmatmul.mubr.msk.f32.gmra.mrb[44].mxu0 %vm617_vm2, %v19656_v55  ;;  %22707 = vmatprep.mubr.msk.f32.mxu1 %vm617_vm2, %v19655_v46  ;;  %v23913_v41 = vpack.c.bf16 %v19552_v28, %v19551_v50  ;;  %v9142_v28 = vld [vmem:[#allocation6 + $0x30] sm:$0xff] }
 0x4fd   : >> { %22867 = vmatprep.mubr.msk.f32.mxu0 %vm617_vm2, %v19657_v2 }
 0x4ff   : >> { %22708 = vmatmul.mubr.msk.f32.gmra.mrb[46].mxu1 %vm617_vm2, %v19656_v55 }
 0x500   : >> { %22868 = vmatmul.mubr.msk.f32.gmra.mrb[46].mxu0 %vm617_vm2, %v19658_v16  ;;  %22718 = vmatprep.mubr.msk.f32.mxu1 %vm617_vm2, %v19497_v24  ;;  %v9143_v16 = vld [vmem:[#allocation6 + $0x38] sm:$0xff] }
 0x501   : >> { %22878 = vmatprep.mubr.msk.f32.mxu0 %vm617_vm2, %v19679_v11 }
 0x503   : >> { %22719 = vmatmul.mubr.msk.f32.vlgmr.msra.gmra.mrb[32].mxu1 %vm617_vm2, %v19498_v8 }
 0x504   : >> { %22879 = vmatmul.mubr.msk.f32.vlgmr.msra.gmra.mrb[32].mxu0 %vm617_vm2, %v19680_v52  ;;  %23912 = vmatpush3.bf16.msra.mxu1 %v23909_v43  ;;  %v9140_v43 = vld [vmem:[#allocation6 + $0x20] sm:$0xff] }
 0x505   : >> { %22721 = vmatprep.mubr.msk.f32.mxu1 %vm617_vm2, %v19679_v11  ;;  %22881 = vmatprep.mubr.msk.f32.mxu0 %vm617_vm2, %v19681_v31 }
 0x506   : >> { %23952 = vmatpush3.bf16.msra.mxu0 %v23949_v25  ;;  %23914 = vmatprep.subr.bf16.mxu1 %v23913_v41 }
 0x507   : >> { %22722 = vmatmul.mubr.msk.f32.gmra.mrb[34].mxu1 %vm617_vm2, %v19680_v52  ;;  %23954 = vmatprep.subr.bf16.mxu0 %v23953_v58 }
 0x508   : >> { %22882 = vmatmul.mubr.msk.f32.gmra.mrb[34].mxu0 %vm617_vm2, %v19682_v62  ;;  %22724 = vmatprep.mubr.msk.f32.mxu1 %vm617_vm2, %v19681_v31 }
 0x509   : >> { %22884 = vmatprep.mubr.msk.f32.mxu0 %vm617_vm2, %v19683_v37  ;;  %23916 = vmatpush3.bf16.msra.mxu1 %v23913_v41 }
 0x50a   : >> { %23956 = vmatpush3.bf16.msra.mxu0 %v23953_v58 }
 0x50b   : >> { %22725 = vmatmul.mubr.msk.f32.gmra.mrb[36].mxu1 %vm617_vm2, %v19682_v62  ;;  %v9145_v62 = vld [vmem:[#allocation6 + $0x48] sm:$0xff] }
 0x50c   : >> { %22885 = vmatmul.mubr.msk.f32.gmra.mrb[36].mxu0 %vm617_vm2, %v19684_v3  ;;  %22727 = vmatprep.mubr.msk.f32.mxu1 %vm617_vm2, %v19683_v37 }
 0x50d   : >> { %22887 = vmatprep.mubr.msk.f32.mxu0 %vm617_vm2, %v19685_v47 }
 0x50f   : >> { %22728 = vmatmul.mubr.msk.f32.gmra.mrb[38].mxu1 %vm617_vm2, %v19684_v3 }
 0x510   : >> { %22888 = vmatmul.mubr.msk.f32.gmra.mrb[38].mxu0 %vm617_vm2, %v19686_v22  ;;  %22730 = vmatprep.mubr.msk.f32.mxu1 %vm617_vm2, %v19685_v47 }
 0x511   : >> { %22890 = vmatprep.mubr.msk.f32.mxu0 %vm617_vm2, %v28678_v33 }
 0x513   : >> { %22731 = vmatmul.mubr.msk.f32.gmra.mrb[40].mxu1 %vm617_vm2, %v19686_v22  ;;  %v9144_v22 = vld [vmem:[#allocation6 + $0x40] sm:$0xff] }
 0x514   : >> { %22891 = vmatmul.mubr.msk.f32.gmra.mrb[40].mxu0 %vm617_vm2, %v28689_v6  ;;  %22733 = vmatprep.mubr.msk.f32.mxu1 %vm617_vm2, %v28678_v33  ;;  %v19693_v33 = vld [vmem:[%s27858_s1 + $0x169] sm:$0xff] }
 0x515   : >> { %22893 = vmatprep.mubr.msk.f32.mxu0 %vm617_vm2, %v28692_v17 }
 0x517   : >> { %22734 = vmatmul.mubr.msk.f32.gmra.mrb[42].mxu1 %vm617_vm2, %v28689_v6  ;;  %v19694_v6 = vld [vmem:[%s27858_s1 + $0x171] sm:$0xff] }
 0x518   : >> { %22894 = vmatmul.mubr.msk.f32.gmra.mrb[42].mxu0 %vm617_vm2, %v28703_v21  ;;  %22736 = vmatprep.mubr.msk.f32.mxu1 %vm617_vm2, %v28692_v17  ;;  %v19715_v17 = vld [vmem:[%s27858_s1 + $0x8a] sm:$0xff] }
 0x519   : >> { %22896 = vmatprep.mubr.msk.f32.mxu0 %vm617_vm2, %v19691_v4 }
 0x51b   : >> { %22737 = vmatmul.mubr.msk.f32.gmra.mrb[44].mxu1 %vm617_vm2, %v28703_v21  ;;  %v19534_v21 = vld [vmem:[%s27858_s1 + $0x72] sm:$0xff] }
 0x51c   : >> { %22897 = vmatmul.mubr.msk.f32.gmra.mrb[44].mxu0 %vm617_vm2, %v19692_v14  ;;  %22739 = vmatprep.mubr.msk.f32.mxu1 %vm617_vm2, %v19691_v4 }
 0x51d   : >> { %22899 = vmatprep.mubr.msk.f32.mxu0 %vm617_vm2, %v19693_v33 }
 0x51f   : >> { %22740 = vmatmul.mubr.msk.f32.gmra.mrb[46].mxu1 %vm617_vm2, %v19692_v14 }
 0x520   : >> { %22900 = vmatmul.mubr.msk.f32.gmra.mrb[46].mxu0 %vm617_vm2, %v19694_v6  ;;  %22750 = vmatprep.mubr.msk.f32.mxu1 %vm617_vm2, %v19533_v26 }
 0x521   : >> { %22910 = vmatprep.mubr.msk.f32.mxu0 %vm617_vm2, %v19715_v17 }
 0x523   : >> { %22751 = vmatmul.mubr.msk.f32.vlgmr.msra.gmra.mrb[32].mxu1 %vm617_vm2, %v19534_v21 }
 0x524   : >> { %22911 = vmatmul.mubr.msk.f32.vlgmr.msra.gmra.mrb[32].mxu0 %vm617_vm2, %v19716_v59  ;;  %22753 = vmatprep.mubr.msk.f32.mxu1 %vm617_vm2, %v19715_v17 }
 0x525   : >> { %22913 = vmatprep.mubr.msk.f32.mxu0 %vm617_vm2, %v19717_v34 }
 0x527   : >> { %22754 = vmatmul.mubr.msk.f32.gmra.mrb[34].mxu1 %vm617_vm2, %v19716_v59  ;;  %v9147_v59 = vld [vmem:[#allocation6 + $0x58] sm:$0xff] }
 0x528   : >> { %22914 = vmatmul.mubr.msk.f32.gmra.mrb[34].mxu0 %vm617_vm2, %v19718_v13  ;;  %22756 = vmatprep.mubr.msk.f32.mxu1 %vm617_vm2, %v19717_v34 }
 0x529   : >> { %22916 = vmatprep.mubr.msk.f32.mxu0 %vm617_vm2, %v19719_v1 }
 0x52b   : >> { %22757 = vmatmul.mubr.msk.f32.gmra.mrb[36].mxu1 %vm617_vm2, %v19718_v13 }
 0x52c   : >> { %22917 = vmatmul.mubr.msk.f32.gmra.mrb[36].mxu0 %vm617_vm2, %v19720_v27  ;;  %22759 = vmatprep.mubr.msk.f32.mxu1 %vm617_vm2, %v19719_v1 }
 0x52d   : >> { %22919 = vmatprep.mubr.msk.f32.mxu0 %vm617_vm2, %v19721_v5 }
 0x52f   : >> { %22760 = vmatmul.mubr.msk.f32.gmra.mrb[38].mxu1 %vm617_vm2, %v19720_v27  ;;  %v9146_v27 = vld [vmem:[#allocation6 + $0x50] sm:$0xff] }
 0x530   : >> { %22920 = vmatmul.mubr.msk.f32.gmra.mrb[38].mxu0 %vm617_vm2, %v19722_v29  ;;  %22762 = vmatprep.mubr.msk.f32.mxu1 %vm617_vm2, %v19721_v5 }
 0x531   : >> { %22922 = vmatprep.mubr.msk.f32.mxu0 %vm617_vm2, %v28778_v9 }
 0x533   : >> { %22763 = vmatmul.mubr.msk.f32.gmra.mrb[40].mxu1 %vm617_vm2, %v19722_v29 }
 0x534   : >> { %22923 = vmatmul.mubr.msk.f32.gmra.mrb[40].mxu0 %vm617_vm2, %v28789_v10  ;;  %22765 = vmatprep.mubr.msk.f32.mxu1 %vm617_vm2, %v28778_v9  ;;  %v19730_v9 = vld [vmem:[%s27858_s1 + $0x172] sm:$0xff]  ;;  %s19753_s1 = smul.u32 96, %s25379_s13  ;;  %s6878_s13 = sadd.s32 1, %s25379_s13  }
 0x535   : >> { %22925 = vmatprep.mubr.msk.f32.mxu0 %vm617_vm2, %v28792_v56  ;;  %p6875_p9 = scmp.ge.s32.totalorder %s6878_s13, 2  }
 0x536   : >> { %s29261_s15 = scalar_lea.vmem [#allocation4], %s19753_s1  ;;  %vm13486_vm5 = vcmask (%p6875_p9), 523264   ;;  %vm25386_vm6 = vmmov (%p6875_p9), 0   ;;  %s20096_s24 = sshll.u32 (%p6875_p9), %s25469_s21, 4  ;;  %vm17995_vm7 = vcmask (%p6875_p9), 73728  }
 0x537   : >> { %22766 = vmatmul.mubr.msk.f32.gmra.mrb[42].mxu1 %vm617_vm2, %v28789_v10  ;;  %s18010_s29 = sshll.u32 (%p6875_p9), %s26463_s30, 4  ;;  %s30401_s0 = scalar_lea.hbm (%p6875_p9), %s30457_s11, %s20096_s24  ;;  %s30403_s29 = int_to_ptr.vmem [resolvable:$true] %s18010_s29 }
 0x538   : >> { %22926 = vmatmul.mubr.msk.f32.gmra.mrb[42].mxu0 %vm617_vm2, %v28803_v57  ;;  %22768 = vmatprep.mubr.msk.f32.mxu1 %vm617_vm2, %v28792_v56  ;;  %v9137_v56 = vld [vmem:[#allocation6 + $0x8] sm:$0xff]  ;;  %s30535_s26 = sand.u32 (%p6875_p9), 1, %s25363_s18   ;;  %s25297_s16 = scalar_lea.vmem (%p6875_p9), %s30403_s29, 16 }
 0x539   : >> { %22928 = vmatprep.mubr.msk.f32.mxu0 %vm617_vm2, %v19727_v51  ;;  %s17998_s1 = scalar_lea.sflag (%p6875_p9), [#allocation10], %s30535_s26  ;;  %p25298_p10 = scmp.ne.s32.totalorder (%p6875_p9), %s30403_s29, %s25297_s16 }
 0x53a   : > { %p30536_p12 = scmp.ne.s32.totalorder (%p6875_p9), %s30495_s27, 0  ;;  %s25387_s21 = smov (%p6875_p9), [#allocation11]  }
 0x53b   : >> { %22769 = vmatmul.mubr.msk.f32.gmra.mrb[44].mxu1 %vm617_vm2, %v28803_v57  ;;  %s25301_s25 = sshll.u32 (%p6875_p9), %s25387_s21, 4  ;;  %s25302_s25 = int_to_ptr.vmem [resolvable:$false] %s25301_s25 }
 0x53c   : >> { %22929 = vmatmul.mubr.msk.f32.gmra.mrb[44].mxu0 %vm617_vm2, %v19728_v36  ;;  %22771 = vmatprep.mubr.msk.f32.mxu1 %vm617_vm2, %v19727_v51  ;;  %p25299_p2 = pnand (%p6875_p9), %p25298_p10, %p30536_p12  ;;  %p25304_p4 = scmp.lt.s32.totalorder (%p6875_p9), %s30403_s29, %s25302_s25 }
 0x53d   : >> { %22931 = vmatprep.mubr.msk.f32.mxu0 %vm617_vm2, %v19729_v35 }
 0x53e   : > { %p25300_p3 = pneg (%p6875_p9), %p25299_p2 }
 0x53f   : >> { %22772 = vmatmul.mubr.msk.f32.gmra.mrb[46].mxu1 %vm617_vm2, %v19728_v36 }
 0x540   : >> { %22932 = vmatmul.mubr.msk.f32.gmra.mrb[46].mxu0 %vm617_vm2, %v19730_v9 }
 0x556   : >> { %v22432_v10 = vpop.f32.mrb[16].mxu1 }
 0x557   : >> { %v9153_v30 = vadd.f32 %v22432_v10, %v9137_v56  ;;  %v22592_v15 = vpop.f32.mrb[16].mxu0  ;;  %v9041_v23 = vpop.f32.mrb[17].mxu1  ;;  %v9149_v56 = vld [vmem:[#allocation6 + $0x68] sm:$0xff] }
 0x558   : >> { %v9152_v49 = vadd.f32 %v9136_v44, %v9041_v23  ;;  %v10210_v32 = vpop.f32.mrb[17].mxu0  ;;  %v9148_v44 = vld [vmem:[#allocation6 + $0x60] sm:$0xff] }
 0x559   : >> { %9169 = vst.msk [vmem:[#allocation6 + $0x8] sm:$0xff] %vm617_vm2, %v9153_v30 }
 0x55a   : >> { %9168 = vst.msk [vmem:[#allocation6] sm:$0xff] %vm617_vm2, %v9152_v49  ;;  %v22435_v57 = vpop.f32.mrb[18].mxu1 }
 0x55b   : >> { %v9155_v48 = vadd.f32 %v22435_v57, %v9139_v54  ;;  %v22595_v61 = vpop.f32.mrb[18].mxu0  ;;  %v9051_v7 = vpop.f32.mrb[19].mxu1 }
 0x55c   : >> { %v9154_v63 = vadd.f32 %v9138_v20, %v9051_v7  ;;  %v10220_v45 = vpop.f32.mrb[19].mxu0  ;;  %v9151_v20 = vld [vmem:[#allocation6 + $0x78] sm:$0xff] }
 0x55d   : >> { %9171 = vst.msk [vmem:[#allocation6 + $0x18] sm:$0xff] %vm617_vm2, %v9155_v48 }
 0x55e   : >> { %9170 = vst.msk [vmem:[#allocation6 + $0x10] sm:$0xff] %vm617_vm2, %v9154_v63  ;;  %v22438_v40 = vpop.f32.mrb[20].mxu1 }
 0x55f   : >> { %v9157_v60 = vadd.f32 %v22438_v40, %v9141_v53  ;;  %v22598_v39 = vpop.f32.mrb[20].mxu0  ;;  %v9061_v19 = vpop.f32.mrb[21].mxu1  ;;  %v9150_v53 = vld [vmem:[#allocation6 + $0x70] sm:$0xff] }
 0x560   : >> { %v10306_v25 = vld [vmem:[#allocation6 + $0x8] sm:$0xff]  ;;  %v9156_v38 = vadd.f32 %v9140_v43, %v9061_v19  ;;  %v10230_v12 = vpop.f32.mrb[21].mxu0 }
 0x561   : >> { %v10322_v42 = vadd.f32 %v22592_v15, %v10306_v25  ;;  %v10305_v46 = vld [vmem:[#allocation6] sm:$0xff]  ;;  %9173 = vst.msk [vmem:[#allocation6 + $0x28] sm:$0xff] %vm617_vm2, %v9157_v60 }
 0x562   : >> { %v10321_v55 = vadd.f32 %v10305_v46, %v10210_v32  ;;  %9172 = vst.msk [vmem:[#allocation6 + $0x20] sm:$0xff] %vm617_vm2, %v9156_v38  ;;  %v22441_v2 = vpop.f32.mrb[22].mxu1 }
 0x563   : >> { %10338 = vst.msk [vmem:[#allocation6 + $0x8] sm:$0xff] %vm617_vm2, %v10322_v42  ;;  %v9159_v24 = vadd.f32 %v22441_v2, %v9143_v16  ;;  %v22601_v11 = vpop.f32.mrb[22].mxu0  ;;  %v9071_v50 = vpop.f32.mrb[23].mxu1 }
 0x564   : >> { %10337 = vst.msk [vmem:[#allocation6] sm:$0xff] %vm617_vm2, %v10321_v55  ;;  %v10308_v8 = vld [vmem:[#allocation6 + $0x18] sm:$0xff]  ;;  %v9158_v0 = vadd.f32 %v9142_v28, %v9071_v50  ;;  %v10240_v18 = vpop.f32.mrb[23].mxu0 }
 0x565   : >> { %v10324_v52 = vadd.f32 %v22595_v61, %v10308_v8  ;;  %v10307_v31 = vld [vmem:[#allocation6 + $0x10] sm:$0xff]  ;;  %9175 = vst.msk [vmem:[#allocation6 + $0x38] sm:$0xff] %vm617_vm2, %v9159_v24 }
 0x566   : >> { %v10323_v41 = vadd.f32 %v10307_v31, %v10220_v45  ;;  %9174 = vst.msk [vmem:[#allocation6 + $0x30] sm:$0xff] %vm617_vm2, %v9158_v0  ;;  %v22444_v58 = vpop.f32.mrb[24].mxu1 }
 0x567   : >> { %10340 = vst.msk [vmem:[#allocation6 + $0x18] sm:$0xff] %vm617_vm2, %v10324_v52  ;;  %v9161_v37 = vadd.f32 %v22444_v58, %v9145_v62  ;;  %v22604_v3 = vpop.f32.mrb[24].mxu0  ;;  %v9081_v47 = vpop.f32.mrb[25].mxu1 }
 0x568   : >> { %10339 = vst.msk [vmem:[#allocation6 + $0x10] sm:$0xff] %vm617_vm2, %v10323_v41  ;;  %v10310_v4 = vld [vmem:[#allocation6 + $0x28] sm:$0xff]  ;;  %v9160_v14 = vadd.f32 %v9144_v22, %v9081_v47  ;;  %v10250_v33 = vpop.f32.mrb[25].mxu0 }
 0x569   : >> { %v10326_v6 = vadd.f32 %v22598_v39, %v10310_v4  ;;  %v10309_v26 = vld [vmem:[#allocation6 + $0x20] sm:$0xff]  ;;  %9177 = vst.msk [vmem:[#allocation6 + $0x48] sm:$0xff] %vm617_vm2, %v9161_v37 }
 0x56a   : >> { %v10325_v17 = vadd.f32 %v10309_v26, %v10230_v12  ;;  %9176 = vst.msk [vmem:[#allocation6 + $0x40] sm:$0xff] %vm617_vm2, %v9160_v14  ;;  %v22447_v21 = vpop.f32.mrb[26].mxu1  ;;  %v11475_v28 = vld [vmem:[#allocation6 + $0x8] sm:$0xff] }
 0x56b   : >> { %10342 = vst.msk [vmem:[#allocation6 + $0x28] sm:$0xff] %vm617_vm2, %v10326_v6  ;;  %v9163_v34 = vadd.f32 %v22447_v21, %v9147_v59  ;;  %v22607_v13 = vpop.f32.mrb[26].mxu0  ;;  %v9091_v1 = vpop.f32.mrb[27].mxu1  ;;  %v11474_v52 = vld [vmem:[#allocation6] sm:$0xff] }
 0x56c   : >> { %10341 = vst.msk [vmem:[#allocation6 + $0x20] sm:$0xff] %vm617_vm2, %v10325_v17  ;;  %v10312_v5 = vld [vmem:[#allocation6 + $0x38] sm:$0xff]  ;;  %v9162_v29 = vadd.f32 %v9146_v27, %v9091_v1  ;;  %v10260_v51 = vpop.f32.mrb[27].mxu0 }
 0x56d   : >> { %v10328_v36 = vadd.f32 %v22601_v11, %v10312_v5  ;;  %v10311_v35 = vld [vmem:[#allocation6 + $0x30] sm:$0xff]  ;;  %9179 = vst.msk [vmem:[#allocation6 + $0x58] sm:$0xff] %vm617_vm2, %v9163_v34 }
 0x56e   : >> { %v10327_v9 = vadd.f32 %v10311_v35, %v10240_v18  ;;  %9178 = vst.msk [vmem:[#allocation6 + $0x50] sm:$0xff] %vm617_vm2, %v9162_v29  ;;  %v22450_v10 = vpop.f32.mrb[28].mxu1  ;;  %v11477_v62 = vld [vmem:[#allocation6 + $0x18] sm:$0xff] }
 0x56f   : >> { %10344 = vst.msk [vmem:[#allocation6 + $0x38] sm:$0xff] %vm617_vm2, %v10328_v36  ;;  %v9165_v30 = vadd.f32 %v22450_v10, %v9149_v56  ;;  %v22610_v15 = vpop.f32.mrb[28].mxu0  ;;  %v9101_v23 = vpop.f32.mrb[29].mxu1  ;;  %v11476_v22 = vld [vmem:[#allocation6 + $0x10] sm:$0xff] }
 0x570   : >> { %10343 = vst.msk [vmem:[#allocation6 + $0x30] sm:$0xff] %vm617_vm2, %v10327_v9  ;;  %v10314_v49 = vld [vmem:[#allocation6 + $0x48] sm:$0xff]  ;;  %v9164_v32 = vadd.f32 %v9148_v44, %v9101_v23  ;;  %v10270_v57 = vpop.f32.mrb[29].mxu0 }
 0x571   : >> { %v10330_v54 = vadd.f32 %v22604_v3, %v10314_v49  ;;  %v10313_v48 = vld [vmem:[#allocation6 + $0x40] sm:$0xff]  ;;  %9181 = vst.msk [vmem:[#allocation6 + $0x68] sm:$0xff] %vm617_vm2, %v9165_v30 }
 0x572   : >> { %v10329_v61 = vadd.f32 %v10313_v48, %v10250_v33  ;;  %9180 = vst.msk [vmem:[#allocation6 + $0x60] sm:$0xff] %vm617_vm2, %v9164_v32  ;;  %v22453_v7 = vpop.f32.mrb[30].mxu1  ;;  %v11479_v6 = vld [vmem:[#allocation6 + $0x28] sm:$0xff] }
 0x573   : >> { %10346 = vst.msk [vmem:[#allocation6 + $0x48] sm:$0xff] %vm617_vm2, %v10330_v54  ;;  %v9167_v63 = vadd.f32 %v22453_v7, %v9151_v20  ;;  %v22613_v45 = vpop.f32.mrb[30].mxu0  ;;  %v9111_v40 = vpop.f32.mrb[31].mxu1  ;;  %v11478_v59 = vld [vmem:[#allocation6 + $0x20] sm:$0xff] }
 0x574   : >> { %10345 = vst.msk [vmem:[#allocation6 + $0x40] sm:$0xff] %vm617_vm2, %v10329_v61  ;;  %v10316_v60 = vld [vmem:[#allocation6 + $0x58] sm:$0xff]  ;;  %v9166_v39 = vadd.f32 %v9150_v53, %v9111_v40  ;;  %v10280_v19 = vpop.f32.mrb[31].mxu0 }
 0x575   : >> { %v10332_v43 = vadd.f32 %v22607_v13, %v10316_v60  ;;  %v10315_v25 = vld [vmem:[#allocation6 + $0x50] sm:$0xff]  ;;  %9183 = vst.msk [vmem:[#allocation6 + $0x78] sm:$0xff] %vm617_vm2, %v9167_v63 }
 0x576   : >> { %v10331_v38 = vadd.f32 %v10315_v25, %v10260_v51  ;;  %9182 = vst.msk [vmem:[#allocation6 + $0x70] sm:$0xff] %vm617_vm2, %v9166_v39  ;;  %v11481_v36 = vld [vmem:[#allocation6 + $0x38] sm:$0xff] }
 0x577   : >> { %10348 = vst.msk [vmem:[#allocation6 + $0x58] sm:$0xff] %vm617_vm2, %v10332_v43  ;;  %v11480_v56 = vld [vmem:[#allocation6 + $0x30] sm:$0xff] }
 0x578   : >> { %10347 = vst.msk [vmem:[#allocation6 + $0x50] sm:$0xff] %vm617_vm2, %v10331_v38  ;;  %v10318_v12 = vld [vmem:[#allocation6 + $0x68] sm:$0xff] }
 0x579   : >> { %v10334_v42 = vadd.f32 %v22610_v15, %v10318_v12  ;;  %v10317_v46 = vld [vmem:[#allocation6 + $0x60] sm:$0xff] }
 0x57a   : >> { %v10333_v55 = vadd.f32 %v10317_v46, %v10270_v57  ;;  %v11483_v54 = vld [vmem:[#allocation6 + $0x48] sm:$0xff] }
 0x57b   : >> { %10350 = vst.msk [vmem:[#allocation6 + $0x68] sm:$0xff] %vm617_vm2, %v10334_v42  ;;  %v11482_v20 = vld [vmem:[#allocation6 + $0x40] sm:$0xff] }
 0x57c   : >> { %10349 = vst.msk [vmem:[#allocation6 + $0x60] sm:$0xff] %vm617_vm2, %v10333_v55  ;;  %v10320_v2 = vld [vmem:[#allocation6 + $0x78] sm:$0xff] }
 0x57d   : >> { %v10336_v16 = vadd.f32 %v22613_v45, %v10320_v2  ;;  %v10319_v24 = vld [vmem:[#allocation6 + $0x70] sm:$0xff] }
 0x57e   : >> { %v10335_v11 = vadd.f32 %v10319_v24, %v10280_v19  ;;  %v11485_v43 = vld [vmem:[#allocation6 + $0x58] sm:$0xff] }
 0x57f   : >> { %10352 = vst.msk [vmem:[#allocation6 + $0x78] sm:$0xff] %vm617_vm2, %v10336_v16  ;;  %v11484_v42 = vld [vmem:[#allocation6 + $0x50] sm:$0xff] }
 0x580   : >> { %10351 = vst.msk [vmem:[#allocation6 + $0x70] sm:$0xff] %vm617_vm2, %v10335_v11 }
 0x5f6   : >> { %v22752_v50 = vpop.f32.mrb[32].mxu1 }
 0x5f7   : >> { %v11491_v8 = vadd.f32 %v22752_v50, %v11475_v28  ;;  %v22912_v0 = vpop.f32.mrb[32].mxu0  ;;  %v11379_v18 = vpop.f32.mrb[33].mxu1 }
 0x5f8   : >> { %v11490_v31 = vadd.f32 %v11474_v52, %v11379_v18  ;;  %v12548_v41 = vpop.f32.mrb[33].mxu0  ;;  %v11486_v18 = vld [vmem:[#allocation6 + $0x60] sm:$0xff] }
 0x5f9   : >> { %11507 = vst.msk [vmem:[#allocation6 + $0x8] sm:$0xff] %vm617_vm2, %v11491_v8 }
 0x5fa   : >> { %11506 = vst.msk [vmem:[#allocation6] sm:$0xff] %vm617_vm2, %v11490_v31  ;;  %v22755_v58 = vpop.f32.mrb[34].mxu1 }
 0x5fb   : >> { %v11493_v37 = vadd.f32 %v22755_v58, %v11477_v62  ;;  %v22915_v3 = vpop.f32.mrb[34].mxu0  ;;  %v11389_v47 = vpop.f32.mrb[35].mxu1 }
 0x5fc   : >> { %v11492_v4 = vadd.f32 %v11476_v22, %v11389_v47  ;;  %v12558_v14 = vpop.f32.mrb[35].mxu0 }
 0x5fd   : >> { %11509 = vst.msk [vmem:[#allocation6 + $0x18] sm:$0xff] %vm617_vm2, %v11493_v37 }
 0x5fe   : >> { %11508 = vst.msk [vmem:[#allocation6 + $0x10] sm:$0xff] %vm617_vm2, %v11492_v4  ;;  %v22758_v33 = vpop.f32.mrb[36].mxu1 }
 0x5ff   : >> { %v11495_v26 = vadd.f32 %v22758_v33, %v11479_v6  ;;  %v22918_v17 = vpop.f32.mrb[36].mxu0  ;;  %v11399_v21 = vpop.f32.mrb[37].mxu1 }
 0x600   : >> { %v12644_v34 = vld [vmem:[#allocation6 + $0x8] sm:$0xff]  ;;  %v11494_v13 = vadd.f32 %v11478_v59, %v11399_v21  ;;  %v12568_v1 = vpop.f32.mrb[37].mxu0  ;;  %v11489_v59 = vld [vmem:[#allocation6 + $0x78] sm:$0xff] }
 0x601   : >> { %v12660_v27 = vadd.f32 %v22912_v0, %v12644_v34  ;;  %v12643_v5 = vld [vmem:[#allocation6] sm:$0xff]  ;;  %11511 = vst.msk [vmem:[#allocation6 + $0x28] sm:$0xff] %vm617_vm2, %v11495_v26  ;;  %v11487_v0 = vld [vmem:[#allocation6 + $0x68] sm:$0xff] }
 0x602   : >> { %v12659_v29 = vadd.f32 %v12643_v5, %v12548_v41  ;;  %11510 = vst.msk [vmem:[#allocation6 + $0x20] sm:$0xff] %vm617_vm2, %v11494_v13  ;;  %v22761_v51 = vpop.f32.mrb[38].mxu1 }
 0x603   : >> { %12676 = vst.msk [vmem:[#allocation6 + $0x8] sm:$0xff] %vm617_vm2, %v12660_v27  ;;  %v11497_v35 = vadd.f32 %v22761_v51, %v11481_v36  ;;  %v22921_v9 = vpop.f32.mrb[38].mxu0  ;;  %v11409_v10 = vpop.f32.mrb[39].mxu1  ;;  %v11488_v27 = vld [vmem:[#allocation6 + $0x70] sm:$0xff] }
 0x604   : >> { %12675 = vst.msk [vmem:[#allocation6] sm:$0xff] %vm617_vm2, %v12659_v29  ;;  %v12646_v30 = vld [vmem:[#allocation6 + $0x18] sm:$0xff]  ;;  %v11496_v15 = vadd.f32 %v11480_v56, %v11409_v10  ;;  %v12578_v23 = vpop.f32.mrb[39].mxu0 }
 0x605   : >> { %v12662_v44 = vadd.f32 %v22915_v3, %v12646_v30  ;;  %v12645_v49 = vld [vmem:[#allocation6 + $0x10] sm:$0xff]  ;;  %11513 = vst.msk [vmem:[#allocation6 + $0x38] sm:$0xff] %vm617_vm2, %v11497_v35 }
 0x606   : >> { %v12661_v32 = vadd.f32 %v12645_v49, %v12558_v14  ;;  %11512 = vst.msk [vmem:[#allocation6 + $0x30] sm:$0xff] %vm617_vm2, %v11496_v15  ;;  %v22764_v57 = vpop.f32.mrb[40].mxu1  ;;  %v29251_v14 = vld [vmem:[%s30450_s4] ss:$0 sm:$0xff] }
 0x607   : >> { %12678 = vst.msk [vmem:[#allocation6 + $0x18] sm:$0xff] %vm617_vm2, %v12662_v44  ;;  %v11499_v48 = vadd.f32 %v22764_v57, %v11483_v54  ;;  %v22924_v61 = vpop.f32.mrb[40].mxu0  ;;  %v11419_v7 = vpop.f32.mrb[41].mxu1 }
 0x608   : >> { %12677 = vst.msk [vmem:[#allocation6 + $0x10] sm:$0xff] %vm617_vm2, %v12661_v32  ;;  %v12648_v63 = vld [vmem:[#allocation6 + $0x28] sm:$0xff]  ;;  %v11498_v45 = vadd.f32 %v11482_v20, %v11419_v7  ;;  %v12588_v40 = vpop.f32.mrb[41].mxu0 }
 0x609   : >> { %v12664_v53 = vadd.f32 %v22918_v17, %v12648_v63  ;;  %v12647_v60 = vld [vmem:[#allocation6 + $0x20] sm:$0xff]  ;;  %11515 = vst.msk [vmem:[#allocation6 + $0x48] sm:$0xff] %vm617_vm2, %v11499_v48 }
 0x60a   : >> { %v12663_v39 = vadd.f32 %v12647_v60, %v12568_v1  ;;  %11514 = vst.msk [vmem:[#allocation6 + $0x40] sm:$0xff] %vm617_vm2, %v11498_v45  ;;  %v22767_v19 = vpop.f32.mrb[42].mxu1 }
 0x60b   : >> { %12680 = vst.msk [vmem:[#allocation6 + $0x28] sm:$0xff] %vm617_vm2, %v12664_v53  ;;  %v11501_v25 = vadd.f32 %v22767_v19, %v11485_v43  ;;  %v22927_v38 = vpop.f32.mrb[42].mxu0  ;;  %v11429_v12 = vpop.f32.mrb[43].mxu1  ;;  %v12691_v16 = vld [vmem:[#allocation6] ss:$2 sm:$0xff] }
 0x60c   : >> { %12679 = vst.msk [vmem:[#allocation6 + $0x20] sm:$0xff] %vm617_vm2, %v12663_v39  ;;  %v12650_v46 = vld [vmem:[#allocation6 + $0x38] sm:$0xff]  ;;  %v11500_v55 = vadd.f32 %v11484_v42, %v11429_v12  ;;  %v12598_v2 = vpop.f32.mrb[43].mxu0  ;;  %v12707_v24 = vld [vmem:[#allocation6 + $0x1] ss:$2 sm:$0xff] }
 0x60d   : >> { %v12666_v11 = vadd.f32 %v22921_v9, %v12650_v46  ;;  %v12649_v50 = vld [vmem:[#allocation6 + $0x30] sm:$0xff]  ;;  %11517 = vst.msk [vmem:[#allocation6 + $0x58] sm:$0xff] %vm617_vm2, %v11501_v25  ;;  %v12722_v37 = vmax.f32 %v12691_v16, %v12707_v24 }
 0x60e   : >> { %v12665_v28 = vadd.f32 %v12649_v50, %v12578_v23  ;;  %11516 = vst.msk [vmem:[#allocation6 + $0x50] sm:$0xff] %vm617_vm2, %v11500_v55  ;;  %v22770_v8 = vpop.f32.mrb[44].mxu1 }
 0x60f   : >> { %v12693_v52 = vld [vmem:[#allocation6 + $0x10] ss:$2 sm:$0xff]  ;;  %v12709_v31 = vld [vmem:[#allocation6 + $0x11] ss:$2 sm:$0xff]  ;;  %12682 = vst.msk [vmem:[#allocation6 + $0x38] sm:$0xff] %vm617_vm2, %v12666_v11  ;;  %v11503_v41 = vadd.f32 %v22770_v8, %v11487_v0  ;;  %v22930_v58 = vpop.f32.mrb[44].mxu0 }
 0x610   : >> { %v11439_v62 = vpop.f32.mrb[45].mxu1  ;;  %v12723_v3 = vmax.f32 %v12693_v52, %v12709_v31  ;;  %12681 = vst.msk [vmem:[#allocation6 + $0x30] sm:$0xff] %vm617_vm2, %v12665_v28  ;;  %v12652_v47 = vld [vmem:[#allocation6 + $0x48] sm:$0xff]  ;;  %v12608_v4 = vpop.f32.mrb[45].mxu0  ;;  %v12774_v28 = vld [vmem:[#allocation8 + $0x20] sm:$0xff] (%p6875_p9)  ;;  %v12776_v0 = vld [vmem:[#allocation8 + $0x30] sm:$0xff] (%p6875_p9) }
 0x611   : >> { %v11502_v22 = vadd.f32 %v11486_v18, %v11439_v62  ;;  %v12668_v33 = vadd.f32 %v22924_v61, %v12652_v47  ;;  %v12651_v6 = vld [vmem:[#allocation6 + $0x40] sm:$0xff]  ;;  %11519 = vst.msk [vmem:[#allocation6 + $0x68] sm:$0xff] %vm617_vm2, %v11503_v41  ;;  %v12775_v8 = vld [vmem:[#allocation8 + $0x28] sm:$0xff] (%p6875_p9)  ;;  %v12777_v52 = vld [vmem:[#allocation8 + $0x38] sm:$0xff] (%p6875_p9) }
 0x612   : >> { %v12730_v26 = vmax.f32 %v12722_v37, %v12723_v3  ;;  %v12667_v17 = vadd.f32 %v12651_v6, %v12588_v40  ;;  %v22773_v21 = vpop.f32.mrb[46].mxu1  ;;  %v23957_v18 = vpack.c.bf16 (%p6875_p9), %v12775_v8, %v12774_v28  ;;  %v23961_v41 = vpack.c.bf16 (%p6875_p9), %v12777_v52, %v12776_v0  ;;  %v12762_v62 = vld [vmem:[#allocation8 + $0x8] sm:$0xff] (%p6875_p9)  ;;  %v12763_v47 = vld [vmem:[#allocation8 + $0x10] sm:$0xff] (%p6875_p9)  ;;  %v13045_v6 = vld [vmem:[#allocation8 + $0x40] sm:$0xff] (%p6875_p9) }
 0x613   : >> { %11518 = vst.msk [vmem:[#allocation6 + $0x60] sm:$0xff] %vm617_vm2, %v11502_v22  ;;  %12684 = vst.msk [vmem:[#allocation6 + $0x48] sm:$0xff] %vm617_vm2, %v12668_v33  ;;  %v11505_v34 = vadd.f32 %v22773_v21, %v11489_v59  ;;  %v22933_v13 = vpop.f32.mrb[46].mxu0  ;;  %v11449_v1 = vpop.f32.mrb[47].mxu1  ;;  %v12695_v35 = vld [vmem:[#allocation6 + $0x20] ss:$2 sm:$0xff] }
 0x614   : >> { %v12741_v5 = vadd.f32 %v29251_v14, %v12730_v26  ;;  %12683 = vst.msk [vmem:[#allocation6 + $0x40] sm:$0xff] %vm617_vm2, %v12667_v17  ;;  %v12654_v29 = vld [vmem:[#allocation6 + $0x58] sm:$0xff]  ;;  %v11504_v51 = vadd.f32 %v11488_v27, %v11449_v1  ;;  %v12618_v36 = vpop.f32.mrb[47].mxu0  ;;  %v12711_v9 = vld [vmem:[#allocation6 + $0x21] ss:$2 sm:$0xff]  ;;  %23958 = vmatprep.subr.bf16.mxu0 (%p6875_p9), %v23957_v18  ;;  %v13047_v27 = vld [vmem:[#allocation8 + $0x50] sm:$0xff] (%p6875_p9) }
 0x615   : >> { %v12670_v10 = vadd.f32 %v22927_v38, %v12654_v29  ;;  %v12653_v56 = vld [vmem:[#allocation6 + $0x50] sm:$0xff]  ;;  %11521 = vst.msk [vmem:[#allocation6 + $0x78] sm:$0xff] %vm617_vm2, %v11505_v34  ;;  %v12724_v44 = vmax.f32 %v12695_v35, %v12711_v9  ;;  %23960 = vmatpush3.bf16.msra.mxu0 (%p6875_p9), %v23957_v18  ;;  %v12764_v22 = vld [vmem:[#allocation8 + $0x18] sm:$0xff] (%p6875_p9)  ;;  %v13046_v26 = vld [vmem:[#allocation8 + $0x48] sm:$0xff] (%p6875_p9) }
 0x616   : >> { %19754 = vst.msk [vmem:[%s29261_s15 + $0x38] sm:$0xff] %vm617_vm2, %v12741_v5  ;;  %v12669_v30 = vadd.f32 %v12653_v56, %v12598_v2  ;;  %11520 = vst.msk [vmem:[#allocation6 + $0x70] sm:$0xff] %vm617_vm2, %v11504_v51  ;;  %23962 = vmatprep.subr.bf16.mxu0 (%p6875_p9), %v23961_v41  ;;  %v23969_v33 = vpack.c.bf16 (%p6875_p9), %v12764_v22, %v12763_v47  ;;  %v23973_v21 = vpack.c.bf16 (%p6875_p9), %v13046_v26, %v13045_v6  ;;  %v13048_v5 = vld [vmem:[#allocation8 + $0x58] sm:$0xff] (%p6875_p9)  ;;  %v13195_v35 = vld [vmem:[#allocation8 + $0x60] sm:$0xff] (%p6875_p9) }
 0x617   : >> { %v12697_v15 = vld [vmem:[#allocation6 + $0x30] ss:$2 sm:$0xff]  ;;  %v12713_v23 = vld [vmem:[#allocation6 + $0x31] ss:$2 sm:$0xff]  ;;  %12686 = vst.msk [vmem:[#allocation6 + $0x58] sm:$0xff] %vm617_vm2, %v12670_v10  ;;  %v13196_v9 = vld [vmem:[#allocation8 + $0x68] sm:$0xff] (%p6875_p9) }
 0x618   : >> { %v12725_v49 = vmax.f32 %v12697_v15, %v12713_v23  ;;  %12685 = vst.msk [vmem:[#allocation6 + $0x50] sm:$0xff] %vm617_vm2, %v12669_v30  ;;  %v12656_v32 = vld [vmem:[#allocation6 + $0x68] sm:$0xff]  ;;  %v23981_v30 = vpack.c.bf16 (%p6875_p9), %v13196_v9, %v13195_v35  ;;  %v15025_v52 = vld [vmem:[#allocation8 + $0x1f0] sm:$0xff] (%p6875_p9)  ;;  %v13521_v35 = vld [vmem:[#allocation8 + $0xd8] sm:$0xff] (%p6875_p9) }
 0x619   : >> { %v12672_v57 = vadd.f32 %v22930_v58, %v12656_v32  ;;  %v12761_v58 = vld [vmem:[#allocation8] sm:$0xff] (%p6875_p9)  ;;  %23964 = vmatpush3.bf16.msra.mxu0 (%p6875_p9), %v23961_v41 }
 0x61a   : >> { %v12655_v54 = vld [vmem:[#allocation6 + $0x60] sm:$0xff]  ;;  %v12731_v48 = vmax.f32 %v12724_v44, %v12725_v49  ;;  %v23965_v3 = vpack.c.bf16 (%p6875_p9), %v12762_v62, %v12761_v58  ;;  %v13519_v58 = vld [vmem:[#allocation8 + $0xc8] sm:$0xff] (%p6875_p9) }
 0x61b   : >> { %v12671_v61 = vadd.f32 %v12655_v54, %v12608_v4  ;;  %12688 = vst.msk [vmem:[#allocation6 + $0x68] sm:$0xff] %vm617_vm2, %v12672_v57  ;;  %v12699_v63 = vld [vmem:[#allocation6 + $0x40] ss:$2 sm:$0xff]  ;;  %v12715_v45 = vld [vmem:[#allocation6 + $0x41] ss:$2 sm:$0xff]  ;;  %v13197_v54 = vld [vmem:[#allocation8 + $0x70] sm:$0xff] (%p6875_p9) }
 0x61c   : >> { %v12742_v7 = vadd.f32 %v29251_v14, %v12731_v48  ;;  %v12658_v20 = vld [vmem:[#allocation6 + $0x78] sm:$0xff]  ;;  %v12726_v43 = vmax.f32 %v12699_v63, %v12715_v45  ;;  %23966 = vmatprep.subr.bf16.mxu0 (%p6875_p9), %v23965_v3  ;;  %v15036_v32 = vld [vmem:[#allocation8 + $0x200] sm:$0xff] (%p6875_p9)  ;;  %v15037_v57 = vld [vmem:[#allocation8 + $0x208] sm:$0xff] (%p6875_p9) }
 0x61d   : >> { %12687 = vst.msk [vmem:[#allocation6 + $0x60] sm:$0xff] %vm617_vm2, %v12671_v61  ;;  %v12674_v40 = vadd.f32 %v22933_v13, %v12658_v20  ;;  %v12657_v53 = vld [vmem:[#allocation6 + $0x70] sm:$0xff]  ;;  %v13198_v48 = vld [vmem:[#allocation8 + $0x78] sm:$0xff] (%p6875_p9)  ;;  %v24077_v61 = vpack.c.bf16 (%p6875_p9), %v15037_v57, %v15036_v32  ;;  %v13518_v41 = vld [vmem:[#allocation8 + $0xc0] sm:$0xff] (%p6875_p9) }
 0x61e   : >> { %19755 = vst.msk [vmem:[%s29261_s15 + $0x50] sm:$0xff] %vm617_vm2, %v12742_v7  ;;  %v12673_v60 = vadd.f32 %v12657_v53, %v12618_v36  ;;  %v23977_v36 = vpack.c.bf16 (%p6875_p9), %v13048_v5, %v13047_v27  ;;  %v23985_v63 = vpack.c.bf16 (%p6875_p9), %v13198_v48, %v13197_v54  ;;  %v15038_v45 = vld [vmem:[#allocation8 + $0x210] sm:$0xff] (%p6875_p9)  ;;  %v13345_v53 = vld [vmem:[#allocation8 + $0x80] sm:$0xff] (%p6875_p9)  ;;  %v15308_v5 = vld [vmem:[#allocation8 + $0x228] sm:$0xff] (%p6875_p9) }
 0x61f   : >> { %v12701_v39 = vld [vmem:[#allocation6 + $0x50] ss:$2 sm:$0xff]  ;;  %v12717_v19 = vld [vmem:[#allocation6 + $0x51] ss:$2 sm:$0xff]  ;;  %12690 = vst.msk [vmem:[#allocation6 + $0x78] sm:$0xff] %vm617_vm2, %v12674_v40  ;;  %24078 = vmatprep.subr.bf16.mxu1 (%p6875_p9), %v24077_v61  ;;  %v15307_v27 = vld [vmem:[#allocation8 + $0x220] sm:$0xff] (%p6875_p9) }
 0x620   : >> { %v12727_v25 = vmax.f32 %v12701_v39, %v12717_v19  ;;  %12689 = vst.msk [vmem:[#allocation6 + $0x70] sm:$0xff] %vm617_vm2, %v12673_v60  ;;  %24080 = vmatpush3.bf16.msra.mxu1 (%p6875_p9), %v24077_v61  ;;  %v15039_v40 = vld [vmem:[#allocation8 + $0x218] sm:$0xff] (%p6875_p9)  ;;  %v13346_v60 = vld [vmem:[#allocation8 + $0x88] sm:$0xff] (%p6875_p9)  ;;  %v24093_v9 = vpack.c.bf16 (%p6875_p9), %v15308_v5, %v15307_v27  ;;  %v15309_v54 = vld [vmem:[#allocation8 + $0x230] sm:$0xff] (%p6875_p9) }
 0x621   : > { %v24081_v39 = vpack.c.bf16 (%p6875_p9), %v15039_v40, %v15038_v45  ;;  %v15310_v48 = vld [vmem:[#allocation8 + $0x238] sm:$0xff] (%p6875_p9)  ;;  %v13505_v61 = vld [vmem:[#allocation8 + $0xa0] sm:$0xff] (%p6875_p9) }
 0x622   : >> { %v12732_v38 = vmax.f32 %v12726_v43, %v12727_v25  ;;  %v23989_v25 = vpack.c.bf16 (%p6875_p9), %v13346_v60, %v13345_v53  ;;  %v24097_v40 = vpack.c.bf16 (%p6875_p9), %v15310_v48, %v15309_v54  ;;  %v13792_v54 = vld [vmem:[#allocation8 + $0xf8] sm:$0xff] (%p6875_p9) }
 0x623   : > { %24082 = vmatprep.subr.bf16.mxu1 (%p6875_p9), %v24081_v39 }
 0x624   : >> { %v12743_v12 = vadd.f32 %v29251_v14, %v12732_v38  ;;  %v12703_v42 = vld [vmem:[#allocation6 + $0x60] ss:$2 sm:$0xff]  ;;  %v12719_v46 = vld [vmem:[#allocation6 + $0x61] ss:$2 sm:$0xff]  ;;  %24084 = vmatpush3.bf16.msra.mxu1 (%p6875_p9), %v24081_v39 }
 0x625   : >> { %v12728_v16 = vmax.f32 %v12703_v42, %v12719_v46 }
 0x626   : >> { %19756 = vst.msk [vmem:[%s29261_s15 + $0x68] sm:$0xff] %vm617_vm2, %v12743_v12 }
 0x627   : >> { %v12705_v55 = vld [vmem:[#allocation6 + $0x70] ss:$2 sm:$0xff]  ;;  %v12721_v2 = vld [vmem:[#allocation6 + $0x71] ss:$2 sm:$0xff] }
 0x628   : >> { %v12729_v24 = vmax.f32 %v12705_v55, %v12721_v2  ;;  %6877 = sbr.rel (!%p6875_p9) target bundleno = 936 (0x3a8), region = 278  ;;  %v15023_v55 = vld [vmem:[#allocation8 + $0x1e0] sm:$0xff] (%p6875_p9)  ;;  %v15024_v2 = vld [vmem:[#allocation8 + $0x1e8] sm:$0xff] (%p6875_p9) }
 0x62a   : >> { %v12733_v11 = vmax.f32 %v12728_v16, %v12729_v24  ;;  %v13347_v16 = vld [vmem:[#allocation8 + $0x90] sm:$0xff] (%p6875_p9)  ;;  %v13348_v24 = vld [vmem:[#allocation8 + $0x98] sm:$0xff] (%p6875_p9) }
 0x62b   : > { %v23993_v0 = vpack.c.bf16 (%p6875_p9), %v13348_v24, %v13347_v16  ;;  %v15457_v16 = vld [vmem:[#allocation8 + $0x240] sm:$0xff] (%p6875_p9)  ;;  %v15458_v24 = vld [vmem:[#allocation8 + $0x248] sm:$0xff] (%p6875_p9) }
 0x62c   : >> { %v12744_v50 = vadd.f32 %v29251_v14, %v12733_v11  ;;  %v24085_v11 = vpack.c.bf16 (%p6875_p9), %v15024_v2, %v15023_v55 }
 0x62e   : >> { %19757 = vst.msk [vmem:[%s29261_s15 + $0x80] sm:$0xff] %vm617_vm2, %v12744_v50  ;;  %24086 = vmatprep.subr.bf16.mxu1 (%p6875_p9), %v24085_v11  ;;  %s25303_s15 = scalar_lea.vmem (%p6875_p9), %s25302_s25, 32 }
 0x62f   : > { %p25305_p7 = scmp.lt.s32.totalorder %s25303_s15, %s25297_s16 }
 0x631   : > { %p25306_p8 = por %p25305_p7, %p25304_p4 }
 0x633   : > { %p25307_p11 = pnand %p25306_p8, %p25300_p3 }
 0x635   : > { %v12765_v31 = vld [vmem:[#allocation4 + $0x7] sm:$0xff]  ;;  %v29285_v37 = vld [vmem:[#allocation4 + $0x4f] sm:$0xff]  ;;  %v29289_v4 = vld [vmem:[#allocation4 + $0x1f] sm:$0xff] }
 0x636   : > { %22942 = vmatprep.mubr.msk.f32.mxu0 %vm617_vm2, %v12765_v31  ;;  %23242 = vmatprep.mubr.msk.f32.mxu1 %vm617_vm2, %v29285_v37  ;;  %v29291_v14 = vld [vmem:[#allocation4 + $0x37] sm:$0xff]  ;;  %v29297_v17 = vld [vmem:[#allocation4 + $0x67] sm:$0xff]  ;;  %v29303_v59 = vld [vmem:[#allocation4 + $0x7f] sm:$0xff] }
 0x637   : > { %22943 = vmatmul.mubr.msk.f32.vlgmr.msra.gmra.mrb[0].mxu0 %vm617_vm2, %v29289_v4  ;;  %v29305_v34 = vld [vmem:[#allocation4 + $0x97] sm:$0xff]  ;;  %v29311_v13 = vld [vmem:[#allocation4 + $0xaf] sm:$0xff]  ;;  %v12753_v1 = vld [vmem:[#allocation4 + $0x6] sm:$0xff]  ;;  %23243 = vmatmul.mubr.msk.f32.vlgmr.msra.gmra.mrb[0].mxu1 %vm617_vm2, %v29297_v17 }
 0x638   : > { %23968 = vmatpush3.bf16.msra.mxu0 %v23965_v3  ;;  %22945 = vmatprep.mubr.msk.f32.mxu0 %vm617_vm2, %v29291_v14  ;;  %v29316_v29 = vld [vmem:[#allocation4 + $0x1e] sm:$0xff]  ;;  %v29318_v51 = vld [vmem:[#allocation4 + $0x36] sm:$0xff]  ;;  %v29324_v10 = vld [vmem:[#allocation4 + $0x4e] sm:$0xff] }
 0x639   : > { %23970 = vmatprep.subr.bf16.mxu0 %v23969_v33  ;;  %v29326_v56 = vld [vmem:[#allocation4 + $0x66] sm:$0xff]  ;;  %v29332_v15 = vld [vmem:[#allocation4 + $0x7e] sm:$0xff]  ;;  %v29334_v23 = vld [vmem:[#allocation4 + $0x96] sm:$0xff]  ;;  %23245 = vmatprep.mubr.msk.f32.mxu1 %vm617_vm2, %v29303_v59 }
 0x63a   : > { %v29340_v44 = vld [vmem:[#allocation4 + $0xae] sm:$0xff]  ;;  %v29345_v7 = vld [vmem:[#allocation4 + $0x20] sm:$0xff]  ;;  %v29347_v20 = vld [vmem:[#allocation4 + $0x38] sm:$0xff]  ;;  %24088 = vmatpush3.bf16.msra.mxu1 %v24085_v11 }
 0x63b   : > { %22946 = vmatmul.mubr.msk.f32.gmra.mrb[2].mxu0 %vm617_vm2, %v29285_v37  ;;  %v13036_v49 = vld [vmem:[#allocation4 + $0x8] sm:$0xff]  ;;  %v29353_v19 = vld [vmem:[#allocation4 + $0x50] sm:$0xff]  ;;  %v29361_v38 = vld [vmem:[#allocation4 + $0x80] sm:$0xff]  ;;  %23246 = vmatmul.mubr.msk.f32.gmra.mrb[2].mxu1 %vm617_vm2, %v29305_v34 }
 0x63c   : > { %22948 = vmatprep.mubr.msk.f32.mxu0 %vm617_vm2, %v29297_v17  ;;  %23972 = vmatpush3.bf16.msra.mxu0 %v23969_v33  ;;  %v29355_v43 = vld [vmem:[#allocation4 + $0x68] sm:$0xff]  ;;  %v29363_v12 = vld [vmem:[#allocation4 + $0x98] sm:$0xff]  ;;  %v29373_v42 = vld [vmem:[#allocation4 + $0xb0] sm:$0xff]  ;;  %v23997_v33 = vpack.c.bf16 %v13519_v58, %v13518_v41 }
 0x63d   : > { %23974 = vmatprep.subr.bf16.mxu0 %v23973_v21  ;;  %v13186_v46 = vld [vmem:[#allocation4 + $0x9] sm:$0xff]  ;;  %23248 = vmatprep.mubr.msk.f32.mxu1 %vm617_vm2, %v29311_v13  ;;  %v29382_v50 = vld [vmem:[#allocation4 + $0x21] sm:$0xff]  ;;  %v29384_v28 = vld [vmem:[#allocation4 + $0x39] sm:$0xff] }
 0x63e   : > { %v29386_v8 = vld [vmem:[#allocation4 + $0xc7] sm:$0xff]  ;;  %v29388_v18 = vld [vmem:[#allocation4 + $0xdf] sm:$0xff]  ;;  %v29396_v3 = vld [vmem:[#allocation4 + $0xf7] sm:$0xff] }
 0x63f   : > { %22949 = vmatmul.mubr.msk.f32.gmra.mrb[4].mxu0 %vm617_vm2, %v29303_v59  ;;  %23249 = vmatmul.mubr.msk.f32.gmra.mrb[4].mxu1 %vm617_vm2, %v29386_v8  ;;  %v15026_v31 = vld [vmem:[#allocation8 + $0x1f8] sm:$0xff]  ;;  %v29402_v22 = vld [vmem:[#allocation4 + $0x69] sm:$0xff]  ;;  %v29412_v6 = vld [vmem:[#allocation4 + $0x81] sm:$0xff] }
 0x640   : > { %22951 = vmatprep.mubr.msk.f32.mxu0 %vm617_vm2, %v29305_v34  ;;  %23251 = vmatprep.mubr.msk.f32.mxu1 %vm617_vm2, %v29388_v18  ;;  %v24089_v62 = vpack.c.bf16 %v15026_v31, %v15025_v52  ;;  %v29400_v47 = vld [vmem:[#allocation4 + $0x51] sm:$0xff]  ;;  %v29414_v26 = vld [vmem:[#allocation4 + $0x99] sm:$0xff]  ;;  %v29437_v57 = vld [vmem:[#allocation4 + $0xc6] sm:$0xff]  ;;  %v24101_v52 = vpack.c.bf16 %v15458_v24, %v15457_v16 }
 0x641   : > { %v29439_v45 = vld [vmem:[#allocation4 + $0xde] sm:$0xff]  ;;  %v29447_v53 = vld [vmem:[#allocation4 + $0xf6] sm:$0xff]  ;;  %v29453_v39 = vld [vmem:[#allocation4 + $0x6a] sm:$0xff] }
 0x642   : > { %24090 = vmatprep.subr.bf16.mxu1 %v24089_v62  ;;  %v29451_v60 = vld [vmem:[#allocation4 + $0x52] sm:$0xff]  ;;  %v29463_v55 = vld [vmem:[#allocation4 + $0x9a] sm:$0xff]  ;;  %v29485_v41 = vld [vmem:[#allocation4 + $0xc8] sm:$0xff] }
 0x643   : > { %22952 = vmatmul.mubr.msk.f32.gmra.mrb[6].mxu0 %vm617_vm2, %v29311_v13  ;;  %23252 = vmatmul.mubr.msk.f32.gmra.mrb[6].mxu1 %vm617_vm2, %v29396_v3  ;;  %v29475_v2 = vld [vmem:[#allocation4 + $0xb2] sm:$0xff]  ;;  %v29487_v27 = vld [vmem:[#allocation4 + $0xe0] sm:$0xff]  ;;  %v13940_v24 = vld [vmem:[#allocation8 + $0x108] sm:$0xff] }
 0x644   : > { %22962 = vmatprep.mubr.msk.f32.mxu0 %vm617_vm2, %v12753_v1  ;;  %23262 = vmatprep.mubr.msk.f32.mxu1 %vm617_vm2, %v29324_v10  ;;  %v13336_v1 = vld [vmem:[#allocation4 + $0xa] sm:$0xff]  ;;  %v13939_v16 = vld [vmem:[#allocation8 + $0x100] sm:$0xff] }
 0x645   : > { %24092 = vmatpush3.bf16.msra.mxu1 %v24089_v62  ;;  %v13507_v11 = vld [vmem:[#allocation8 + $0xb0] sm:$0xff]  ;;  %v15460_v62 = vld [vmem:[#allocation8 + $0x258] sm:$0xff] }
 0x646   : > { %24094 = vmatprep.subr.bf16.mxu1 %v24093_v9  ;;  %v15459_v58 = vld [vmem:[#allocation8 + $0x250] sm:$0xff] }
 0x647   : > { %22963 = vmatmul.mubr.msk.f32.vlgmr.msra.gmra.mrb[0].mxu0 %vm617_vm2, %v29316_v29  ;;  %v24105_v5 = vpack.c.bf16 %v15460_v62, %v15459_v58  ;;  %v13942_v58 = vld [vmem:[#allocation8 + $0x118] sm:$0xff] }
 0x648   : > { %23976 = vmatpush3.bf16.msra.mxu0 %v23973_v21  ;;  %22965 = vmatprep.mubr.msk.f32.mxu0 %vm617_vm2, %v29318_v51  ;;  %v29424_v21 = vld [vmem:[#allocation4 + $0xb1] sm:$0xff] }
 0x649   : > { %23978 = vmatprep.subr.bf16.mxu0 %v23977_v36  ;;  %23263 = vmatmul.mubr.msk.f32.vlgmr.msra.gmra.mrb[0].mxu1 %vm617_vm2, %v29326_v56 }
 0x64a   : > { %23265 = vmatprep.mubr.msk.f32.mxu1 %vm617_vm2, %v29332_v15  ;;  %24096 = vmatpush3.bf16.msra.mxu1 %v24093_v9  ;;  %v15608_v9 = vld [vmem:[#allocation8 + $0x268] sm:$0xff] }
 0x64b   : > { %22966 = vmatmul.mubr.msk.f32.gmra.mrb[2].mxu0 %vm617_vm2, %v29324_v10  ;;  %24098 = vmatprep.subr.bf16.mxu1 %v24097_v40 }
 0x64c   : > { %22968 = vmatprep.mubr.msk.f32.mxu0 %vm617_vm2, %v29326_v56  ;;  %23980 = vmatpush3.bf16.msra.mxu0 %v23977_v36  ;;  %v13520_v36 = vld [vmem:[#allocation8 + $0xd0] sm:$0xff] }
 0x64d   : > { %23982 = vmatprep.subr.bf16.mxu0 %v23981_v30  ;;  %23266 = vmatmul.mubr.msk.f32.gmra.mrb[2].mxu1 %vm617_vm2, %v29334_v23  ;;  %v24001_v32 = vpack.c.bf16 %v13521_v35, %v13520_v36  ;;  %v15607_v35 = vld [vmem:[#allocation8 + $0x260] sm:$0xff] }
 0x64e   : > { %23268 = vmatprep.mubr.msk.f32.mxu1 %vm617_vm2, %v29340_v44  ;;  %24100 = vmatpush3.bf16.msra.mxu1 %v24097_v40  ;;  %v24109_v48 = vpack.c.bf16 %v15608_v9, %v15607_v35  ;;  %v15609_v40 = vld [vmem:[#allocation8 + $0x270] sm:$0xff]  ;;  %v29571_v35 = vld [vmem:[#allocation4 + $0xfa] sm:$0xff] }
 0x64f   : > { %22969 = vmatmul.mubr.msk.f32.gmra.mrb[4].mxu0 %vm617_vm2, %v29332_v15  ;;  %24102 = vmatprep.subr.bf16.mxu1 %v24101_v52  ;;  %v14091_v9 = vld [vmem:[#allocation8 + $0x130] sm:$0xff] }
 0x650   : > { %22971 = vmatprep.mubr.msk.f32.mxu0 %vm617_vm2, %v29334_v23 }
 0x651   : > { %23269 = vmatmul.mubr.msk.f32.gmra.mrb[4].mxu1 %vm617_vm2, %v29437_v57 }
 0x652   : > { %23271 = vmatprep.mubr.msk.f32.mxu1 %vm617_vm2, %v29439_v45 }
 0x653   : > { %22972 = vmatmul.mubr.msk.f32.gmra.mrb[6].mxu0 %vm617_vm2, %v29340_v44 }
 0x654   : > { %22982 = vmatprep.mubr.msk.f32.mxu0 %vm617_vm2, %v13036_v49  ;;  %v29435_v49 = vld [vmem:[#allocation4 + $0x3a] sm:$0xff] }
 0x655   : > { %23272 = vmatmul.mubr.msk.f32.gmra.mrb[6].mxu1 %vm617_vm2, %v29447_v53 }
 0x656   : > { %23282 = vmatprep.mubr.msk.f32.mxu1 %vm617_vm2, %v29353_v19 }
 0x657   : > { %22983 = vmatmul.mubr.msk.f32.vlgmr.msra.gmra.mrb[0].mxu0 %vm617_vm2, %v29345_v7 }
 0x658   : > { %23984 = vmatpush3.bf16.msra.mxu0 %v23981_v30  ;;  %22985 = vmatprep.mubr.msk.f32.mxu0 %vm617_vm2, %v29347_v20  ;;  %v29433_v30 = vld [vmem:[#allocation4 + $0x22] sm:$0xff] }
 0x659   : > { %23986 = vmatprep.subr.bf16.mxu0 %v23985_v63  ;;  %23283 = vmatmul.mubr.msk.f32.vlgmr.msra.gmra.mrb[0].mxu1 %vm617_vm2, %v29355_v43 }
 0x65a   : > { %23285 = vmatprep.mubr.msk.f32.mxu1 %vm617_vm2, %v29361_v38  ;;  %24104 = vmatpush3.bf16.msra.mxu1 %v24101_v52  ;;  %v24021_v52 = vpack.c.bf16 %v13940_v24, %v13939_v16  ;;  %v14264_v24 = vld [vmem:[#allocation8 + $0x140] sm:$0xff] }
 0x65b   : > { %22986 = vmatmul.mubr.msk.f32.gmra.mrb[2].mxu0 %vm617_vm2, %v29353_v19  ;;  %24106 = vmatprep.subr.bf16.mxu1 %v24105_v5 }
 0x65c   : > { %22988 = vmatprep.mubr.msk.f32.mxu0 %vm617_vm2, %v29355_v43  ;;  %23988 = vmatpush3.bf16.msra.mxu0 %v23985_v63  ;;  %v13506_v63 = vld [vmem:[#allocation8 + $0xa8] sm:$0xff] }
 0x65d   : > { %23990 = vmatprep.subr.bf16.mxu0 %v23989_v25  ;;  %23286 = vmatmul.mubr.msk.f32.gmra.mrb[2].mxu1 %vm617_vm2, %v29363_v12 }
 0x65e   : > { %23288 = vmatprep.mubr.msk.f32.mxu1 %vm617_vm2, %v29373_v42  ;;  %24108 = vmatpush3.bf16.msra.mxu1 %v24105_v5  ;;  %v14090_v5 = vld [vmem:[#allocation8 + $0x128] sm:$0xff] }
 0x65f   : > { %22989 = vmatmul.mubr.msk.f32.gmra.mrb[4].mxu0 %vm617_vm2, %v29361_v38  ;;  %24110 = vmatprep.subr.bf16.mxu1 %v24109_v48 }
 0x660   : > { %22991 = vmatprep.mubr.msk.f32.mxu0 %vm617_vm2, %v29363_v12 }
 0x661   : > { %23289 = vmatmul.mubr.msk.f32.gmra.mrb[4].mxu1 %vm617_vm2, %v29485_v41 }
 0x662   : > { %23291 = vmatprep.mubr.msk.f32.mxu1 %vm617_vm2, %v29487_v27 }
 0x663   : > { %22992 = vmatmul.mubr.msk.f32.gmra.mrb[6].mxu0 %vm617_vm2, %v29373_v42 }
 0x664   : > { %23002 = vmatprep.mubr.msk.f32.mxu0 %vm617_vm2, %v13186_v46  ;;  %v29461_v46 = vld [vmem:[#allocation4 + $0x82] sm:$0xff] }
 0x667   : > { %23003 = vmatmul.mubr.msk.f32.vlgmr.msra.gmra.mrb[0].mxu0 %vm617_vm2, %v29382_v50 }
 0x668   : > { %23992 = vmatpush3.bf16.msra.mxu0 %v23989_v25  ;;  %23005 = vmatprep.mubr.msk.f32.mxu0 %vm617_vm2, %v29384_v28  ;;  %v24005_v25 = vpack.c.bf16 %v13506_v63, %v13505_v61  ;;  %v29523_v63 = vld [vmem:[#allocation4 + $0xc9] sm:$0xff] }
 0x669   : > { %23994 = vmatprep.subr.bf16.mxu0 %v23993_v0 }
 0x66b   : > { %23006 = vmatmul.mubr.msk.f32.gmra.mrb[2].mxu0 %vm617_vm2, %v29400_v47 }
 0x66c   : > { %23008 = vmatprep.mubr.msk.f32.mxu0 %vm617_vm2, %v29402_v22  ;;  %23996 = vmatpush3.bf16.msra.mxu0 %v23993_v0  ;;  %v13508_v0 = vld [vmem:[#allocation8 + $0xb8] sm:$0xff] }
 0x66d   : > { %23998 = vmatprep.subr.bf16.mxu0 %v23997_v33  ;;  %v24009_v31 = vpack.c.bf16 %v13508_v0, %v13507_v11  ;;  %v29525_v11 = vld [vmem:[#allocation4 + $0xe1] sm:$0xff] }
 0x66f   : > { %23009 = vmatmul.mubr.msk.f32.gmra.mrb[4].mxu0 %vm617_vm2, %v29412_v6 }
 0x670   : > { %23011 = vmatprep.mubr.msk.f32.mxu0 %vm617_vm2, %v29414_v26 }
 0x673   : > { %23012 = vmatmul.mubr.msk.f32.gmra.mrb[6].mxu0 %vm617_vm2, %v29424_v21 }
 0x674   : > { %23022 = vmatprep.mubr.msk.f32.mxu0 %vm617_vm2, %v13336_v1  ;;  %v13790_v1 = vld [vmem:[#allocation8 + $0xe8] sm:$0xff] }
 0x677   : > { %23023 = vmatmul.mubr.msk.f32.vlgmr.msra.gmra.mrb[0].mxu0 %vm617_vm2, %v29433_v30 }
 0x678   : > { %24000 = vmatpush3.bf16.msra.mxu0 %v23997_v33  ;;  %23025 = vmatprep.mubr.msk.f32.mxu0 %vm617_vm2, %v29435_v49  ;;  %v13789_v33 = vld [vmem:[#allocation8 + $0xe0] sm:$0xff] }
 0x679   : > { %24002 = vmatprep.subr.bf16.mxu0 %v24001_v32  ;;  %v24013_v36 = vpack.c.bf16 %v13790_v1, %v13789_v33  ;;  %v29561_v33 = vld [vmem:[#allocation4 + $0xca] sm:$0xff]  ;;  %v14089_v1 = vld [vmem:[#allocation8 + $0x120] sm:$0xff] }
 0x67b   : > { %23026 = vmatmul.mubr.msk.f32.gmra.mrb[2].mxu0 %vm617_vm2, %v29451_v60 }
 0x67c   : > { %23028 = vmatprep.mubr.msk.f32.mxu0 %vm617_vm2, %v29453_v39  ;;  %24004 = vmatpush3.bf16.msra.mxu0 %v24001_v32  ;;  %v13791_v32 = vld [vmem:[#allocation8 + $0xf0] sm:$0xff] }
 0x67d   : > { %24006 = vmatprep.subr.bf16.mxu0 %v24005_v25  ;;  %v24017_v61 = vpack.c.bf16 %v13792_v54, %v13791_v32  ;;  %v14092_v32 = vld [vmem:[#allocation8 + $0x138] sm:$0xff] }
 0x67e   : > { %v24033_v54 = vpack.c.bf16 %v14092_v32, %v14091_v9  ;;  %v14698_v9 = vld [vmem:[#allocation8 + $0x1a0] sm:$0xff]  ;;  %v14699_v32 = vld [vmem:[#allocation8 + $0x1a8] sm:$0xff] }
 0x67f   : > { %23029 = vmatmul.mubr.msk.f32.gmra.mrb[4].mxu0 %vm617_vm2, %v29461_v46 }
 0x680   : > { %23031 = vmatprep.mubr.msk.f32.mxu0 %vm617_vm2, %v29463_v55 }
 0x683   : > { %23032 = vmatmul.mubr.msk.f32.gmra.mrb[6].mxu0 %vm617_vm2, %v29475_v2 }
 0x684   : > { %23042 = vmatprep.mubr.msk.f32.mxu0 %vm617_vm2, %v29289_v4  ;;  %v29495_v4 = vld [vmem:[#allocation4 + $0xf8] sm:$0xff] }
 0x685   : > { %23292 = vmatmul.mubr.msk.f32.gmra.mrb[6].mxu1 %vm617_vm2, %v29495_v4 }
 0x686   : > { %23302 = vmatprep.mubr.msk.f32.mxu1 %vm617_vm2, %v29400_v47 }
 0x687   : > { %23043 = vmatmul.mubr.msk.f32.vlgmr.msra.gmra.mrb[8].mxu0 %vm617_vm2, %v29291_v14 }
 0x688   : > { %24008 = vmatpush3.bf16.msra.mxu0 %v24005_v25  ;;  %23045 = vmatprep.mubr.msk.f32.mxu0 %vm617_vm2, %v29285_v37  ;;  %v15610_v25 = vld [vmem:[#allocation8 + $0x278] sm:$0xff] }
 0x689   : > { %24010 = vmatprep.subr.bf16.mxu0 %v24009_v31  ;;  %23303 = vmatmul.mubr.msk.f32.vlgmr.msra.gmra.mrb[0].mxu1 %vm617_vm2, %v29402_v22  ;;  %v24113_v0 = vpack.c.bf16 %v15610_v25, %v15609_v40  ;;  %v14280_v25 = vld [vmem:[#allocation8 + $0x178] sm:$0xff] }
 0x68a   : > { %23305 = vmatprep.mubr.msk.f32.mxu1 %vm617_vm2, %v29412_v6  ;;  %24112 = vmatpush3.bf16.msra.mxu1 %v24109_v48  ;;  %v14277_v48 = vld [vmem:[#allocation8 + $0x160] sm:$0xff] }
 0x68b   : > { %23046 = vmatmul.mubr.msk.f32.gmra.mrb[10].mxu0 %vm617_vm2, %v29297_v17  ;;  %24114 = vmatprep.subr.bf16.mxu1 %v24113_v0 }
 0x68c   : > { %23048 = vmatprep.mubr.msk.f32.mxu0 %vm617_vm2, %v29303_v59  ;;  %24012 = vmatpush3.bf16.msra.mxu0 %v24009_v31  ;;  %v13941_v31 = vld [vmem:[#allocation8 + $0x110] sm:$0xff] }
 0x68d   : > { %24014 = vmatprep.subr.bf16.mxu0 %v24013_v36  ;;  %23306 = vmatmul.mubr.msk.f32.gmra.mrb[2].mxu1 %vm617_vm2, %v29414_v26  ;;  %v24025_v62 = vpack.c.bf16 %v13942_v58, %v13941_v31  ;;  %v14267_v31 = vld [vmem:[#allocation8 + $0x158] sm:$0xff] }
 0x68e   : > { %23308 = vmatprep.mubr.msk.f32.mxu1 %vm617_vm2, %v29424_v21  ;;  %24116 = vmatpush3.bf16.msra.mxu1 %v24113_v0  ;;  %v14265_v0 = vld [vmem:[#allocation8 + $0x148] sm:$0xff] }
 0x68f   : > { %23049 = vmatmul.mubr.msk.f32.gmra.mrb[12].mxu0 %vm617_vm2, %v29305_v34 }
 0x690   : > { %23051 = vmatprep.mubr.msk.f32.mxu0 %vm617_vm2, %v29311_v13 }
 0x691   : > { %23309 = vmatmul.mubr.msk.f32.gmra.mrb[4].mxu1 %vm617_vm2, %v29523_v63 }
 0x692   : > { %23311 = vmatprep.mubr.msk.f32.mxu1 %vm617_vm2, %v29525_v11 }
 0x693   : > { %23052 = vmatmul.mubr.msk.f32.gmra.mrb[14].mxu0 %vm617_vm2, %v29386_v8 }
 0x694   : > { %23062 = vmatprep.mubr.msk.f32.mxu0 %vm617_vm2, %v29316_v29  ;;  %v29533_v29 = vld [vmem:[#allocation4 + $0xf9] sm:$0xff] }
 0x695   : > { %23312 = vmatmul.mubr.msk.f32.gmra.mrb[6].mxu1 %vm617_vm2, %v29533_v29 }
 0x696   : > { %23322 = vmatprep.mubr.msk.f32.mxu1 %vm617_vm2, %v29451_v60 }
 0x697   : > { %23063 = vmatmul.mubr.msk.f32.vlgmr.msra.gmra.mrb[8].mxu0 %vm617_vm2, %v29318_v51 }
 0x698   : > { %24016 = vmatpush3.bf16.msra.mxu0 %v24013_v36  ;;  %23065 = vmatprep.mubr.msk.f32.mxu0 %vm617_vm2, %v29324_v10  ;;  %v29563_v36 = vld [vmem:[#allocation4 + $0xe2] sm:$0xff] }
 0x699   : > { %24018 = vmatprep.subr.bf16.mxu0 %v24017_v61  ;;  %23323 = vmatmul.mubr.msk.f32.vlgmr.msra.gmra.mrb[0].mxu1 %vm617_vm2, %v29453_v39 }
 0x69a   : > { %23325 = vmatprep.mubr.msk.f32.mxu1 %vm617_vm2, %v29461_v46 }
 0x69b   : > { %23066 = vmatmul.mubr.msk.f32.gmra.mrb[10].mxu0 %vm617_vm2, %v29326_v56 }
 0x69c   : > { %23068 = vmatprep.mubr.msk.f32.mxu0 %vm617_vm2, %v29332_v15  ;;  %24020 = vmatpush3.bf16.msra.mxu0 %v24017_v61  ;;  %v14278_v61 = vld [vmem:[#allocation8 + $0x168] sm:$0xff] }
 0x69d   : > { %24022 = vmatprep.subr.bf16.mxu0 %v24021_v52  ;;  %23326 = vmatmul.mubr.msk.f32.gmra.mrb[2].mxu1 %vm617_vm2, %v29463_v55  ;;  %v24037_v40 = vpack.c.bf16 %v14278_v61, %v14277_v48  ;;  %v14848_v61 = vld [vmem:[#allocation8 + $0x1c0] sm:$0xff] }
 0x69e   : > { %23328 = vmatprep.mubr.msk.f32.mxu1 %vm617_vm2, %v29475_v2 }
 0x69f   : > { %23069 = vmatmul.mubr.msk.f32.gmra.mrb[12].mxu0 %vm617_vm2, %v29334_v23 }
 0x6a0   : > { %23071 = vmatprep.mubr.msk.f32.mxu0 %vm617_vm2, %v29340_v44 }
 0x6a1   : > { %23329 = vmatmul.mubr.msk.f32.gmra.mrb[4].mxu1 %vm617_vm2, %v29561_v33 }
 0x6a2   : > { %23331 = vmatprep.mubr.msk.f32.mxu1 %vm617_vm2, %v29563_v36 }
 0x6a3   : > { %23072 = vmatmul.mubr.msk.f32.gmra.mrb[14].mxu0 %vm617_vm2, %v29437_v57 }
 0x6a4   : > { %23082 = vmatprep.mubr.msk.f32.mxu0 %vm617_vm2, %v29345_v7  ;;  %v24029_v7 = vpack.c.bf16 %v14090_v5, %v14089_v1  ;;  %v14549_v1 = vld [vmem:[#allocation8 + $0x188] sm:$0xff] }
 0x6a5   : > { %23332 = vmatmul.mubr.msk.f32.gmra.mrb[6].mxu1 %vm617_vm2, %v29571_v35 }
 0x6a7   : > { %23083 = vmatmul.mubr.msk.f32.vlgmr.msra.gmra.mrb[8].mxu0 %vm617_vm2, %v29347_v20 }
 0x6a8   : > { %24024 = vmatpush3.bf16.msra.mxu0 %v24021_v52  ;;  %23085 = vmatprep.mubr.msk.f32.mxu0 %vm617_vm2, %v29353_v19  ;;  %v24045_v52 = vpack.c.bf16 %v14265_v0, %v14264_v24  ;;  %v15796_v24 = vld [vmem:[#allocation8 + $0x2a8] sm:$0xff] }
 0x6a9   : > { %24026 = vmatprep.subr.bf16.mxu0 %v24025_v62 }
 0x6ab   : > { %23086 = vmatmul.mubr.msk.f32.gmra.mrb[10].mxu0 %vm617_vm2, %v29355_v43 }
 0x6ac   : > { %23088 = vmatprep.mubr.msk.f32.mxu0 %vm617_vm2, %v29361_v38  ;;  %24028 = vmatpush3.bf16.msra.mxu0 %v24025_v62  ;;  %v14548_v62 = vld [vmem:[#allocation8 + $0x180] sm:$0xff] }
 0x6ad   : > { %24030 = vmatprep.subr.bf16.mxu0 %v24029_v7  ;;  %v24053_v5 = vpack.c.bf16 %v14549_v1, %v14548_v62  ;;  %v16369_v62 = vld [vmem:[#allocation8 + $0x318] sm:$0xff] }
 0x6ae   : > { %v16209_v1 = vld [vmem:[#allocation4 + $0x99] sm:$0xff] }
 0x6af   : > { %23089 = vmatmul.mubr.msk.f32.gmra.mrb[12].mxu0 %vm617_vm2, %v29363_v12 }
 0x6b0   : > { %23091 = vmatprep.mubr.msk.f32.mxu0 %vm617_vm2, %v29373_v42 }
 0x6b3   : > { %23092 = vmatmul.mubr.msk.f32.gmra.mrb[14].mxu0 %vm617_vm2, %v29485_v41 }
 0x6b4   : > { %23102 = vmatprep.mubr.msk.f32.mxu0 %vm617_vm2, %v29382_v50  ;;  %v14279_v50 = vld [vmem:[#allocation8 + $0x170] sm:$0xff] }
 0x6b5   : > { %v24041_v16 = vpack.c.bf16 %v14280_v25, %v14279_v50 }
 0x6b7   : > { %23103 = vmatmul.mubr.msk.f32.vlgmr.msra.gmra.mrb[8].mxu0 %vm617_vm2, %v29384_v28 }
 0x6b8   : > { %24032 = vmatpush3.bf16.msra.mxu0 %v24029_v7  ;;  %23105 = vmatprep.mubr.msk.f32.mxu0 %vm617_vm2, %v29400_v47 }
 0x6b9   : > { %24034 = vmatprep.subr.bf16.mxu0 %v24033_v54 }
 0x6bb   : > { %23106 = vmatmul.mubr.msk.f32.gmra.mrb[10].mxu0 %vm617_vm2, %v29402_v22 }
 0x6bc   : > { %23108 = vmatprep.mubr.msk.f32.mxu0 %vm617_vm2, %v29412_v6  ;;  %24036 = vmatpush3.bf16.msra.mxu0 %v24033_v54  ;;  %v24061_v54 = vpack.c.bf16 %v14699_v32, %v14698_v9  ;;  %v16357_v9 = vld [vmem:[#allocation4 + $0x6a] sm:$0xff]  ;;  %v16358_v32 = vld [vmem:[#allocation4 + $0x82] sm:$0xff] }
 0x6bd   : > { %24038 = vmatprep.subr.bf16.mxu0 %v24037_v40 }
 0x6bf   : > { %23109 = vmatmul.mubr.msk.f32.gmra.mrb[12].mxu0 %vm617_vm2, %v29414_v26 }
 0x6c0   : > { %23111 = vmatprep.mubr.msk.f32.mxu0 %vm617_vm2, %v29424_v21 }
 0x6c3   : > { %23112 = vmatmul.mubr.msk.f32.gmra.mrb[14].mxu0 %vm617_vm2, %v29523_v63 }
 0x6c4   : > { %23122 = vmatprep.mubr.msk.f32.mxu0 %vm617_vm2, %v29433_v30  ;;  %v14266_v30 = vld [vmem:[#allocation8 + $0x150] sm:$0xff] }
 0x6c5   : > { %v24049_v58 = vpack.c.bf16 %v14267_v31, %v14266_v30  ;;  %v16217_v30 = vld [vmem:[#allocation8 + $0x2e8] sm:$0xff] }
 0x6c7   : > { %23123 = vmatmul.mubr.msk.f32.vlgmr.msra.gmra.mrb[8].mxu0 %vm617_vm2, %v29435_v49 }
 0x6c8   : > { %24040 = vmatpush3.bf16.msra.mxu0 %v24037_v40  ;;  %23125 = vmatprep.mubr.msk.f32.mxu0 %vm617_vm2, %v29451_v60  ;;  %v14849_v40 = vld [vmem:[#allocation8 + $0x1c8] sm:$0xff] }
 0x6c9   : > { %24042 = vmatprep.subr.bf16.mxu0 %v24041_v16  ;;  %v24069_v50 = vpack.c.bf16 %v14849_v40, %v14848_v61 }
 0x6cb   : > { %23126 = vmatmul.mubr.msk.f32.gmra.mrb[10].mxu0 %vm617_vm2, %v29453_v39 }
 0x6cc   : > { %23128 = vmatprep.mubr.msk.f32.mxu0 %vm617_vm2, %v29461_v46  ;;  %24044 = vmatpush3.bf16.msra.mxu0 %v24041_v16  ;;  %v15795_v16 = vld [vmem:[#allocation8 + $0x2a0] sm:$0xff] }
 0x6cd   : > { %24046 = vmatprep.subr.bf16.mxu0 %v24045_v52  ;;  %v24117_v0 = vpack.c.bf16 %v15796_v24, %v15795_v16 }
 0x6cf   : > { %23129 = vmatmul.mubr.msk.f32.gmra.mrb[12].mxu0 %vm617_vm2, %v29463_v55 }
 0x6d0   : > { %23131 = vmatprep.mubr.msk.f32.mxu0 %vm617_vm2, %v29475_v2 }
 0x6d3   : > { %23132 = vmatmul.mubr.msk.f32.gmra.mrb[14].mxu0 %vm617_vm2, %v29561_v33 }
 0x6d4   : > { %23142 = vmatprep.mubr.msk.f32.mxu0 %vm617_vm2, %v29291_v14  ;;  %v14551_v14 = vld [vmem:[#allocation8 + $0x198] sm:$0xff] }
 0x6d7   : > { %23143 = vmatmul.mubr.msk.f32.vlgmr.msra.gmra.mrb[16].mxu0 %vm617_vm2, %v29285_v37  ;;  %v14550_v37 = vld [vmem:[#allocation8 + $0x190] sm:$0xff] }
 0x6d8   : > { %24048 = vmatpush3.bf16.msra.mxu0 %v24045_v52  ;;  %23145 = vmatprep.mubr.msk.f32.mxu0 %vm617_vm2, %v29297_v17  ;;  %v24057_v7 = vpack.c.bf16 %v14551_v14, %v14550_v37  ;;  %v15783_v52 = vld [vmem:[#allocation8 + $0x288] sm:$0xff]  ;;  %v16210_v14 = vld [vmem:[#allocation4 + $0xb1] sm:$0xff] }
 0x6d9   : > { %24050 = vmatprep.subr.bf16.mxu0 %v24049_v58 }
 0x6db   : > { %23146 = vmatmul.mubr.msk.f32.gmra.mrb[18].mxu0 %vm617_vm2, %v29303_v59 }
 0x6dc   : > { %23148 = vmatprep.mubr.msk.f32.mxu0 %vm617_vm2, %v29305_v34  ;;  %24052 = vmatpush3.bf16.msra.mxu0 %v24049_v58  ;;  %v16368_v58 = vld [vmem:[#allocation8 + $0x310] sm:$0xff] }
 0x6dd   : > { %24054 = vmatprep.subr.bf16.mxu0 %v24053_v5 }
 0x6df   : > { %23149 = vmatmul.mubr.msk.f32.gmra.mrb[20].mxu0 %vm617_vm2, %v29311_v13 }
 0x6e0   : > { %23151 = vmatprep.mubr.msk.f32.mxu0 %vm617_vm2, %v29386_v8 }
 0x6e3   : > { %23152 = vmatmul.mubr.msk.f32.gmra.mrb[22].mxu0 %vm617_vm2, %v29388_v18 }
 0x6e4   : > { %23162 = vmatprep.mubr.msk.f32.mxu0 %vm617_vm2, %v29318_v51  ;;  %v14700_v51 = vld [vmem:[#allocation8 + $0x1b0] sm:$0xff] }
 0x6e7   : > { %23163 = vmatmul.mubr.msk.f32.vlgmr.msra.gmra.mrb[16].mxu0 %vm617_vm2, %v29324_v10  ;;  %v14701_v10 = vld [vmem:[#allocation8 + $0x1b8] sm:$0xff] }
 0x6e8   : > { %24056 = vmatpush3.bf16.msra.mxu0 %v24053_v5  ;;  %23165 = vmatprep.mubr.msk.f32.mxu0 %vm617_vm2, %v29326_v56  ;;  %v24065_v48 = vpack.c.bf16 %v14701_v10, %v14700_v51  ;;  %v24153_v5 = vpack.c.bf16 %v16369_v62, %v16368_v58 }
 0x6e9   : > { %24058 = vmatprep.subr.bf16.mxu0 %v24057_v7 }
 0x6eb   : > { %23166 = vmatmul.mubr.msk.f32.gmra.mrb[18].mxu0 %vm617_vm2, %v29332_v15 }
 0x6ec   : > { %23168 = vmatprep.mubr.msk.f32.mxu0 %vm617_vm2, %v29334_v23  ;;  %24060 = vmatpush3.bf16.msra.mxu0 %v24057_v7  ;;  %v16214_v7 = vld [vmem:[#allocation4 + $0x111] sm:$0xff] }
 0x6ed   : > { %24062 = vmatprep.subr.bf16.mxu0 %v24061_v54 }
 0x6ef   : > { %23169 = vmatmul.mubr.msk.f32.gmra.mrb[20].mxu0 %vm617_vm2, %v29340_v44 }
 0x6f0   : > { %23171 = vmatprep.mubr.msk.f32.mxu0 %vm617_vm2, %v29437_v57 }
 0x6f3   : > { %23172 = vmatmul.mubr.msk.f32.gmra.mrb[22].mxu0 %vm617_vm2, %v29439_v45 }
 0x6f4   : > { %23182 = vmatprep.mubr.msk.f32.mxu0 %vm617_vm2, %v29347_v20  ;;  %v14850_v20 = vld [vmem:[#allocation8 + $0x1d0] sm:$0xff] }
 0x6f7   : > { %23183 = vmatmul.mubr.msk.f32.vlgmr.msra.gmra.mrb[16].mxu0 %vm617_vm2, %v29353_v19  ;;  %v14851_v19 = vld [vmem:[#allocation8 + $0x1d8] sm:$0xff] }
 0x6f8   : > { %24064 = vmatpush3.bf16.msra.mxu0 %v24061_v54  ;;  %23185 = vmatprep.mubr.msk.f32.mxu0 %vm617_vm2, %v29355_v43  ;;  %v24073_v25 = vpack.c.bf16 %v14851_v19, %v14850_v20  ;;  %v16359_v54 = vld [vmem:[#allocation4 + $0x9a] sm:$0xff] }
 0x6f9   : > { %24066 = vmatprep.subr.bf16.mxu0 %v24065_v48 }
 0x6fb   : > { %23186 = vmatmul.mubr.msk.f32.gmra.mrb[18].mxu0 %vm617_vm2, %v29361_v38 }
 0x6fc   : > { %23188 = vmatprep.mubr.msk.f32.mxu0 %vm617_vm2, %v29363_v12  ;;  %24068 = vmatpush3.bf16.msra.mxu0 %v24065_v48 }
 0x6fd   : > { %24070 = vmatprep.subr.bf16.mxu0 %v24069_v50 }
 0x6ff   : > { %23189 = vmatmul.mubr.msk.f32.gmra.mrb[20].mxu0 %vm617_vm2, %v29373_v42 }
 0x700   : > { %23191 = vmatprep.mubr.msk.f32.mxu0 %vm617_vm2, %v29485_v41 }
 0x703   : > { %23192 = vmatmul.mubr.msk.f32.gmra.mrb[22].mxu0 %vm617_vm2, %v29487_v27 }
 0x704   : > { %23202 = vmatprep.mubr.msk.f32.mxu0 %vm617_vm2, %v29384_v28  ;;  %v15797_v28 = vld [vmem:[#allocation8 + $0x2b0] sm:$0xff] }
 0x707   : > { %23203 = vmatmul.mubr.msk.f32.vlgmr.msra.gmra.mrb[16].mxu0 %vm617_vm2, %v29400_v47  ;;  %v15798_v47 = vld [vmem:[#allocation8 + $0x2b8] sm:$0xff] }
 0x708   : > { %24072 = vmatpush3.bf16.msra.mxu0 %v24069_v50  ;;  %23205 = vmatprep.mubr.msk.f32.mxu0 %vm617_vm2, %v29402_v22  ;;  %v24121_v22 = vpack.c.bf16 %v15798_v47, %v15797_v28 }
 0x709   : > { %24074 = vmatprep.subr.bf16.mxu0 %v24073_v25 }
 0x70b   : > { %23206 = vmatmul.mubr.msk.f32.gmra.mrb[18].mxu0 %vm617_vm2, %v29412_v6  ;;  %v15782_v6 = vld [vmem:[#allocation8 + $0x280] sm:$0xff] }
 0x70c   : > { %23208 = vmatprep.mubr.msk.f32.mxu0 %vm617_vm2, %v29414_v26  ;;  %24076 = vmatpush3.bf16.msra.mxu0 %v24073_v25  ;;  %v24125_v26 = vpack.c.bf16 %v15783_v52, %v15782_v6 }
 0x70d   : > { %24118 = vmatprep.subr.bf16.mxu0 %v24117_v0 }
 0x70f   : > { %23209 = vmatmul.mubr.msk.f32.gmra.mrb[20].mxu0 %vm617_vm2, %v29424_v21  ;;  %v15784_v21 = vld [vmem:[#allocation8 + $0x290] sm:$0xff] }
 0x710   : > { %23211 = vmatprep.mubr.msk.f32.mxu0 %vm617_vm2, %v29523_v63 }
 0x713   : > { %23212 = vmatmul.mubr.msk.f32.gmra.mrb[22].mxu0 %vm617_vm2, %v29525_v11 }
 0x714   : > { %23222 = vmatprep.mubr.msk.f32.mxu0 %vm617_vm2, %v29435_v49  ;;  %v15785_v49 = vld [vmem:[#allocation8 + $0x298] sm:$0xff] }
 0x717   : > { %23223 = vmatmul.mubr.msk.f32.vlgmr.msra.gmra.mrb[16].mxu0 %vm617_vm2, %v29451_v60  ;;  %v24129_v60 = vpack.c.bf16 %v15785_v49, %v15784_v21 }
 0x718   : > { %24120 = vmatpush3.bf16.msra.mxu0 %v24117_v0  ;;  %23225 = vmatprep.mubr.msk.f32.mxu0 %vm617_vm2, %v29453_v39  ;;  %v16066_v39 = vld [vmem:[#allocation8 + $0x2c0] sm:$0xff] }
 0x719   : > { %24122 = vmatprep.subr.bf16.mxu0 %v24121_v22 }
 0x71b   : > { %23226 = vmatmul.mubr.msk.f32.gmra.mrb[18].mxu0 %vm617_vm2, %v29461_v46  ;;  %v16067_v46 = vld [vmem:[#allocation8 + $0x2c8] sm:$0xff] }
 0x71c   : > { %23228 = vmatprep.mubr.msk.f32.mxu0 %vm617_vm2, %v29463_v55  ;;  %24124 = vmatpush3.bf16.msra.mxu0 %v24121_v22  ;;  %v24133_v55 = vpack.c.bf16 %v16067_v46, %v16066_v39 }
 0x71d   : > { %24126 = vmatprep.subr.bf16.mxu0 %v24125_v26 }
 0x71f   : > { %23229 = vmatmul.mubr.msk.f32.gmra.mrb[20].mxu0 %vm617_vm2, %v29475_v2  ;;  %v16069_v2 = vld [vmem:[#allocation8 + $0x2d8] sm:$0xff] }
 0x720   : > { %23231 = vmatprep.mubr.msk.f32.mxu0 %vm617_vm2, %v29561_v33 }
 0x723   : > { %23232 = vmatmul.mubr.msk.f32.gmra.mrb[22].mxu0 %vm617_vm2, %v29563_v36 }
 0x724   : > { %23342 = vmatprep.mubr.msk.f32.mxu0 %vm617_vm2, %v29297_v17  ;;  %v15793_v17 = vld [vmem:[#allocation4 + $0x10f] sm:$0xff] }
 0x727   : > { %23343 = vmatmul.mubr.msk.f32.vlgmr.msra.gmra.mrb[24].mxu0 %vm617_vm2, %v29303_v59  ;;  %v16068_v59 = vld [vmem:[#allocation8 + $0x2d0] sm:$0xff] }
 0x728   : > { %24128 = vmatpush3.bf16.msra.mxu0 %v24125_v26  ;;  %23345 = vmatprep.mubr.msk.f32.mxu0 %vm617_vm2, %v29305_v34  ;;  %v24137_v34 = vpack.c.bf16 %v16069_v2, %v16068_v59 }
 0x729   : > { %24130 = vmatprep.subr.bf16.mxu0 %v24129_v60 }
 0x72b   : > { %23346 = vmatmul.mubr.msk.f32.gmra.mrb[26].mxu0 %vm617_vm2, %v29311_v13  ;;  %v16216_v13 = vld [vmem:[#allocation8 + $0x2e0] sm:$0xff] }
 0x72c   : > { %23348 = vmatprep.mubr.msk.f32.mxu0 %vm617_vm2, %v29386_v8  ;;  %24132 = vmatpush3.bf16.msra.mxu0 %v24129_v60  ;;  %v24141_v8 = vpack.c.bf16 %v16217_v30, %v16216_v13  ;;  %v16586_v13 = vld [vmem:[%s30453_s7] sm:$0xff]  ;;  %v16587_v30 = vld [vmem:[%s30453_s7 + $0x8] sm:$0xff] }
 0x72d   : > { %24134 = vmatprep.subr.bf16.mxu0 %v24133_v55 }
 0x72f   : > { %23349 = vmatmul.mubr.msk.f32.gmra.mrb[28].mxu0 %vm617_vm2, %v29388_v18  ;;  %v16219_v18 = vld [vmem:[#allocation8 + $0x2f8] sm:$0xff] }
 0x730   : > { %23351 = vmatprep.mubr.msk.f32.mxu0 %vm617_vm2, %v29396_v3  ;;  %v16367_v3 = vld [vmem:[#allocation8 + $0x308] sm:$0xff] }
 0x733   : > { %23352 = vmatmul.mubr.msk.f32.gmra.mrb[30].mxu0 %vm617_vm2, %v15793_v17 }
 0x734   : > { %23362 = vmatprep.mubr.msk.f32.mxu0 %vm617_vm2, %v29326_v56  ;;  %v15780_v56 = vld [vmem:[#allocation4 + $0x10e] sm:$0xff] }
 0x737   : > { %23363 = vmatmul.mubr.msk.f32.vlgmr.msra.gmra.mrb[24].mxu0 %vm617_vm2, %v29332_v15  ;;  %v16218_v15 = vld [vmem:[#allocation8 + $0x2f0] sm:$0xff] }
 0x738   : > { %24136 = vmatpush3.bf16.msra.mxu0 %v24133_v55  ;;  %23365 = vmatprep.mubr.msk.f32.mxu0 %vm617_vm2, %v29334_v23  ;;  %v24145_v23 = vpack.c.bf16 %v16219_v18, %v16218_v15  ;;  %v16588_v15 = vld [vmem:[%s30453_s7 + $0x10] sm:$0xff]  ;;  %v16589_v18 = vld [vmem:[%s30453_s7 + $0x18] sm:$0xff] }
 0x739   : > { %24138 = vmatprep.subr.bf16.mxu0 %v24137_v34 }
 0x73b   : > { %23366 = vmatmul.mubr.msk.f32.gmra.mrb[26].mxu0 %vm617_vm2, %v29340_v44  ;;  %v16366_v44 = vld [vmem:[#allocation8 + $0x300] sm:$0xff] }
 0x73c   : > { %23368 = vmatprep.mubr.msk.f32.mxu0 %vm617_vm2, %v29437_v57  ;;  %24140 = vmatpush3.bf16.msra.mxu0 %v24137_v34  ;;  %v24149_v57 = vpack.c.bf16 %v16367_v3, %v16366_v44  ;;  %v16590_v44 = vld [vmem:[%s30453_s7 + $0x20] sm:$0xff]  ;;  %v16591_v3 = vld [vmem:[%s30453_s7 + $0x28] sm:$0xff] }
 0x73d   : > { %24142 = vmatprep.subr.bf16.mxu0 %v24141_v8 }
 0x73f   : > { %23369 = vmatmul.mubr.msk.f32.gmra.mrb[28].mxu0 %vm617_vm2, %v29439_v45 }
 0x740   : > { %23371 = vmatprep.mubr.msk.f32.mxu0 %vm617_vm2, %v29447_v53 }
 0x743   : > { %23372 = vmatmul.mubr.msk.f32.gmra.mrb[30].mxu0 %vm617_vm2, %v15780_v56  ;;  %v25385_v56 = vmov 0.0|0.0  }
 0x744   : > { %23382 = vmatprep.mubr.msk.f32.mxu0 %vm617_vm2, %v29355_v43  ;;  %24157 = vmatprep.subr.bf16.mxu1 %v25385_v56 }
 0x747   : > { %23383 = vmatmul.mubr.msk.f32.vlgmr.msra.gmra.mrb[24].mxu0 %vm617_vm2, %v29361_v38 }
 0x748   : > { %24144 = vmatpush3.bf16.msra.mxu0 %v24141_v8  ;;  %23385 = vmatprep.mubr.msk.f32.mxu0 %vm617_vm2, %v29363_v12  ;;  %v16064_v12 = vld [vmem:[#allocation4 + $0x110] sm:$0xff]  ;;  %v24158_v8 = vpack.c.bf16 %v16587_v30, %v16586_v13 }
 0x749   : > { %24146 = vmatprep.subr.bf16.mxu0 %v24145_v23 }
 0x74a   : > { %v23024_v45 = vpop.f32.mrb[0].mxu0  ;;  %24159 = vmatpush3.bf16.msra.mxu1 %v24158_v8 }
 0x74b   : > { %13488 = vst.msk [vmem:[#allocation7 + $0x8] sm:$0xff] %vm13486_vm5, %v23024_v45  ;;  %v13439_v53 = vpop.f32.mrb[1].mxu0  ;;  %23386 = vmatmul.mubr.msk.f32.gmra.mrb[26].mxu0 %vm617_vm2, %v29373_v42  ;;  %v16207_v42 = vld [vmem:[#allocation4 + $0x69] sm:$0xff]  ;;  %24160 = vmatprep.subr.bf16.mxu1 %v25385_v56 }
 0x74c   : > { %13487 = vst.msk [vmem:[#allocation7] sm:$0xff] %vm13486_vm5, %v13439_v53  ;;  %23388 = vmatprep.mubr.msk.f32.mxu0 %vm617_vm2, %v29485_v41  ;;  %24148 = vmatpush3.bf16.msra.mxu0 %v24145_v23  ;;  %v24161_v23 = vpack.c.bf16 %v16589_v18, %v16588_v15  ;;  %v16592_v45 = vld [vmem:[%s30453_s7 + $0x30] sm:$0xff]  ;;  %v16593_v53 = vld [vmem:[%s30453_s7 + $0x38] sm:$0xff] }
 0x74d   : > { %24150 = vmatprep.subr.bf16.mxu0 %v24149_v57 }
 0x74e   : > { %v23027_v43 = vpop.f32.mrb[2].mxu0  ;;  %24162 = vmatpush3.bf16.msra.mxu1 %v24161_v23 }
 0x74f   : > { %13490 = vst.msk [vmem:[#allocation7 + $0x18] sm:$0xff] %vm13486_vm5, %v23027_v43  ;;  %v13449_v38 = vpop.f32.mrb[3].mxu0  ;;  %23389 = vmatmul.mubr.msk.f32.gmra.mrb[28].mxu0 %vm617_vm2, %v29487_v27  ;;  %v16208_v27 = vld [vmem:[#allocation4 + $0x81] sm:$0xff]  ;;  %24163 = vmatprep.subr.bf16.mxu1 %v25385_v56  ;;  %v24167_v43 = vpack.c.bf16 %v16593_v53, %v16592_v45 }
 0x750   : > { %13489 = vst.msk [vmem:[#allocation7 + $0x10] sm:$0xff] %vm13486_vm5, %v13449_v38  ;;  %23391 = vmatprep.mubr.msk.f32.mxu0 %vm617_vm2, %v29495_v4  ;;  %v30534_v38 = vmov 0.0  }
 0x751   : > { %23450 = vmatprep.mubr.msk.f32.mxu1 %vm25386_vm6, %v30534_v38 }
 0x752   : > { %v23030_v31 = vpop.f32.mrb[4].mxu0  ;;  %v14231_v50 = vld [vmem:[#allocation7 + $0x8] sm:$0xff] }
 0x753   : > { %13492 = vst.msk [vmem:[#allocation7 + $0x28] sm:$0xff] %vm13486_vm5, %v23030_v31  ;;  %v13459_v41 = vpop.f32.mrb[5].mxu0  ;;  %23392 = vmatmul.mubr.msk.f32.gmra.mrb[30].mxu0 %vm617_vm2, %v16064_v12  ;;  %v14230_v25 = vld [vmem:[#allocation7] sm:$0xff] }
 0x754   : > { %13491 = vst.msk [vmem:[#allocation7 + $0x20] sm:$0xff] %vm13486_vm5, %v13459_v41  ;;  %23402 = vmatprep.mubr.msk.f32.mxu0 %vm617_vm2, %v16207_v42 }
 0x756   : > { %v23033_v37 = vpop.f32.mrb[6].mxu0  ;;  %v14233_v0 = vld [vmem:[#allocation7 + $0x18] sm:$0xff] }
 0x757   : > { %13494 = vst.msk [vmem:[#allocation7 + $0x38] sm:$0xff] %vm13486_vm5, %v23033_v37  ;;  %v13469_v4 = vpop.f32.mrb[7].mxu0  ;;  %23403 = vmatmul.mubr.msk.f32.vlgmr.msra.gmra.mrb[24].mxu0 %vm617_vm2, %v16208_v27  ;;  %v14232_v22 = vld [vmem:[#allocation7 + $0x10] sm:$0xff] }
 0x758   : > { %13493 = vst.msk [vmem:[#allocation7 + $0x30] sm:$0xff] %vm13486_vm5, %v13469_v4  ;;  %24152 = vmatpush3.bf16.msra.mxu0 %v24149_v57  ;;  %23405 = vmatprep.mubr.msk.f32.mxu0 %vm617_vm2, %v16209_v1  ;;  %v24164_v57 = vpack.c.bf16 %v16591_v3, %v16590_v44 }
 0x759   : > { %24154 = vmatprep.subr.bf16.mxu0 %v24153_v5 }
 0x75a   : > { %v14235_v26 = vld [vmem:[#allocation7 + $0x28] sm:$0xff]  ;;  %24165 = vmatpush3.bf16.msra.mxu1 %v24164_v57 }
 0x75b   : > { %23406 = vmatmul.mubr.msk.f32.gmra.mrb[26].mxu0 %vm617_vm2, %v16210_v14  ;;  %v14234_v60 = vld [vmem:[#allocation7 + $0x20] sm:$0xff]  ;;  %24166 = vmatprep.subr.bf16.mxu1 %v25385_v56 }
 0x75c   : > { %23408 = vmatprep.mubr.msk.f32.mxu0 %vm617_vm2, %v29523_v63  ;;  %24156 = vmatpush3.bf16.msra.mxu0 %v24153_v5  ;;  %v16360_v63 = vld [vmem:[#allocation4 + $0xb2] sm:$0xff] }
 0x75d   : > { %24349 = vmatprep.subr.bf16.mxu0 %v25385_v56 }
 0x75e   : > { %v14237_v55 = vld [vmem:[#allocation7 + $0x38] sm:$0xff]  ;;  %24168 = vmatpush3.bf16.msra.mxu1 %v24167_v43 }
 0x75f   : > { %23409 = vmatmul.mubr.msk.f32.gmra.mrb[28].mxu0 %vm617_vm2, %v29525_v11  ;;  %v16364_v11 = vld [vmem:[#allocation4 + $0x112] sm:$0xff]  ;;  %24169 = vmatprep.subr.bf16.mxu1 %v25385_v56 }
 0x760   : > { %23411 = vmatprep.mubr.msk.f32.mxu0 %vm617_vm2, %v29533_v29  ;;  %v14236_v2 = vld [vmem:[#allocation7 + $0x30] sm:$0xff] }
 0x763   : > { %23412 = vmatmul.mubr.msk.f32.gmra.mrb[30].mxu0 %vm617_vm2, %v16214_v7 }
 0x764   : > { %23422 = vmatprep.mubr.msk.f32.mxu0 %vm617_vm2, %v16357_v9 }
 0x767   : > { %23423 = vmatmul.mubr.msk.f32.vlgmr.msra.gmra.mrb[24].mxu0 %vm617_vm2, %v16358_v32 }
 0x768   : > { %23425 = vmatprep.mubr.msk.f32.mxu0 %vm617_vm2, %v16359_v54 }
 0x76b   : > { %23426 = vmatmul.mubr.msk.f32.gmra.mrb[26].mxu0 %vm617_vm2, %v16360_v63 }
 0x76c   : > { %23428 = vmatprep.mubr.msk.f32.mxu0 %vm617_vm2, %v29561_v33  ;;  %v29773_v29 = vpop.f32.mrb[0].mxu1 }
 0x76d   : > { %v29775_v51 = vpop.f32.mrb[1].mxu1 }
 0x76f   : > { %23429 = vmatmul.mubr.msk.f32.gmra.mrb[28].mxu0 %vm617_vm2, %v29563_v36 }
 0x770   : > { %23431 = vmatprep.mubr.msk.f32.mxu0 %vm617_vm2, %v29571_v35  ;;  %v29778_v10 = vpop.f32.mrb[2].mxu1 }
 0x771   : > { %v29780_v48 = vpop.f32.mrb[3].mxu1 }
 0x773   : > { %23432 = vmatmul.mubr.msk.f32.gmra.mrb[30].mxu0 %vm617_vm2, %v16364_v11 }
 0x774   : > { %v29782_v61 = vpop.f32.mrb[4].mxu1  ;;  %23754 = vmatprep.mubr.msk.f32.mxu0 %vm25386_vm6, %v30534_v38 }
 0x775   : > { %v29784_v33 = vpop.f32.mrb[5].mxu1 }
 0x778   : > { %v29786_v40 = vpop.f32.mrb[6].mxu1 }
 0x779   : > { %v29788_v36 = vpop.f32.mrb[7].mxu1 }
 0x79a   : > { %v23124_v35 = vpop.f32.mrb[8].mxu0 }
 0x79b   : > { %v14239_v20 = vadd.f32 %v23124_v35, %v14231_v50  ;;  %v14183_v19 = vpop.f32.mrb[9].mxu0 }
 0x79c   : > { %v14238_v16 = vadd.f32 %v14230_v25, %v14183_v19 }
 0x79d   : > { %14247 = vst.msk [vmem:[#allocation7 + $0x8] sm:$0xff] %vm13486_vm5, %v14239_v20 }
 0x79e   : > { %14246 = vst.msk [vmem:[#allocation7] sm:$0xff] %vm13486_vm5, %v14238_v16  ;;  %v23127_v24 = vpop.f32.mrb[10].mxu0 }
 0x79f   : > { %v14241_v28 = vadd.f32 %v23127_v24, %v14233_v0  ;;  %v14193_v47 = vpop.f32.mrb[11].mxu0 }
 0x7a0   : > { %v14240_v6 = vadd.f32 %v14232_v22, %v14193_v47 }
 0x7a1   : > { %14249 = vst.msk [vmem:[#allocation7 + $0x18] sm:$0xff] %vm13486_vm5, %v14241_v28 }
 0x7a2   : > { %14248 = vst.msk [vmem:[#allocation7 + $0x10] sm:$0xff] %vm13486_vm5, %v14240_v6  ;;  %v23130_v52 = vpop.f32.mrb[12].mxu0 }
 0x7a3   : > { %v14243_v21 = vadd.f32 %v23130_v52, %v14235_v26  ;;  %v14203_v49 = vpop.f32.mrb[13].mxu0 }
 0x7a4   : > { %v14242_v39 = vadd.f32 %v14234_v60, %v14203_v49  ;;  %v14990_v42 = vld [vmem:[#allocation7 + $0x8] sm:$0xff] }
 0x7a5   : > { %14251 = vst.msk [vmem:[#allocation7 + $0x28] sm:$0xff] %vm13486_vm5, %v14243_v21  ;;  %v14989_v62 = vld [vmem:[#allocation7] sm:$0xff] }
 0x7a6   : > { %14250 = vst.msk [vmem:[#allocation7 + $0x20] sm:$0xff] %vm13486_vm5, %v14242_v39  ;;  %v23133_v46 = vpop.f32.mrb[14].mxu0 }
 0x7a7   : > { %v14245_v17 = vadd.f32 %v23133_v46, %v14237_v55  ;;  %v14213_v59 = vpop.f32.mrb[15].mxu0 }
 0x7a8   : > { %v14244_v34 = vadd.f32 %v14236_v2, %v14213_v59  ;;  %v14992_v1 = vld [vmem:[#allocation7 + $0x18] sm:$0xff] }
 0x7a9   : > { %14253 = vst.msk [vmem:[#allocation7 + $0x38] sm:$0xff] %vm13486_vm5, %v14245_v17  ;;  %v14991_v4 = vld [vmem:[#allocation7 + $0x10] sm:$0xff] }
 0x7aa   : > { %14252 = vst.msk [vmem:[#allocation7 + $0x30] sm:$0xff] %vm13486_vm5, %v14244_v34 }
 0x7ac   : > { %v14994_v9 = vld [vmem:[#allocation7 + $0x28] sm:$0xff] }
 0x7ad   : > { %v14993_v63 = vld [vmem:[#allocation7 + $0x20] sm:$0xff] }
 0x7b0   : > { %v14996_v16 = vld [vmem:[#allocation7 + $0x38] sm:$0xff] }
 0x7b1   : > { %v14995_v28 = vld [vmem:[#allocation7 + $0x30] sm:$0xff] }
 0x7ea   : > { %v23224_v12 = vpop.f32.mrb[16].mxu0 }
 0x7eb   : > { %v14998_v31 = vadd.f32 %v23224_v12, %v14990_v42  ;;  %v14942_v58 = vpop.f32.mrb[17].mxu0 }
 0x7ec   : > { %v14997_v41 = vadd.f32 %v14989_v62, %v14942_v58  ;;  %v19960_v62 = vld [vmem:[%s30453_s7 + $0x40] sm:$0xff] }
 0x7ed   : > { %15006 = vst.msk [vmem:[#allocation7 + $0x8] sm:$0xff] %vm13486_vm5, %v14998_v31 }
 0x7ee   : > { %15005 = vst.msk [vmem:[#allocation7] sm:$0xff] %vm13486_vm5, %v14997_v41  ;;  %v23227_v27 = vpop.f32.mrb[18].mxu0  ;;  %v19961_v41 = vld [vmem:[%s30453_s7 + $0x48] sm:$0xff] }
 0x7ef   : > { %v15000_v5 = vadd.f32 %v23227_v27, %v14992_v1  ;;  %v14952_v37 = vpop.f32.mrb[19].mxu0 }
 0x7f0   : > { %v14999_v14 = vadd.f32 %v14991_v4, %v14952_v37  ;;  %v29871_v37 = vld [vmem:[%s30452_s6] ss:$0 sm:$0xff] }
 0x7f1   : > { %15008 = vst.msk [vmem:[#allocation7 + $0x18] sm:$0xff] %vm13486_vm5, %v15000_v5 }
 0x7f2   : > { %15007 = vst.msk [vmem:[#allocation7 + $0x10] sm:$0xff] %vm13486_vm5, %v14999_v14  ;;  %v23230_v7 = vpop.f32.mrb[20].mxu0 }
 0x7f3   : > { %v15002_v32 = vadd.f32 %v23230_v7, %v14994_v9  ;;  %v14962_v54 = vpop.f32.mrb[21].mxu0  ;;  %v24170_v7 = vpack.c.bf16 %v19961_v41, %v19960_v62 }
 0x7f4   : > { %v15749_v11 = vld [vmem:[#allocation7 + $0x8] sm:$0xff]  ;;  %v15001_v35 = vadd.f32 %v14993_v63, %v14962_v54  ;;  %v19963_v54 = vld [vmem:[%s30453_s7 + $0x58] sm:$0xff] }
 0x7f5   : > { %v15757_v50 = vadd.f32 %v29773_v29, %v15749_v11  ;;  %v15748_v20 = vld [vmem:[#allocation7] sm:$0xff]  ;;  %15010 = vst.msk [vmem:[#allocation7 + $0x28] sm:$0xff] %vm13486_vm5, %v15002_v32  ;;  %v19962_v32 = vld [vmem:[%s30453_s7 + $0x50] sm:$0xff] }
 0x7f6   : > { %v15756_v19 = vadd.f32 %v15748_v20, %v29775_v51  ;;  %15009 = vst.msk [vmem:[#allocation7 + $0x20] sm:$0xff] %vm13486_vm5, %v15001_v35  ;;  %v23233_v25 = vpop.f32.mrb[22].mxu0  ;;  %v24173_v63 = vpack.c.bf16 %v19963_v54, %v19962_v32  ;;  %v19964_v11 = vld [vmem:[%s30453_s7 + $0x60] sm:$0xff]  ;;  %v19965_v35 = vld [vmem:[%s30453_s7 + $0x68] sm:$0xff]  ;;  %v19966_v20 = vld [vmem:[%s30453_s7 + $0x70] sm:$0xff] }
 0x7f7   : > { %15765 = vst.msk [vmem:[#allocation7 + $0x8] sm:$0xff] %vm13486_vm5, %v15757_v50  ;;  %v15004_v24 = vadd.f32 %v23233_v25, %v14996_v16  ;;  %v14972_v0 = vpop.f32.mrb[23].mxu0  ;;  %v24176_v50 = vpack.c.bf16 %v19965_v35, %v19964_v11  ;;  %v19969_v16 = vld [vmem:[%s30453_s7 + $0x80] sm:$0xff]  ;;  %v20002_v35 = vld [vmem:[%s30453_s7 + $0x170] sm:$0xff] }
 0x7f8   : > { %15764 = vst.msk [vmem:[#allocation7] sm:$0xff] %vm13486_vm5, %v15756_v19  ;;  %v15751_v47 = vld [vmem:[#allocation7 + $0x18] sm:$0xff]  ;;  %v15003_v22 = vadd.f32 %v14995_v28, %v14972_v0  ;;  %v20000_v54 = vld [vmem:[%s30453_s7 + $0x160] sm:$0xff] }
 0x7f9   : > { %v15759_v29 = vadd.f32 %v29778_v10, %v15751_v47  ;;  %v15750_v6 = vld [vmem:[#allocation7 + $0x10] sm:$0xff]  ;;  %15012 = vst.msk [vmem:[#allocation7 + $0x38] sm:$0xff] %vm13486_vm5, %v15004_v24  ;;  %v19967_v19 = vld [vmem:[%s30453_s7 + $0x78] sm:$0xff]  ;;  %v19970_v24 = vld [vmem:[%s30453_s7 + $0x88] sm:$0xff] }
 0x7fa   : > { %v15758_v51 = vadd.f32 %v15750_v6, %v29780_v48  ;;  %15011 = vst.msk [vmem:[#allocation7 + $0x30] sm:$0xff] %vm13486_vm5, %v15003_v22  ;;  %v24179_v25 = vpack.c.bf16 %v19967_v19, %v19966_v20  ;;  %v24182_v0 = vpack.c.bf16 %v19970_v24, %v19969_v16  ;;  %v19971_v47 = vld [vmem:[%s30453_s7 + $0x90] sm:$0xff]  ;;  %v19972_v22 = vld [vmem:[%s30453_s7 + $0x98] sm:$0xff]  ;;  %v19973_v6 = vld [vmem:[%s30453_s7 + $0xa0] sm:$0xff] }
 0x7fb   : > { %15767 = vst.msk [vmem:[#allocation7 + $0x18] sm:$0xff] %vm13486_vm5, %v15759_v29  ;;  %v24185_v29 = vpack.c.bf16 %v19972_v22, %v19971_v47  ;;  %v20005_v19 = vld [vmem:[%s30453_s7 + $0x180] sm:$0xff] }
 0x7fc   : > { %15766 = vst.msk [vmem:[#allocation7 + $0x10] sm:$0xff] %vm13486_vm5, %v15758_v51  ;;  %v15753_v52 = vld [vmem:[#allocation7 + $0x28] sm:$0xff]  ;;  %v20009_v22 = vld [vmem:[%s30453_s7 + $0x1a0] sm:$0xff] }
 0x7fd   : > { %v15761_v26 = vadd.f32 %v29782_v61, %v15753_v52  ;;  %v15752_v21 = vld [vmem:[#allocation7 + $0x20] sm:$0xff]  ;;  %v19974_v51 = vld [vmem:[%s30453_s7 + $0xa8] sm:$0xff] }
 0x7fe   : > { %v15760_v49 = vadd.f32 %v15752_v21, %v29784_v33  ;;  %v16508_v55 = vld [vmem:[#allocation7 + $0x8] sm:$0xff]  ;;  %v24188_v52 = vpack.c.bf16 %v19974_v51, %v19973_v6  ;;  %v19976_v21 = vld [vmem:[%s30453_s7 + $0xb8] sm:$0xff]  ;;  %v20011_v51 = vld [vmem:[%s30453_s7 + $0x1b0] sm:$0xff] }
 0x7ff   : > { %15769 = vst.msk [vmem:[#allocation7 + $0x28] sm:$0xff] %vm13486_vm5, %v15761_v26  ;;  %v16507_v59 = vld [vmem:[#allocation7] sm:$0xff]  ;;  %v19975_v26 = vld [vmem:[%s30453_s7 + $0xb0] sm:$0xff] }
 0x800   : > { %15768 = vst.msk [vmem:[#allocation7 + $0x20] sm:$0xff] %vm13486_vm5, %v15760_v49  ;;  %v15755_v10 = vld [vmem:[#allocation7 + $0x38] sm:$0xff]  ;;  %v24191_v49 = vpack.c.bf16 %v19976_v21, %v19975_v26  ;;  %v20014_v21 = vld [vmem:[%s30453_s7 + $0x1c0] sm:$0xff] }
 0x801   : > { %v15763_v60 = vadd.f32 %v29786_v40, %v15755_v10  ;;  %v15754_v48 = vld [vmem:[#allocation7 + $0x30] sm:$0xff]  ;;  %v19978_v10 = vld [vmem:[%s30453_s7 + $0xc0] sm:$0xff] }
 0x802   : > { %v15762_v39 = vadd.f32 %v15754_v48, %v29788_v36  ;;  %v16510_v34 = vld [vmem:[#allocation7 + $0x18] sm:$0xff] }
 0x803   : > { %15771 = vst.msk [vmem:[#allocation7 + $0x38] sm:$0xff] %vm13486_vm5, %v15763_v60  ;;  %v16509_v30 = vld [vmem:[#allocation7 + $0x10] sm:$0xff]  ;;  %v19979_v60 = vld [vmem:[%s30453_s7 + $0xc8] sm:$0xff] }
 0x804   : > { %15770 = vst.msk [vmem:[#allocation7 + $0x30] sm:$0xff] %vm13486_vm5, %v15762_v39  ;;  %v24194_v48 = vpack.c.bf16 %v19979_v60, %v19978_v10 }
 0x806   : > { %v16512_v15 = vld [vmem:[#allocation7 + $0x28] sm:$0xff] }
 0x807   : > { %v16511_v44 = vld [vmem:[#allocation7 + $0x20] sm:$0xff] }
 0x80a   : > { %v16514_v31 = vld [vmem:[#allocation7 + $0x38] sm:$0xff] }
 0x80b   : > { %v16513_v5 = vld [vmem:[#allocation7 + $0x30] sm:$0xff] }
 0x83a   : > { %v23424_v46 = vpop.f32.mrb[24].mxu0 }
 0x83b   : > { %v16516_v61 = vadd.f32 %v23424_v46, %v16508_v55  ;;  %v16460_v17 = vpop.f32.mrb[25].mxu0  ;;  %v19980_v46 = vld [vmem:[%s30453_s7 + $0xd0] sm:$0xff]  ;;  %v19981_v55 = vld [vmem:[%s30453_s7 + $0xd8] sm:$0xff] }
 0x83c   : > { %v16515_v33 = vadd.f32 %v16507_v59, %v16460_v17  ;;  %v19982_v17 = vld [vmem:[%s30453_s7 + $0xe0] sm:$0xff]  ;;  %v19983_v59 = vld [vmem:[%s30453_s7 + $0xe8] sm:$0xff] }
 0x83d   : > { %16524 = vst.msk [vmem:[#allocation7 + $0x8] sm:$0xff] %vm13486_vm5, %v16516_v61  ;;  %v24197_v61 = vpack.c.bf16 %v19981_v55, %v19980_v46  ;;  %v20018_v55 = vld [vmem:[%s30453_s7 + $0x1e0] sm:$0xff] }
 0x83e   : > { %16523 = vst.msk [vmem:[#allocation7] sm:$0xff] %vm13486_vm5, %v16515_v33  ;;  %v23427_v2 = vpop.f32.mrb[26].mxu0  ;;  %v24200_v33 = vpack.c.bf16 %v19983_v59, %v19982_v17  ;;  %v20020_v59 = vld [vmem:[%s30453_s7 + $0x1f0] sm:$0xff] }
 0x83f   : > { %v16518_v40 = vadd.f32 %v23427_v2, %v16510_v34  ;;  %v16470_v13 = vpop.f32.mrb[27].mxu0  ;;  %v19984_v2 = vld [vmem:[%s30453_s7 + $0xf0] sm:$0xff]  ;;  %v19985_v34 = vld [vmem:[%s30453_s7 + $0xf8] sm:$0xff] }
 0x840   : > { %v16517_v36 = vadd.f32 %v16509_v30, %v16470_v13  ;;  %v19987_v13 = vld [vmem:[%s30453_s7 + $0x100] sm:$0xff]  ;;  %v19988_v30 = vld [vmem:[%s30453_s7 + $0x108] sm:$0xff] }
 0x841   : > { %16526 = vst.msk [vmem:[#allocation7 + $0x18] sm:$0xff] %vm13486_vm5, %v16518_v40  ;;  %v24203_v40 = vpack.c.bf16 %v19985_v34, %v19984_v2  ;;  %v20023_v34 = vld [vmem:[%s30453_s7 + $0x200] sm:$0xff] }
 0x842   : > { %16525 = vst.msk [vmem:[#allocation7 + $0x10] sm:$0xff] %vm13486_vm5, %v16517_v36  ;;  %v23430_v8 = vpop.f32.mrb[28].mxu0  ;;  %v24206_v36 = vpack.c.bf16 %v19988_v30, %v19987_v13 }
 0x843   : > { %v16520_v18 = vadd.f32 %v23430_v8, %v16512_v15  ;;  %v16480_v23 = vpop.f32.mrb[29].mxu0  ;;  %v19989_v15 = vld [vmem:[%s30453_s7 + $0x110] sm:$0xff] }
 0x844   : > { %v16519_v3 = vadd.f32 %v16511_v44, %v16480_v23  ;;  %v16533_v57 = vld [vmem:[#allocation7 + $0x8] ss:$2 sm:$0xf]  ;;  %v16549_v45 = vld [vmem:[#allocation7 + $0x9] ss:$2 sm:$0xf] }
 0x845   : > { %16528 = vst.msk [vmem:[#allocation7 + $0x28] sm:$0xff] %vm13486_vm5, %v16520_v18  ;;  %v16531_v53 = vld [vmem:[#allocation7] ss:$2 sm:$0xf]  ;;  %v16563_v12 = vmax.f32 %v16533_v57, %v16549_v45  ;;  %v19990_v18 = vld [vmem:[%s30453_s7 + $0x118] sm:$0xff] }
 0x846   : > { %v16547_v43 = vld [vmem:[#allocation7 + $0x1] ss:$2 sm:$0xf]  ;;  %16527 = vst.msk [vmem:[#allocation7 + $0x20] sm:$0xff] %vm13486_vm5, %v16519_v3  ;;  %v23433_v42 = vpop.f32.mrb[30].mxu0  ;;  %v24209_v23 = vpack.c.bf16 %v19990_v18, %v19989_v15  ;;  %v19992_v3 = vld [vmem:[%s30453_s7 + $0x128] sm:$0xff] }
 0x847   : > { %v16562_v58 = vmax.f32 %v16531_v53, %v16547_v43  ;;  %v16522_v27 = vadd.f32 %v23433_v42, %v16514_v31  ;;  %v16490_v1 = vpop.f32.mrb[31].mxu0  ;;  %v19991_v44 = vld [vmem:[%s30453_s7 + $0x120] sm:$0xff]  ;;  %v19993_v42 = vld [vmem:[%s30453_s7 + $0x130] sm:$0xff]  ;;  %v19994_v31 = vld [vmem:[%s30453_s7 + $0x138] sm:$0xff] }
 0x848   : > { %v16521_v4 = vadd.f32 %v16513_v5, %v16490_v1  ;;  %v16537_v57 = vld [vmem:[#allocation7 + $0x18] ss:$2 sm:$0xf]  ;;  %v16553_v45 = vld [vmem:[#allocation7 + $0x19] ss:$2 sm:$0xf]  ;;  %v24215_v41 = vpack.c.bf16 %v19994_v31, %v19993_v42 }
 0x849   : > { %v16570_v14 = vmax.f32 %v16562_v58, %v16563_v12  ;;  %16530 = vst.msk [vmem:[#allocation7 + $0x38] sm:$0xff] %vm13486_vm5, %v16522_v27  ;;  %v16535_v53 = vld [vmem:[#allocation7 + $0x10] ss:$2 sm:$0xf]  ;;  %v24212_v12 = vpack.c.bf16 %v19992_v3, %v19991_v44  ;;  %v16565_v62 = vmax.f32 %v16537_v57, %v16553_v45  ;;  %v19996_v1 = vld [vmem:[%s30453_s7 + $0x140] sm:$0xff]  ;;  %v19997_v5 = vld [vmem:[%s30453_s7 + $0x148] sm:$0xff] }
 0x84a   : > { %16529 = vst.msk [vmem:[#allocation7 + $0x30] sm:$0xff] %vm13486_vm5, %v16521_v4  ;;  %v16551_v43 = vld [vmem:[#allocation7 + $0x11] ss:$2 sm:$0xf]  ;;  %v24218_v4 = vpack.c.bf16 %v19997_v5, %v19996_v1  ;;  %v17913_v15 = vld [vmem:[%s30455_s9] sm:$0xff]  ;;  %v17914_v18 = vld [vmem:[%s30455_s9 + $0x8] sm:$0xff] }
 0x84b   : > { %v29876_v9 = vadd.f32 %v29871_v37, %v16570_v14  ;;  %v16564_v58 = vmax.f32 %v16535_v53, %v16551_v43  ;;  %v20027_v3 = vld [vmem:[%s30453_s7 + $0x220] sm:$0xff]  ;;  %v20028_v57 = vld [vmem:[%s30453_s7 + $0x228] sm:$0xff]  ;;  %v24350_v45 = vpack.c.bf16 %v17914_v18, %v17913_v15  ;;  %v17916_v53 = vld [vmem:[%s30455_s9 + $0x18] sm:$0xff] }
 0x84c   : > { %v16557_v31 = vld [vmem:[#allocation7 + $0x29] ss:$2 sm:$0xf]  ;;  %v20029_v1 = vld [vmem:[%s30453_s7 + $0x230] sm:$0xff]  ;;  %v20030_v5 = vld [vmem:[%s30453_s7 + $0x238] sm:$0xff] }
 0x84d   : > { %23451 = vmatmul.mubr.msk.f32.vlgmr.msra.gmra.mrb[8].mxu1 %vm13486_vm5, %v29876_v9  ;;  %v16677_v28 = vrot.slane %v29876_v9, 1  ;;  %v16760_v39 = vrot.slane %v29876_v9, 2  ;;  %v16843_v8 = vrot.slane %v29876_v9, 3  ;;  %v16571_v27 = vmax.f32 %v16564_v58, %v16565_v62  ;;  %v19999_v9 = vld [vmem:[%s30453_s7 + $0x158] sm:$0xff]  ;;  %24351 = vmatpush3.bf16.msra.mxu0 %v24350_v45  ;;  %v17917_v62 = vld [vmem:[%s30455_s9 + $0x20] sm:$0xff] }
 0x84e   : > { %24171 = vmatpush3.bf16.msra.mxu1 %v24170_v7  ;;  %23469 = vmatprep.mubr.msk.f32.mxu1 %vm25386_vm6, %v30534_v38  ;;  %v19998_v7 = vld [vmem:[%s30453_s7 + $0x150] sm:$0xff]  ;;  %v16539_v43 = vld [vmem:[#allocation7 + $0x20] ss:$2 sm:$0xf]  ;;  %v20062_v45 = vld [vmem:[%s30453_s7 + $0x318] sm:$0xff] }
 0x84f   : > { %24172 = vmatprep.subr.bf16.mxu1 %v25385_v56  ;;  %v30006_v14 = vadd.f32 %v29871_v37, %v16571_v27  ;;  %v24221_v32 = vpack.c.bf16 %v19999_v9, %v19998_v7  ;;  %v16555_v42 = vld [vmem:[#allocation7 + $0x21] ss:$2 sm:$0xf]  ;;  %24352 = vmatprep.subr.bf16.mxu0 %v25385_v56  ;;  %v24260_v27 = vpack.c.bf16 %v20028_v57, %v20027_v3  ;;  %v20061_v57 = vld [vmem:[%s30453_s7 + $0x310] sm:$0xff] }
 0x850   : > { %v24263_v9 = vpack.c.bf16 %v20030_v5, %v20029_v1  ;;  %v20059_v18 = vld [vmem:[%s30453_s7 + $0x300] sm:$0xff]  ;;  %v20066_v1 = vld [vmem:[%s30453_s7 + $0x338] sm:$0xff] }
 0x851   : > { %v17009_v24 = vrot.slane %v30006_v14, 1  ;;  %v17092_v60 = vrot.slane %v30006_v14, 2  ;;  %v17175_v30 = vrot.slane %v30006_v14, 3 }
 0x852   : > { %24174 = vmatpush3.bf16.msra.mxu1 %v24173_v63  ;;  %v20001_v63 = vld [vmem:[%s30453_s7 + $0x168] sm:$0xff] }
 0x853   : > { %24175 = vmatprep.subr.bf16.mxu1 %v25385_v56  ;;  %v24224_v11 = vpack.c.bf16 %v20001_v63, %v20000_v54  ;;  %v20032_v54 = vld [vmem:[%s30453_s7 + $0x240] sm:$0xff]  ;;  %v20033_v63 = vld [vmem:[%s30453_s7 + $0x248] sm:$0xff] }
 0x856   : > { %24177 = vmatpush3.bf16.msra.mxu1 %v24176_v50  ;;  %v20003_v50 = vld [vmem:[%s30453_s7 + $0x178] sm:$0xff] }
 0x857   : > { %24178 = vmatprep.subr.bf16.mxu1 %v25385_v56  ;;  %v24227_v20 = vpack.c.bf16 %v20003_v50, %v20002_v35  ;;  %v20034_v50 = vld [vmem:[%s30453_s7 + $0x250] sm:$0xff] }
 0x85a   : > { %24180 = vmatpush3.bf16.msra.mxu1 %v24179_v25  ;;  %v20006_v25 = vld [vmem:[%s30453_s7 + $0x188] sm:$0xff] }
 0x85b   : > { %24181 = vmatprep.subr.bf16.mxu1 %v25385_v56  ;;  %v24230_v16 = vpack.c.bf16 %v20006_v25, %v20005_v19  ;;  %v20036_v25 = vld [vmem:[%s30453_s7 + $0x260] sm:$0xff] }
 0x85d   : > { %23470 = vmatmul.mubr.msk.f32.vlgmr.msra.gmra.mrb[8].mxu1 %vm13486_vm5, %v16677_v28  ;;  %v20008_v28 = vld [vmem:[%s30453_s7 + $0x198] sm:$0xff] }
 0x85e   : > { %24183 = vmatpush3.bf16.msra.mxu1 %v24182_v0  ;;  %23488 = vmatprep.mubr.msk.f32.mxu1 %vm25386_vm6, %v30534_v38  ;;  %v20007_v0 = vld [vmem:[%s30453_s7 + $0x190] sm:$0xff] }
 0x85f   : > { %24184 = vmatprep.subr.bf16.mxu1 %v25385_v56  ;;  %v24233_v47 = vpack.c.bf16 %v20008_v28, %v20007_v0  ;;  %v20038_v0 = vld [vmem:[%s30453_s7 + $0x270] sm:$0xff]  ;;  %v20039_v28 = vld [vmem:[%s30453_s7 + $0x278] sm:$0xff] }
 0x862   : > { %24186 = vmatpush3.bf16.msra.mxu1 %v24185_v29  ;;  %v20010_v29 = vld [vmem:[%s30453_s7 + $0x1a8] sm:$0xff] }
 0x863   : > { %24187 = vmatprep.subr.bf16.mxu1 %v25385_v56  ;;  %v24236_v6 = vpack.c.bf16 %v20010_v29, %v20009_v22  ;;  %v20041_v22 = vld [vmem:[%s30453_s7 + $0x280] sm:$0xff]  ;;  %v20042_v29 = vld [vmem:[%s30453_s7 + $0x288] sm:$0xff] }
 0x866   : > { %24189 = vmatpush3.bf16.msra.mxu1 %v24188_v52  ;;  %v20012_v52 = vld [vmem:[%s30453_s7 + $0x1b8] sm:$0xff] }
 0x867   : > { %24190 = vmatprep.subr.bf16.mxu1 %v25385_v56  ;;  %v24239_v26 = vpack.c.bf16 %v20012_v52, %v20011_v51  ;;  %v20043_v52 = vld [vmem:[%s30453_s7 + $0x290] sm:$0xff] }
 0x86a   : > { %24192 = vmatpush3.bf16.msra.mxu1 %v24191_v49  ;;  %v20015_v49 = vld [vmem:[%s30453_s7 + $0x1c8] sm:$0xff] }
 0x86b   : > { %24193 = vmatprep.subr.bf16.mxu1 %v25385_v56  ;;  %v24242_v10 = vpack.c.bf16 %v20015_v49, %v20014_v21  ;;  %v20045_v49 = vld [vmem:[%s30453_s7 + $0x2a0] sm:$0xff] }
 0x86d   : > { %23489 = vmatmul.mubr.msk.f32.vlgmr.msra.gmra.mrb[8].mxu1 %vm13486_vm5, %v16760_v39  ;;  %v20017_v39 = vld [vmem:[%s30453_s7 + $0x1d8] sm:$0xff] }
 0x86e   : > { %24195 = vmatpush3.bf16.msra.mxu1 %v24194_v48  ;;  %23507 = vmatprep.mubr.msk.f32.mxu1 %vm25386_vm6, %v30534_v38  ;;  %v20016_v48 = vld [vmem:[%s30453_s7 + $0x1d0] sm:$0xff] }
 0x86f   : > { %24196 = vmatprep.subr.bf16.mxu1 %v25385_v56  ;;  %v24245_v46 = vpack.c.bf16 %v20017_v39, %v20016_v48  ;;  %v20047_v48 = vld [vmem:[%s30453_s7 + $0x2b0] sm:$0xff]  ;;  %v20048_v39 = vld [vmem:[%s30453_s7 + $0x2b8] sm:$0xff] }
 0x872   : > { %24198 = vmatpush3.bf16.msra.mxu1 %v24197_v61  ;;  %v20019_v61 = vld [vmem:[%s30453_s7 + $0x1e8] sm:$0xff] }
 0x873   : > { %24199 = vmatprep.subr.bf16.mxu1 %v25385_v56  ;;  %v24248_v17 = vpack.c.bf16 %v20019_v61, %v20018_v55  ;;  %v20050_v55 = vld [vmem:[%s30453_s7 + $0x2c0] sm:$0xff]  ;;  %v20051_v61 = vld [vmem:[%s30453_s7 + $0x2c8] sm:$0xff] }
 0x876   : > { %24201 = vmatpush3.bf16.msra.mxu1 %v24200_v33  ;;  %v20021_v33 = vld [vmem:[%s30453_s7 + $0x1f8] sm:$0xff] }
 0x877   : > { %24202 = vmatprep.subr.bf16.mxu1 %v25385_v56  ;;  %v24251_v2 = vpack.c.bf16 %v20021_v33, %v20020_v59  ;;  %v20052_v33 = vld [vmem:[%s30453_s7 + $0x2d0] sm:$0xff] }
 0x87a   : > { %24204 = vmatpush3.bf16.msra.mxu1 %v24203_v40  ;;  %v20024_v40 = vld [vmem:[%s30453_s7 + $0x208] sm:$0xff] }
 0x87b   : > { %24205 = vmatprep.subr.bf16.mxu1 %v25385_v56  ;;  %v24254_v13 = vpack.c.bf16 %v20024_v40, %v20023_v34  ;;  %v20054_v40 = vld [vmem:[%s30453_s7 + $0x2e0] sm:$0xff] }
 0x87d   : > { %23508 = vmatmul.mubr.msk.f32.vlgmr.msra.gmra.mrb[8].mxu1 %vm13486_vm5, %v16843_v8  ;;  %v20026_v8 = vld [vmem:[%s30453_s7 + $0x218] sm:$0xff] }
 0x87e   : > { %24207 = vmatpush3.bf16.msra.mxu1 %v24206_v36  ;;  %23526 = vmatprep.mubr.msk.f32.mxu1 %vm25386_vm6, %v30534_v38  ;;  %v20025_v36 = vld [vmem:[%s30453_s7 + $0x210] sm:$0xff] }
 0x87f   : > { %24208 = vmatprep.subr.bf16.mxu1 %v25385_v56  ;;  %v24257_v44 = vpack.c.bf16 %v20026_v8, %v20025_v36  ;;  %v20056_v36 = vld [vmem:[%s30453_s7 + $0x2f0] sm:$0xff]  ;;  %v20057_v8 = vld [vmem:[%s30453_s7 + $0x2f8] sm:$0xff] }
 0x880   : > { %v24299_v15 = vpack.c.bf16 %v20057_v8, %v20056_v36  ;;  %v17919_v36 = vld [vmem:[%s30455_s9 + $0x30] sm:$0xff]  ;;  %v17920_v8 = vld [vmem:[%s30455_s9 + $0x38] sm:$0xff] }
 0x882   : > { %24210 = vmatpush3.bf16.msra.mxu1 %v24209_v23  ;;  %v17915_v23 = vld [vmem:[%s30455_s9 + $0x10] sm:$0xff] }
 0x883   : > { %24211 = vmatprep.subr.bf16.mxu1 %v25385_v56  ;;  %v24353_v58 = vpack.c.bf16 %v17916_v53, %v17915_v23  ;;  %v20060_v23 = vld [vmem:[%s30453_s7 + $0x308] sm:$0xff]  ;;  %v24305_v53 = vpack.c.bf16 %v20062_v45, %v20061_v57 }
 0x885   : > { %24354 = vmatpush3.bf16.msra.mxu0 %v24353_v58  ;;  %v16559_v58 = vld [vmem:[#allocation7 + $0x31] ss:$2 sm:$0xf] }
 0x886   : > { %24213 = vmatpush3.bf16.msra.mxu1 %v24212_v12  ;;  %v16541_v12 = vld [vmem:[#allocation7 + $0x28] ss:$2 sm:$0xf]  ;;  %24355 = vmatprep.subr.bf16.mxu0 %v25385_v56 }
 0x887   : > { %24214 = vmatprep.subr.bf16.mxu1 %v25385_v56 }
 0x88a   : > { %24216 = vmatpush3.bf16.msra.mxu1 %v24215_v41  ;;  %v17918_v41 = vld [vmem:[%s30455_s9 + $0x28] sm:$0xff] }
 0x88b   : > { %24217 = vmatprep.subr.bf16.mxu1 %v25385_v56  ;;  %v24356_v7 = vpack.c.bf16 %v17918_v41, %v17917_v62  ;;  %v16561_v62 = vld [vmem:[#allocation7 + $0x39] ss:$2 sm:$0xf] }
 0x88d   : > { %23527 = vmatmul.mubr.msk.f32.vlgmr.msra.gmra.mrb[8].mxu1 %vm13486_vm5, %v30006_v14  ;;  %v16567_v14 = vmax.f32 %v16541_v12, %v16557_v31  ;;  %24357 = vmatpush3.bf16.msra.mxu0 %v24356_v7  ;;  %v20063_v12 = vld [vmem:[%s30453_s7 + $0x320] sm:$0xff]  ;;  %v16543_v31 = vld [vmem:[#allocation7 + $0x30] ss:$2 sm:$0xf] }
 0x88e   : > { %24219 = vmatpush3.bf16.msra.mxu1 %v24218_v4  ;;  %23545 = vmatprep.mubr.msk.f32.mxu1 %vm25386_vm6, %v30534_v38  ;;  %v16566_v4 = vmax.f32 %v16539_v43, %v16555_v42  ;;  %v16545_v43 = vld [vmem:[#allocation7 + $0x38] ss:$2 sm:$0xf]  ;;  %v20064_v42 = vld [vmem:[%s30453_s7 + $0x328] sm:$0xff]  ;;  %v16568_v5 = vmax.f32 %v16543_v31, %v16559_v58 }
 0x88f   : > { %24220 = vmatprep.subr.bf16.mxu1 %v25385_v56  ;;  %24358 = vmatprep.subr.bf16.mxu0 %v25385_v56  ;;  %v24308_v41 = vpack.c.bf16 %v20064_v42, %v20063_v12 }
 0x892   : > { %24222 = vmatpush3.bf16.msra.mxu1 %v24221_v32  ;;  %v16572_v32 = vmax.f32 %v16566_v4, %v16567_v14  ;;  %v16569_v4 = vmax.f32 %v16545_v43, %v16561_v62 }
 0x893   : > { %24223 = vmatprep.subr.bf16.mxu1 %v25385_v56 }
 0x894   : > { %v30158_v35 = vadd.f32 %v29871_v37, %v16572_v32  ;;  %v16573_v7 = vmax.f32 %v16568_v5, %v16569_v4  ;;  %v20069_v32 = vld [vmem:[%s30453_s7 + $0x348] sm:$0xff] }
 0x896   : > { %24225 = vmatpush3.bf16.msra.mxu1 %v24224_v11  ;;  %v24266_v11 = vpack.c.bf16 %v20033_v63, %v20032_v54  ;;  %v17341_v51 = vrot.slane %v30158_v35, 1  ;;  %v17424_v59 = vrot.slane %v30158_v35, 2  ;;  %v17507_v3 = vrot.slane %v30158_v35, 3 }
 0x897   : > { %24226 = vmatprep.subr.bf16.mxu1 %v25385_v56  ;;  %v30289_v63 = vadd.f32 %v29871_v37, %v16573_v7  ;;  %v20072_v37 = vld [vmem:[%s30453_s7 + $0x360] sm:$0xff] }
 0x89a   : > { %24228 = vmatpush3.bf16.msra.mxu1 %v24227_v20  ;;  %v20035_v20 = vld [vmem:[%s30453_s7 + $0x258] sm:$0xff] }
 0x89b   : > { %24229 = vmatprep.subr.bf16.mxu1 %v25385_v56  ;;  %v24269_v19 = vpack.c.bf16 %v20035_v20, %v20034_v50  ;;  %v20073_v20 = vld [vmem:[%s30453_s7 + $0x368] sm:$0xff] }
 0x89d   : > { %23546 = vmatmul.mubr.msk.f32.vlgmr.msra.gmra.mrb[8].mxu1 %vm13486_vm5, %v17009_v24 }
 0x89e   : > { %24231 = vmatpush3.bf16.msra.mxu1 %v24230_v16  ;;  %23564 = vmatprep.mubr.msk.f32.mxu1 %vm25386_vm6, %v30534_v38  ;;  %v20037_v16 = vld [vmem:[%s30453_s7 + $0x268] sm:$0xff] }
 0x89f   : > { %24232 = vmatprep.subr.bf16.mxu1 %v25385_v56  ;;  %v24272_v24 = vpack.c.bf16 %v20037_v16, %v20036_v25  ;;  %v20074_v25 = vld [vmem:[%s30453_s7 + $0x370] sm:$0xff]  ;;  %v20075_v16 = vld [vmem:[%s30453_s7 + $0x378] sm:$0xff] }
 0x8a2   : > { %24234 = vmatpush3.bf16.msra.mxu1 %v24233_v47  ;;  %v24275_v47 = vpack.c.bf16 %v20039_v28, %v20038_v0  ;;  %v20077_v0 = vld [vmem:[%s30453_s7 + $0x380] sm:$0xff]  ;;  %v20078_v28 = vld [vmem:[%s30453_s7 + $0x388] sm:$0xff] }
 0x8a3   : > { %24235 = vmatprep.subr.bf16.mxu1 %v25385_v56 }
 0x8a6   : > { %24237 = vmatpush3.bf16.msra.mxu1 %v24236_v6  ;;  %v24278_v6 = vpack.c.bf16 %v20042_v29, %v20041_v22  ;;  %v17673_v22 = vrot.slane %v30289_v63, 1  ;;  %v20079_v29 = vld [vmem:[%s30453_s7 + $0x390] sm:$0xff] }
 0x8a7   : > { %24238 = vmatprep.subr.bf16.mxu1 %v25385_v56 }
 0x8aa   : > { %24240 = vmatpush3.bf16.msra.mxu1 %v24239_v26  ;;  %v20044_v26 = vld [vmem:[%s30453_s7 + $0x298] sm:$0xff] }
 0x8ab   : > { %24241 = vmatprep.subr.bf16.mxu1 %v25385_v56  ;;  %v24281_v21 = vpack.c.bf16 %v20044_v26, %v20043_v52  ;;  %v20081_v52 = vld [vmem:[%s30453_s7 + $0x3a0] sm:$0xff]  ;;  %v20082_v26 = vld [vmem:[%s30453_s7 + $0x3a8] sm:$0xff] }
 0x8ad   : > { %23565 = vmatmul.mubr.msk.f32.vlgmr.msra.gmra.mrb[8].mxu1 %vm13486_vm5, %v17092_v60 }
 0x8ae   : > { %24243 = vmatpush3.bf16.msra.mxu1 %v24242_v10  ;;  %23583 = vmatprep.mubr.msk.f32.mxu1 %vm25386_vm6, %v30534_v38  ;;  %v20046_v10 = vld [vmem:[%s30453_s7 + $0x2a8] sm:$0xff] }
 0x8af   : > { %24244 = vmatprep.subr.bf16.mxu1 %v25385_v56  ;;  %v24284_v60 = vpack.c.bf16 %v20046_v10, %v20045_v49  ;;  %v20083_v49 = vld [vmem:[%s30453_s7 + $0x3b0] sm:$0xff]  ;;  %v20084_v10 = vld [vmem:[%s30453_s7 + $0x3b8] sm:$0xff] }
 0x8b2   : > { %24246 = vmatpush3.bf16.msra.mxu1 %v24245_v46  ;;  %v24287_v46 = vpack.c.bf16 %v20048_v39, %v20047_v48  ;;  %v20086_v48 = vld [vmem:[%s30453_s7 + $0x3c0] sm:$0xff]  ;;  %v20087_v39 = vld [vmem:[%s30453_s7 + $0x3c8] sm:$0xff] }
 0x8b3   : > { %24247 = vmatprep.subr.bf16.mxu1 %v25385_v56 }
 0x8b6   : > { %24249 = vmatpush3.bf16.msra.mxu1 %v24248_v17  ;;  %v24290_v17 = vpack.c.bf16 %v20051_v61, %v20050_v55  ;;  %v17756_v55 = vrot.slane %v30289_v63, 2  ;;  %v20088_v61 = vld [vmem:[%s30453_s7 + $0x3d0] sm:$0xff] }
 0x8b7   : > { %24250 = vmatprep.subr.bf16.mxu1 %v25385_v56 }
 0x8ba   : > { %24252 = vmatpush3.bf16.msra.mxu1 %v24251_v2  ;;  %v20053_v2 = vld [vmem:[%s30453_s7 + $0x2d8] sm:$0xff] }
 0x8bb   : > { %24253 = vmatprep.subr.bf16.mxu1 %v25385_v56  ;;  %v24293_v34 = vpack.c.bf16 %v20053_v2, %v20052_v33  ;;  %v20090_v33 = vld [vmem:[%s30453_s7 + $0x3e0] sm:$0xff]  ;;  %v20091_v2 = vld [vmem:[%s30453_s7 + $0x3e8] sm:$0xff] }
 0x8bd   : > { %23584 = vmatmul.mubr.msk.f32.vlgmr.msra.gmra.mrb[8].mxu1 %vm13486_vm5, %v17175_v30 }
 0x8be   : > { %24255 = vmatpush3.bf16.msra.mxu1 %v24254_v13  ;;  %23602 = vmatprep.mubr.msk.f32.mxu1 %vm25386_vm6, %v30534_v38  ;;  %v20055_v13 = vld [vmem:[%s30453_s7 + $0x2e8] sm:$0xff] }
 0x8bf   : > { %24256 = vmatprep.subr.bf16.mxu1 %v25385_v56  ;;  %v24296_v30 = vpack.c.bf16 %v20055_v13, %v20054_v40  ;;  %v20092_v40 = vld [vmem:[%s30453_s7 + $0x3f0] sm:$0xff] }
 0x8c2   : > { %24258 = vmatpush3.bf16.msra.mxu1 %v24257_v44  ;;  %v24302_v44 = vpack.c.bf16 %v20060_v23, %v20059_v18 }
 0x8c3   : > { %24259 = vmatprep.subr.bf16.mxu1 %v25385_v56 }
 0x8c6   : > { %24261 = vmatpush3.bf16.msra.mxu1 %v24260_v27  ;;  %v20065_v27 = vld [vmem:[%s30453_s7 + $0x330] sm:$0xff] }
 0x8c7   : > { %24262 = vmatprep.subr.bf16.mxu1 %v25385_v56  ;;  %v24311_v14 = vpack.c.bf16 %v20066_v1, %v20065_v27 }
 0x8ca   : > { %24264 = vmatpush3.bf16.msra.mxu1 %v24263_v9  ;;  %v20068_v9 = vld [vmem:[%s30453_s7 + $0x340] sm:$0xff] }
 0x8cb   : > { %24265 = vmatprep.subr.bf16.mxu1 %v25385_v56  ;;  %v24314_v54 = vpack.c.bf16 %v20069_v32, %v20068_v9 }
 0x8cd   : > { %23603 = vmatmul.mubr.msk.f32.vlgmr.msra.gmra.mrb[8].mxu1 %vm13486_vm5, %v30158_v35  ;;  %v20071_v35 = vld [vmem:[%s30453_s7 + $0x358] sm:$0xff] }
 0x8ce   : > { %24267 = vmatpush3.bf16.msra.mxu1 %v24266_v11  ;;  %23621 = vmatprep.mubr.msk.f32.mxu1 %vm25386_vm6, %v30534_v38  ;;  %v20070_v11 = vld [vmem:[%s30453_s7 + $0x350] sm:$0xff] }
 0x8cf   : > { %24268 = vmatprep.subr.bf16.mxu1 %v25385_v56  ;;  %v24317_v50 = vpack.c.bf16 %v20071_v35, %v20070_v11 }
 0x8d2   : > { %24270 = vmatpush3.bf16.msra.mxu1 %v24269_v19  ;;  %v24320_v19 = vpack.c.bf16 %v20073_v20, %v20072_v37 }
 0x8d3   : > { %24271 = vmatprep.subr.bf16.mxu1 %v25385_v56 }
 0x8d6   : > { %24273 = vmatpush3.bf16.msra.mxu1 %v24272_v24  ;;  %v24323_v24 = vpack.c.bf16 %v20075_v16, %v20074_v25 }
 0x8d7   : > { %24274 = vmatprep.subr.bf16.mxu1 %v25385_v56 }
 0x8da   : > { %24276 = vmatpush3.bf16.msra.mxu1 %v24275_v47  ;;  %v24326_v47 = vpack.c.bf16 %v20078_v28, %v20077_v0 }
 0x8db   : > { %24277 = vmatprep.subr.bf16.mxu1 %v25385_v56 }
 0x8dd   : > { %23622 = vmatmul.mubr.msk.f32.vlgmr.msra.gmra.mrb[8].mxu1 %vm13486_vm5, %v17341_v51 }
 0x8de   : > { %24279 = vmatpush3.bf16.msra.mxu1 %v24278_v6  ;;  %23640 = vmatprep.mubr.msk.f32.mxu1 %vm25386_vm6, %v30534_v38  ;;  %v20080_v6 = vld [vmem:[%s30453_s7 + $0x398] sm:$0xff] }
 0x8df   : > { %24280 = vmatprep.subr.bf16.mxu1 %v25385_v56  ;;  %v24329_v51 = vpack.c.bf16 %v20080_v6, %v20079_v29 }
 0x8e2   : > { %24282 = vmatpush3.bf16.msra.mxu1 %v24281_v21  ;;  %v24332_v21 = vpack.c.bf16 %v20082_v26, %v20081_v52 }
 0x8e3   : > { %24283 = vmatprep.subr.bf16.mxu1 %v25385_v56 }
 0x8e6   : > { %24285 = vmatpush3.bf16.msra.mxu1 %v24284_v60  ;;  %v24335_v60 = vpack.c.bf16 %v20084_v10, %v20083_v49 }
 0x8e7   : > { %24286 = vmatprep.subr.bf16.mxu1 %v25385_v56 }
 0x8ea   : > { %24288 = vmatpush3.bf16.msra.mxu1 %v24287_v46  ;;  %v24338_v46 = vpack.c.bf16 %v20087_v39, %v20086_v48 }
 0x8eb   : > { %24289 = vmatprep.subr.bf16.mxu1 %v25385_v56 }
 0x8ed   : > { %23641 = vmatmul.mubr.msk.f32.vlgmr.msra.gmra.mrb[8].mxu1 %vm13486_vm5, %v17424_v59 }
 0x8ee   : > { %24291 = vmatpush3.bf16.msra.mxu1 %v24290_v17  ;;  %23659 = vmatprep.mubr.msk.f32.mxu1 %vm25386_vm6, %v30534_v38  ;;  %v20089_v17 = vld [vmem:[%s30453_s7 + $0x3d8] sm:$0xff] }
 0x8ef   : > { %24292 = vmatprep.subr.bf16.mxu1 %v25385_v56  ;;  %v24341_v59 = vpack.c.bf16 %v20089_v17, %v20088_v61 }
 0x8f2   : > { %24294 = vmatpush3.bf16.msra.mxu1 %v24293_v34  ;;  %v24344_v34 = vpack.c.bf16 %v20091_v2, %v20090_v33 }
 0x8f3   : > { %24295 = vmatprep.subr.bf16.mxu1 %v25385_v56 }
 0x8f6   : > { %24297 = vmatpush3.bf16.msra.mxu1 %v24296_v30  ;;  %v17839_v30 = vrot.slane %v30289_v63, 3 }
 0x8f7   : > { %24298 = vmatprep.subr.bf16.mxu1 %v25385_v56 }
 0x8fa   : > { %24300 = vmatpush3.bf16.msra.mxu1 %v24299_v15  ;;  %v24359_v15 = vpack.c.bf16 %v17920_v8, %v17919_v36 }
 0x8fb   : > { %24301 = vmatprep.subr.bf16.mxu1 %v25385_v56 }
 0x8fc   : > { %24360 = vmatpush3.bf16.msra.mxu0 %v24359_v15 }
 0x8fd   : > { %23660 = vmatmul.mubr.msk.f32.vlgmr.msra.gmra.mrb[8].mxu1 %vm13486_vm5, %v17507_v3  ;;  %v17921_v3 = vld [vmem:[%s30456_s10] sm:$0x1] }
 0x8fe   : > { %24303 = vmatpush3.bf16.msra.mxu1 %v24302_v44  ;;  %23678 = vmatprep.mubr.msk.f32.mxu1 %vm25386_vm6, %v30534_v38 }
 0x8ff   : > { %24304 = vmatprep.subr.bf16.mxu1 %v25385_v56 }
 0x902   : > { %24306 = vmatpush3.bf16.msra.mxu1 %v24305_v53 }
 0x903   : > { %24307 = vmatprep.subr.bf16.mxu1 %v25385_v56 }
 0x906   : > { %24309 = vmatpush3.bf16.msra.mxu1 %v24308_v41 }
 0x907   : > { %24310 = vmatprep.subr.bf16.mxu1 %v25385_v56 }
 0x90a   : > { %24312 = vmatpush3.bf16.msra.mxu1 %v24311_v14 }
 0x90b   : > { %24313 = vmatprep.subr.bf16.mxu1 %v25385_v56 }
 0x90d   : > { %23679 = vmatmul.mubr.msk.f32.vlgmr.msra.gmra.mrb[8].mxu1 %vm13486_vm5, %v30289_v63 }
 0x90e   : > { %24315 = vmatpush3.bf16.msra.mxu1 %v24314_v54  ;;  %23697 = vmatprep.mubr.msk.f32.mxu1 %vm25386_vm6, %v30534_v38 }
 0x90f   : > { %24316 = vmatprep.subr.bf16.mxu1 %v25385_v56 }
 0x912   : > { %24318 = vmatpush3.bf16.msra.mxu1 %v24317_v50 }
 0x913   : > { %24319 = vmatprep.subr.bf16.mxu1 %v25385_v56 }
 0x916   : > { %24321 = vmatpush3.bf16.msra.mxu1 %v24320_v19 }
 0x917   : > { %24322 = vmatprep.subr.bf16.mxu1 %v25385_v56 }
 0x91a   : > { %24324 = vmatpush3.bf16.msra.mxu1 %v24323_v24 }
 0x91b   : > { %24325 = vmatprep.subr.bf16.mxu1 %v25385_v56 }
 0x91d   : > { %23698 = vmatmul.mubr.msk.f32.vlgmr.msra.gmra.mrb[8].mxu1 %vm13486_vm5, %v17673_v22 }
 0x91e   : > { %24327 = vmatpush3.bf16.msra.mxu1 %v24326_v47  ;;  %23716 = vmatprep.mubr.msk.f32.mxu1 %vm25386_vm6, %v30534_v38 }
 0x91f   : > { %24328 = vmatprep.subr.bf16.mxu1 %v25385_v56 }
 0x922   : > { %24330 = vmatpush3.bf16.msra.mxu1 %v24329_v51 }
 0x923   : > { %24331 = vmatprep.subr.bf16.mxu1 %v25385_v56 }
 0x926   : > { %24333 = vmatpush3.bf16.msra.mxu1 %v24332_v21 }
 0x927   : > { %24334 = vmatprep.subr.bf16.mxu1 %v25385_v56 }
 0x92a   : > { %24336 = vmatpush3.bf16.msra.mxu1 %v24335_v60 }
 0x92b   : > { %24337 = vmatprep.subr.bf16.mxu1 %v25385_v56 }
 0x92d   : > { %23717 = vmatmul.mubr.msk.f32.vlgmr.msra.gmra.mrb[8].mxu1 %vm13486_vm5, %v17756_v55 }
 0x92e   : > { %24339 = vmatpush3.bf16.msra.mxu1 %v24338_v46  ;;  %23735 = vmatprep.mubr.msk.f32.mxu1 %vm25386_vm6, %v30534_v38  ;;  %v20093_v38 = vld [vmem:[%s30453_s7 + $0x3f8] sm:$0xff] }
 0x92f   : > { %24340 = vmatprep.subr.bf16.mxu1 %v25385_v56  ;;  %v24347_v13 = vpack.c.bf16 %v20093_v38, %v20092_v40 }
 0x932   : > { %24342 = vmatpush3.bf16.msra.mxu1 %v24341_v59 }
 0x933   : > { %24343 = vmatprep.subr.bf16.mxu1 %v25385_v56 }
 0x936   : > { %24345 = vmatpush3.bf16.msra.mxu1 %v24344_v34 }
 0x937   : > { %24346 = vmatprep.subr.bf16.mxu1 %v25385_v56  ;;  %v16585_v56 = vld [vmem:[%s30454_s8] sm:$0x1] }
 0x93a   : > { %24348 = vmatpush3.bf16.msra.mxu1 %v24347_v13 }
 0x93d   : > { %23736 = vmatmul.mubr.msk.f32.vlgmr.msra.gmra.mrb[8].mxu1 %vm13486_vm5, %v17839_v30 }
 0xa10   : > { %v17908_v18 = vpop.f32.mrb[8].mxu1 }
 0xa11   : > { %v25007_v23 = vadd.f32 %v17908_v18, %v16585_v56  ;;  %v23737_v44 = vpop.f32.mrb[9].mxu1 }
 0xa13   : > { %23755 = vmatmul.mubr.msk.f32.vlgmr.msra.gmra.mrb[32].mxu0 %vm13486_vm5, %v25007_v23 }
 0xae6   : > { %v17991_v57 = vpop.f32.mrb[32].mxu0 }
 0xae7   : > { %v17992_v45 = vadd.f32 %v17991_v57, %v17921_v3  ;;  %v23756_v53 = vpop.f32.mrb[33].mxu0 }
 0xae9   : > { %17996 = vst.msk [vmem:[%s26463_s30] sm:$0x1] %vm17995_vm7, %v17992_v45 }
 0xaea   : > { %25310 = shalt.err (!%p25307_p11)
}
 0xaeb   : > { %s25311_s30 = scalar_lea.hbm %s30401_s0, 16  ;;  %s25315_s24 = scalar_lea.hbm %s30457_s11, 32 }
 0xaec   : > { %p25312_p13 = scmp.ne.s32.totalorder %s30401_s0, %s25311_s30  ;;  %p25316_p5 = scmp.lt.u32.totalorder %s30401_s0, %s30457_s11 }
 0xaed   : > { %p25317_p6 = scmp.lt.u32.totalorder %s25315_s24, %s25311_s30  ;;  %p25319_p10 = scmp.lt.u32.totalorder %s25311_s30, %s30401_s0 }
 0xaee   : > { %p25313_p1 = pnand %p25312_p13, %p30536_p12 }
 0xaef   : > { %p25318_p9 = por %p25317_p6, %p25316_p5 }
 0xaf0   : > { %p25314_p0 = pneg %p25313_p1 }
 0xaf1   : > { %p25320_p2 = por %p25319_p10, %p25318_p9 }
 0xaf3   : > { %p25321_p3 = pnand %p25320_p2, %p25314_p0 }
 0xaf5   : > { %25324 = shalt.err (!%p25321_p3)
}
 0xaf6   : > { %25202 = dma.vmem_to_hbm [thread:$0]  (%p30536_p12), %s30403_s29, 16, %s30401_s0, %s17998_s1  }
 0xaf7 PF: > { %p25214_p4 = scmp.ge.s32.totalorder %s25371_s20, 2  ;;  %s18022_s26 = sand.u32 1, %s25359_s17  }
 0xaf8   : > { %p30537_p7 = scmp.ne.s32.totalorder %s30496_s28, 0  ;;  %s18023_s16 = scalar_lea.sflag [#allocation10], %s18022_s26 }
 0xafa   : > { %p25209_p8 = pnand %p25214_p4, %p30537_p7 }
 0xafc   : > { %25354 = dma.done.wait (!%p25209_p8), %s18023_s16, 16  }
 0xafd   : > { %25356 = vsyncadd (!%p25209_p8), %s18023_s16, 4294967280  ;;  %s30538_s21 = sld [smem:[#allocation14_spill]]  ;;  %p22_p11 = scmp.ge.s32.totalorder %s25473_s23, 4  }
 0xafe   : > { %s30539_s17 = smov %s25363_s18  ;;  %s30540_s18 = smov %s25367_s19 }
 0xaff   : > { %s30542_s20 = smov %s25473_s23  ;;  %24 = sbr.rel (!%p22_p11) target bundleno = 7 (0x7), region = 289 }
 0xb03   : > { %s30541_s19 = smov %s30538_s21 }
 0xb06   :  { %18027 = vsyncpa [#allocation9], 1 }
 0xb07   :  { %18029 = vsyncpa [#allocation9 + $0x1], 1 }
 0xb08   :  { %18030 = vsyncpa [#allocation10], 1 }
 0xb09   :  { %18032 = vsyncpa [#allocation10 + $0x1], 1 }

</bundles_post_ra>
